<compile_context>
chip_gen: v5e
topology: v5e:2x2
jax: 0.10.0
libtpu: 0.0.40
codegen_flags: <defaults>
</compile_context>

<pallas_src>
import functools

import jax
import jax.numpy as jnp
from jax import lax
from jax.experimental import pallas as pl
from jax.experimental.pallas import tpu as pltpu

# --- small model config consistent with the module's forward ---
IMG = 16              # img_size
PATCH = 4             # patch_size
IN_C = 3              # in_c
EMBED = 64            # embed_dim
DEPTH = 2             # depth
HEADS = 4             # num_heads
MLP_RATIO = 4
NUM_CLASSES = 5
HEAD_PAD = 128        # lane-dense padded head width (sliced to NUM_CLASSES outside)
NUM_PATCHES = (IMG // PATCH) ** 2
TOKENS = NUM_PATCHES + 1          # +1 cls token (no distillation)
N_PAD = 24                        # tokens padded to a multiple of 8 (sublane aligned)
HEAD_DIM = EMBED // HEADS
HIDDEN = EMBED * MLP_RATIO
PATCH_IN = IN_C * PATCH * PATCH   # 48
PATCH_IN_PAD = 64                 # lane-friendly padded patch-row width
EPS = 1e-6                        # norm_layer = partial(LayerNorm, eps=1e-6)


# ---------------------------- fused Pallas kernel ----------------------------
def _vit_kernel(
    # inputs
    patches_ref, base_ref, patch_w_ref,
    ln1_g_ref, ln1_b_ref,
    wq_ref, wk_ref, wv_ref, bq_ref, bk_ref, bv_ref,
    wo_ref, bo_ref,
    ln2_g_ref, ln2_b_ref,
    fc1_w_ref, fc1_b_ref, fc2_w_ref, fc2_b_ref,
    norm_g_ref, norm_b_ref, head_w_ref, head_b_ref,
    # output
    out_ref,
    *, batch, eps):
  B = batch
  N = N_PAD
  E = EMBED
  Dh = HEAD_DIM
  R = B * N
  scale = Dh ** -0.5

  def layernorm(v, g, b):
    mean = jnp.mean(v, axis=-1, keepdims=True)
    var = jnp.mean(jnp.square(v - mean), axis=-1, keepdims=True)
    return (v - mean) * lax.rsqrt(var + eps) * g + b

  # Additive attention bias masking padded key columns (col >= TOKENS).
  col_ids = lax.broadcasted_iota(jnp.int32, (1, 1, N), 2)
  key_bias = jnp.where(col_ids >= TOKENS, -1e30, 0.0).astype(jnp.float32)

  # ---- patch embedding + cls/pos assembly: one matmul + one add ----
  # patches rows are zero for cls/pad slots, so the matmul contributes nothing
  # there; `base` carries cls+pos / pos+patch_bias / zeros.
  x = jnp.dot(patches_ref[...], patch_w_ref[...],
              preferred_element_type=jnp.float32) + base_ref[...]       # (R, E) f32

  # ---- transformer blocks (statically unrolled over DEPTH) ----
  for d in range(DEPTH):
    # --- attention branch: x = x + proj(attn(norm1(x))) ---
    h = layernorm(x, ln1_g_ref[d], ln1_b_ref[d]).astype(jnp.bfloat16)   # (R, E)
    attn = jnp.zeros((R, E), jnp.float32)
    for hh in range(HEADS):
      w = d * HEADS + hh
      q = jnp.dot(h, wq_ref[w], preferred_element_type=jnp.float32) + bq_ref[w]
      k = jnp.dot(h, wk_ref[w], preferred_element_type=jnp.float32) + bk_ref[w]
      v = jnp.dot(h, wv_ref[w], preferred_element_type=jnp.float32) + bv_ref[w]
      q3 = q.reshape(B, N, Dh).astype(jnp.bfloat16)
      k3 = k.reshape(B, N, Dh).astype(jnp.bfloat16)
      v3 = v.reshape(B, N, Dh).astype(jnp.bfloat16)
      s = jnp.einsum('bqd,bkd->bqk', q3, k3,
                     preferred_element_type=jnp.float32) * scale + key_bias
      s = s - jnp.max(s, axis=-1, keepdims=True)
      p = jnp.exp(s)
      p = p * pl.reciprocal(jnp.sum(p, axis=-1, keepdims=True), approx=True)
      o = jnp.einsum('bqk,bkd->bqd', p.astype(jnp.bfloat16), v3,
                     preferred_element_type=jnp.float32)                # (B, N, Dh)
      # fold the head output straight into the output projection:
      # proj(concat_h o_h) == sum_h o_h @ Wo[h*Dh:(h+1)*Dh, :]
      attn = attn + jnp.dot(o.reshape(R, Dh).astype(jnp.bfloat16), wo_ref[w],
                            preferred_element_type=jnp.float32)
    x = x + attn + bo_ref[d]

    # --- MLP branch: x = x + fc2(gelu(fc1(norm2(x)))) ---
    h = layernorm(x, ln2_g_ref[d], ln2_b_ref[d]).astype(jnp.bfloat16)
    h = jnp.dot(h, fc1_w_ref[d],
                preferred_element_type=jnp.float32) + fc1_b_ref[d]
    # TODO(synk): PyTorch nn.GELU uses exact erf GELU; tanh approximation used here.
    h = jax.nn.gelu(h, approximate=True).astype(jnp.bfloat16)
    h = jnp.dot(h, fc2_w_ref[d],
                preferred_element_type=jnp.float32) + fc2_b_ref[d]
    x = x + h

  # ---- final LayerNorm + classification head on the cls rows only ----
  cls = jnp.concatenate([x[b * N:b * N + 1, :] for b in range(B)], axis=0)  # (B, E)
  cls = layernorm(cls, norm_g_ref[...], norm_b_ref[...])
  logits = jnp.dot(cls.astype(jnp.bfloat16), head_w_ref[...],
                   preferred_element_type=jnp.float32) + head_b_ref[...]
  out_ref[...] = logits.astype(out_ref.dtype)                  # single (B, 128) store


def _fused_vit_call(patches, base, params, batch):
  kernel = functools.partial(_vit_kernel, batch=batch, eps=EPS)
  vmem = pl.BlockSpec(memory_space=pltpu.MemorySpace.VMEM)
  args = (
      patches, base, params["patch_w"],
      params["ln1_g"], params["ln1_b"],
      params["wq"], params["wk"], params["wv"],
      params["bq"], params["bk"], params["bv"],
      params["wo"], params["bo"],
      params["ln2_g"], params["ln2_b"],
      params["fc1_w"], params["fc1_b"],
      params["fc2_w"], params["fc2_b"],
      params["norm_g"], params["norm_b"],
      params["head_w"], params["head_b"],
  )
  return pl.pallas_call(
      kernel,
      out_shape=jax.ShapeDtypeStruct((batch, HEAD_PAD), jnp.float32),
      in_specs=[vmem] * len(args),
      out_specs=vmem,
  )(*args)


# ---------------------------- parameter init ----------------------------
def _trunc_normal(key, shape, std):
  return (std * jax.random.truncated_normal(key, -2.0, 2.0, shape)).astype(jnp.float32)


def init_params(key):
  ks = iter(jax.random.split(key, 8))
  params = {
      "pos_embed": _trunc_normal(next(ks), (TOKENS, EMBED), 0.02),
      "cls_token": _trunc_normal(next(ks), (1, EMBED), 0.02),
  }
  # PatchEmbed conv weight (EMBED, IN_C, p, p), kaiming_normal(fan_out), bias zero.
  fan_out = EMBED * PATCH * PATCH
  conv_w = jax.random.normal(next(ks), (EMBED, IN_C, PATCH, PATCH)) * jnp.sqrt(2.0 / fan_out)
  pw = conv_w.reshape(EMBED, PATCH_IN).T                        # (48, EMBED)
  pw = jnp.pad(pw, ((0, PATCH_IN_PAD - PATCH_IN), (0, 0)))      # zero-pad rows to 64
  params["patch_w"] = pw.astype(jnp.bfloat16)
  params["patch_b"] = jnp.zeros((1, EMBED), jnp.float32)        # folded into `base` slab

  qkv_keys = jax.random.split(next(ks), DEPTH)
  proj_keys = jax.random.split(next(ks), DEPTH)
  mlp_keys = jax.random.split(next(ks), DEPTH)
  head_key = next(ks)

  # Per-head split of QKV / projection weights, stacked on a leading (DEPTH*HEADS) axis.
  wq, wk, wv, wo = [], [], [], []
  fc1, fc2 = [], []
  for d in range(DEPTH):
    W = _trunc_normal(qkv_keys[d], (EMBED, 3 * EMBED), 0.01)    # x @ W layout
    Wp = _trunc_normal(proj_keys[d], (EMBED, EMBED), 0.01)
    k1, k2 = jax.random.split(mlp_keys[d])
    fc1.append(_trunc_normal(k1, (EMBED, HIDDEN), 0.01))
    fc2.append(_trunc_normal(k2, (HIDDEN, EMBED), 0.01))
    for h in range(HEADS):
      c = h * HEAD_DIM
      wq.append(W[:, c:c + HEAD_DIM])
      wk.append(W[:, EMBED + c:EMBED + c + HEAD_DIM])
      wv.append(W[:, 2 * EMBED + c:2 * EMBED + c + HEAD_DIM])
      wo.append(Wp[c:c + HEAD_DIM, :])

  params["wq"] = jnp.stack(wq).astype(jnp.bfloat16)             # (DEPTH*HEADS, E, Dh)
  params["wk"] = jnp.stack(wk).astype(jnp.bfloat16)
  params["wv"] = jnp.stack(wv).astype(jnp.bfloat16)
  params["wo"] = jnp.stack(wo).astype(jnp.bfloat16)             # (DEPTH*HEADS, Dh, E)
  params["bq"] = jnp.zeros((DEPTH * HEADS, 1, HEAD_DIM), jnp.float32)  # qkv_bias=True
  params["bk"] = jnp.zeros((DEPTH * HEADS, 1, HEAD_DIM), jnp.float32)
  params["bv"] = jnp.zeros((DEPTH * HEADS, 1, HEAD_DIM), jnp.float32)
  params["bo"] = jnp.zeros((DEPTH, 1, EMBED), jnp.float32)

  params["ln1_g"] = jnp.ones((DEPTH, 1, EMBED), jnp.float32)
  params["ln1_b"] = jnp.zeros((DEPTH, 1, EMBED), jnp.float32)
  params["ln2_g"] = jnp.ones((DEPTH, 1, EMBED), jnp.float32)
  params["ln2_b"] = jnp.zeros((DEPTH, 1, EMBED), jnp.float32)

  params["fc1_w"] = jnp.stack(fc1).astype(jnp.bfloat16)         # (DEPTH, E, HIDDEN)
  params["fc1_b"] = jnp.zeros((DEPTH, 1, HIDDEN), jnp.float32)
  params["fc2_w"] = jnp.stack(fc2).astype(jnp.bfloat16)         # (DEPTH, HIDDEN, E)
  params["fc2_b"] = jnp.zeros((DEPTH, 1, EMBED), jnp.float32)

  params["norm_g"] = jnp.ones((1, EMBED), jnp.float32)
  params["norm_b"] = jnp.zeros((1, EMBED), jnp.float32)

  # head padded to 128 lanes (lane-dense output store); sliced to NUM_CLASSES outside
  head_w = _trunc_normal(head_key, (EMBED, NUM_CLASSES), 0.01)
  params["head_w"] = (jnp.zeros((EMBED, HEAD_PAD), jnp.float32)
                      .at[:, :NUM_CLASSES].set(head_w).astype(jnp.bfloat16))
  params["head_b"] = jnp.zeros((1, HEAD_PAD), jnp.float32)
  return params


# ---------------------------- forward pass ----------------------------
def vit_forward(params, x_nchw):
  B, C, H, W = x_nchw.shape
  p = PATCH
  gh, gw = H // p, W // p

  # PatchEmbed layout: stride==kernel conv -> flattened-patch rows (pure XLA layout).
  patches = x_nchw.reshape(B, C, gh, p, gw, p).transpose(0, 2, 4, 1, 3, 5)
  patches = patches.reshape(B, gh * gw, C * p * p)
  # pad: 1 leading zero row per image (cls slot), pad rows to N_PAD, lanes 48 -> 64
  patches = jnp.pad(patches, ((0, 0), (1, N_PAD - 1 - NUM_PATCHES),
                              (0, PATCH_IN_PAD - PATCH_IN)))
  patches = patches.reshape(B * N_PAD, PATCH_IN_PAD).astype(jnp.bfloat16)

  # base slab: row 0 = cls + pos[0]; rows 1..NP = pos[1:] + conv bias; pad rows = 0
  base_one = jnp.zeros((N_PAD, EMBED), jnp.float32)
  base_one = base_one.at[0].set(params["cls_token"][0] + params["pos_embed"][0])
  base_one = base_one.at[1:TOKENS].set(params["pos_embed"][1:TOKENS] + params["patch_b"])
  base = jnp.tile(base_one, (B, 1))                             # (B*N_PAD, EMBED)

  # single fused Pallas kernel for the whole transformer forward
  logits_padded = _fused_vit_call(patches, base, params, B)     # (B, HEAD_PAD)
  return logits_padded[:, :NUM_CLASSES]


if __name__ == "__main__":
  key = jax.random.PRNGKey(0)
  pkey, xkey = jax.random.split(key)
  params = init_params(pkey)
  x = jax.random.normal(xkey, (2, IN_C, IMG, IMG), dtype=jnp.float32)  # NCHW

  logits = jax.jit(vit_forward)(params, x)
  logits = jax.block_until_ready(logits)

  assert logits.shape == (2, NUM_CLASSES), logits.shape
  assert bool(jnp.all(jnp.isfinite(logits)))
  print("KERNEL_OK")
</pallas_src>

<mosaic_0001>
module attributes {stable_mosaic.version = 11 : i64} {
  func.func @_vit_kernel(%arg0: memref<48x64xbf16, #tpu.memory_space<vmem>>, %arg1: memref<48x64xf32, #tpu.memory_space<vmem>>, %arg2: memref<64x64xbf16, #tpu.memory_space<vmem>>, %arg3: memref<2x1x64xf32, #tpu.memory_space<vmem>>, %arg4: memref<2x1x64xf32, #tpu.memory_space<vmem>>, %arg5: memref<8x64x16xbf16, #tpu.memory_space<vmem>>, %arg6: memref<8x64x16xbf16, #tpu.memory_space<vmem>>, %arg7: memref<8x64x16xbf16, #tpu.memory_space<vmem>>, %arg8: memref<8x1x16xf32, #tpu.memory_space<vmem>>, %arg9: memref<8x1x16xf32, #tpu.memory_space<vmem>>, %arg10: memref<8x1x16xf32, #tpu.memory_space<vmem>>, %arg11: memref<8x16x64xbf16, #tpu.memory_space<vmem>>, %arg12: memref<2x1x64xf32, #tpu.memory_space<vmem>>, %arg13: memref<2x1x64xf32, #tpu.memory_space<vmem>>, %arg14: memref<2x1x64xf32, #tpu.memory_space<vmem>>, %arg15: memref<2x64x256xbf16, #tpu.memory_space<vmem>>, %arg16: memref<2x1x256xf32, #tpu.memory_space<vmem>>, %arg17: memref<2x256x64xbf16, #tpu.memory_space<vmem>>, %arg18: memref<2x1x64xf32, #tpu.memory_space<vmem>>, %arg19: memref<1x64xf32, #tpu.memory_space<vmem>>, %arg20: memref<1x64xf32, #tpu.memory_space<vmem>>, %arg21: memref<64x128xbf16, #tpu.memory_space<vmem>>, %arg22: memref<1x128xf32, #tpu.memory_space<vmem>>, %arg23: memref<2x128xf32, #tpu.memory_space<vmem>>) attributes {dimension_semantics = [], scalar_prefetch = 0 : i64, scratch_operands = 0 : i64, tpu.core_type = #tpu.core_type<tc>} {
    %0 = tpu.iota {dimensions = array<i32: 2>} : vector<1x1x24xi32>
    %c17_i32 = arith.constant 17 : i32
    %1 = vector.broadcast %c17_i32 : i32 to vector<1x1x24xi32>
    %2 = arith.cmpi sge, %0, %1 : vector<1x1x24xi32>
    %cst = arith.constant -1.000000e+30 : f32
    %cst_0 = arith.constant 0.000000e+00 : f32
    %3 = vector.broadcast %cst : f32 to vector<1x1x24xf32>
    %4 = vector.broadcast %cst_0 : f32 to vector<1x1x24xf32>
    %5 = arith.select %2, %3, %4 : vector<1x1x24xi1>, vector<1x1x24xf32>
    %c0 = arith.constant 0 : index
    %c0_1 = arith.constant 0 : index
    %6 = vector.load %arg0[%c0, %c0_1] : memref<48x64xbf16, #tpu.memory_space<vmem>>, vector<48x64xbf16>
    %c0_2 = arith.constant 0 : index
    %c0_3 = arith.constant 0 : index
    %7 = vector.load %arg2[%c0_2, %c0_3] : memref<64x64xbf16, #tpu.memory_space<vmem>>, vector<64x64xbf16>
    %cst_4 = arith.constant dense<0.000000e+00> : vector<48x64xf32>
    %8 = tpu.matmul %6, %7, %cst_4 {dimension_numbers = #tpu.dot_dimension_numbers<[1], [0], [0], [1], [0, 0, 1, 1], [], []>} : vector<48x64xbf16>, vector<64x64xbf16>, vector<48x64xf32> -> vector<48x64xf32>
    %c0_5 = arith.constant 0 : index
    %c0_6 = arith.constant 0 : index
    %9 = vector.load %arg1[%c0_5, %c0_6] : memref<48x64xf32, #tpu.memory_space<vmem>>, vector<48x64xf32>
    %10 = arith.addf %8, %9 : vector<48x64xf32>
    %c0_7 = arith.constant 0 : index
    %c0_8 = arith.constant 0 : index
    %c0_9 = arith.constant 0 : index
    %11 = vector.load %arg3[%c0_7, %c0_8, %c0_9] : memref<2x1x64xf32, #tpu.memory_space<vmem>>, vector<1x1x64xf32>
    %12 = vector.shape_cast %11 : vector<1x1x64xf32> to vector<1x64xf32>
    %c0_10 = arith.constant 0 : index
    %c0_11 = arith.constant 0 : index
    %c0_12 = arith.constant 0 : index
    %13 = vector.load %arg4[%c0_10, %c0_11, %c0_12] : memref<2x1x64xf32, #tpu.memory_space<vmem>>, vector<1x1x64xf32>
    %14 = vector.shape_cast %13 : vector<1x1x64xf32> to vector<1x64xf32>
    %cst_13 = arith.constant dense<0.000000e+00> : vector<48xf32>
    %15 = vector.multi_reduction <add>, %10, %cst_13 [1] : vector<48x64xf32> to vector<48xf32>
    %16 = vector.shape_cast %15 : vector<48xf32> to vector<48x1xf32>
    %cst_14 = arith.constant 6.400000e+01 : f32
    %17 = vector.broadcast %cst_14 : f32 to vector<48x1xf32>
    %18 = arith.divf %16, %17 : vector<48x1xf32>
    %19 = vector.broadcast %18 : vector<48x1xf32> to vector<48x64xf32>
    %20 = arith.subf %10, %19 : vector<48x64xf32>
    %21 = arith.mulf %20, %20 : vector<48x64xf32>
    %cst_15 = arith.constant dense<0.000000e+00> : vector<48xf32>
    %22 = vector.multi_reduction <add>, %21, %cst_15 [1] : vector<48x64xf32> to vector<48xf32>
    %23 = vector.shape_cast %22 : vector<48xf32> to vector<48x1xf32>
    %cst_16 = arith.constant 6.400000e+01 : f32
    %24 = vector.broadcast %cst_16 : f32 to vector<48x1xf32>
    %25 = arith.divf %23, %24 : vector<48x1xf32>
    %26 = vector.broadcast %18 : vector<48x1xf32> to vector<48x64xf32>
    %27 = arith.subf %10, %26 : vector<48x64xf32>
    %cst_17 = arith.constant 9.99999997E-7 : f32
    %28 = vector.broadcast %cst_17 : f32 to vector<48x1xf32>
    %29 = arith.addf %25, %28 : vector<48x1xf32>
    %30 = math.rsqrt %29 : vector<48x1xf32>
    %31 = vector.broadcast %30 : vector<48x1xf32> to vector<48x64xf32>
    %32 = arith.mulf %27, %31 : vector<48x64xf32>
    %33 = vector.broadcast %12 : vector<1x64xf32> to vector<48x64xf32>
    %34 = arith.mulf %32, %33 : vector<48x64xf32>
    %35 = vector.broadcast %14 : vector<1x64xf32> to vector<48x64xf32>
    %36 = arith.addf %34, %35 : vector<48x64xf32>
    %37 = arith.truncf %36 : vector<48x64xf32> to vector<48x64xbf16>
    %cst_18 = arith.constant 0.000000e+00 : f32
    %38 = vector.broadcast %cst_18 : f32 to vector<48x64xf32>
    %c0_19 = arith.constant 0 : index
    %c0_20 = arith.constant 0 : index
    %c0_21 = arith.constant 0 : index
    %39 = vector.load %arg5[%c0_19, %c0_20, %c0_21] : memref<8x64x16xbf16, #tpu.memory_space<vmem>>, vector<1x64x16xbf16>
    %40 = vector.shape_cast %39 : vector<1x64x16xbf16> to vector<64x16xbf16>
    %cst_22 = arith.constant dense<0.000000e+00> : vector<48x16xf32>
    %41 = tpu.matmul %37, %40, %cst_22 {dimension_numbers = #tpu.dot_dimension_numbers<[1], [0], [0], [1], [0, 0, 1, 1], [], []>} : vector<48x64xbf16>, vector<64x16xbf16>, vector<48x16xf32> -> vector<48x16xf32>
    %c0_23 = arith.constant 0 : index
    %c0_24 = arith.constant 0 : index
    %c0_25 = arith.constant 0 : index
    %42 = vector.load %arg8[%c0_23, %c0_24, %c0_25] : memref<8x1x16xf32, #tpu.memory_space<vmem>>, vector<1x1x16xf32>
    %43 = vector.shape_cast %42 : vector<1x1x16xf32> to vector<1x16xf32>
    %44 = vector.broadcast %43 : vector<1x16xf32> to vector<48x16xf32>
    %45 = arith.addf %41, %44 : vector<48x16xf32>
    %c0_26 = arith.constant 0 : index
    %c0_27 = arith.constant 0 : index
    %c0_28 = arith.constant 0 : index
    %46 = vector.load %arg6[%c0_26, %c0_27, %c0_28] : memref<8x64x16xbf16, #tpu.memory_space<vmem>>, vector<1x64x16xbf16>
    %47 = vector.shape_cast %46 : vector<1x64x16xbf16> to vector<64x16xbf16>
    %cst_29 = arith.constant dense<0.000000e+00> : vector<48x16xf32>
    %48 = tpu.matmul %37, %47, %cst_29 {dimension_numbers = #tpu.dot_dimension_numbers<[1], [0], [0], [1], [0, 0, 1, 1], [], []>} : vector<48x64xbf16>, vector<64x16xbf16>, vector<48x16xf32> -> vector<48x16xf32>
    %c0_30 = arith.constant 0 : index
    %c0_31 = arith.constant 0 : index
    %c0_32 = arith.constant 0 : index
    %49 = vector.load %arg9[%c0_30, %c0_31, %c0_32] : memref<8x1x16xf32, #tpu.memory_space<vmem>>, vector<1x1x16xf32>
    %50 = vector.shape_cast %49 : vector<1x1x16xf32> to vector<1x16xf32>
    %51 = vector.broadcast %50 : vector<1x16xf32> to vector<48x16xf32>
    %52 = arith.addf %48, %51 : vector<48x16xf32>
    %c0_33 = arith.constant 0 : index
    %c0_34 = arith.constant 0 : index
    %c0_35 = arith.constant 0 : index
    %53 = vector.load %arg7[%c0_33, %c0_34, %c0_35] : memref<8x64x16xbf16, #tpu.memory_space<vmem>>, vector<1x64x16xbf16>
    %54 = vector.shape_cast %53 : vector<1x64x16xbf16> to vector<64x16xbf16>
    %cst_36 = arith.constant dense<0.000000e+00> : vector<48x16xf32>
    %55 = tpu.matmul %37, %54, %cst_36 {dimension_numbers = #tpu.dot_dimension_numbers<[1], [0], [0], [1], [0, 0, 1, 1], [], []>} : vector<48x64xbf16>, vector<64x16xbf16>, vector<48x16xf32> -> vector<48x16xf32>
    %c0_37 = arith.constant 0 : index
    %c0_38 = arith.constant 0 : index
    %c0_39 = arith.constant 0 : index
    %56 = vector.load %arg10[%c0_37, %c0_38, %c0_39] : memref<8x1x16xf32, #tpu.memory_space<vmem>>, vector<1x1x16xf32>
    %57 = vector.shape_cast %56 : vector<1x1x16xf32> to vector<1x16xf32>
    %58 = vector.broadcast %57 : vector<1x16xf32> to vector<48x16xf32>
    %59 = arith.addf %55, %58 : vector<48x16xf32>
    %60 = vector.shape_cast %45 : vector<48x16xf32> to vector<2x24x16xf32>
    %61 = arith.truncf %60 : vector<2x24x16xf32> to vector<2x24x16xbf16>
    %62 = vector.shape_cast %52 : vector<48x16xf32> to vector<2x24x16xf32>
    %63 = arith.truncf %62 : vector<2x24x16xf32> to vector<2x24x16xbf16>
    %64 = vector.shape_cast %59 : vector<48x16xf32> to vector<2x24x16xf32>
    %65 = arith.truncf %64 : vector<2x24x16xf32> to vector<2x24x16xbf16>
    "tpu.trace_start"() <{level = 10 : i32, message = "bqd,bkd->bqk"}> : () -> ()
    %cst_40 = arith.constant dense<0.000000e+00> : vector<2x24x24xf32>
    %66 = tpu.matmul %61, %63, %cst_40 {dimension_numbers = #tpu.dot_dimension_numbers<[2], [2], [1], [1], [0, 0, 0, 1, 1, 1], [0], [0]>} : vector<2x24x16xbf16>, vector<2x24x16xbf16>, vector<2x24x24xf32> -> vector<2x24x24xf32>
    "tpu.trace_stop"() : () -> ()
    %cst_41 = arith.constant 2.500000e-01 : f32
    %67 = vector.broadcast %cst_41 : f32 to vector<2x24x24xf32>
    %68 = arith.mulf %66, %67 : vector<2x24x24xf32>
    %69 = vector.broadcast %5 : vector<1x1x24xf32> to vector<2x24x24xf32>
    %70 = arith.addf %68, %69 : vector<2x24x24xf32>
    %cst_42 = arith.constant dense<0xFF800000> : vector<2x24xf32>
    %71 = vector.multi_reduction <maximumf>, %70, %cst_42 [2] : vector<2x24x24xf32> to vector<2x24xf32>
    %72 = vector.shape_cast %71 : vector<2x24xf32> to vector<2x24x1xf32>
    %73 = vector.broadcast %72 : vector<2x24x1xf32> to vector<2x24x24xf32>
    %74 = arith.subf %70, %73 : vector<2x24x24xf32>
    %75 = math.exp %74 : vector<2x24x24xf32>
    %cst_43 = arith.constant dense<0.000000e+00> : vector<2x24xf32>
    %76 = vector.multi_reduction <add>, %75, %cst_43 [2] : vector<2x24x24xf32> to vector<2x24xf32>
    %77 = vector.shape_cast %76 : vector<2x24xf32> to vector<2x24x1xf32>
    %78 = tpu.reciprocal %77 {approx = true} : vector<2x24x1xf32> -> vector<2x24x1xf32>
    %79 = vector.broadcast %78 : vector<2x24x1xf32> to vector<2x24x24xf32>
    %80 = arith.mulf %75, %79 : vector<2x24x24xf32>
    %81 = arith.truncf %80 : vector<2x24x24xf32> to vector<2x24x24xbf16>
    "tpu.trace_start"() <{level = 10 : i32, message = "bqk,bkd->bqd"}> : () -> ()
    %cst_44 = arith.constant dense<0.000000e+00> : vector<2x24x16xf32>
    %82 = tpu.matmul %81, %65, %cst_44 {dimension_numbers = #tpu.dot_dimension_numbers<[2], [1], [1], [2], [0, 0, 0, 1, 1, 2], [0], [0]>} : vector<2x24x24xbf16>, vector<2x24x16xbf16>, vector<2x24x16xf32> -> vector<2x24x16xf32>
    "tpu.trace_stop"() : () -> ()
    %83 = vector.shape_cast %82 : vector<2x24x16xf32> to vector<48x16xf32>
    %84 = arith.truncf %83 : vector<48x16xf32> to vector<48x16xbf16>
    %c0_45 = arith.constant 0 : index
    %c0_46 = arith.constant 0 : index
    %c0_47 = arith.constant 0 : index
    %85 = vector.load %arg11[%c0_45, %c0_46, %c0_47] : memref<8x16x64xbf16, #tpu.memory_space<vmem>>, vector<1x16x64xbf16>
    %86 = vector.shape_cast %85 : vector<1x16x64xbf16> to vector<16x64xbf16>
    %cst_48 = arith.constant dense<0.000000e+00> : vector<48x64xf32>
    %87 = tpu.matmul %84, %86, %cst_48 {dimension_numbers = #tpu.dot_dimension_numbers<[1], [0], [0], [1], [0, 0, 1, 1], [], []>} : vector<48x16xbf16>, vector<16x64xbf16>, vector<48x64xf32> -> vector<48x64xf32>
    %88 = arith.addf %38, %87 : vector<48x64xf32>
    %c1 = arith.constant 1 : index
    %c0_49 = arith.constant 0 : index
    %c0_50 = arith.constant 0 : index
    %89 = vector.load %arg5[%c1, %c0_49, %c0_50] : memref<8x64x16xbf16, #tpu.memory_space<vmem>>, vector<1x64x16xbf16>
    %90 = vector.shape_cast %89 : vector<1x64x16xbf16> to vector<64x16xbf16>
    %cst_51 = arith.constant dense<0.000000e+00> : vector<48x16xf32>
    %91 = tpu.matmul %37, %90, %cst_51 {dimension_numbers = #tpu.dot_dimension_numbers<[1], [0], [0], [1], [0, 0, 1, 1], [], []>} : vector<48x64xbf16>, vector<64x16xbf16>, vector<48x16xf32> -> vector<48x16xf32>
    %c1_52 = arith.constant 1 : index
    %c0_53 = arith.constant 0 : index
    %c0_54 = arith.constant 0 : index
    %92 = vector.load %arg8[%c1_52, %c0_53, %c0_54] : memref<8x1x16xf32, #tpu.memory_space<vmem>>, vector<1x1x16xf32>
    %93 = vector.shape_cast %92 : vector<1x1x16xf32> to vector<1x16xf32>
    %94 = vector.broadcast %93 : vector<1x16xf32> to vector<48x16xf32>
    %95 = arith.addf %91, %94 : vector<48x16xf32>
    %c1_55 = arith.constant 1 : index
    %c0_56 = arith.constant 0 : index
    %c0_57 = arith.constant 0 : index
    %96 = vector.load %arg6[%c1_55, %c0_56, %c0_57] : memref<8x64x16xbf16, #tpu.memory_space<vmem>>, vector<1x64x16xbf16>
    %97 = vector.shape_cast %96 : vector<1x64x16xbf16> to vector<64x16xbf16>
    %cst_58 = arith.constant dense<0.000000e+00> : vector<48x16xf32>
    %98 = tpu.matmul %37, %97, %cst_58 {dimension_numbers = #tpu.dot_dimension_numbers<[1], [0], [0], [1], [0, 0, 1, 1], [], []>} : vector<48x64xbf16>, vector<64x16xbf16>, vector<48x16xf32> -> vector<48x16xf32>
    %c1_59 = arith.constant 1 : index
    %c0_60 = arith.constant 0 : index
    %c0_61 = arith.constant 0 : index
    %99 = vector.load %arg9[%c1_59, %c0_60, %c0_61] : memref<8x1x16xf32, #tpu.memory_space<vmem>>, vector<1x1x16xf32>
    %100 = vector.shape_cast %99 : vector<1x1x16xf32> to vector<1x16xf32>
    %101 = vector.broadcast %100 : vector<1x16xf32> to vector<48x16xf32>
    %102 = arith.addf %98, %101 : vector<48x16xf32>
    %c1_62 = arith.constant 1 : index
    %c0_63 = arith.constant 0 : index
    %c0_64 = arith.constant 0 : index
    %103 = vector.load %arg7[%c1_62, %c0_63, %c0_64] : memref<8x64x16xbf16, #tpu.memory_space<vmem>>, vector<1x64x16xbf16>
    %104 = vector.shape_cast %103 : vector<1x64x16xbf16> to vector<64x16xbf16>
    %cst_65 = arith.constant dense<0.000000e+00> : vector<48x16xf32>
    %105 = tpu.matmul %37, %104, %cst_65 {dimension_numbers = #tpu.dot_dimension_numbers<[1], [0], [0], [1], [0, 0, 1, 1], [], []>} : vector<48x64xbf16>, vector<64x16xbf16>, vector<48x16xf32> -> vector<48x16xf32>
    %c1_66 = arith.constant 1 : index
    %c0_67 = arith.constant 0 : index
    %c0_68 = arith.constant 0 : index
    %106 = vector.load %arg10[%c1_66, %c0_67, %c0_68] : memref<8x1x16xf32, #tpu.memory_space<vmem>>, vector<1x1x16xf32>
    %107 = vector.shape_cast %106 : vector<1x1x16xf32> to vector<1x16xf32>
    %108 = vector.broadcast %107 : vector<1x16xf32> to vector<48x16xf32>
    %109 = arith.addf %105, %108 : vector<48x16xf32>
    %110 = vector.shape_cast %95 : vector<48x16xf32> to vector<2x24x16xf32>
    %111 = arith.truncf %110 : vector<2x24x16xf32> to vector<2x24x16xbf16>
    %112 = vector.shape_cast %102 : vector<48x16xf32> to vector<2x24x16xf32>
    %113 = arith.truncf %112 : vector<2x24x16xf32> to vector<2x24x16xbf16>
    %114 = vector.shape_cast %109 : vector<48x16xf32> to vector<2x24x16xf32>
    %115 = arith.truncf %114 : vector<2x24x16xf32> to vector<2x24x16xbf16>
    "tpu.trace_start"() <{level = 10 : i32, message = "bqd,bkd->bqk"}> : () -> ()
    %cst_69 = arith.constant dense<0.000000e+00> : vector<2x24x24xf32>
    %116 = tpu.matmul %111, %113, %cst_69 {dimension_numbers = #tpu.dot_dimension_numbers<[2], [2], [1], [1], [0, 0, 0, 1, 1, 1], [0], [0]>} : vector<2x24x16xbf16>, vector<2x24x16xbf16>, vector<2x24x24xf32> -> vector<2x24x24xf32>
    "tpu.trace_stop"() : () -> ()
    %cst_70 = arith.constant 2.500000e-01 : f32
    %117 = vector.broadcast %cst_70 : f32 to vector<2x24x24xf32>
    %118 = arith.mulf %116, %117 : vector<2x24x24xf32>
    %119 = vector.broadcast %5 : vector<1x1x24xf32> to vector<2x24x24xf32>
    %120 = arith.addf %118, %119 : vector<2x24x24xf32>
    %cst_71 = arith.constant dense<0xFF800000> : vector<2x24xf32>
    %121 = vector.multi_reduction <maximumf>, %120, %cst_71 [2] : vector<2x24x24xf32> to vector<2x24xf32>
    %122 = vector.shape_cast %121 : vector<2x24xf32> to vector<2x24x1xf32>
    %123 = vector.broadcast %122 : vector<2x24x1xf32> to vector<2x24x24xf32>
    %124 = arith.subf %120, %123 : vector<2x24x24xf32>
    %125 = math.exp %124 : vector<2x24x24xf32>
    %cst_72 = arith.constant dense<0.000000e+00> : vector<2x24xf32>
    %126 = vector.multi_reduction <add>, %125, %cst_72 [2] : vector<2x24x24xf32> to vector<2x24xf32>
    %127 = vector.shape_cast %126 : vector<2x24xf32> to vector<2x24x1xf32>
    %128 = tpu.reciprocal %127 {approx = true} : vector<2x24x1xf32> -> vector<2x24x1xf32>
    %129 = vector.broadcast %128 : vector<2x24x1xf32> to vector<2x24x24xf32>
    %130 = arith.mulf %125, %129 : vector<2x24x24xf32>
    %131 = arith.truncf %130 : vector<2x24x24xf32> to vector<2x24x24xbf16>
    "tpu.trace_start"() <{level = 10 : i32, message = "bqk,bkd->bqd"}> : () -> ()
    %cst_73 = arith.constant dense<0.000000e+00> : vector<2x24x16xf32>
    %132 = tpu.matmul %131, %115, %cst_73 {dimension_numbers = #tpu.dot_dimension_numbers<[2], [1], [1], [2], [0, 0, 0, 1, 1, 2], [0], [0]>} : vector<2x24x24xbf16>, vector<2x24x16xbf16>, vector<2x24x16xf32> -> vector<2x24x16xf32>
    "tpu.trace_stop"() : () -> ()
    %133 = vector.shape_cast %132 : vector<2x24x16xf32> to vector<48x16xf32>
    %134 = arith.truncf %133 : vector<48x16xf32> to vector<48x16xbf16>
    %c1_74 = arith.constant 1 : index
    %c0_75 = arith.constant 0 : index
    %c0_76 = arith.constant 0 : index
    %135 = vector.load %arg11[%c1_74, %c0_75, %c0_76] : memref<8x16x64xbf16, #tpu.memory_space<vmem>>, vector<1x16x64xbf16>
    %136 = vector.shape_cast %135 : vector<1x16x64xbf16> to vector<16x64xbf16>
    %cst_77 = arith.constant dense<0.000000e+00> : vector<48x64xf32>
    %137 = tpu.matmul %134, %136, %cst_77 {dimension_numbers = #tpu.dot_dimension_numbers<[1], [0], [0], [1], [0, 0, 1, 1], [], []>} : vector<48x16xbf16>, vector<16x64xbf16>, vector<48x64xf32> -> vector<48x64xf32>
    %138 = arith.addf %88, %137 : vector<48x64xf32>
    %c2 = arith.constant 2 : index
    %c0_78 = arith.constant 0 : index
    %c0_79 = arith.constant 0 : index
    %139 = vector.load %arg5[%c2, %c0_78, %c0_79] : memref<8x64x16xbf16, #tpu.memory_space<vmem>>, vector<1x64x16xbf16>
    %140 = vector.shape_cast %139 : vector<1x64x16xbf16> to vector<64x16xbf16>
    %cst_80 = arith.constant dense<0.000000e+00> : vector<48x16xf32>
    %141 = tpu.matmul %37, %140, %cst_80 {dimension_numbers = #tpu.dot_dimension_numbers<[1], [0], [0], [1], [0, 0, 1, 1], [], []>} : vector<48x64xbf16>, vector<64x16xbf16>, vector<48x16xf32> -> vector<48x16xf32>
    %c2_81 = arith.constant 2 : index
    %c0_82 = arith.constant 0 : index
    %c0_83 = arith.constant 0 : index
    %142 = vector.load %arg8[%c2_81, %c0_82, %c0_83] : memref<8x1x16xf32, #tpu.memory_space<vmem>>, vector<1x1x16xf32>
    %143 = vector.shape_cast %142 : vector<1x1x16xf32> to vector<1x16xf32>
    %144 = vector.broadcast %143 : vector<1x16xf32> to vector<48x16xf32>
    %145 = arith.addf %141, %144 : vector<48x16xf32>
    %c2_84 = arith.constant 2 : index
    %c0_85 = arith.constant 0 : index
    %c0_86 = arith.constant 0 : index
    %146 = vector.load %arg6[%c2_84, %c0_85, %c0_86] : memref<8x64x16xbf16, #tpu.memory_space<vmem>>, vector<1x64x16xbf16>
    %147 = vector.shape_cast %146 : vector<1x64x16xbf16> to vector<64x16xbf16>
    %cst_87 = arith.constant dense<0.000000e+00> : vector<48x16xf32>
    %148 = tpu.matmul %37, %147, %cst_87 {dimension_numbers = #tpu.dot_dimension_numbers<[1], [0], [0], [1], [0, 0, 1, 1], [], []>} : vector<48x64xbf16>, vector<64x16xbf16>, vector<48x16xf32> -> vector<48x16xf32>
    %c2_88 = arith.constant 2 : index
    %c0_89 = arith.constant 0 : index
    %c0_90 = arith.constant 0 : index
    %149 = vector.load %arg9[%c2_88, %c0_89, %c0_90] : memref<8x1x16xf32, #tpu.memory_space<vmem>>, vector<1x1x16xf32>
    %150 = vector.shape_cast %149 : vector<1x1x16xf32> to vector<1x16xf32>
    %151 = vector.broadcast %150 : vector<1x16xf32> to vector<48x16xf32>
    %152 = arith.addf %148, %151 : vector<48x16xf32>
    %c2_91 = arith.constant 2 : index
    %c0_92 = arith.constant 0 : index
    %c0_93 = arith.constant 0 : index
    %153 = vector.load %arg7[%c2_91, %c0_92, %c0_93] : memref<8x64x16xbf16, #tpu.memory_space<vmem>>, vector<1x64x16xbf16>
    %154 = vector.shape_cast %153 : vector<1x64x16xbf16> to vector<64x16xbf16>
    %cst_94 = arith.constant dense<0.000000e+00> : vector<48x16xf32>
    %155 = tpu.matmul %37, %154, %cst_94 {dimension_numbers = #tpu.dot_dimension_numbers<[1], [0], [0], [1], [0, 0, 1, 1], [], []>} : vector<48x64xbf16>, vector<64x16xbf16>, vector<48x16xf32> -> vector<48x16xf32>
    %c2_95 = arith.constant 2 : index
    %c0_96 = arith.constant 0 : index
    %c0_97 = arith.constant 0 : index
    %156 = vector.load %arg10[%c2_95, %c0_96, %c0_97] : memref<8x1x16xf32, #tpu.memory_space<vmem>>, vector<1x1x16xf32>
    %157 = vector.shape_cast %156 : vector<1x1x16xf32> to vector<1x16xf32>
    %158 = vector.broadcast %157 : vector<1x16xf32> to vector<48x16xf32>
    %159 = arith.addf %155, %158 : vector<48x16xf32>
    %160 = vector.shape_cast %145 : vector<48x16xf32> to vector<2x24x16xf32>
    %161 = arith.truncf %160 : vector<2x24x16xf32> to vector<2x24x16xbf16>
    %162 = vector.shape_cast %152 : vector<48x16xf32> to vector<2x24x16xf32>
    %163 = arith.truncf %162 : vector<2x24x16xf32> to vector<2x24x16xbf16>
    %164 = vector.shape_cast %159 : vector<48x16xf32> to vector<2x24x16xf32>
    %165 = arith.truncf %164 : vector<2x24x16xf32> to vector<2x24x16xbf16>
    "tpu.trace_start"() <{level = 10 : i32, message = "bqd,bkd->bqk"}> : () -> ()
    %cst_98 = arith.constant dense<0.000000e+00> : vector<2x24x24xf32>
    %166 = tpu.matmul %161, %163, %cst_98 {dimension_numbers = #tpu.dot_dimension_numbers<[2], [2], [1], [1], [0, 0, 0, 1, 1, 1], [0], [0]>} : vector<2x24x16xbf16>, vector<2x24x16xbf16>, vector<2x24x24xf32> -> vector<2x24x24xf32>
    "tpu.trace_stop"() : () -> ()
    %cst_99 = arith.constant 2.500000e-01 : f32
    %167 = vector.broadcast %cst_99 : f32 to vector<2x24x24xf32>
    %168 = arith.mulf %166, %167 : vector<2x24x24xf32>
    %169 = vector.broadcast %5 : vector<1x1x24xf32> to vector<2x24x24xf32>
    %170 = arith.addf %168, %169 : vector<2x24x24xf32>
    %cst_100 = arith.constant dense<0xFF800000> : vector<2x24xf32>
    %171 = vector.multi_reduction <maximumf>, %170, %cst_100 [2] : vector<2x24x24xf32> to vector<2x24xf32>
    %172 = vector.shape_cast %171 : vector<2x24xf32> to vector<2x24x1xf32>
    %173 = vector.broadcast %172 : vector<2x24x1xf32> to vector<2x24x24xf32>
    %174 = arith.subf %170, %173 : vector<2x24x24xf32>
    %175 = math.exp %174 : vector<2x24x24xf32>
    %cst_101 = arith.constant dense<0.000000e+00> : vector<2x24xf32>
    %176 = vector.multi_reduction <add>, %175, %cst_101 [2] : vector<2x24x24xf32> to vector<2x24xf32>
    %177 = vector.shape_cast %176 : vector<2x24xf32> to vector<2x24x1xf32>
    %178 = tpu.reciprocal %177 {approx = true} : vector<2x24x1xf32> -> vector<2x24x1xf32>
    %179 = vector.broadcast %178 : vector<2x24x1xf32> to vector<2x24x24xf32>
    %180 = arith.mulf %175, %179 : vector<2x24x24xf32>
    %181 = arith.truncf %180 : vector<2x24x24xf32> to vector<2x24x24xbf16>
    "tpu.trace_start"() <{level = 10 : i32, message = "bqk,bkd->bqd"}> : () -> ()
    %cst_102 = arith.constant dense<0.000000e+00> : vector<2x24x16xf32>
    %182 = tpu.matmul %181, %165, %cst_102 {dimension_numbers = #tpu.dot_dimension_numbers<[2], [1], [1], [2], [0, 0, 0, 1, 1, 2], [0], [0]>} : vector<2x24x24xbf16>, vector<2x24x16xbf16>, vector<2x24x16xf32> -> vector<2x24x16xf32>
    "tpu.trace_stop"() : () -> ()
    %183 = vector.shape_cast %182 : vector<2x24x16xf32> to vector<48x16xf32>
    %184 = arith.truncf %183 : vector<48x16xf32> to vector<48x16xbf16>
    %c2_103 = arith.constant 2 : index
    %c0_104 = arith.constant 0 : index
    %c0_105 = arith.constant 0 : index
    %185 = vector.load %arg11[%c2_103, %c0_104, %c0_105] : memref<8x16x64xbf16, #tpu.memory_space<vmem>>, vector<1x16x64xbf16>
    %186 = vector.shape_cast %185 : vector<1x16x64xbf16> to vector<16x64xbf16>
    %cst_106 = arith.constant dense<0.000000e+00> : vector<48x64xf32>
    %187 = tpu.matmul %184, %186, %cst_106 {dimension_numbers = #tpu.dot_dimension_numbers<[1], [0], [0], [1], [0, 0, 1, 1], [], []>} : vector<48x16xbf16>, vector<16x64xbf16>, vector<48x64xf32> -> vector<48x64xf32>
    %188 = arith.addf %138, %187 : vector<48x64xf32>
    %c3 = arith.constant 3 : index
    %c0_107 = arith.constant 0 : index
    %c0_108 = arith.constant 0 : index
    %189 = vector.load %arg5[%c3, %c0_107, %c0_108] : memref<8x64x16xbf16, #tpu.memory_space<vmem>>, vector<1x64x16xbf16>
    %190 = vector.shape_cast %189 : vector<1x64x16xbf16> to vector<64x16xbf16>
    %cst_109 = arith.constant dense<0.000000e+00> : vector<48x16xf32>
    %191 = tpu.matmul %37, %190, %cst_109 {dimension_numbers = #tpu.dot_dimension_numbers<[1], [0], [0], [1], [0, 0, 1, 1], [], []>} : vector<48x64xbf16>, vector<64x16xbf16>, vector<48x16xf32> -> vector<48x16xf32>
    %c3_110 = arith.constant 3 : index
    %c0_111 = arith.constant 0 : index
    %c0_112 = arith.constant 0 : index
    %192 = vector.load %arg8[%c3_110, %c0_111, %c0_112] : memref<8x1x16xf32, #tpu.memory_space<vmem>>, vector<1x1x16xf32>
    %193 = vector.shape_cast %192 : vector<1x1x16xf32> to vector<1x16xf32>
    %194 = vector.broadcast %193 : vector<1x16xf32> to vector<48x16xf32>
    %195 = arith.addf %191, %194 : vector<48x16xf32>
    %c3_113 = arith.constant 3 : index
    %c0_114 = arith.constant 0 : index
    %c0_115 = arith.constant 0 : index
    %196 = vector.load %arg6[%c3_113, %c0_114, %c0_115] : memref<8x64x16xbf16, #tpu.memory_space<vmem>>, vector<1x64x16xbf16>
    %197 = vector.shape_cast %196 : vector<1x64x16xbf16> to vector<64x16xbf16>
    %cst_116 = arith.constant dense<0.000000e+00> : vector<48x16xf32>
    %198 = tpu.matmul %37, %197, %cst_116 {dimension_numbers = #tpu.dot_dimension_numbers<[1], [0], [0], [1], [0, 0, 1, 1], [], []>} : vector<48x64xbf16>, vector<64x16xbf16>, vector<48x16xf32> -> vector<48x16xf32>
    %c3_117 = arith.constant 3 : index
    %c0_118 = arith.constant 0 : index
    %c0_119 = arith.constant 0 : index
    %199 = vector.load %arg9[%c3_117, %c0_118, %c0_119] : memref<8x1x16xf32, #tpu.memory_space<vmem>>, vector<1x1x16xf32>
    %200 = vector.shape_cast %199 : vector<1x1x16xf32> to vector<1x16xf32>
    %201 = vector.broadcast %200 : vector<1x16xf32> to vector<48x16xf32>
    %202 = arith.addf %198, %201 : vector<48x16xf32>
    %c3_120 = arith.constant 3 : index
    %c0_121 = arith.constant 0 : index
    %c0_122 = arith.constant 0 : index
    %203 = vector.load %arg7[%c3_120, %c0_121, %c0_122] : memref<8x64x16xbf16, #tpu.memory_space<vmem>>, vector<1x64x16xbf16>
    %204 = vector.shape_cast %203 : vector<1x64x16xbf16> to vector<64x16xbf16>
    %cst_123 = arith.constant dense<0.000000e+00> : vector<48x16xf32>
    %205 = tpu.matmul %37, %204, %cst_123 {dimension_numbers = #tpu.dot_dimension_numbers<[1], [0], [0], [1], [0, 0, 1, 1], [], []>} : vector<48x64xbf16>, vector<64x16xbf16>, vector<48x16xf32> -> vector<48x16xf32>
    %c3_124 = arith.constant 3 : index
    %c0_125 = arith.constant 0 : index
    %c0_126 = arith.constant 0 : index
    %206 = vector.load %arg10[%c3_124, %c0_125, %c0_126] : memref<8x1x16xf32, #tpu.memory_space<vmem>>, vector<1x1x16xf32>
    %207 = vector.shape_cast %206 : vector<1x1x16xf32> to vector<1x16xf32>
    %208 = vector.broadcast %207 : vector<1x16xf32> to vector<48x16xf32>
    %209 = arith.addf %205, %208 : vector<48x16xf32>
    %210 = vector.shape_cast %195 : vector<48x16xf32> to vector<2x24x16xf32>
    %211 = arith.truncf %210 : vector<2x24x16xf32> to vector<2x24x16xbf16>
    %212 = vector.shape_cast %202 : vector<48x16xf32> to vector<2x24x16xf32>
    %213 = arith.truncf %212 : vector<2x24x16xf32> to vector<2x24x16xbf16>
    %214 = vector.shape_cast %209 : vector<48x16xf32> to vector<2x24x16xf32>
    %215 = arith.truncf %214 : vector<2x24x16xf32> to vector<2x24x16xbf16>
    "tpu.trace_start"() <{level = 10 : i32, message = "bqd,bkd->bqk"}> : () -> ()
    %cst_127 = arith.constant dense<0.000000e+00> : vector<2x24x24xf32>
    %216 = tpu.matmul %211, %213, %cst_127 {dimension_numbers = #tpu.dot_dimension_numbers<[2], [2], [1], [1], [0, 0, 0, 1, 1, 1], [0], [0]>} : vector<2x24x16xbf16>, vector<2x24x16xbf16>, vector<2x24x24xf32> -> vector<2x24x24xf32>
    "tpu.trace_stop"() : () -> ()
    %cst_128 = arith.constant 2.500000e-01 : f32
    %217 = vector.broadcast %cst_128 : f32 to vector<2x24x24xf32>
    %218 = arith.mulf %216, %217 : vector<2x24x24xf32>
    %219 = vector.broadcast %5 : vector<1x1x24xf32> to vector<2x24x24xf32>
    %220 = arith.addf %218, %219 : vector<2x24x24xf32>
    %cst_129 = arith.constant dense<0xFF800000> : vector<2x24xf32>
    %221 = vector.multi_reduction <maximumf>, %220, %cst_129 [2] : vector<2x24x24xf32> to vector<2x24xf32>
    %222 = vector.shape_cast %221 : vector<2x24xf32> to vector<2x24x1xf32>
    %223 = vector.broadcast %222 : vector<2x24x1xf32> to vector<2x24x24xf32>
    %224 = arith.subf %220, %223 : vector<2x24x24xf32>
    %225 = math.exp %224 : vector<2x24x24xf32>
    %cst_130 = arith.constant dense<0.000000e+00> : vector<2x24xf32>
    %226 = vector.multi_reduction <add>, %225, %cst_130 [2] : vector<2x24x24xf32> to vector<2x24xf32>
    %227 = vector.shape_cast %226 : vector<2x24xf32> to vector<2x24x1xf32>
    %228 = tpu.reciprocal %227 {approx = true} : vector<2x24x1xf32> -> vector<2x24x1xf32>
    %229 = vector.broadcast %228 : vector<2x24x1xf32> to vector<2x24x24xf32>
    %230 = arith.mulf %225, %229 : vector<2x24x24xf32>
    %231 = arith.truncf %230 : vector<2x24x24xf32> to vector<2x24x24xbf16>
    "tpu.trace_start"() <{level = 10 : i32, message = "bqk,bkd->bqd"}> : () -> ()
    %cst_131 = arith.constant dense<0.000000e+00> : vector<2x24x16xf32>
    %232 = tpu.matmul %231, %215, %cst_131 {dimension_numbers = #tpu.dot_dimension_numbers<[2], [1], [1], [2], [0, 0, 0, 1, 1, 2], [0], [0]>} : vector<2x24x24xbf16>, vector<2x24x16xbf16>, vector<2x24x16xf32> -> vector<2x24x16xf32>
    "tpu.trace_stop"() : () -> ()
    %233 = vector.shape_cast %232 : vector<2x24x16xf32> to vector<48x16xf32>
    %234 = arith.truncf %233 : vector<48x16xf32> to vector<48x16xbf16>
    %c3_132 = arith.constant 3 : index
    %c0_133 = arith.constant 0 : index
    %c0_134 = arith.constant 0 : index
    %235 = vector.load %arg11[%c3_132, %c0_133, %c0_134] : memref<8x16x64xbf16, #tpu.memory_space<vmem>>, vector<1x16x64xbf16>
    %236 = vector.shape_cast %235 : vector<1x16x64xbf16> to vector<16x64xbf16>
    %cst_135 = arith.constant dense<0.000000e+00> : vector<48x64xf32>
    %237 = tpu.matmul %234, %236, %cst_135 {dimension_numbers = #tpu.dot_dimension_numbers<[1], [0], [0], [1], [0, 0, 1, 1], [], []>} : vector<48x16xbf16>, vector<16x64xbf16>, vector<48x64xf32> -> vector<48x64xf32>
    %238 = arith.addf %188, %237 : vector<48x64xf32>
    %239 = arith.addf %10, %238 : vector<48x64xf32>
    %c0_136 = arith.constant 0 : index
    %c0_137 = arith.constant 0 : index
    %c0_138 = arith.constant 0 : index
    %240 = vector.load %arg12[%c0_136, %c0_137, %c0_138] : memref<2x1x64xf32, #tpu.memory_space<vmem>>, vector<1x1x64xf32>
    %241 = vector.shape_cast %240 : vector<1x1x64xf32> to vector<1x64xf32>
    %242 = vector.broadcast %241 : vector<1x64xf32> to vector<48x64xf32>
    %243 = arith.addf %239, %242 : vector<48x64xf32>
    %c0_139 = arith.constant 0 : index
    %c0_140 = arith.constant 0 : index
    %c0_141 = arith.constant 0 : index
    %244 = vector.load %arg13[%c0_139, %c0_140, %c0_141] : memref<2x1x64xf32, #tpu.memory_space<vmem>>, vector<1x1x64xf32>
    %245 = vector.shape_cast %244 : vector<1x1x64xf32> to vector<1x64xf32>
    %c0_142 = arith.constant 0 : index
    %c0_143 = arith.constant 0 : index
    %c0_144 = arith.constant 0 : index
    %246 = vector.load %arg14[%c0_142, %c0_143, %c0_144] : memref<2x1x64xf32, #tpu.memory_space<vmem>>, vector<1x1x64xf32>
    %247 = vector.shape_cast %246 : vector<1x1x64xf32> to vector<1x64xf32>
    %cst_145 = arith.constant dense<0.000000e+00> : vector<48xf32>
    %248 = vector.multi_reduction <add>, %243, %cst_145 [1] : vector<48x64xf32> to vector<48xf32>
    %249 = vector.shape_cast %248 : vector<48xf32> to vector<48x1xf32>
    %cst_146 = arith.constant 6.400000e+01 : f32
    %250 = vector.broadcast %cst_146 : f32 to vector<48x1xf32>
    %251 = arith.divf %249, %250 : vector<48x1xf32>
    %252 = vector.broadcast %251 : vector<48x1xf32> to vector<48x64xf32>
    %253 = arith.subf %243, %252 : vector<48x64xf32>
    %254 = arith.mulf %253, %253 : vector<48x64xf32>
    %cst_147 = arith.constant dense<0.000000e+00> : vector<48xf32>
    %255 = vector.multi_reduction <add>, %254, %cst_147 [1] : vector<48x64xf32> to vector<48xf32>
    %256 = vector.shape_cast %255 : vector<48xf32> to vector<48x1xf32>
    %cst_148 = arith.constant 6.400000e+01 : f32
    %257 = vector.broadcast %cst_148 : f32 to vector<48x1xf32>
    %258 = arith.divf %256, %257 : vector<48x1xf32>
    %259 = vector.broadcast %251 : vector<48x1xf32> to vector<48x64xf32>
    %260 = arith.subf %243, %259 : vector<48x64xf32>
    %cst_149 = arith.constant 9.99999997E-7 : f32
    %261 = vector.broadcast %cst_149 : f32 to vector<48x1xf32>
    %262 = arith.addf %258, %261 : vector<48x1xf32>
    %263 = math.rsqrt %262 : vector<48x1xf32>
    %264 = vector.broadcast %263 : vector<48x1xf32> to vector<48x64xf32>
    %265 = arith.mulf %260, %264 : vector<48x64xf32>
    %266 = vector.broadcast %245 : vector<1x64xf32> to vector<48x64xf32>
    %267 = arith.mulf %265, %266 : vector<48x64xf32>
    %268 = vector.broadcast %247 : vector<1x64xf32> to vector<48x64xf32>
    %269 = arith.addf %267, %268 : vector<48x64xf32>
    %270 = arith.truncf %269 : vector<48x64xf32> to vector<48x64xbf16>
    %c0_150 = arith.constant 0 : index
    %c0_151 = arith.constant 0 : index
    %c0_152 = arith.constant 0 : index
    %271 = vector.load %arg15[%c0_150, %c0_151, %c0_152] : memref<2x64x256xbf16, #tpu.memory_space<vmem>>, vector<1x64x256xbf16>
    %272 = vector.shape_cast %271 : vector<1x64x256xbf16> to vector<64x256xbf16>
    %cst_153 = arith.constant dense<0.000000e+00> : vector<48x256xf32>
    %273 = tpu.matmul %270, %272, %cst_153 {dimension_numbers = #tpu.dot_dimension_numbers<[1], [0], [0], [1], [0, 0, 1, 1], [], []>} : vector<48x64xbf16>, vector<64x256xbf16>, vector<48x256xf32> -> vector<48x256xf32>
    %c0_154 = arith.constant 0 : index
    %c0_155 = arith.constant 0 : index
    %c0_156 = arith.constant 0 : index
    %274 = vector.load %arg16[%c0_154, %c0_155, %c0_156] : memref<2x1x256xf32, #tpu.memory_space<vmem>>, vector<1x1x256xf32>
    %275 = vector.shape_cast %274 : vector<1x1x256xf32> to vector<1x256xf32>
    %276 = vector.broadcast %275 : vector<1x256xf32> to vector<48x256xf32>
    %277 = arith.addf %273, %276 : vector<48x256xf32>
    %278 = arith.mulf %277, %277 : vector<48x256xf32>
    %279 = arith.mulf %277, %278 : vector<48x256xf32>
    %cst_157 = arith.constant 4.471500e-02 : f32
    %280 = vector.broadcast %cst_157 : f32 to vector<48x256xf32>
    %281 = arith.mulf %280, %279 : vector<48x256xf32>
    %282 = arith.addf %277, %281 : vector<48x256xf32>
    %cst_158 = arith.constant 0.797884583 : f32
    %283 = vector.broadcast %cst_158 : f32 to vector<48x256xf32>
    %284 = arith.mulf %283, %282 : vector<48x256xf32>
    %285 = math.tanh %284 : vector<48x256xf32>
    %cst_159 = arith.constant 1.000000e+00 : f32
    %286 = vector.broadcast %cst_159 : f32 to vector<48x256xf32>
    %287 = arith.addf %286, %285 : vector<48x256xf32>
    %cst_160 = arith.constant 5.000000e-01 : f32
    %288 = vector.broadcast %cst_160 : f32 to vector<48x256xf32>
    %289 = arith.mulf %288, %287 : vector<48x256xf32>
    %290 = arith.mulf %277, %289 : vector<48x256xf32>
    %291 = arith.truncf %290 : vector<48x256xf32> to vector<48x256xbf16>
    %c0_161 = arith.constant 0 : index
    %c0_162 = arith.constant 0 : index
    %c0_163 = arith.constant 0 : index
    %292 = vector.load %arg17[%c0_161, %c0_162, %c0_163] : memref<2x256x64xbf16, #tpu.memory_space<vmem>>, vector<1x256x64xbf16>
    %293 = vector.shape_cast %292 : vector<1x256x64xbf16> to vector<256x64xbf16>
    %cst_164 = arith.constant dense<0.000000e+00> : vector<48x64xf32>
    %294 = tpu.matmul %291, %293, %cst_164 {dimension_numbers = #tpu.dot_dimension_numbers<[1], [0], [0], [1], [0, 0, 1, 1], [], []>} : vector<48x256xbf16>, vector<256x64xbf16>, vector<48x64xf32> -> vector<48x64xf32>
    %c0_165 = arith.constant 0 : index
    %c0_166 = arith.constant 0 : index
    %c0_167 = arith.constant 0 : index
    %295 = vector.load %arg18[%c0_165, %c0_166, %c0_167] : memref<2x1x64xf32, #tpu.memory_space<vmem>>, vector<1x1x64xf32>
    %296 = vector.shape_cast %295 : vector<1x1x64xf32> to vector<1x64xf32>
    %297 = vector.broadcast %296 : vector<1x64xf32> to vector<48x64xf32>
    %298 = arith.addf %294, %297 : vector<48x64xf32>
    %299 = arith.addf %243, %298 : vector<48x64xf32>
    %c1_168 = arith.constant 1 : index
    %c0_169 = arith.constant 0 : index
    %c0_170 = arith.constant 0 : index
    %300 = vector.load %arg3[%c1_168, %c0_169, %c0_170] : memref<2x1x64xf32, #tpu.memory_space<vmem>>, vector<1x1x64xf32>
    %301 = vector.shape_cast %300 : vector<1x1x64xf32> to vector<1x64xf32>
    %c1_171 = arith.constant 1 : index
    %c0_172 = arith.constant 0 : index
    %c0_173 = arith.constant 0 : index
    %302 = vector.load %arg4[%c1_171, %c0_172, %c0_173] : memref<2x1x64xf32, #tpu.memory_space<vmem>>, vector<1x1x64xf32>
    %303 = vector.shape_cast %302 : vector<1x1x64xf32> to vector<1x64xf32>
    %cst_174 = arith.constant dense<0.000000e+00> : vector<48xf32>
    %304 = vector.multi_reduction <add>, %299, %cst_174 [1] : vector<48x64xf32> to vector<48xf32>
    %305 = vector.shape_cast %304 : vector<48xf32> to vector<48x1xf32>
    %cst_175 = arith.constant 6.400000e+01 : f32
    %306 = vector.broadcast %cst_175 : f32 to vector<48x1xf32>
    %307 = arith.divf %305, %306 : vector<48x1xf32>
    %308 = vector.broadcast %307 : vector<48x1xf32> to vector<48x64xf32>
    %309 = arith.subf %299, %308 : vector<48x64xf32>
    %310 = arith.mulf %309, %309 : vector<48x64xf32>
    %cst_176 = arith.constant dense<0.000000e+00> : vector<48xf32>
    %311 = vector.multi_reduction <add>, %310, %cst_176 [1] : vector<48x64xf32> to vector<48xf32>
    %312 = vector.shape_cast %311 : vector<48xf32> to vector<48x1xf32>
    %cst_177 = arith.constant 6.400000e+01 : f32
    %313 = vector.broadcast %cst_177 : f32 to vector<48x1xf32>
    %314 = arith.divf %312, %313 : vector<48x1xf32>
    %315 = vector.broadcast %307 : vector<48x1xf32> to vector<48x64xf32>
    %316 = arith.subf %299, %315 : vector<48x64xf32>
    %cst_178 = arith.constant 9.99999997E-7 : f32
    %317 = vector.broadcast %cst_178 : f32 to vector<48x1xf32>
    %318 = arith.addf %314, %317 : vector<48x1xf32>
    %319 = math.rsqrt %318 : vector<48x1xf32>
    %320 = vector.broadcast %319 : vector<48x1xf32> to vector<48x64xf32>
    %321 = arith.mulf %316, %320 : vector<48x64xf32>
    %322 = vector.broadcast %301 : vector<1x64xf32> to vector<48x64xf32>
    %323 = arith.mulf %321, %322 : vector<48x64xf32>
    %324 = vector.broadcast %303 : vector<1x64xf32> to vector<48x64xf32>
    %325 = arith.addf %323, %324 : vector<48x64xf32>
    %326 = arith.truncf %325 : vector<48x64xf32> to vector<48x64xbf16>
    %cst_179 = arith.constant 0.000000e+00 : f32
    %327 = vector.broadcast %cst_179 : f32 to vector<48x64xf32>
    %c4 = arith.constant 4 : index
    %c0_180 = arith.constant 0 : index
    %c0_181 = arith.constant 0 : index
    %328 = vector.load %arg5[%c4, %c0_180, %c0_181] : memref<8x64x16xbf16, #tpu.memory_space<vmem>>, vector<1x64x16xbf16>
    %329 = vector.shape_cast %328 : vector<1x64x16xbf16> to vector<64x16xbf16>
    %cst_182 = arith.constant dense<0.000000e+00> : vector<48x16xf32>
    %330 = tpu.matmul %326, %329, %cst_182 {dimension_numbers = #tpu.dot_dimension_numbers<[1], [0], [0], [1], [0, 0, 1, 1], [], []>} : vector<48x64xbf16>, vector<64x16xbf16>, vector<48x16xf32> -> vector<48x16xf32>
    %c4_183 = arith.constant 4 : index
    %c0_184 = arith.constant 0 : index
    %c0_185 = arith.constant 0 : index
    %331 = vector.load %arg8[%c4_183, %c0_184, %c0_185] : memref<8x1x16xf32, #tpu.memory_space<vmem>>, vector<1x1x16xf32>
    %332 = vector.shape_cast %331 : vector<1x1x16xf32> to vector<1x16xf32>
    %333 = vector.broadcast %332 : vector<1x16xf32> to vector<48x16xf32>
    %334 = arith.addf %330, %333 : vector<48x16xf32>
    %c4_186 = arith.constant 4 : index
    %c0_187 = arith.constant 0 : index
    %c0_188 = arith.constant 0 : index
    %335 = vector.load %arg6[%c4_186, %c0_187, %c0_188] : memref<8x64x16xbf16, #tpu.memory_space<vmem>>, vector<1x64x16xbf16>
    %336 = vector.shape_cast %335 : vector<1x64x16xbf16> to vector<64x16xbf16>
    %cst_189 = arith.constant dense<0.000000e+00> : vector<48x16xf32>
    %337 = tpu.matmul %326, %336, %cst_189 {dimension_numbers = #tpu.dot_dimension_numbers<[1], [0], [0], [1], [0, 0, 1, 1], [], []>} : vector<48x64xbf16>, vector<64x16xbf16>, vector<48x16xf32> -> vector<48x16xf32>
    %c4_190 = arith.constant 4 : index
    %c0_191 = arith.constant 0 : index
    %c0_192 = arith.constant 0 : index
    %338 = vector.load %arg9[%c4_190, %c0_191, %c0_192] : memref<8x1x16xf32, #tpu.memory_space<vmem>>, vector<1x1x16xf32>
    %339 = vector.shape_cast %338 : vector<1x1x16xf32> to vector<1x16xf32>
    %340 = vector.broadcast %339 : vector<1x16xf32> to vector<48x16xf32>
    %341 = arith.addf %337, %340 : vector<48x16xf32>
    %c4_193 = arith.constant 4 : index
    %c0_194 = arith.constant 0 : index
    %c0_195 = arith.constant 0 : index
    %342 = vector.load %arg7[%c4_193, %c0_194, %c0_195] : memref<8x64x16xbf16, #tpu.memory_space<vmem>>, vector<1x64x16xbf16>
    %343 = vector.shape_cast %342 : vector<1x64x16xbf16> to vector<64x16xbf16>
    %cst_196 = arith.constant dense<0.000000e+00> : vector<48x16xf32>
    %344 = tpu.matmul %326, %343, %cst_196 {dimension_numbers = #tpu.dot_dimension_numbers<[1], [0], [0], [1], [0, 0, 1, 1], [], []>} : vector<48x64xbf16>, vector<64x16xbf16>, vector<48x16xf32> -> vector<48x16xf32>
    %c4_197 = arith.constant 4 : index
    %c0_198 = arith.constant 0 : index
    %c0_199 = arith.constant 0 : index
    %345 = vector.load %arg10[%c4_197, %c0_198, %c0_199] : memref<8x1x16xf32, #tpu.memory_space<vmem>>, vector<1x1x16xf32>
    %346 = vector.shape_cast %345 : vector<1x1x16xf32> to vector<1x16xf32>
    %347 = vector.broadcast %346 : vector<1x16xf32> to vector<48x16xf32>
    %348 = arith.addf %344, %347 : vector<48x16xf32>
    %349 = vector.shape_cast %334 : vector<48x16xf32> to vector<2x24x16xf32>
    %350 = arith.truncf %349 : vector<2x24x16xf32> to vector<2x24x16xbf16>
    %351 = vector.shape_cast %341 : vector<48x16xf32> to vector<2x24x16xf32>
    %352 = arith.truncf %351 : vector<2x24x16xf32> to vector<2x24x16xbf16>
    %353 = vector.shape_cast %348 : vector<48x16xf32> to vector<2x24x16xf32>
    %354 = arith.truncf %353 : vector<2x24x16xf32> to vector<2x24x16xbf16>
    "tpu.trace_start"() <{level = 10 : i32, message = "bqd,bkd->bqk"}> : () -> ()
    %cst_200 = arith.constant dense<0.000000e+00> : vector<2x24x24xf32>
    %355 = tpu.matmul %350, %352, %cst_200 {dimension_numbers = #tpu.dot_dimension_numbers<[2], [2], [1], [1], [0, 0, 0, 1, 1, 1], [0], [0]>} : vector<2x24x16xbf16>, vector<2x24x16xbf16>, vector<2x24x24xf32> -> vector<2x24x24xf32>
    "tpu.trace_stop"() : () -> ()
    %cst_201 = arith.constant 2.500000e-01 : f32
    %356 = vector.broadcast %cst_201 : f32 to vector<2x24x24xf32>
    %357 = arith.mulf %355, %356 : vector<2x24x24xf32>
    %358 = vector.broadcast %5 : vector<1x1x24xf32> to vector<2x24x24xf32>
    %359 = arith.addf %357, %358 : vector<2x24x24xf32>
    %cst_202 = arith.constant dense<0xFF800000> : vector<2x24xf32>
    %360 = vector.multi_reduction <maximumf>, %359, %cst_202 [2] : vector<2x24x24xf32> to vector<2x24xf32>
    %361 = vector.shape_cast %360 : vector<2x24xf32> to vector<2x24x1xf32>
    %362 = vector.broadcast %361 : vector<2x24x1xf32> to vector<2x24x24xf32>
    %363 = arith.subf %359, %362 : vector<2x24x24xf32>
    %364 = math.exp %363 : vector<2x24x24xf32>
    %cst_203 = arith.constant dense<0.000000e+00> : vector<2x24xf32>
    %365 = vector.multi_reduction <add>, %364, %cst_203 [2] : vector<2x24x24xf32> to vector<2x24xf32>
    %366 = vector.shape_cast %365 : vector<2x24xf32> to vector<2x24x1xf32>
    %367 = tpu.reciprocal %366 {approx = true} : vector<2x24x1xf32> -> vector<2x24x1xf32>
    %368 = vector.broadcast %367 : vector<2x24x1xf32> to vector<2x24x24xf32>
    %369 = arith.mulf %364, %368 : vector<2x24x24xf32>
    %370 = arith.truncf %369 : vector<2x24x24xf32> to vector<2x24x24xbf16>
    "tpu.trace_start"() <{level = 10 : i32, message = "bqk,bkd->bqd"}> : () -> ()
    %cst_204 = arith.constant dense<0.000000e+00> : vector<2x24x16xf32>
    %371 = tpu.matmul %370, %354, %cst_204 {dimension_numbers = #tpu.dot_dimension_numbers<[2], [1], [1], [2], [0, 0, 0, 1, 1, 2], [0], [0]>} : vector<2x24x24xbf16>, vector<2x24x16xbf16>, vector<2x24x16xf32> -> vector<2x24x16xf32>
    "tpu.trace_stop"() : () -> ()
    %372 = vector.shape_cast %371 : vector<2x24x16xf32> to vector<48x16xf32>
    %373 = arith.truncf %372 : vector<48x16xf32> to vector<48x16xbf16>
    %c4_205 = arith.constant 4 : index
    %c0_206 = arith.constant 0 : index
    %c0_207 = arith.constant 0 : index
    %374 = vector.load %arg11[%c4_205, %c0_206, %c0_207] : memref<8x16x64xbf16, #tpu.memory_space<vmem>>, vector<1x16x64xbf16>
    %375 = vector.shape_cast %374 : vector<1x16x64xbf16> to vector<16x64xbf16>
    %cst_208 = arith.constant dense<0.000000e+00> : vector<48x64xf32>
    %376 = tpu.matmul %373, %375, %cst_208 {dimension_numbers = #tpu.dot_dimension_numbers<[1], [0], [0], [1], [0, 0, 1, 1], [], []>} : vector<48x16xbf16>, vector<16x64xbf16>, vector<48x64xf32> -> vector<48x64xf32>
    %377 = arith.addf %327, %376 : vector<48x64xf32>
    %c5 = arith.constant 5 : index
    %c0_209 = arith.constant 0 : index
    %c0_210 = arith.constant 0 : index
    %378 = vector.load %arg5[%c5, %c0_209, %c0_210] : memref<8x64x16xbf16, #tpu.memory_space<vmem>>, vector<1x64x16xbf16>
    %379 = vector.shape_cast %378 : vector<1x64x16xbf16> to vector<64x16xbf16>
    %cst_211 = arith.constant dense<0.000000e+00> : vector<48x16xf32>
    %380 = tpu.matmul %326, %379, %cst_211 {dimension_numbers = #tpu.dot_dimension_numbers<[1], [0], [0], [1], [0, 0, 1, 1], [], []>} : vector<48x64xbf16>, vector<64x16xbf16>, vector<48x16xf32> -> vector<48x16xf32>
    %c5_212 = arith.constant 5 : index
    %c0_213 = arith.constant 0 : index
    %c0_214 = arith.constant 0 : index
    %381 = vector.load %arg8[%c5_212, %c0_213, %c0_214] : memref<8x1x16xf32, #tpu.memory_space<vmem>>, vector<1x1x16xf32>
    %382 = vector.shape_cast %381 : vector<1x1x16xf32> to vector<1x16xf32>
    %383 = vector.broadcast %382 : vector<1x16xf32> to vector<48x16xf32>
    %384 = arith.addf %380, %383 : vector<48x16xf32>
    %c5_215 = arith.constant 5 : index
    %c0_216 = arith.constant 0 : index
    %c0_217 = arith.constant 0 : index
    %385 = vector.load %arg6[%c5_215, %c0_216, %c0_217] : memref<8x64x16xbf16, #tpu.memory_space<vmem>>, vector<1x64x16xbf16>
    %386 = vector.shape_cast %385 : vector<1x64x16xbf16> to vector<64x16xbf16>
    %cst_218 = arith.constant dense<0.000000e+00> : vector<48x16xf32>
    %387 = tpu.matmul %326, %386, %cst_218 {dimension_numbers = #tpu.dot_dimension_numbers<[1], [0], [0], [1], [0, 0, 1, 1], [], []>} : vector<48x64xbf16>, vector<64x16xbf16>, vector<48x16xf32> -> vector<48x16xf32>
    %c5_219 = arith.constant 5 : index
    %c0_220 = arith.constant 0 : index
    %c0_221 = arith.constant 0 : index
    %388 = vector.load %arg9[%c5_219, %c0_220, %c0_221] : memref<8x1x16xf32, #tpu.memory_space<vmem>>, vector<1x1x16xf32>
    %389 = vector.shape_cast %388 : vector<1x1x16xf32> to vector<1x16xf32>
    %390 = vector.broadcast %389 : vector<1x16xf32> to vector<48x16xf32>
    %391 = arith.addf %387, %390 : vector<48x16xf32>
    %c5_222 = arith.constant 5 : index
    %c0_223 = arith.constant 0 : index
    %c0_224 = arith.constant 0 : index
    %392 = vector.load %arg7[%c5_222, %c0_223, %c0_224] : memref<8x64x16xbf16, #tpu.memory_space<vmem>>, vector<1x64x16xbf16>
    %393 = vector.shape_cast %392 : vector<1x64x16xbf16> to vector<64x16xbf16>
    %cst_225 = arith.constant dense<0.000000e+00> : vector<48x16xf32>
    %394 = tpu.matmul %326, %393, %cst_225 {dimension_numbers = #tpu.dot_dimension_numbers<[1], [0], [0], [1], [0, 0, 1, 1], [], []>} : vector<48x64xbf16>, vector<64x16xbf16>, vector<48x16xf32> -> vector<48x16xf32>
    %c5_226 = arith.constant 5 : index
    %c0_227 = arith.constant 0 : index
    %c0_228 = arith.constant 0 : index
    %395 = vector.load %arg10[%c5_226, %c0_227, %c0_228] : memref<8x1x16xf32, #tpu.memory_space<vmem>>, vector<1x1x16xf32>
    %396 = vector.shape_cast %395 : vector<1x1x16xf32> to vector<1x16xf32>
    %397 = vector.broadcast %396 : vector<1x16xf32> to vector<48x16xf32>
    %398 = arith.addf %394, %397 : vector<48x16xf32>
    %399 = vector.shape_cast %384 : vector<48x16xf32> to vector<2x24x16xf32>
    %400 = arith.truncf %399 : vector<2x24x16xf32> to vector<2x24x16xbf16>
    %401 = vector.shape_cast %391 : vector<48x16xf32> to vector<2x24x16xf32>
    %402 = arith.truncf %401 : vector<2x24x16xf32> to vector<2x24x16xbf16>
    %403 = vector.shape_cast %398 : vector<48x16xf32> to vector<2x24x16xf32>
    %404 = arith.truncf %403 : vector<2x24x16xf32> to vector<2x24x16xbf16>
    "tpu.trace_start"() <{level = 10 : i32, message = "bqd,bkd->bqk"}> : () -> ()
    %cst_229 = arith.constant dense<0.000000e+00> : vector<2x24x24xf32>
    %405 = tpu.matmul %400, %402, %cst_229 {dimension_numbers = #tpu.dot_dimension_numbers<[2], [2], [1], [1], [0, 0, 0, 1, 1, 1], [0], [0]>} : vector<2x24x16xbf16>, vector<2x24x16xbf16>, vector<2x24x24xf32> -> vector<2x24x24xf32>
    "tpu.trace_stop"() : () -> ()
    %cst_230 = arith.constant 2.500000e-01 : f32
    %406 = vector.broadcast %cst_230 : f32 to vector<2x24x24xf32>
    %407 = arith.mulf %405, %406 : vector<2x24x24xf32>
    %408 = vector.broadcast %5 : vector<1x1x24xf32> to vector<2x24x24xf32>
    %409 = arith.addf %407, %408 : vector<2x24x24xf32>
    %cst_231 = arith.constant dense<0xFF800000> : vector<2x24xf32>
    %410 = vector.multi_reduction <maximumf>, %409, %cst_231 [2] : vector<2x24x24xf32> to vector<2x24xf32>
    %411 = vector.shape_cast %410 : vector<2x24xf32> to vector<2x24x1xf32>
    %412 = vector.broadcast %411 : vector<2x24x1xf32> to vector<2x24x24xf32>
    %413 = arith.subf %409, %412 : vector<2x24x24xf32>
    %414 = math.exp %413 : vector<2x24x24xf32>
    %cst_232 = arith.constant dense<0.000000e+00> : vector<2x24xf32>
    %415 = vector.multi_reduction <add>, %414, %cst_232 [2] : vector<2x24x24xf32> to vector<2x24xf32>
    %416 = vector.shape_cast %415 : vector<2x24xf32> to vector<2x24x1xf32>
    %417 = tpu.reciprocal %416 {approx = true} : vector<2x24x1xf32> -> vector<2x24x1xf32>
    %418 = vector.broadcast %417 : vector<2x24x1xf32> to vector<2x24x24xf32>
    %419 = arith.mulf %414, %418 : vector<2x24x24xf32>
    %420 = arith.truncf %419 : vector<2x24x24xf32> to vector<2x24x24xbf16>
    "tpu.trace_start"() <{level = 10 : i32, message = "bqk,bkd->bqd"}> : () -> ()
    %cst_233 = arith.constant dense<0.000000e+00> : vector<2x24x16xf32>
    %421 = tpu.matmul %420, %404, %cst_233 {dimension_numbers = #tpu.dot_dimension_numbers<[2], [1], [1], [2], [0, 0, 0, 1, 1, 2], [0], [0]>} : vector<2x24x24xbf16>, vector<2x24x16xbf16>, vector<2x24x16xf32> -> vector<2x24x16xf32>
    "tpu.trace_stop"() : () -> ()
    %422 = vector.shape_cast %421 : vector<2x24x16xf32> to vector<48x16xf32>
    %423 = arith.truncf %422 : vector<48x16xf32> to vector<48x16xbf16>
    %c5_234 = arith.constant 5 : index
    %c0_235 = arith.constant 0 : index
    %c0_236 = arith.constant 0 : index
    %424 = vector.load %arg11[%c5_234, %c0_235, %c0_236] : memref<8x16x64xbf16, #tpu.memory_space<vmem>>, vector<1x16x64xbf16>
    %425 = vector.shape_cast %424 : vector<1x16x64xbf16> to vector<16x64xbf16>
    %cst_237 = arith.constant dense<0.000000e+00> : vector<48x64xf32>
    %426 = tpu.matmul %423, %425, %cst_237 {dimension_numbers = #tpu.dot_dimension_numbers<[1], [0], [0], [1], [0, 0, 1, 1], [], []>} : vector<48x16xbf16>, vector<16x64xbf16>, vector<48x64xf32> -> vector<48x64xf32>
    %427 = arith.addf %377, %426 : vector<48x64xf32>
    %c6 = arith.constant 6 : index
    %c0_238 = arith.constant 0 : index
    %c0_239 = arith.constant 0 : index
    %428 = vector.load %arg5[%c6, %c0_238, %c0_239] : memref<8x64x16xbf16, #tpu.memory_space<vmem>>, vector<1x64x16xbf16>
    %429 = vector.shape_cast %428 : vector<1x64x16xbf16> to vector<64x16xbf16>
    %cst_240 = arith.constant dense<0.000000e+00> : vector<48x16xf32>
    %430 = tpu.matmul %326, %429, %cst_240 {dimension_numbers = #tpu.dot_dimension_numbers<[1], [0], [0], [1], [0, 0, 1, 1], [], []>} : vector<48x64xbf16>, vector<64x16xbf16>, vector<48x16xf32> -> vector<48x16xf32>
    %c6_241 = arith.constant 6 : index
    %c0_242 = arith.constant 0 : index
    %c0_243 = arith.constant 0 : index
    %431 = vector.load %arg8[%c6_241, %c0_242, %c0_243] : memref<8x1x16xf32, #tpu.memory_space<vmem>>, vector<1x1x16xf32>
    %432 = vector.shape_cast %431 : vector<1x1x16xf32> to vector<1x16xf32>
    %433 = vector.broadcast %432 : vector<1x16xf32> to vector<48x16xf32>
    %434 = arith.addf %430, %433 : vector<48x16xf32>
    %c6_244 = arith.constant 6 : index
    %c0_245 = arith.constant 0 : index
    %c0_246 = arith.constant 0 : index
    %435 = vector.load %arg6[%c6_244, %c0_245, %c0_246] : memref<8x64x16xbf16, #tpu.memory_space<vmem>>, vector<1x64x16xbf16>
    %436 = vector.shape_cast %435 : vector<1x64x16xbf16> to vector<64x16xbf16>
    %cst_247 = arith.constant dense<0.000000e+00> : vector<48x16xf32>
    %437 = tpu.matmul %326, %436, %cst_247 {dimension_numbers = #tpu.dot_dimension_numbers<[1], [0], [0], [1], [0, 0, 1, 1], [], []>} : vector<48x64xbf16>, vector<64x16xbf16>, vector<48x16xf32> -> vector<48x16xf32>
    %c6_248 = arith.constant 6 : index
    %c0_249 = arith.constant 0 : index
    %c0_250 = arith.constant 0 : index
    %438 = vector.load %arg9[%c6_248, %c0_249, %c0_250] : memref<8x1x16xf32, #tpu.memory_space<vmem>>, vector<1x1x16xf32>
    %439 = vector.shape_cast %438 : vector<1x1x16xf32> to vector<1x16xf32>
    %440 = vector.broadcast %439 : vector<1x16xf32> to vector<48x16xf32>
    %441 = arith.addf %437, %440 : vector<48x16xf32>
    %c6_251 = arith.constant 6 : index
    %c0_252 = arith.constant 0 : index
    %c0_253 = arith.constant 0 : index
    %442 = vector.load %arg7[%c6_251, %c0_252, %c0_253] : memref<8x64x16xbf16, #tpu.memory_space<vmem>>, vector<1x64x16xbf16>
    %443 = vector.shape_cast %442 : vector<1x64x16xbf16> to vector<64x16xbf16>
    %cst_254 = arith.constant dense<0.000000e+00> : vector<48x16xf32>
    %444 = tpu.matmul %326, %443, %cst_254 {dimension_numbers = #tpu.dot_dimension_numbers<[1], [0], [0], [1], [0, 0, 1, 1], [], []>} : vector<48x64xbf16>, vector<64x16xbf16>, vector<48x16xf32> -> vector<48x16xf32>
    %c6_255 = arith.constant 6 : index
    %c0_256 = arith.constant 0 : index
    %c0_257 = arith.constant 0 : index
    %445 = vector.load %arg10[%c6_255, %c0_256, %c0_257] : memref<8x1x16xf32, #tpu.memory_space<vmem>>, vector<1x1x16xf32>
    %446 = vector.shape_cast %445 : vector<1x1x16xf32> to vector<1x16xf32>
    %447 = vector.broadcast %446 : vector<1x16xf32> to vector<48x16xf32>
    %448 = arith.addf %444, %447 : vector<48x16xf32>
    %449 = vector.shape_cast %434 : vector<48x16xf32> to vector<2x24x16xf32>
    %450 = arith.truncf %449 : vector<2x24x16xf32> to vector<2x24x16xbf16>
    %451 = vector.shape_cast %441 : vector<48x16xf32> to vector<2x24x16xf32>
    %452 = arith.truncf %451 : vector<2x24x16xf32> to vector<2x24x16xbf16>
    %453 = vector.shape_cast %448 : vector<48x16xf32> to vector<2x24x16xf32>
    %454 = arith.truncf %453 : vector<2x24x16xf32> to vector<2x24x16xbf16>
    "tpu.trace_start"() <{level = 10 : i32, message = "bqd,bkd->bqk"}> : () -> ()
    %cst_258 = arith.constant dense<0.000000e+00> : vector<2x24x24xf32>
    %455 = tpu.matmul %450, %452, %cst_258 {dimension_numbers = #tpu.dot_dimension_numbers<[2], [2], [1], [1], [0, 0, 0, 1, 1, 1], [0], [0]>} : vector<2x24x16xbf16>, vector<2x24x16xbf16>, vector<2x24x24xf32> -> vector<2x24x24xf32>
    "tpu.trace_stop"() : () -> ()
    %cst_259 = arith.constant 2.500000e-01 : f32
    %456 = vector.broadcast %cst_259 : f32 to vector<2x24x24xf32>
    %457 = arith.mulf %455, %456 : vector<2x24x24xf32>
    %458 = vector.broadcast %5 : vector<1x1x24xf32> to vector<2x24x24xf32>
    %459 = arith.addf %457, %458 : vector<2x24x24xf32>
    %cst_260 = arith.constant dense<0xFF800000> : vector<2x24xf32>
    %460 = vector.multi_reduction <maximumf>, %459, %cst_260 [2] : vector<2x24x24xf32> to vector<2x24xf32>
    %461 = vector.shape_cast %460 : vector<2x24xf32> to vector<2x24x1xf32>
    %462 = vector.broadcast %461 : vector<2x24x1xf32> to vector<2x24x24xf32>
    %463 = arith.subf %459, %462 : vector<2x24x24xf32>
    %464 = math.exp %463 : vector<2x24x24xf32>
    %cst_261 = arith.constant dense<0.000000e+00> : vector<2x24xf32>
    %465 = vector.multi_reduction <add>, %464, %cst_261 [2] : vector<2x24x24xf32> to vector<2x24xf32>
    %466 = vector.shape_cast %465 : vector<2x24xf32> to vector<2x24x1xf32>
    %467 = tpu.reciprocal %466 {approx = true} : vector<2x24x1xf32> -> vector<2x24x1xf32>
    %468 = vector.broadcast %467 : vector<2x24x1xf32> to vector<2x24x24xf32>
    %469 = arith.mulf %464, %468 : vector<2x24x24xf32>
    %470 = arith.truncf %469 : vector<2x24x24xf32> to vector<2x24x24xbf16>
    "tpu.trace_start"() <{level = 10 : i32, message = "bqk,bkd->bqd"}> : () -> ()
    %cst_262 = arith.constant dense<0.000000e+00> : vector<2x24x16xf32>
    %471 = tpu.matmul %470, %454, %cst_262 {dimension_numbers = #tpu.dot_dimension_numbers<[2], [1], [1], [2], [0, 0, 0, 1, 1, 2], [0], [0]>} : vector<2x24x24xbf16>, vector<2x24x16xbf16>, vector<2x24x16xf32> -> vector<2x24x16xf32>
    "tpu.trace_stop"() : () -> ()
    %472 = vector.shape_cast %471 : vector<2x24x16xf32> to vector<48x16xf32>
    %473 = arith.truncf %472 : vector<48x16xf32> to vector<48x16xbf16>
    %c6_263 = arith.constant 6 : index
    %c0_264 = arith.constant 0 : index
    %c0_265 = arith.constant 0 : index
    %474 = vector.load %arg11[%c6_263, %c0_264, %c0_265] : memref<8x16x64xbf16, #tpu.memory_space<vmem>>, vector<1x16x64xbf16>
    %475 = vector.shape_cast %474 : vector<1x16x64xbf16> to vector<16x64xbf16>
    %cst_266 = arith.constant dense<0.000000e+00> : vector<48x64xf32>
    %476 = tpu.matmul %473, %475, %cst_266 {dimension_numbers = #tpu.dot_dimension_numbers<[1], [0], [0], [1], [0, 0, 1, 1], [], []>} : vector<48x16xbf16>, vector<16x64xbf16>, vector<48x64xf32> -> vector<48x64xf32>
    %477 = arith.addf %427, %476 : vector<48x64xf32>
    %c7 = arith.constant 7 : index
    %c0_267 = arith.constant 0 : index
    %c0_268 = arith.constant 0 : index
    %478 = vector.load %arg5[%c7, %c0_267, %c0_268] : memref<8x64x16xbf16, #tpu.memory_space<vmem>>, vector<1x64x16xbf16>
    %479 = vector.shape_cast %478 : vector<1x64x16xbf16> to vector<64x16xbf16>
    %cst_269 = arith.constant dense<0.000000e+00> : vector<48x16xf32>
    %480 = tpu.matmul %326, %479, %cst_269 {dimension_numbers = #tpu.dot_dimension_numbers<[1], [0], [0], [1], [0, 0, 1, 1], [], []>} : vector<48x64xbf16>, vector<64x16xbf16>, vector<48x16xf32> -> vector<48x16xf32>
    %c7_270 = arith.constant 7 : index
    %c0_271 = arith.constant 0 : index
    %c0_272 = arith.constant 0 : index
    %481 = vector.load %arg8[%c7_270, %c0_271, %c0_272] : memref<8x1x16xf32, #tpu.memory_space<vmem>>, vector<1x1x16xf32>
    %482 = vector.shape_cast %481 : vector<1x1x16xf32> to vector<1x16xf32>
    %483 = vector.broadcast %482 : vector<1x16xf32> to vector<48x16xf32>
    %484 = arith.addf %480, %483 : vector<48x16xf32>
    %c7_273 = arith.constant 7 : index
    %c0_274 = arith.constant 0 : index
    %c0_275 = arith.constant 0 : index
    %485 = vector.load %arg6[%c7_273, %c0_274, %c0_275] : memref<8x64x16xbf16, #tpu.memory_space<vmem>>, vector<1x64x16xbf16>
    %486 = vector.shape_cast %485 : vector<1x64x16xbf16> to vector<64x16xbf16>
    %cst_276 = arith.constant dense<0.000000e+00> : vector<48x16xf32>
    %487 = tpu.matmul %326, %486, %cst_276 {dimension_numbers = #tpu.dot_dimension_numbers<[1], [0], [0], [1], [0, 0, 1, 1], [], []>} : vector<48x64xbf16>, vector<64x16xbf16>, vector<48x16xf32> -> vector<48x16xf32>
    %c7_277 = arith.constant 7 : index
    %c0_278 = arith.constant 0 : index
    %c0_279 = arith.constant 0 : index
    %488 = vector.load %arg9[%c7_277, %c0_278, %c0_279] : memref<8x1x16xf32, #tpu.memory_space<vmem>>, vector<1x1x16xf32>
    %489 = vector.shape_cast %488 : vector<1x1x16xf32> to vector<1x16xf32>
    %490 = vector.broadcast %489 : vector<1x16xf32> to vector<48x16xf32>
    %491 = arith.addf %487, %490 : vector<48x16xf32>
    %c7_280 = arith.constant 7 : index
    %c0_281 = arith.constant 0 : index
    %c0_282 = arith.constant 0 : index
    %492 = vector.load %arg7[%c7_280, %c0_281, %c0_282] : memref<8x64x16xbf16, #tpu.memory_space<vmem>>, vector<1x64x16xbf16>
    %493 = vector.shape_cast %492 : vector<1x64x16xbf16> to vector<64x16xbf16>
    %cst_283 = arith.constant dense<0.000000e+00> : vector<48x16xf32>
    %494 = tpu.matmul %326, %493, %cst_283 {dimension_numbers = #tpu.dot_dimension_numbers<[1], [0], [0], [1], [0, 0, 1, 1], [], []>} : vector<48x64xbf16>, vector<64x16xbf16>, vector<48x16xf32> -> vector<48x16xf32>
    %c7_284 = arith.constant 7 : index
    %c0_285 = arith.constant 0 : index
    %c0_286 = arith.constant 0 : index
    %495 = vector.load %arg10[%c7_284, %c0_285, %c0_286] : memref<8x1x16xf32, #tpu.memory_space<vmem>>, vector<1x1x16xf32>
    %496 = vector.shape_cast %495 : vector<1x1x16xf32> to vector<1x16xf32>
    %497 = vector.broadcast %496 : vector<1x16xf32> to vector<48x16xf32>
    %498 = arith.addf %494, %497 : vector<48x16xf32>
    %499 = vector.shape_cast %484 : vector<48x16xf32> to vector<2x24x16xf32>
    %500 = arith.truncf %499 : vector<2x24x16xf32> to vector<2x24x16xbf16>
    %501 = vector.shape_cast %491 : vector<48x16xf32> to vector<2x24x16xf32>
    %502 = arith.truncf %501 : vector<2x24x16xf32> to vector<2x24x16xbf16>
    %503 = vector.shape_cast %498 : vector<48x16xf32> to vector<2x24x16xf32>
    %504 = arith.truncf %503 : vector<2x24x16xf32> to vector<2x24x16xbf16>
    "tpu.trace_start"() <{level = 10 : i32, message = "bqd,bkd->bqk"}> : () -> ()
    %cst_287 = arith.constant dense<0.000000e+00> : vector<2x24x24xf32>
    %505 = tpu.matmul %500, %502, %cst_287 {dimension_numbers = #tpu.dot_dimension_numbers<[2], [2], [1], [1], [0, 0, 0, 1, 1, 1], [0], [0]>} : vector<2x24x16xbf16>, vector<2x24x16xbf16>, vector<2x24x24xf32> -> vector<2x24x24xf32>
    "tpu.trace_stop"() : () -> ()
    %cst_288 = arith.constant 2.500000e-01 : f32
    %506 = vector.broadcast %cst_288 : f32 to vector<2x24x24xf32>
    %507 = arith.mulf %505, %506 : vector<2x24x24xf32>
    %508 = vector.broadcast %5 : vector<1x1x24xf32> to vector<2x24x24xf32>
    %509 = arith.addf %507, %508 : vector<2x24x24xf32>
    %cst_289 = arith.constant dense<0xFF800000> : vector<2x24xf32>
    %510 = vector.multi_reduction <maximumf>, %509, %cst_289 [2] : vector<2x24x24xf32> to vector<2x24xf32>
    %511 = vector.shape_cast %510 : vector<2x24xf32> to vector<2x24x1xf32>
    %512 = vector.broadcast %511 : vector<2x24x1xf32> to vector<2x24x24xf32>
    %513 = arith.subf %509, %512 : vector<2x24x24xf32>
    %514 = math.exp %513 : vector<2x24x24xf32>
    %cst_290 = arith.constant dense<0.000000e+00> : vector<2x24xf32>
    %515 = vector.multi_reduction <add>, %514, %cst_290 [2] : vector<2x24x24xf32> to vector<2x24xf32>
    %516 = vector.shape_cast %515 : vector<2x24xf32> to vector<2x24x1xf32>
    %517 = tpu.reciprocal %516 {approx = true} : vector<2x24x1xf32> -> vector<2x24x1xf32>
    %518 = vector.broadcast %517 : vector<2x24x1xf32> to vector<2x24x24xf32>
    %519 = arith.mulf %514, %518 : vector<2x24x24xf32>
    %520 = arith.truncf %519 : vector<2x24x24xf32> to vector<2x24x24xbf16>
    "tpu.trace_start"() <{level = 10 : i32, message = "bqk,bkd->bqd"}> : () -> ()
    %cst_291 = arith.constant dense<0.000000e+00> : vector<2x24x16xf32>
    %521 = tpu.matmul %520, %504, %cst_291 {dimension_numbers = #tpu.dot_dimension_numbers<[2], [1], [1], [2], [0, 0, 0, 1, 1, 2], [0], [0]>} : vector<2x24x24xbf16>, vector<2x24x16xbf16>, vector<2x24x16xf32> -> vector<2x24x16xf32>
    "tpu.trace_stop"() : () -> ()
    %522 = vector.shape_cast %521 : vector<2x24x16xf32> to vector<48x16xf32>
    %523 = arith.truncf %522 : vector<48x16xf32> to vector<48x16xbf16>
    %c7_292 = arith.constant 7 : index
    %c0_293 = arith.constant 0 : index
    %c0_294 = arith.constant 0 : index
    %524 = vector.load %arg11[%c7_292, %c0_293, %c0_294] : memref<8x16x64xbf16, #tpu.memory_space<vmem>>, vector<1x16x64xbf16>
    %525 = vector.shape_cast %524 : vector<1x16x64xbf16> to vector<16x64xbf16>
    %cst_295 = arith.constant dense<0.000000e+00> : vector<48x64xf32>
    %526 = tpu.matmul %523, %525, %cst_295 {dimension_numbers = #tpu.dot_dimension_numbers<[1], [0], [0], [1], [0, 0, 1, 1], [], []>} : vector<48x16xbf16>, vector<16x64xbf16>, vector<48x64xf32> -> vector<48x64xf32>
    %527 = arith.addf %477, %526 : vector<48x64xf32>
    %528 = arith.addf %299, %527 : vector<48x64xf32>
    %c1_296 = arith.constant 1 : index
    %c0_297 = arith.constant 0 : index
    %c0_298 = arith.constant 0 : index
    %529 = vector.load %arg12[%c1_296, %c0_297, %c0_298] : memref<2x1x64xf32, #tpu.memory_space<vmem>>, vector<1x1x64xf32>
    %530 = vector.shape_cast %529 : vector<1x1x64xf32> to vector<1x64xf32>
    %531 = vector.broadcast %530 : vector<1x64xf32> to vector<48x64xf32>
    %532 = arith.addf %528, %531 : vector<48x64xf32>
    %c1_299 = arith.constant 1 : index
    %c0_300 = arith.constant 0 : index
    %c0_301 = arith.constant 0 : index
    %533 = vector.load %arg13[%c1_299, %c0_300, %c0_301] : memref<2x1x64xf32, #tpu.memory_space<vmem>>, vector<1x1x64xf32>
    %534 = vector.shape_cast %533 : vector<1x1x64xf32> to vector<1x64xf32>
    %c1_302 = arith.constant 1 : index
    %c0_303 = arith.constant 0 : index
    %c0_304 = arith.constant 0 : index
    %535 = vector.load %arg14[%c1_302, %c0_303, %c0_304] : memref<2x1x64xf32, #tpu.memory_space<vmem>>, vector<1x1x64xf32>
    %536 = vector.shape_cast %535 : vector<1x1x64xf32> to vector<1x64xf32>
    %cst_305 = arith.constant dense<0.000000e+00> : vector<48xf32>
    %537 = vector.multi_reduction <add>, %532, %cst_305 [1] : vector<48x64xf32> to vector<48xf32>
    %538 = vector.shape_cast %537 : vector<48xf32> to vector<48x1xf32>
    %cst_306 = arith.constant 6.400000e+01 : f32
    %539 = vector.broadcast %cst_306 : f32 to vector<48x1xf32>
    %540 = arith.divf %538, %539 : vector<48x1xf32>
    %541 = vector.broadcast %540 : vector<48x1xf32> to vector<48x64xf32>
    %542 = arith.subf %532, %541 : vector<48x64xf32>
    %543 = arith.mulf %542, %542 : vector<48x64xf32>
    %cst_307 = arith.constant dense<0.000000e+00> : vector<48xf32>
    %544 = vector.multi_reduction <add>, %543, %cst_307 [1] : vector<48x64xf32> to vector<48xf32>
    %545 = vector.shape_cast %544 : vector<48xf32> to vector<48x1xf32>
    %cst_308 = arith.constant 6.400000e+01 : f32
    %546 = vector.broadcast %cst_308 : f32 to vector<48x1xf32>
    %547 = arith.divf %545, %546 : vector<48x1xf32>
    %548 = vector.broadcast %540 : vector<48x1xf32> to vector<48x64xf32>
    %549 = arith.subf %532, %548 : vector<48x64xf32>
    %cst_309 = arith.constant 9.99999997E-7 : f32
    %550 = vector.broadcast %cst_309 : f32 to vector<48x1xf32>
    %551 = arith.addf %547, %550 : vector<48x1xf32>
    %552 = math.rsqrt %551 : vector<48x1xf32>
    %553 = vector.broadcast %552 : vector<48x1xf32> to vector<48x64xf32>
    %554 = arith.mulf %549, %553 : vector<48x64xf32>
    %555 = vector.broadcast %534 : vector<1x64xf32> to vector<48x64xf32>
    %556 = arith.mulf %554, %555 : vector<48x64xf32>
    %557 = vector.broadcast %536 : vector<1x64xf32> to vector<48x64xf32>
    %558 = arith.addf %556, %557 : vector<48x64xf32>
    %559 = arith.truncf %558 : vector<48x64xf32> to vector<48x64xbf16>
    %c1_310 = arith.constant 1 : index
    %c0_311 = arith.constant 0 : index
    %c0_312 = arith.constant 0 : index
    %560 = vector.load %arg15[%c1_310, %c0_311, %c0_312] : memref<2x64x256xbf16, #tpu.memory_space<vmem>>, vector<1x64x256xbf16>
    %561 = vector.shape_cast %560 : vector<1x64x256xbf16> to vector<64x256xbf16>
    %cst_313 = arith.constant dense<0.000000e+00> : vector<48x256xf32>
    %562 = tpu.matmul %559, %561, %cst_313 {dimension_numbers = #tpu.dot_dimension_numbers<[1], [0], [0], [1], [0, 0, 1, 1], [], []>} : vector<48x64xbf16>, vector<64x256xbf16>, vector<48x256xf32> -> vector<48x256xf32>
    %c1_314 = arith.constant 1 : index
    %c0_315 = arith.constant 0 : index
    %c0_316 = arith.constant 0 : index
    %563 = vector.load %arg16[%c1_314, %c0_315, %c0_316] : memref<2x1x256xf32, #tpu.memory_space<vmem>>, vector<1x1x256xf32>
    %564 = vector.shape_cast %563 : vector<1x1x256xf32> to vector<1x256xf32>
    %565 = vector.broadcast %564 : vector<1x256xf32> to vector<48x256xf32>
    %566 = arith.addf %562, %565 : vector<48x256xf32>
    %567 = arith.mulf %566, %566 : vector<48x256xf32>
    %568 = arith.mulf %566, %567 : vector<48x256xf32>
    %cst_317 = arith.constant 4.471500e-02 : f32
    %569 = vector.broadcast %cst_317 : f32 to vector<48x256xf32>
    %570 = arith.mulf %569, %568 : vector<48x256xf32>
    %571 = arith.addf %566, %570 : vector<48x256xf32>
    %cst_318 = arith.constant 0.797884583 : f32
    %572 = vector.broadcast %cst_318 : f32 to vector<48x256xf32>
    %573 = arith.mulf %572, %571 : vector<48x256xf32>
    %574 = math.tanh %573 : vector<48x256xf32>
    %cst_319 = arith.constant 1.000000e+00 : f32
    %575 = vector.broadcast %cst_319 : f32 to vector<48x256xf32>
    %576 = arith.addf %575, %574 : vector<48x256xf32>
    %cst_320 = arith.constant 5.000000e-01 : f32
    %577 = vector.broadcast %cst_320 : f32 to vector<48x256xf32>
    %578 = arith.mulf %577, %576 : vector<48x256xf32>
    %579 = arith.mulf %566, %578 : vector<48x256xf32>
    %580 = arith.truncf %579 : vector<48x256xf32> to vector<48x256xbf16>
    %c1_321 = arith.constant 1 : index
    %c0_322 = arith.constant 0 : index
    %c0_323 = arith.constant 0 : index
    %581 = vector.load %arg17[%c1_321, %c0_322, %c0_323] : memref<2x256x64xbf16, #tpu.memory_space<vmem>>, vector<1x256x64xbf16>
    %582 = vector.shape_cast %581 : vector<1x256x64xbf16> to vector<256x64xbf16>
    %cst_324 = arith.constant dense<0.000000e+00> : vector<48x64xf32>
    %583 = tpu.matmul %580, %582, %cst_324 {dimension_numbers = #tpu.dot_dimension_numbers<[1], [0], [0], [1], [0, 0, 1, 1], [], []>} : vector<48x256xbf16>, vector<256x64xbf16>, vector<48x64xf32> -> vector<48x64xf32>
    %c1_325 = arith.constant 1 : index
    %c0_326 = arith.constant 0 : index
    %c0_327 = arith.constant 0 : index
    %584 = vector.load %arg18[%c1_325, %c0_326, %c0_327] : memref<2x1x64xf32, #tpu.memory_space<vmem>>, vector<1x1x64xf32>
    %585 = vector.shape_cast %584 : vector<1x1x64xf32> to vector<1x64xf32>
    %586 = vector.broadcast %585 : vector<1x64xf32> to vector<48x64xf32>
    %587 = arith.addf %583, %586 : vector<48x64xf32>
    %588 = arith.addf %532, %587 : vector<48x64xf32>
    %589 = vector.extract_strided_slice %588 {offsets = [0, 0], sizes = [1, 64], strides = [1, 1]} : vector<48x64xf32> to vector<1x64xf32>
    %590 = vector.extract_strided_slice %588 {offsets = [24, 0], sizes = [1, 64], strides = [1, 1]} : vector<48x64xf32> to vector<1x64xf32>
    %591 = tpu.concatenate %589, %590 in 0 : vector<1x64xf32>, vector<1x64xf32> -> vector<2x64xf32>
    %c0_328 = arith.constant 0 : index
    %c0_329 = arith.constant 0 : index
    %592 = vector.load %arg19[%c0_328, %c0_329] : memref<1x64xf32, #tpu.memory_space<vmem>>, vector<1x64xf32>
    %c0_330 = arith.constant 0 : index
    %c0_331 = arith.constant 0 : index
    %593 = vector.load %arg20[%c0_330, %c0_331] : memref<1x64xf32, #tpu.memory_space<vmem>>, vector<1x64xf32>
    %cst_332 = arith.constant dense<0.000000e+00> : vector<2xf32>
    %594 = vector.multi_reduction <add>, %591, %cst_332 [1] : vector<2x64xf32> to vector<2xf32>
    %595 = vector.shape_cast %594 : vector<2xf32> to vector<2x1xf32>
    %cst_333 = arith.constant 6.400000e+01 : f32
    %596 = vector.broadcast %cst_333 : f32 to vector<2x1xf32>
    %597 = arith.divf %595, %596 : vector<2x1xf32>
    %598 = vector.broadcast %597 : vector<2x1xf32> to vector<2x64xf32>
    %599 = arith.subf %591, %598 : vector<2x64xf32>
    %600 = arith.mulf %599, %599 : vector<2x64xf32>
    %cst_334 = arith.constant dense<0.000000e+00> : vector<2xf32>
    %601 = vector.multi_reduction <add>, %600, %cst_334 [1] : vector<2x64xf32> to vector<2xf32>
    %602 = vector.shape_cast %601 : vector<2xf32> to vector<2x1xf32>
    %cst_335 = arith.constant 6.400000e+01 : f32
    %603 = vector.broadcast %cst_335 : f32 to vector<2x1xf32>
    %604 = arith.divf %602, %603 : vector<2x1xf32>
    %605 = vector.broadcast %597 : vector<2x1xf32> to vector<2x64xf32>
    %606 = arith.subf %591, %605 : vector<2x64xf32>
    %cst_336 = arith.constant 9.99999997E-7 : f32
    %607 = vector.broadcast %cst_336 : f32 to vector<2x1xf32>
    %608 = arith.addf %604, %607 : vector<2x1xf32>
    %609 = math.rsqrt %608 : vector<2x1xf32>
    %610 = vector.broadcast %609 : vector<2x1xf32> to vector<2x64xf32>
    %611 = arith.mulf %606, %610 : vector<2x64xf32>
    %612 = vector.broadcast %592 : vector<1x64xf32> to vector<2x64xf32>
    %613 = arith.mulf %611, %612 : vector<2x64xf32>
    %614 = vector.broadcast %593 : vector<1x64xf32> to vector<2x64xf32>
    %615 = arith.addf %613, %614 : vector<2x64xf32>
    %616 = arith.truncf %615 : vector<2x64xf32> to vector<2x64xbf16>
    %c0_337 = arith.constant 0 : index
    %c0_338 = arith.constant 0 : index
    %617 = vector.load %arg21[%c0_337, %c0_338] : memref<64x128xbf16, #tpu.memory_space<vmem>>, vector<64x128xbf16>
    %cst_339 = arith.constant dense<0.000000e+00> : vector<2x128xf32>
    %618 = tpu.matmul %616, %617, %cst_339 {dimension_numbers = #tpu.dot_dimension_numbers<[1], [0], [0], [1], [0, 0, 1, 1], [], []>} : vector<2x64xbf16>, vector<64x128xbf16>, vector<2x128xf32> -> vector<2x128xf32>
    %c0_340 = arith.constant 0 : index
    %c0_341 = arith.constant 0 : index
    %619 = vector.load %arg22[%c0_340, %c0_341] : memref<1x128xf32, #tpu.memory_space<vmem>>, vector<1x128xf32>
    %620 = vector.broadcast %619 : vector<1x128xf32> to vector<2x128xf32>
    %621 = arith.addf %618, %620 : vector<2x128xf32>
    %c0_342 = arith.constant 0 : index
    %c0_343 = arith.constant 0 : index
    %622 = vector.load %arg23[%c0_342, %c0_343] : memref<2x128xf32, #tpu.memory_space<vmem>>, vector<2x128xf32>
    tpu.vector_store %arg23[%c0_342, %c0_343], %621 {strides = array<i32>} : memref<2x128xf32, #tpu.memory_space<vmem>>, vector<2x128xf32>,
    return
  }
}

</mosaic_0001>

<bundles_post_ra>
// kernel: vit_forward.1
= control target key start
LH: loop header
LB: loop body
LE: loop exit
PB: predicated region body
PF: predicated region fallthrough
CT: control target
= control target key end

     0   :  { %s9601_s0 = inlined_call_operand.vmem [shape: bf16[48,64], index: 0, kind: input, shape index: {}]   ;;  %s9602_s1 = inlined_call_operand.vmem [shape: f32[48,64], index: 1, kind: input, shape index: {}]   ;;  %s9603_s2 = inlined_call_operand.vmem [shape: bf16[64,64], index: 2, kind: input, shape index: {}]   ;;  %s9604_s3 = inlined_call_operand.vmem [shape: f32[2,1,64], index: 3, kind: input, shape index: {}]   ;;  %s9605_s4 = inlined_call_operand.vmem [shape: f32[2,1,64], index: 4, kind: input, shape index: {}]   ;;  %s9606_s5 = inlined_call_operand.vmem [shape: bf16[8,64,16], index: 5, kind: input, shape index: {}]   ;;  %s9607_s6 = inlined_call_operand.vmem [shape: bf16[8,64,16], index: 6, kind: input, shape index: {}]   ;;  %s9608_s7 = inlined_call_operand.vmem [shape: bf16[8,64,16], index: 7, kind: input, shape index: {}]   ;;  %s9609_s8 = inlined_call_operand.vmem [shape: f32[8,1,16], index: 8, kind: input, shape index: {}]   ;;  %s9610_s9 = inlined_call_operand.vmem [shape: f32[8,1,16], index: 9, kind: input, shape index: {}]   ;;  %s9611_s10 = inlined_call_operand.vmem [shape: f32[8,1,16], index: 10, kind: input, shape index: {}]   ;;  %s9612_s11 = inlined_call_operand.vmem [shape: bf16[8,16,64], index: 11, kind: input, shape index: {}]   ;;  %s9613_s12 = inlined_call_operand.vmem [shape: f32[2,1,64], index: 12, kind: input, shape index: {}]   ;;  %s9614_s13 = inlined_call_operand.vmem [shape: f32[2,1,64], index: 13, kind: input, shape index: {}]   ;;  %s9615_s14 = inlined_call_operand.vmem [shape: f32[2,1,64], index: 14, kind: input, shape index: {}]   ;;  %s9616_s15 = inlined_call_operand.vmem [shape: bf16[2,64,256], index: 15, kind: input, shape index: {}]   ;;  %s9617_s16 = inlined_call_operand.vmem [shape: f32[2,1,256], index: 16, kind: input, shape index: {}]   ;;  %s9618_s17 = inlined_call_operand.vmem [shape: bf16[2,256,64], index: 17, kind: input, shape index: {}]   ;;  %s9619_s18 = inlined_call_operand.vmem [shape: f32[2,1,64], index: 18, kind: input, shape index: {}]   ;;  %s9620_s19 = inlined_call_operand.vmem [shape: f32[1,64], index: 19, kind: input, shape index: {}]   ;;  %s9621_s20 = inlined_call_operand.vmem [shape: f32[1,64], index: 20, kind: input, shape index: {}]   ;;  %s9622_s21 = inlined_call_operand.vmem [shape: bf16[64,128], index: 21, kind: input, shape index: {}]   ;;  %s9623_s22 = inlined_call_operand.vmem [shape: f32[1,128], index: 22, kind: input, shape index: {}]   ;;  %s9624_s23 = inlined_call_operand.hbm [shape: f32[2,128], index: 23, kind: output, shape index: {}]  }
   0x1   :  { %9633 = sst [smem:[#allocation5_spill]] %s9601_s0 }
   0x2   :  { %9634 = sst [smem:[#allocation6_spill]] %s9602_s1 }
   0x3   :  { %9635 = sst [smem:[#allocation7_spill]] %s9603_s2 }
   0x4   :  { %9636 = sst [smem:[#allocation8_spill]] %s9604_s3 }
   0x5   :  { %9637 = sst [smem:[#allocation9_spill]] %s9605_s4 }
   0x6   :  { %9638 = sst [smem:[#allocation10_spill]] %s9606_s5 }
   0x7   :  { %9639 = sst [smem:[#allocation11_spill]] %s9607_s6 }
   0x8   :  { %9640 = sst [smem:[#allocation12_spill]] %s9608_s7 }
   0x9   :  { %s9641_s24 = sld [smem:[#allocation7_spill]]  ;;  %vm139_vm0 = vcmask 523264  }
   0xa   :  { %s9642_s28 = sld [smem:[#allocation5_spill]] }
   0xf   :  { %v6985_v0 = vld [vmem:[%s9641_s24 + $0x18] sm:$0xff]  ;;  %v6984_v1 = vld [vmem:[%s9641_s24 + $0x10] sm:$0xff]  ;;  %v6983_v2 = vld [vmem:[%s9641_s24 + $0x8] sm:$0xff] }
  0x10   :  { %153 = vmatpush.bf16.msra.mxu0 %v6985_v0  ;;  %v6982_v3 = vld [vmem:[%s9641_s24] sm:$0xff] }
  0x11   :  { %v6979_v4 = vld [vmem:[%s9642_s28] sm:$0xff] }
  0x14   :  { %154 = vmatpush.bf16.msra.mxu0 %v6984_v1 }
  0x18   :  { %155 = vmatpush.bf16.msra.mxu0 %v6983_v2 }
  0x1c   :  { %156 = vmatpush.bf16.msra.mxu0 %v6982_v3 }
  0x1d   :  { %28 = vsyncpa [#allocation3], 0  ;;  %v6980_v5 = vld [vmem:[%s9642_s28 + $0x8] sm:$0xff]  ;;  %v6981_v6 = vld [vmem:[%s9642_s28 + $0x10] sm:$0xff]  ;;  %s9643_s25 = sld [smem:[#allocation6_spill]]  ;;  %v7506_v31 = vmov 64.0  }
  0x1e   :  { %7188 = vrcp.f32 %v7506_v31  ;;  %s9644_s30 = sld [smem:[#allocation10_spill]] }
  0x1f   :  { %5929 = vmatmul.msk.bf16.vlgmr.msra.gmra.mxu0 %vm139_vm0, %v6979_v4  ;;  %s9645_s5 = sld [smem:[#allocation11_spill]] }
  0x20   :  { %s9646_s26 = sld [smem:[#allocation12_spill]] }
  0x21   :  { %s9647_s4 = sld [smem:[#allocation8_spill]] }
  0x22   :  { %s9648_s1 = sld [smem:[#allocation9_spill]] }
  0x23   :  { %v94_v7 = vld [vmem:[%s9643_s25] sm:$0xff]  ;;  %v95_v11 = vld [vmem:[%s9643_s25 + $0x8] sm:$0xff]  ;;  %v96_v15 = vld [vmem:[%s9643_s25 + $0x10] sm:$0xff] }
  0x24   :  { %v97_v19 = vld [vmem:[%s9643_s25 + $0x18] sm:$0xff]  ;;  %v98_v23 = vld [vmem:[%s9643_s25 + $0x20] sm:$0xff]  ;;  %v99_v27 = vld [vmem:[%s9643_s25 + $0x28] sm:$0xff]  ;;  %v7189_v32 = vpop.eup %7188 }
  0x25   :  { %v194_v33 = vmul.f32 64.0, %v7189_v32  ;;  %vm198_vm1 = vweird.f32 %v7189_v32  ;;  %v6989_v4 = vld [vmem:[%s9644_s30 + $0x18] sm:$0xff] }
  0x26   :  { %384 = vmatpush.bf16.msra.mxu1 %v6989_v4 }
  0x27   :  { %v195_v34 = vsub.f32 1.0, %v194_v33 }
  0x29   :  { %v196_v35 = vmul.f32 %v7189_v32, %v195_v34  ;;  %v6994_v34 = vld [vmem:[%s9646_s26] sm:$0xff] }
  0x2b   :  { %v197_v36 = vadd.f32 %v7189_v32, %v196_v35 }
  0x2d   :  { %v7695_v37 = vsel %vm198_vm1, %v7189_v32, %v197_v36 }
  0x2f   :  { %5930 = vmatmul.msk.bf16.gmra.mxu0 %vm139_vm0, %v6980_v5  ;;  %v6993_v5 = vld [vmem:[%s9645_s5 + $0x18] sm:$0xff] }
  0x30   :  { %444 = vmatpush.bf16.msra.mxu2 %v6993_v5 }
  0x3f   :  { %5931 = vmatmul.msk.bf16.gmra.mxu0 %vm139_vm0, %v6981_v6  ;;  %v6988_v6 = vld [vmem:[%s9644_s30 + $0x10] sm:$0xff] }
  0x40   :  { %385 = vmatpush.bf16.msra.mxu1 %v6988_v6 }
  0x9c   :  { %v158_v8 = vpop.f32.mrf.mxu0 }
  0x9d   :  { %v7656_v9 = vadd.f32 %v158_v8, %v94_v7  ;;  %v6992_v7 = vld [vmem:[%s9645_s5 + $0x10] sm:$0xff]  ;;  %v6987_v8 = vld [vmem:[%s9644_s30 + $0x8] sm:$0xff] }
  0x9e   :  { %445 = vmatpush.bf16.msra.mxu2 %v6992_v7  ;;  %386 = vmatpush.bf16.msra.mxu1 %v6987_v8 }
  0x9f   :  { %v175_v10 = vsel %vm139_vm0, %v7656_v9, 0.0 }
  0xa0   :  { %176 = vadd.xlane.f32.xlu0 %v175_v10  ;;  %v6991_v10 = vld [vmem:[%s9645_s5 + $0x8] sm:$0xff] }
  0xa2   :  { %446 = vmatpush.bf16.msra.mxu2 %v6991_v10 }
  0xa4   :  { %v160_v12 = vpop.f32.mrf.mxu0 }
  0xa5   :  { %v7663_v13 = vadd.f32 %v160_v12, %v95_v11 }
  0xa7   :  { %v178_v14 = vsel %vm139_vm0, %v7663_v13, 0.0 }
  0xa8   :  { %179 = vadd.xlane.f32.xlu0 %v178_v14  ;;  %v6986_v14 = vld [vmem:[%s9644_s30] sm:$0xff] }
  0xa9   :  { %387 = vmatpush.bf16.msra.mxu1 %v6986_v14 }
  0xac   :  { %v163_v16 = vpop.f32.mrf.mxu0 }
  0xad   :  { %v7670_v17 = vadd.f32 %v163_v16, %v96_v15  ;;  %v6990_v15 = vld [vmem:[%s9645_s5] sm:$0xff] }
  0xae   :  { %447 = vmatpush.bf16.msra.mxu2 %v6990_v15 }
  0xaf   :  { %v181_v18 = vsel %vm139_vm0, %v7670_v17, 0.0 }
  0xb0   :  { %182 = vadd.xlane.f32.xlu1 %v181_v18  ;;  %v6997_v18 = vld [vmem:[%s9646_s26 + $0x18] sm:$0xff] }
  0xb1   :  { %7142 = vmatpush.bf16.msra.mxu3 %v6997_v18  ;;  %504 = vmatpush.bf16.msrb.mxu1 %v6997_v18 }
  0xb4   :  { %v165_v20 = vpop.f32.mrf.mxu0 }
  0xb5   :  { %v7677_v21 = vadd.f32 %v165_v20, %v97_v19 }
  0xb7   :  { %v184_v22 = vsel %vm139_vm0, %v7677_v21, 0.0 }
  0xb8   :  { %185 = vadd.xlane.f32.xlu1 %v184_v22  ;;  %v6996_v22 = vld [vmem:[%s9646_s26 + $0x10] sm:$0xff] }
  0xb9   :  { %7143 = vmatpush.bf16.msra.mxu3 %v6996_v22  ;;  %505 = vmatpush.bf16.msrb.mxu1 %v6996_v22 }
  0xbc   :  { %v168_v24 = vpop.f32.mrf.mxu0 }
  0xbd   :  { %v7684_v25 = vadd.f32 %v168_v24, %v98_v23 }
  0xbf   :  { %v187_v26 = vsel %vm139_vm0, %v7684_v25, 0.0 }
  0xc0   :  { %188 = vadd.xlane.f32.xlu2 %v187_v26 }
  0xc4   :  { %v170_v28 = vpop.f32.mrf.mxu0 }
  0xc5   :  { %v7691_v29 = vadd.f32 %v170_v28, %v99_v27  ;;  %v6995_v28 = vld [vmem:[%s9646_s26 + $0x8] sm:$0xff] }
  0xc6   :  { %7144 = vmatpush.bf16.msra.mxu3 %v6995_v28  ;;  %506 = vmatpush.bf16.msrb.mxu1 %v6995_v28 }
  0xc7   :  { %v190_v30 = vsel %vm139_vm0, %v7691_v29, 0.0 }
  0xc8   :  { %191 = vadd.xlane.f32.xlu2 %v190_v30 }
  0xca   :  { %7145 = vmatpush.bf16.msra.mxu3 %v6994_v34  ;;  %507 = vmatpush.bf16.msrb.mxu1 %v6994_v34 }
 0x113   :  { %v177_v38 = vpop.xlane.xlu0 %176 }
 0x114   :  { %v200_v39 = vmul.f32 %v7695_v37, %v177_v38 }
 0x116   :  { %v7699_v40 = vsub.f32 %v7656_v9, %v200_v39 }
 0x118   :  { %v212_v41 = vmul.f32 %v7699_v40, %v7699_v40 }
 0x11a   :  { %v218_v42 = vsel %vm139_vm0, %v212_v41, 0.0 }
 0x11b   :  { %219 = vadd.xlane.f32.xlu0 %v218_v42  ;;  %v180_v43 = vpop.xlane.xlu0 %179 }
 0x11c   :  { %v201_v44 = vmul.f32 %v7695_v37, %v180_v43 }
 0x11e   :  { %v7706_v45 = vsub.f32 %v7663_v13, %v201_v44 }
 0x120   :  { %v213_v46 = vmul.f32 %v7706_v45, %v7706_v45 }
 0x122   :  { %v221_v47 = vsel %vm139_vm0, %v213_v46, 0.0 }
 0x123   :  { %v183_v48 = vpop.xlane.xlu1 %182  ;;  %222 = vadd.xlane.f32.xlu1 %v221_v47 }
 0x124   :  { %v202_v49 = vmul.f32 %v7695_v37, %v183_v48 }
 0x126   :  { %v7713_v50 = vsub.f32 %v7670_v17, %v202_v49  ;;  %v7782_v49 = vld [vmem:[%s9647_s4] ss:$0 sm:$0xff] }
 0x128   :  { %v214_v51 = vmul.f32 %v7713_v50, %v7713_v50 }
 0x12a   :  { %v224_v52 = vsel %vm139_vm0, %v214_v51, 0.0 }
 0x12b   :  { %225 = vadd.xlane.f32.xlu2 %v224_v52  ;;  %v186_v53 = vpop.xlane.xlu1 %185 }
 0x12c   :  { %v203_v54 = vmul.f32 %v7695_v37, %v186_v53 }
 0x12e   :  { %v7720_v55 = vsub.f32 %v7677_v21, %v203_v54 }
 0x130   :  { %v215_v56 = vmul.f32 %v7720_v55, %v7720_v55 }
 0x132   :  { %v227_v57 = vsel %vm139_vm0, %v215_v56, 0.0 }
 0x133   :  { %v189_v58 = vpop.xlane.xlu2 %188  ;;  %228 = vadd.xlane.f32.xlu0 %v227_v57 }
 0x134   :  { %v204_v59 = vmul.f32 %v7695_v37, %v189_v58  ;;  %v7788_v58 = vld [vmem:[%s9648_s1] ss:$0 sm:$0xff] }
 0x136   :  { %v7727_v60 = vsub.f32 %v7684_v25, %v204_v59 }
 0x138   :  { %v216_v61 = vmul.f32 %v7727_v60, %v7727_v60 }
 0x13a   :  { %v230_v62 = vsel %vm139_vm0, %v216_v61, 0.0 }
 0x13b   :  { %v192_v63 = vpop.xlane.xlu2 %191  ;;  %231 = vadd.xlane.f32.xlu1 %v230_v62 }
 0x13c   :  { %v205_v0 = vmul.f32 %v7695_v37, %v192_v63 }
 0x13e   :  { %v7734_v1 = vsub.f32 %v7691_v29, %v205_v0 }
 0x140   :  { %v217_v2 = vmul.f32 %v7734_v1, %v7734_v1 }
 0x142   :  { %v233_v3 = vsel %vm139_vm0, %v217_v2, 0.0 }
 0x143   :  { %234 = vadd.xlane.f32.xlu2 %v233_v3 }
 0x18e   :  { %v220_v11 = vpop.xlane.xlu0 %219 }
 0x18f   :  { %v236_v12 = vmul.f32 %v220_v11, %v7695_v37 }
 0x191   :  { %v242_v16 = vadd.f32 1e-06, %v236_v12 }
 0x193   :  { %7190 = vrsqrt.f32 %v242_v16  ;;  %vm254_vm3 = vweird.f32 %v242_v16 }
 0x196   :  { %v223_v19 = vpop.xlane.xlu1 %222 }
 0x197   :  { %v237_v20 = vmul.f32 %v223_v19, %v7695_v37 }
 0x199   :  { %v7191_v23 = vpop.eup %7190  ;;  %v243_v24 = vadd.f32 1e-06, %v237_v20 }
 0x19a   :  { %v249_v26 = vmul.f32 %v7191_v23, %v242_v16  ;;  %vm255_vm2 = vweird.f32 %v7191_v23 }
 0x19b   :  { %7192 = vrsqrt.f32 %v243_v24  ;;  %vm256_vm4 = vmor %vm254_vm3, %vm255_vm2  ;;  %vm264_vm6 = vweird.f32 %v243_v24 }
 0x19c   :  { %v250_v27 = vmul.f32 %v7191_v23, %v249_v26 }
 0x19e   :  { %v251_v30 = vmul.f32 0.5, %v250_v27  ;;  %v226_v31 = vpop.xlane.xlu2 %225 }
 0x19f   :  { %v238_v32 = vmul.f32 %v226_v31, %v7695_v37 }
 0x1a0   :  { %v252_v33 = vsub.f32 1.5, %v251_v30 }
 0x1a1   :  { %v7193_v35 = vpop.eup %7192  ;;  %v244_v36 = vadd.f32 1e-06, %v238_v32 }
 0x1a2   :  { %v253_v38 = vmul.f32 %v7191_v23, %v252_v33  ;;  %v259_v39 = vmul.f32 %v7193_v35, %v243_v24  ;;  %vm265_vm5 = vweird.f32 %v7193_v35 }
 0x1a3   :  { %7194 = vrsqrt.f32 %v244_v36  ;;  %vm266_vm7 = vmor %vm264_vm6, %vm265_vm5  ;;  %vm274_vm9 = vweird.f32 %v244_v36  ;;  %vm743_vm5 = vcmask 1043456   ;;  %vm558_vm6 = vcmask 130048  }
 0x1a4   :  { %v260_v41 = vmul.f32 %v7193_v35, %v259_v39  ;;  %v257_v42 = vsel %vm256_vm4, %v7191_v23, %v253_v38 }
 0x1a5   :  { %v308_v51 = vmul.f32 %v257_v42, %v7699_v40 }
 0x1a6   :  { %v261_v43 = vmul.f32 0.5, %v260_v41  ;;  %v229_v44 = vpop.xlane.xlu0 %228 }
 0x1a7   :  { %v239_v46 = vmul.f32 %v229_v44, %v7695_v37  ;;  %v317_v59 = vmul.f32 %v7782_v49, %v308_v51 }
 0x1a8   :  { %v262_v47 = vsub.f32 1.5, %v261_v43 }
 0x1a9   :  { %v7195_v48 = vpop.eup %7194  ;;  %v245_v52 = vadd.f32 1e-06, %v239_v46  ;;  %v326_v4 = vadd.f32 %v7788_v58, %v317_v59  ;;  %v7152_v59 = vld [vmem:[%s9610_s9] ss:$0 sm:$0xff] }
 0x1aa   :  { %v263_v53 = vmul.f32 %v7193_v35, %v262_v47  ;;  %v269_v54 = vmul.f32 %v7195_v48, %v244_v36  ;;  %vm275_vm8 = vweird.f32 %v7195_v48 }
 0x1ab   :  { %7196 = vrsqrt.f32 %v245_v52  ;;  %vm276_vm10 = vmor %vm274_vm9, %vm275_vm8  ;;  %vm284_vm12 = vweird.f32 %v245_v52  ;;  %vm647_vm8 = vcmask 195584  }
 0x1ac   :  { %v267_v56 = vsel %vm266_vm7, %v7193_v35, %v263_v53  ;;  %v270_v57 = vmul.f32 %v7195_v48, %v269_v54 }
 0x1ad   :  { %v309_v61 = vmul.f32 %v267_v56, %v7706_v45 }
 0x1ae   :  { %v271_v62 = vmul.f32 0.5, %v270_v57  ;;  %v232_v63 = vpop.xlane.xlu1 %231 }
 0x1af   :  { %v318_v40 = vmul.f32 %v7782_v49, %v309_v61  ;;  %v240_v0 = vmul.f32 %v232_v63, %v7695_v37 }
 0x1b0   :  { %v272_v2 = vsub.f32 1.5, %v271_v62 }
 0x1b1   :  { %v7197_v3 = vpop.eup %7196  ;;  %v327_v5 = vadd.f32 %v7788_v58, %v318_v40  ;;  %v246_v6 = vadd.f32 1e-06, %v240_v0 }
 0x1b2   :  { %v273_v7 = vmul.f32 %v7195_v48, %v272_v2  ;;  %v279_v8 = vmul.f32 %v7197_v3, %v245_v52  ;;  %vm285_vm11 = vweird.f32 %v7197_v3 }
 0x1b3   :  { %v7796_v10 = vpack.c.bf16 %v327_v5, %v326_v4  ;;  %7198 = vrsqrt.f32 %v246_v6  ;;  %vm286_vm13 = vmor %vm284_vm12, %vm285_vm11  ;;  %vm294_vm15 = vweird.f32 %v246_v6 }
 0x1b4   :  { %v280_v45 = vmul.f32 %v7197_v3, %v279_v8  ;;  %v277_v11 = vsel %vm276_vm10, %v7195_v48, %v273_v7 }
 0x1b5   :  { %5948 = vmatmul.msk.bf16.vlgmr.msra.gmra.mxu1 %vm139_vm0, %v7796_v10  ;;  %5967 = vmatmul.msk.bf16.vlgmr.msra.gmra.mxu2 %vm139_vm0, %v7796_v10  ;;  %v310_v19 = vmul.f32 %v277_v11, %v7713_v50 }
 0x1b6   :  { %v281_v12 = vmul.f32 0.5, %v280_v45  ;;  %v235_v14 = vpop.xlane.xlu2 %234 }
 0x1b7   :  { %v241_v15 = vmul.f32 %v235_v14, %v7695_v37  ;;  %v319_v27 = vmul.f32 %v7782_v49, %v310_v19 }
 0x1b8   :  { %v282_v16 = vsub.f32 1.5, %v281_v12 }
 0x1b9   :  { %v7199_v18 = vpop.eup %7198  ;;  %v247_v20 = vadd.f32 1e-06, %v241_v15  ;;  %v328_v34 = vadd.f32 %v7788_v58, %v319_v27  ;;  %v7847_v15 = vld [vmem:[%s9609_s8] ss:$0 sm:$0xff] }
 0x1ba   :  { %v283_v22 = vmul.f32 %v7197_v3, %v282_v16  ;;  %v289_v23 = vmul.f32 %v7199_v18, %v246_v6  ;;  %vm295_vm14 = vweird.f32 %v7199_v18 }
 0x1bb   :  { %7200 = vrsqrt.f32 %v247_v20  ;;  %vm296_vm1 = vmor %vm294_vm15, %vm295_vm14  ;;  %vm304_vm3 = vweird.f32 %v247_v20 }
 0x1bc   :  { %v287_v24 = vsel %vm286_vm13, %v7197_v3, %v283_v22  ;;  %v290_v26 = vmul.f32 %v7199_v18, %v289_v23 }
 0x1bd   :  { %v311_v28 = vmul.f32 %v287_v24, %v7720_v55 }
 0x1be   :  { %v291_v30 = vmul.f32 0.5, %v290_v26 }
 0x1bf   :  { %v320_v31 = vmul.f32 %v7782_v49, %v311_v28 }
 0x1c0   :  { %v292_v32 = vsub.f32 1.5, %v291_v30  ;;  %v7002_v30 = vld [vmem:[%s9644_s30 + $0x38] sm:$0xff] }
 0x1c1   :  { %v7201_v33 = vpop.eup %7200  ;;  %v329_v50 = vadd.f32 %v7788_v58, %v320_v31 }
 0x1c2   :  { %v293_v35 = vmul.f32 %v7199_v18, %v292_v32  ;;  %v299_v36 = vmul.f32 %v7201_v33, %v247_v20  ;;  %vm305_vm2 = vweird.f32 %v7201_v33 }
 0x1c3   :  { %v7809_v38 = vpack.c.bf16 %v329_v50, %v328_v34  ;;  %vm306_vm4 = vmor %vm304_vm3, %vm305_vm2 }
 0x1c4   :  { %v300_v39 = vmul.f32 %v7201_v33, %v299_v36  ;;  %v297_v55 = vsel %vm296_vm1, %v7199_v18, %v293_v35  ;;  %v7001_v36 = vld [vmem:[%s9644_s30 + $0x30] sm:$0xff] }
 0x1c5   :  { %5949 = vmatmul.msk.bf16.gmra.mxu1 %vm139_vm0, %v7809_v38  ;;  %5968 = vmatmul.msk.bf16.gmra.mxu2 %vm139_vm0, %v7809_v38  ;;  %v312_v43 = vmul.f32 %v297_v55, %v7727_v60 }
 0x1c6   :  { %v301_v41 = vmul.f32 0.5, %v300_v39  ;;  %5987 = vmatmul.msk.bf16.vlgmr.msra.gmra.mxu3 %vm139_vm0, %v7809_v38 }
 0x1c7   :  { %v321_v47 = vmul.f32 %v7782_v49, %v312_v43 }
 0x1c8   :  { %v302_v42 = vsub.f32 1.5, %v301_v41  ;;  %v7000_v41 = vld [vmem:[%s9644_s30 + $0x28] sm:$0xff] }
 0x1c9   :  { %v330_v52 = vadd.f32 %v7788_v58, %v321_v47 }
 0x1ca   :  { %v303_v44 = vmul.f32 %v7201_v33, %v302_v42 }
 0x1cc   :  { %v307_v46 = vsel %vm306_vm4, %v7201_v33, %v303_v44 }
 0x1cd   :  { %v313_v48 = vmul.f32 %v307_v46, %v7734_v1 }
 0x1cf   :  { %v322_v51 = vmul.f32 %v7782_v49, %v313_v48 }
 0x1d1   :  { %v331_v53 = vadd.f32 %v7788_v58, %v322_v51  ;;  %v7836_v58 = vld [vmem:[%s9611_s10] ss:$0 sm:$0xff] }
 0x1d3   :  { %v7823_v54 = vpack.c.bf16 %v331_v53, %v330_v52 }
 0x1d5   :  { %5950 = vmatmul.msk.bf16.gmra.mxu1 %vm139_vm0, %v7823_v54  ;;  %5969 = vmatmul.msk.bf16.gmra.mxu2 %vm139_vm0, %v7823_v54 }
 0x1d6   :  { %5988 = vmatmul.msk.bf16.gmra.mxu3 %vm139_vm0, %v7823_v54 }
 0x1e5   :  { %5986 = vmatmul.msk.bf16.vlgmr.msrb.gmra.mxu1 %vm139_vm0, %v7796_v10 }
 0x232   :  { %v389_v60 = vpop.f32.mrf.mxu1 }
 0x233   :  { %v390_v26 = vadd.f32 %v7847_v15, %v389_v60 }
 0x235   :  { %v524_v32 = vpack.c.bf16 %v390_v26, %v390_v26 }
 0x237   :  { %v545_v39 = vunpack.c.l.b16 %v524_v32  ;;  %v7006_v32 = vld [vmem:[%s9645_s5 + $0x38] sm:$0xff] }
 0x238   :  { %v449_v1 = vpop.f32.mrf.mxu2 }
 0x239   :  { %v450_v3 = vadd.f32 %v7152_v59, %v449_v1 }
 0x23a   :  { %v391_v49 = vpop.f32.mrf.mxu1 }
 0x23b   :  { %v530_v45 = vpack.c.bf16 %v450_v3, %v450_v3  ;;  %v392_v24 = vadd.f32 %v7847_v15, %v391_v49  ;;  %v6999_v49 = vld [vmem:[%s9644_s30 + $0x20] sm:$0xff] }
 0x23d   :  { %v553_v23 = vunpack.c.l.b16 %v530_v45  ;;  %v525_v28 = vpack.c.bf16 %v392_v24, %v392_v24 }
 0x23f   :  { %v546_v35 = vunpack.c.l.b16 %v525_v28 }
 0x240   :  { %v451_v56 = vpop.f32.mrf.mxu2 }
 0x241   :  { %v452_v62 = vadd.f32 %v7152_v59, %v451_v56  ;;  %v548_v55 = vpack.c.b16 %v546_v35, %v545_v39  ;;  %v7005_v35 = vld [vmem:[%s9645_s5 + $0x30] sm:$0xff] }
 0x242   :  { %v394_v57 = vpop.f32.mrf.mxu1 }
 0x243   :  { %v531_v6 = vpack.c.bf16 %v452_v62, %v452_v62  ;;  %v395_v48 = vadd.f32 %v7847_v15, %v394_v57 }
 0x245   :  { %v554_v16 = vunpack.c.l.b16 %v531_v6 }
 0x247   :  { %v556_v27 = vpack.c.b16 %v554_v16, %v553_v23 }
 0x248   :  { %v454_v61 = vpop.f32.mrf.mxu2 }
 0x249   :  { %v455_v63 = vadd.f32 %v7152_v59, %v454_v61  ;;  %v514_v40 = vpop.f32.mrf.mxu3  ;;  %v566_v34 = vsel %vm558_vm6, %v556_v27, 0 }
 0x24a   :  { %v515_v0 = vadd.f32 %v7836_v58, %v514_v40  ;;  %v7842_v2 = vpop.f32.mrf.mxu1  ;;  %v526_v40 = vpack.c.bf16 %v395_v48, %v395_v48 }
 0x24b   :  { %v532_v4 = vpack.c.bf16 %v455_v63, %v455_v63  ;;  %v397_v23 = vadd.f32 %v7847_v15, %v7842_v2 }
 0x24c   :  { %v538_v5 = vpack.c.bf16 %v515_v0, %v515_v0  ;;  %v547_v45 = vunpack.c.l.b16 %v526_v40 }
 0x24d   :  { %v555_v7 = vunpack.c.l.b16 %v532_v4 }
 0x24e   :  { %v733_v8 = vunpack.c.l.b16 %v538_v5  ;;  %v549_v28 = vpack.c.b16 %v547_v45, %v547_v45 }
 0x24f   :  { %v557_v11 = vpack.c.b16 %v555_v7, %v555_v7 }
 0x250   :  { %v735_v12 = vpack.c.b16 %v733_v8, %v733_v8  ;;  %v456_v14 = vpop.f32.mrf.mxu2 }
 0x251   :  { %v516_v18 = vpop.f32.mrf.mxu3  ;;  %v569_v19 = vsel %vm558_vm6, %v557_v11, 0  ;;  %v457_v53 = vadd.f32 %v7152_v59, %v456_v14 }
 0x252   :  { %v399_v20 = vpop.f32.mrf.mxu1  ;;  %577 = vmatpush.bf16.xpose.msrb.mxu0 %v569_v19  ;;  %v745_v22 = vsel %vm743_vm5, %v735_v12, 0  ;;  %v517_v60 = vadd.f32 %v7836_v58, %v516_v18 }
 0x253   :  { %753 = vmatpush.bf16.msrb.mxu2 %v745_v22  ;;  %v533_v3 = vpack.c.bf16 %v457_v53, %v457_v53  ;;  %v400_v11 = vadd.f32 %v7847_v15, %v399_v20 }
 0x254   :  { %v539_v57 = vpack.c.bf16 %v517_v60, %v517_v60 }
 0x255   :  { %v600_v16 = vunpack.c.l.b16 %v533_v3 }
 0x256   :  { %v776_v18 = vunpack.c.l.b16 %v539_v57 }
 0x258   :  { %v459_v31 = vpop.f32.mrf.mxu2 }
 0x259   :  { %v519_v33 = vpop.f32.mrf.mxu3  ;;  %v460_v43 = vadd.f32 %v7152_v59, %v459_v31 }
 0x25a   :  { %v7857_v50 = vpop.f32.mrf.mxu1  ;;  %578 = vmatpush.bf16.xpose.msrb.mxu0 %v566_v34  ;;  %v520_v44 = vadd.f32 %v7836_v58, %v519_v33  ;;  %v527_v33 = vpack.c.bf16 %v397_v23, %v397_v23 }
 0x25b   :  { %v534_v61 = vpack.c.bf16 %v460_v43, %v460_v43 }
 0x25c   :  { %v540_v62 = vpack.c.bf16 %v520_v44, %v520_v44 }
 0x25d   :  { %v601_v6 = vunpack.c.l.b16 %v534_v61 }
 0x25e   :  { %v777_v7 = vunpack.c.l.b16 %v540_v62 }
 0x25f   :  { %v603_v24 = vpack.c.b16 %v601_v6, %v600_v16 }
 0x260   :  { %v461_v42 = vpop.f32.mrf.mxu2  ;;  %v779_v27 = vpack.c.b16 %v777_v7, %v776_v18 }
 0x261   :  { %v462_v46 = vadd.f32 %v7152_v59, %v461_v42  ;;  %v521_v47 = vpop.f32.mrf.mxu3  ;;  %5989 = vmatmul.msk.bf16.vlgmr.msrb.gmra.mxu0 %vm558_vm6, %v548_v55  ;;  %v7004_v55 = vld [vmem:[%s9645_s5 + $0x28] sm:$0xff]  ;;  %v7003_v42 = vld [vmem:[%s9645_s5 + $0x20] sm:$0xff] }
 0x262   :  { %856 = vmatpush.bf16.msra.mxu0 %v7002_v30  ;;  %v522_v51 = vadd.f32 %v7836_v58, %v521_v47  ;;  %v509_v52 = vpop.f32.mrf.mxu1  ;;  %v528_v30 = vpack.c.bf16 %v400_v11, %v400_v11  ;;  %v76_v47 = vlaneseq }
 0x263   :  { %v535_v1 = vpack.c.bf16 %v462_v46, %v462_v46  ;;  %v510_v5 = vadd.f32 %v7836_v58, %v509_v52 }
 0x264   :  { %v541_v56 = vpack.c.bf16 %v522_v51, %v522_v51  ;;  %v593_v2 = vunpack.c.l.b16 %v528_v30  ;;  %v77_v51 = vand.u32 127, %v76_v47 }
 0x265   :  { %v602_v63 = vunpack.c.l.b16 %v535_v1  ;;  %v536_v19 = vpack.c.bf16 %v510_v5, %v510_v5  ;;  %v7507_v1 = vmov 0.0  }
 0x266   :  { %857 = vmatpush.bf16.msra.mxu0 %v7001_v36  ;;  %v778_v0 = vunpack.c.l.b16 %v541_v56  ;;  %v592_v36 = vunpack.c.l.b16 %v527_v33  ;;  %vm78_vm7 = vcmp.ge.s32.totalorder %v77_v51, 17 }
 0x267   :  { %v604_v4 = vpack.c.b16 %v602_v63, %v602_v63  ;;  %v731_v31 = vunpack.c.l.b16 %v536_v19 }
 0x268   :  { %v780_v59 = vpack.c.b16 %v778_v0, %v778_v0  ;;  %v595_v39 = vpack.c.b16 %v593_v2, %v592_v36 }
 0x269   :  { %v615_v8 = vsel %vm558_vm6, %v604_v4, 0 }
 0x26a   :  { %858 = vmatpush.bf16.msra.mxu0 %v7000_v41  ;;  %v511_v12 = vpop.f32.mrf.mxu1  ;;  %623 = vmatpush.bf16.xpose.msra.mxu1 %v615_v8  ;;  %v789_v14 = vsel %vm743_vm5, %v780_v59, 0  ;;  %v402_v41 = vadd.f32 %v7847_v15, %v7857_v50  ;;  %v7923_v8 = vld [vmem:[%s9610_s9 + $0x1] ss:$0 sm:$0xff] }
 0x26b   :  { %v512_v22 = vadd.f32 %v7836_v58, %v511_v12  ;;  %797 = vmatpush.bf16.msrb.mxu3 %v789_v14  ;;  %v612_v58 = vsel %vm558_vm6, %v603_v24, 0 }
 0x26c   :  { %v529_v43 = vpack.c.bf16 %v402_v41, %v402_v41 }
 0x26d   :  { %v537_v26 = vpack.c.bf16 %v512_v22, %v512_v22 }
 0x26e   :  { %859 = vmatpush.bf16.msra.mxu0 %v6999_v49  ;;  %v594_v44 = vunpack.c.l.b16 %v529_v43  ;;  %v7912_v49 = vsel %vm78_vm7, -1e+30, %v7507_v1 }
 0x26f   :  { %v732_v20 = vunpack.c.l.b16 %v537_v26  ;;  %798 = vmatpush.bf16.msrb.mxu3 %v779_v27 }
 0x270   :  { %v596_v46 = vpack.c.b16 %v594_v44, %v594_v44 }
 0x271   :  { %5990 = vmatmul.msk.bf16.gmra.mxu0 %vm558_vm6, %v549_v28  ;;  %v734_v34 = vpack.c.b16 %v732_v20, %v731_v31 }
 0x272   :  { %624 = vmatpush.bf16.xpose.msra.mxu1 %v612_v58 }
 0x273   :  { %754 = vmatpush.bf16.msrb.mxu2 %v734_v34 }
 0x279   :  { %5991 = vmatmul.msk.bf16.vlgmr.msra.gmra.mxu1 %vm558_vm6, %v595_v39 }
 0x27a   :  { %918 = vmatpush.bf16.msrb.mxu1 %v7006_v32 }
 0x27e   :  { %919 = vmatpush.bf16.msrb.mxu1 %v7005_v35 }
 0x281   :  { %6022 = vmatmul.msk.bf16.vlgmr.msra.gmra.mxu0 %vm139_vm0, %v7796_v10 }
 0x282   :  { %920 = vmatpush.bf16.msrb.mxu1 %v7004_v55 }
 0x286   :  { %921 = vmatpush.bf16.msrb.mxu1 %v7003_v42 }
 0x289   :  { %5992 = vmatmul.msk.bf16.gmra.mxu1 %vm558_vm6, %v596_v46 }
 0x291   :  { %6023 = vmatmul.msk.bf16.gmra.mxu0 %vm139_vm0, %v7809_v38 }
 0x299   :  { %6050 = vmatmul.msk.bf16.vlgmr.msrb.gmra.mxu1 %vm139_vm0, %v7796_v10 }
 0x2a1   :  { %6024 = vmatmul.msk.bf16.gmra.mxu0 %vm139_vm0, %v7823_v54 }
 0x2a9   :  { %6051 = vmatmul.msk.bf16.gmra.mxu1 %vm139_vm0, %v7809_v38 }
 0x2b9   :  { %6052 = vmatmul.msk.bf16.gmra.mxu1 %vm139_vm0, %v7823_v54 }
 0x2de   :  { %v580_v15 = vpop.f32.mrf.mxu0 }
 0x2df   :  { %v635_v35 = vmul.f32 0.25, %v580_v15 }
 0x2e1   :  { %v641_v55 = vadd.f32 %v635_v35, %v7912_v49 }
 0x2e3   :  { %v648_v47 = vsel %vm647_vm8, %v641_v55, -inf }
 0x2e6   :  { %v582_v50 = vpop.f32.mrf.mxu0 }
 0x2e7   :  { %v636_v44 = vmul.f32 0.25, %v582_v50 }
 0x2e9   :  { %v642_v15 = vadd.f32 %v636_v44, %v7912_v49 }
 0x2ee   :  { %v7910_v48 = vpop.f32.mrf.mxu0 }
 0x2f6   :  { %v587_v52 = vpop.f32.mrf.mxu0  ;;  %v626_v53 = vpop.f32.mrf.mxu1 }
 0x2f7   :  { %v638_v60 = vmul.f32 0.25, %v626_v53  ;;  %v637_v52 = vmul.f32 0.25, %v7910_v48 }
 0x2f9   :  { %v644_v56 = vadd.f32 %v638_v60, %v7912_v49  ;;  %v651_v60 = vsel %vm647_vm8, %v642_v15, -inf  ;;  %v643_v50 = vadd.f32 %v637_v52, %v7912_v49 }
 0x2fb   :  { %v657_v61 = vsel %vm647_vm8, %v644_v56, -inf  ;;  %v654_v1 = vsel %vm647_vm8, %v643_v50, -inf }
 0x2fc   :  { %658 = vmax.xlane.f32.xlu0 %v657_v61 }
 0x2fe   :  { %v628_v62 = vpop.f32.mrf.mxu1 }
 0x2ff   :  { %v639_v63 = vmul.f32 0.25, %v628_v62 }
 0x301   :  { %v645_v40 = vadd.f32 %v639_v63, %v7912_v49 }
 0x303   :  { %v660_v0 = vsel %vm647_vm8, %v645_v40, -inf }
 0x304   :  { %661 = vmax.xlane.f32.xlu1 %v660_v0 }
 0x306   :  { %v631_v3 = vpop.f32.mrf.mxu1 }
 0x307   :  { %v640_v57 = vmul.f32 0.25, %v631_v3 }
 0x309   :  { %v646_v4 = vadd.f32 %v640_v57, %v7912_v49 }
 0x30b   :  { %v663_v5 = vsel %vm647_vm8, %v646_v4, -inf }
 0x30c   :  { %664 = vmax.xlane.f32.xlu2 %v663_v5 }
 0x30e   :  { %v633_v59 = vpop.f32.mrf.mxu1 }
 0x316   :  { %v923_v6 = vpop.f32.mrf.mxu1 }
 0x317   :  { %v924_v14 = vadd.f32 %v7923_v8, %v923_v6 }
 0x319   :  { %v1006_v22 = vpack.c.bf16 %v924_v14, %v924_v14 }
 0x31b   :  { %v1029_v27 = vunpack.c.l.b16 %v1006_v22 }
 0x31e   :  { %v925_v7 = vpop.f32.mrf.mxu1 }
 0x31f   :  { %v926_v11 = vadd.f32 %v7923_v8, %v925_v7 }
 0x321   :  { %v1007_v18 = vpack.c.bf16 %v926_v11, %v926_v11 }
 0x323   :  { %v1030_v24 = vunpack.c.l.b16 %v1007_v18 }
 0x325   :  { %v1032_v28 = vpack.c.b16 %v1030_v24, %v1029_v27 }
 0x326   :  { %v928_v45 = vpop.f32.mrf.mxu1 }
 0x327   :  { %v929_v12 = vadd.f32 %v7923_v8, %v928_v45  ;;  %v1041_v30 = vsel %vm558_vm6, %v1032_v28, 0 }
 0x329   :  { %v1008_v16 = vpack.c.bf16 %v929_v12, %v929_v12 }
 0x32b   :  { %v1031_v19 = vunpack.c.l.b16 %v1008_v16 }
 0x32d   :  { %v1033_v23 = vpack.c.b16 %v1031_v19, %v1031_v19 }
 0x32f   :  { %v1044_v26 = vsel %vm558_vm6, %v1033_v23, 0 }
 0x330   :  { %1052 = vmatpush.bf16.xpose.msra.mxu3 %v1044_v26 }
 0x338   :  { %1053 = vmatpush.bf16.xpose.msra.mxu3 %v1041_v30 }
 0x36f   :  { %v659_v31 = vpop.xlane.xlu0 %658 }
 0x370   :  { %v669_v20 = vsub.f32 %v644_v56, %v659_v31  ;;  %v930_v56 = vpop.f32.mrf.mxu1 }
 0x371   :  { %v931_v19 = vadd.f32 %v7923_v8, %v930_v56 }
 0x372   :  { %v678_v32 = vmul.f32 1.442695, %v669_v20 }
 0x373   :  { %v1009_v20 = vpack.c.bf16 %v931_v19, %v931_v19 }
 0x374   :  { %7202 = vpow2.f32 %v678_v32 }
 0x375   :  { %v1075_v35 = vunpack.c.l.b16 %v1009_v20  ;;  %v7009_v20 = vld [vmem:[%s9646_s26 + $0x30] sm:$0xff] }
 0x377   :  { %v662_v33 = vpop.xlane.xlu1 %661 }
 0x378   :  { %v670_v58 = vsub.f32 %v645_v40, %v662_v33  ;;  %v933_v61 = vpop.f32.mrf.mxu1 }
 0x379   :  { %v934_v7 = vadd.f32 %v7923_v8, %v933_v61 }
 0x37a   :  { %v7203_v34 = vpop.eup %7202  ;;  %v680_v2 = vmul.f32 1.442695, %v670_v58 }
 0x37b   :  { %v693_v36 = vsel %vm647_vm8, %v7203_v34, 0.0  ;;  %v1010_v24 = vpack.c.bf16 %v934_v7, %v934_v7 }
 0x37c   :  { %7204 = vpow2.f32 %v680_v2  ;;  %694 = vadd.xlane.f32.xlu0 %v693_v36 }
 0x37d   :  { %v1076_v58 = vunpack.c.l.b16 %v1010_v24 }
 0x37f   :  { %v665_v39 = vpop.xlane.xlu2 %664 }
 0x380   :  { %v671_v41 = vsub.f32 %v646_v4, %v665_v39  ;;  %v935_v63 = vpop.f32.mrf.mxu1 }
 0x381   :  { %v936_v40 = vadd.f32 %v7923_v8, %v935_v63 }
 0x382   :  { %v7205_v42 = vpop.eup %7204  ;;  %v682_v43 = vmul.f32 1.442695, %v671_v41  ;;  %v1078_v41 = vpack.c.b16 %v1076_v58, %v1075_v35 }
 0x383   :  { %v696_v46 = vsel %vm647_vm8, %v7205_v42, 0.0  ;;  %v1011_v5 = vpack.c.bf16 %v936_v40, %v936_v40 }
 0x384   :  { %7206 = vpow2.f32 %v682_v43  ;;  %697 = vadd.xlane.f32.xlu1 %v696_v46  ;;  %649 = vmax.xlane.f32.xlu0 %v648_v47  ;;  %v861_v43 = vpop.f32.mrf.mxu0  ;;  %v1087_v46 = vsel %vm558_vm6, %v1078_v41, 0 }
 0x385   :  { %v1077_v45 = vunpack.c.l.b16 %v1011_v5 }
 0x387   :  { %v1079_v27 = vpack.c.b16 %v1077_v45, %v1077_v45 }
 0x389   :  { %v1090_v8 = vsel %vm558_vm6, %v1079_v27, 0 }
 0x38a   :  { %v7207_v51 = vpop.eup %7206 }
 0x38b   :  { %v699_v53 = vsel %vm647_vm8, %v7207_v51, 0.0 }
 0x38c   :  { %700 = vadd.xlane.f32.xlu2 %v699_v53  ;;  %652 = vmax.xlane.f32.xlu1 %v651_v60  ;;  %v863_v53 = vpop.f32.mrf.mxu0  ;;  %v7154_v60 = vld [vmem:[%s9609_s8 + $0x1] ss:$0 sm:$0xff] }
 0x394   :  { %655 = vmax.xlane.f32.xlu2 %v654_v1  ;;  %v862_v1 = vadd.f32 %v7154_v60, %v861_v43  ;;  %v866_v63 = vpop.f32.mrf.mxu0 }
 0x396   :  { %v1000_v61 = vpack.c.bf16 %v862_v1, %v862_v1 }
 0x398   :  { %v1021_v40 = vunpack.c.l.b16 %v1000_v61 }
 0x3ef   :  { %v695_v62 = vpop.xlane.xlu0 %694 }
 0x3f0   :  { %7208 = vrcp.f32 %v695_v62 }
 0x3f6   :  { %v7209_v3 = vpop.eup %7208 }
 0x3f7   :  { %v698_v0 = vpop.xlane.xlu1 %697  ;;  %v650_v48 = vpop.xlane.xlu0 %649  ;;  %v711_v59 = vmul.f32 %v7209_v3, %v7203_v34 }
 0x3f8   :  { %7210 = vrcp.f32 %v698_v0  ;;  %v666_v57 = vsub.f32 %v641_v55, %v650_v48  ;;  %v867_v48 = vadd.f32 %v7154_v60, %v866_v63  ;;  %v868_v3 = vpop.f32.mrf.mxu0 }
 0x3f9   :  { %v717_v11 = vpack.c.bf16 %v711_v59, %v711_v59  ;;  %v869_v7 = vadd.f32 %v7154_v60, %v868_v3 }
 0x3fa   :  { %v672_v4 = vmul.f32 1.442695, %v666_v57  ;;  %v1002_v57 = vpack.c.bf16 %v867_v48, %v867_v48 }
 0x3fb   :  { %v768_v28 = vunpack.c.l.b16 %v717_v11  ;;  %v1003_v11 = vpack.c.bf16 %v869_v7, %v869_v7 }
 0x3fc   :  { %7212 = vpow2.f32 %v672_v4  ;;  %v1023_v4 = vunpack.c.l.b16 %v1002_v57 }
 0x3fe   :  { %v7211_v6 = vpop.eup %7210  ;;  %v1025_v5 = vpack.c.b16 %v1023_v4, %v1023_v4 }
 0x3ff   :  { %v712_v12 = vmul.f32 %v7211_v6, %v7205_v42  ;;  %v701_v14 = vpop.xlane.xlu2 %700  ;;  %v653_v16 = vpop.xlane.xlu1 %652 }
 0x400   :  { %7214 = vrcp.f32 %v701_v14  ;;  %v667_v18 = vsub.f32 %v642_v15, %v653_v16  ;;  %v871_v59 = vpop.f32.mrf.mxu0  ;;  %v1067_v14 = vunpack.c.l.b16 %v1003_v11 }
 0x401   :  { %v718_v22 = vpack.c.bf16 %v712_v12, %v712_v12  ;;  %v872_v6 = vadd.f32 %v7154_v60, %v871_v59 }
 0x402   :  { %v7943_v23 = vpop.eup %7212  ;;  %v674_v26 = vmul.f32 1.442695, %v667_v18 }
 0x403   :  { %v769_v30 = vunpack.c.l.b16 %v718_v22  ;;  %v684_v31 = vsel %vm647_vm8, %v7943_v23, 0.0  ;;  %v1004_v45 = vpack.c.bf16 %v872_v6, %v872_v6 }
 0x404   :  { %7216 = vpow2.f32 %v674_v26  ;;  %685 = vadd.xlane.f32.xlu0 %v684_v31 }
 0x405   :  { %v771_v32 = vpack.c.b16 %v769_v30, %v768_v28  ;;  %v1068_v12 = vunpack.c.l.b16 %v1004_v45  ;;  %v7010_v30 = vld [vmem:[%s9646_s26 + $0x38] sm:$0xff] }
 0x406   :  { %v7215_v33 = vpop.eup %7214  ;;  %980 = vmatpush.bf16.msra.mxu2 %v7010_v30 }
 0x407   :  { %5995 = vmatmul.msk.bf16.vlgmr.msrb.gmra.mxu3 %vm647_vm8, %v771_v32  ;;  %v656_v34 = vpop.xlane.xlu2 %655  ;;  %v713_v36 = vmul.f32 %v7215_v33, %v7207_v51  ;;  %v1070_v16 = vpack.c.b16 %v1068_v12, %v1067_v14  ;;  %v7008_v33 = vld [vmem:[%s9646_s26 + $0x28] sm:$0xff] }
 0x408   :  { %1098 = vmatpush.bf16.xpose.msrb.mxu3 %v1090_v8  ;;  %v668_v2 = vsub.f32 %v643_v50, %v656_v34  ;;  %v864_v50 = vadd.f32 %v7154_v60, %v863_v53  ;;  %v873_v18 = vpop.f32.mrf.mxu0 }
 0x409   :  { %v719_v44 = vpack.c.bf16 %v713_v36, %v713_v36  ;;  %v874_v19 = vadd.f32 %v7154_v60, %v873_v18 }
 0x40a   :  { %v7217_v39 = vpop.eup %7216  ;;  %v676_v55 = vmul.f32 1.442695, %v668_v2  ;;  %v1001_v56 = vpack.c.bf16 %v864_v50, %v864_v50  ;;  %981 = vmatpush.bf16.msra.mxu2 %v7009_v20 }
 0x40b   :  { %v687_v42 = vsel %vm647_vm8, %v7217_v39, 0.0  ;;  %v770_v47 = vunpack.c.l.b16 %v719_v44  ;;  %v1005_v22 = vpack.c.bf16 %v874_v19, %v874_v19 }
 0x40c   :  { %7218 = vpow2.f32 %v676_v55  ;;  %688 = vadd.xlane.f32.xlu1 %v687_v42  ;;  %v1022_v62 = vunpack.c.l.b16 %v1001_v56  ;;  %v7007_v42 = vld [vmem:[%s9646_s26 + $0x20] sm:$0xff] }
 0x40d   :  { %v772_v51 = vpack.c.b16 %v770_v47, %v770_v47  ;;  %v1069_v24 = vunpack.c.l.b16 %v1005_v22 }
 0x40e   :  { %v1024_v0 = vpack.c.b16 %v1022_v62, %v1021_v40  ;;  %982 = vmatpush.bf16.msra.mxu2 %v7008_v33 }
 0x40f   :  { %v1071_v26 = vpack.c.b16 %v1069_v24, %v1069_v24  ;;  %v6998_v24 = vld [vmem:[%s9612_s11] sm:$0xff] }
 0x410   :  { %1099 = vmatpush.bf16.xpose.msrb.mxu3 %v1087_v46 }
 0x412   :  { %v7951_v15 = vpop.eup %7218  ;;  %983 = vmatpush.bf16.msra.mxu2 %v7007_v42 }
 0x413   :  { %v690_v52 = vsel %vm647_vm8, %v7951_v15, 0.0 }
 0x414   :  { %691 = vadd.xlane.f32.xlu2 %v690_v52 }
 0x417   :  { %5996 = vmatmul.msk.bf16.gmra.mxu3 %vm647_vm8, %v772_v51 }
 0x427   :  { %6081 = vmatmul.msk.bf16.vlgmr.msra.gmra.mxu3 %vm558_vm6, %v1024_v0 }
 0x428   :  { %1349 = vmatpush.bf16.msra.mxu3 %v6998_v24 }
 0x437   :  { %6082 = vmatmul.msk.bf16.gmra.mxu3 %vm558_vm6, %v1025_v5 }
 0x447   :  { %6083 = vmatmul.msk.bf16.vlgmr.msrb.gmra.mxu3 %vm558_vm6, %v1070_v16 }
 0x457   :  { %6084 = vmatmul.msk.bf16.gmra.mxu3 %vm558_vm6, %v1071_v26 }
 0x477   :  { %v686_v27 = vpop.xlane.xlu0 %685 }
 0x478   :  { %7220 = vrcp.f32 %v686_v27 }
 0x47e   :  { %v7221_v31 = vpop.eup %7220 }
 0x47f   :  { %v689_v28 = vpop.xlane.xlu1 %688  ;;  %v708_v32 = vmul.f32 %v7221_v31, %v7943_v23 }
 0x480   :  { %7222 = vrcp.f32 %v689_v28 }
 0x481   :  { %v714_v8 = vpack.c.bf16 %v708_v32, %v708_v32 }
 0x483   :  { %v723_v55 = vunpack.c.l.b16 %v714_v8  ;;  %v7156_v8 = vld [vmem:[%s9611_s10 + $0x1] ss:$0 sm:$0xff] }
 0x486   :  { %v7223_v58 = vpop.eup %7222 }
 0x487   :  { %v709_v34 = vmul.f32 %v7223_v58, %v7217_v39  ;;  %v692_v2 = vpop.xlane.xlu2 %691 }
 0x488   :  { %7224 = vrcp.f32 %v692_v2 }
 0x489   :  { %v715_v35 = vpack.c.bf16 %v709_v34, %v709_v34 }
 0x48a   :  { %v800_v36 = vpop.f32.mrf.mxu3 }
 0x48b   :  { %v724_v41 = vunpack.c.l.b16 %v715_v35 }
 0x48d   :  { %v726_v23 = vpack.c.b16 %v724_v41, %v723_v55 }
 0x48e   :  { %v7225_v43 = vpop.eup %7224 }
 0x48f   :  { %5993 = vmatmul.msk.bf16.vlgmr.msrb.gmra.mxu2 %vm647_vm8, %v726_v23  ;;  %v710_v44 = vmul.f32 %v7225_v43, %v7951_v15 }
 0x491   :  { %v716_v39 = vpack.c.bf16 %v710_v44, %v710_v44 }
 0x492   :  { %v802_v46 = vpop.f32.mrf.mxu3 }
 0x493   :  { %v725_v47 = vunpack.c.l.b16 %v716_v39 }
 0x495   :  { %v727_v51 = vpack.c.b16 %v725_v47, %v725_v47 }
 0x49a   :  { %v805_v52 = vpop.f32.mrf.mxu3 }
 0x49b   :  { %v811_v58 = vpack.c.bf16 %v805_v52, %v802_v46 }
 0x49f   :  { %5994 = vmatmul.msk.bf16.gmra.mxu2 %vm647_vm8, %v727_v51 }
 0x4a2   :  { %v807_v53 = vpop.f32.mrf.mxu3 }
 0x4aa   :  { %v1055_v60 = vpop.f32.mrf.mxu3 }
 0x4ab   :  { %v1110_v63 = vmul.f32 0.25, %v1055_v60 }
 0x4ad   :  { %v1116_v3 = vadd.f32 %v1110_v63, %v7912_v49 }
 0x4af   :  { %6078 = vmatmul.msk.bf16.vlgmr.msra.gmra.mxu2 %vm139_vm0, %v7796_v10  ;;  %v1122_v59 = vsel %vm647_vm8, %v1116_v3, -inf }
 0x4b2   :  { %v1057_v50 = vpop.f32.mrf.mxu3 }
 0x4b3   :  { %v1111_v4 = vmul.f32 0.25, %v1057_v50 }
 0x4b5   :  { %v7992_v45 = vadd.f32 %v1111_v4, %v7912_v49 }
 0x4b7   :  { %v1125_v16 = vsel %vm647_vm8, %v7992_v45, -inf }
 0x4ba   :  { %v1060_v1 = vpop.f32.mrf.mxu3 }
 0x4bb   :  { %v1112_v12 = vmul.f32 0.25, %v1060_v1 }
 0x4bd   :  { %v7999_v19 = vadd.f32 %v1112_v12, %v7912_v49 }
 0x4bf   :  { %6079 = vmatmul.msk.bf16.gmra.mxu2 %vm139_vm0, %v7809_v38  ;;  %v1128_v22 = vsel %vm647_vm8, %v7999_v19, -inf }
 0x4c2   :  { %v1062_v56 = vpop.f32.mrf.mxu3 }
 0x4ca   :  { %v1101_v61 = vpop.f32.mrf.mxu3 }
 0x4cb   :  { %v1113_v15 = vmul.f32 0.25, %v1101_v61 }
 0x4cd   :  { %v1119_v62 = vadd.f32 %v1113_v15, %v7912_v49 }
 0x4cf   :  { %6080 = vmatmul.msk.bf16.gmra.mxu2 %vm139_vm0, %v7823_v54  ;;  %v1131_v40 = vsel %vm647_vm8, %v1119_v62, -inf }
 0x4d0   :  { %1132 = vmax.xlane.f32.xlu0 %v1131_v40 }
 0x4d2   :  { %v1103_v0 = vpop.f32.mrf.mxu3 }
 0x4d3   :  { %v1114_v48 = vmul.f32 0.25, %v1103_v0 }
 0x4d5   :  { %v1120_v57 = vadd.f32 %v1114_v48, %v7912_v49 }
 0x4d7   :  { %v1134_v5 = vsel %vm647_vm8, %v1120_v57, -inf }
 0x4d8   :  { %1135 = vmax.xlane.f32.xlu1 %v1134_v5  ;;  %1123 = vmax.xlane.f32.xlu0 %v1122_v59 }
 0x4da   :  { %v1106_v6 = vpop.f32.mrf.mxu3 }
 0x4db   :  { %v1115_v7 = vmul.f32 0.25, %v1106_v6 }
 0x4dd   :  { %v1121_v11 = vadd.f32 %v1115_v7, %v7912_v49 }
 0x4df   :  { %v1137_v14 = vsel %vm647_vm8, %v1121_v11, -inf }
 0x4e0   :  { %1138 = vmax.xlane.f32.xlu2 %v1137_v14  ;;  %1126 = vmax.xlane.f32.xlu1 %v1125_v16 }
 0x4e2   :  { %v1108_v18 = vpop.f32.mrf.mxu3 }
 0x4e8   :  { %1129 = vmax.xlane.f32.xlu2 %v1128_v22 }
 0x512   :  { %v756_v26 = vpop.f32.mrf.mxu2 }
 0x51a   :  { %v758_v27 = vpop.f32.mrf.mxu2 }
 0x51b   :  { %v809_v28 = vpack.c.bf16 %v758_v27, %v756_v26 }
 0x51d   :  { %6102 = vmatmul.msk.bf16.vlgmr.msra.gmra.mxu3 %vm558_vm6, %v809_v28 }
 0x522   :  { %v761_v30 = vpop.f32.mrf.mxu2 }
 0x523   :  { %v810_v20 = vpack.c.bf16 %v800_v36, %v761_v30 }
 0x52a   :  { %v763_v31 = vpop.f32.mrf.mxu2 }
 0x52d   :  { %6103 = vmatmul.msk.bf16.gmra.mxu3 %vm558_vm6, %v810_v20 }
 0x532   :  { %v985_v32 = vpop.f32.mrf.mxu2 }
 0x533   :  { %v986_v41 = vadd.f32 %v7156_v8, %v985_v32 }
 0x535   :  { %v1012_v39 = vpack.c.bf16 %v986_v41, %v986_v41 }
 0x537   :  { %v1205_v50 = vunpack.c.l.b16 %v1012_v39  ;;  %v7018_v39 = vld [vmem:[%s9645_s5 + $0x50] sm:$0xff] }
 0x53a   :  { %v987_v33 = vpop.f32.mrf.mxu2 }
 0x53b   :  { %v988_v34 = vadd.f32 %v7156_v8, %v987_v33 }
 0x53d   :  { %6104 = vmatmul.msk.bf16.gmra.mxu3 %vm558_vm6, %v811_v58  ;;  %v1013_v43 = vpack.c.bf16 %v988_v34, %v988_v34 }
 0x53f   :  { %v1206_v46 = vunpack.c.l.b16 %v1013_v43  ;;  %v7019_v43 = vld [vmem:[%s9645_s5 + $0x58] sm:$0xff] }
 0x541   :  { %v1208_v63 = vpack.c.b16 %v1206_v46, %v1205_v50  ;;  %v7017_v50 = vld [vmem:[%s9645_s5 + $0x48] sm:$0xff] }
 0x542   :  { %v990_v2 = vpop.f32.mrf.mxu2 }
 0x543   :  { %v991_v35 = vadd.f32 %v7156_v8, %v990_v2  ;;  %v1133_v55 = vpop.xlane.xlu0 %1132 }
 0x544   :  { %v1143_v42 = vsub.f32 %v1119_v62, %v1133_v55 }
 0x545   :  { %v1014_v23 = vpack.c.bf16 %v991_v35, %v991_v35 }
 0x546   :  { %v1152_v36 = vmul.f32 1.442695, %v1143_v42 }
 0x547   :  { %v1207_v44 = vunpack.c.l.b16 %v1014_v23 }
 0x548   :  { %7226 = vpow2.f32 %v1152_v36 }
 0x549   :  { %v1209_v47 = vpack.c.b16 %v1207_v44, %v1207_v44 }
 0x54a   :  { %v992_v52 = vpop.f32.mrf.mxu2 }
 0x54b   :  { %v1136_v51 = vpop.xlane.xlu1 %1135  ;;  %v1124_v53 = vpop.xlane.xlu0 %1123  ;;  %v1218_v60 = vsel %vm743_vm5, %v1209_v47, 0  ;;  %v993_v24 = vadd.f32 %v7156_v8, %v992_v52 }
 0x54c   :  { %v1144_v1 = vsub.f32 %v1120_v57, %v1136_v51  ;;  %v1140_v56 = vsub.f32 %v1116_v3, %v1124_v53  ;;  %1226 = vmatpush.bf16.msrb.mxu0 %v1218_v60  ;;  %v7015_v60 = vld [vmem:[%s9644_s30 + $0x58] sm:$0xff] }
 0x54d   :  { %v1015_v33 = vpack.c.bf16 %v993_v24, %v993_v24 }
 0x54e   :  { %v7227_v61 = vpop.eup %7226  ;;  %v1154_v15 = vmul.f32 1.442695, %v1144_v1  ;;  %v1146_v62 = vmul.f32 1.442695, %v1140_v56 }
 0x54f   :  { %v1167_v40 = vsel %vm647_vm8, %v7227_v61, 0.0  ;;  %v1249_v35 = vunpack.c.l.b16 %v1015_v33 }
 0x550   :  { %7228 = vpow2.f32 %v1154_v15  ;;  %1227 = vmatpush.bf16.msrb.mxu0 %v1208_v63  ;;  %1168 = vadd.xlane.f32.xlu0 %v1167_v40 }
 0x551   :  { %7230 = vpow2.f32 %v1146_v62  ;;  %v7016_v62 = vld [vmem:[%s9645_s5 + $0x40] sm:$0xff] }
 0x552   :  { %v995_v0 = vpop.f32.mrf.mxu2 }
 0x553   :  { %v1139_v48 = vpop.xlane.xlu2 %1138  ;;  %v1127_v4 = vpop.xlane.xlu1 %1126  ;;  %v996_v16 = vadd.f32 %v7156_v8, %v995_v0 }
 0x554   :  { %v1145_v5 = vsub.f32 %v1121_v11, %v1139_v48  ;;  %v1141_v59 = vsub.f32 %v7992_v45, %v1127_v4  ;;  %1408 = vmatpush.bf16.msra.mxu0 %v7015_v60 }
 0x555   :  { %v1016_v28 = vpack.c.bf16 %v996_v16, %v996_v16 }
 0x556   :  { %v7229_v6 = vpop.eup %7228  ;;  %v1156_v57 = vmul.f32 1.442695, %v1145_v5  ;;  %v1148_v3 = vmul.f32 1.442695, %v1141_v59 }
 0x557   :  { %v8015_v7 = vpop.eup %7230  ;;  %v1170_v12 = vsel %vm647_vm8, %v7229_v6, 0.0  ;;  %v1250_v2 = vunpack.c.l.b16 %v1016_v28 }
 0x558   :  { %7232 = vpow2.f32 %v1156_v57  ;;  %1171 = vadd.xlane.f32.xlu1 %v1170_v12  ;;  %v1158_v14 = vsel %vm647_vm8, %v8015_v7, 0.0 }
 0x559   :  { %7234 = vpow2.f32 %v1148_v3  ;;  %1159 = vadd.xlane.f32.xlu0 %v1158_v14  ;;  %v1252_v55 = vpack.c.b16 %v1250_v2, %v1249_v35  ;;  %v7023_v35 = vld [vmem:[%s9646_s26 + $0x58] sm:$0xff] }
 0x55a   :  { %v997_v18 = vpop.f32.mrf.mxu2 }
 0x55b   :  { %v998_v22 = vadd.f32 %v7156_v8, %v997_v18  ;;  %v1130_v11 = vpop.xlane.xlu2 %1129 }
 0x55c   :  { %v1142_v45 = vsub.f32 %v7999_v19, %v1130_v11 }
 0x55d   :  { %v1017_v26 = vpack.c.bf16 %v998_v22, %v998_v22 }
 0x55e   :  { %v7233_v27 = vpop.eup %7232  ;;  %v1150_v30 = vmul.f32 1.442695, %v1142_v45 }
 0x55f   :  { %v7235_v31 = vpop.eup %7234  ;;  %v1251_v20 = vunpack.c.l.b16 %v1017_v26  ;;  %v1173_v32 = vsel %vm647_vm8, %v7233_v27, 0.0 }
 0x560   :  { %7236 = vpow2.f32 %v1150_v30  ;;  %1174 = vadd.xlane.f32.xlu2 %v1173_v32  ;;  %v1161_v58 = vsel %vm647_vm8, %v7235_v31, 0.0 }
 0x561   :  { %v1253_v34 = vpack.c.b16 %v1251_v20, %v1251_v20  ;;  %1162 = vadd.xlane.f32.xlu1 %v1161_v58  ;;  %v7011_v20 = vld [vmem:[%s9612_s11 + $0x8] sm:$0xff] }
 0x562   :  { %1310 = vmatpush.bf16.msrb.mxu2 %v7011_v20 }
 0x563   :  { %v1262_v8 = vsel %vm743_vm5, %v1253_v34, 0 }
 0x564   :  { %1270 = vmatpush.bf16.msra.mxu1 %v1262_v8 }
 0x566   :  { %v7237_v19 = vpop.eup %7236  ;;  %1532 = vmatpush.bf16.msra.mxu2 %v7023_v35 }
 0x567   :  { %v1164_v41 = vsel %vm647_vm8, %v7237_v19, 0.0 }
 0x568   :  { %1165 = vadd.xlane.f32.xlu2 %v1164_v41  ;;  %1271 = vmatpush.bf16.msra.mxu1 %v1252_v55 }
 0x56c   :  { %1470 = vmatpush.bf16.msrb.mxu1 %v7019_v43 }
 0x570   :  { %1471 = vmatpush.bf16.msrb.mxu1 %v7018_v39 }
 0x574   :  { %1472 = vmatpush.bf16.msrb.mxu1 %v7017_v50 }
 0x578   :  { %1473 = vmatpush.bf16.msrb.mxu1 %v7016_v62 }
 0x5c3   :  { %v1169_v42 = vpop.xlane.xlu0 %1168 }
 0x5c4   :  { %7238 = vrcp.f32 %v1169_v42  ;;  %v7021_v42 = vld [vmem:[%s9646_s26 + $0x48] sm:$0xff] }
 0x5ca   :  { %v7239_v36 = vpop.eup %7238 }
 0x5cb   :  { %v1172_v23 = vpop.xlane.xlu1 %1171  ;;  %v1185_v47 = vmul.f32 %v7239_v36, %v7227_v61  ;;  %v7014_v61 = vld [vmem:[%s9644_s30 + $0x50] sm:$0xff] }
 0x5cc   :  { %7240 = vrcp.f32 %v1172_v23  ;;  %v1160_v44 = vpop.xlane.xlu0 %1159  ;;  %1409 = vmatpush.bf16.msra.mxu0 %v7014_v61  ;;  %v7020_v23 = vld [vmem:[%s9646_s26 + $0x40] sm:$0xff] }
 0x5cd   :  { %7242 = vrcp.f32 %v1160_v44  ;;  %v1191_v52 = vpack.c.bf16 %v1185_v47, %v1185_v47 }
 0x5cf   :  { %v1241_v63 = vunpack.c.l.b16 %v1191_v52 }
 0x5d2   :  { %v7241_v46 = vpop.eup %7240 }
 0x5d3   :  { %v1186_v51 = vmul.f32 %v7241_v46, %v7229_v6  ;;  %v1175_v53 = vpop.xlane.xlu2 %1174  ;;  %v7243_v56 = vpop.eup %7242  ;;  %v7013_v6 = vld [vmem:[%s9644_s30 + $0x48] sm:$0xff]  ;;  %v7157_v46 = vld [vmem:[%s9610_s9 + $0x2] ss:$0 sm:$0xff] }
 0x5d4   :  { %7244 = vrcp.f32 %v1175_v53  ;;  %v1163_v1 = vpop.xlane.xlu1 %1162  ;;  %v1182_v0 = vmul.f32 %v7243_v56, %v8015_v7  ;;  %1410 = vmatpush.bf16.msra.mxu0 %v7013_v6  ;;  %v7012_v7 = vld [vmem:[%s9644_s30 + $0x40] sm:$0xff] }
 0x5d5   :  { %v1192_v15 = vpack.c.bf16 %v1186_v51, %v1186_v51  ;;  %7246 = vrcp.f32 %v1163_v1 }
 0x5d6   :  { %v1188_v57 = vpack.c.bf16 %v1182_v0, %v1182_v0  ;;  %v7158_v0 = vld [vmem:[%s9609_s8 + $0x2] ss:$0 sm:$0xff] }
 0x5d7   :  { %v1242_v40 = vunpack.c.l.b16 %v1192_v15 }
 0x5d8   :  { %v1197_v16 = vunpack.c.l.b16 %v1188_v57  ;;  %1411 = vmatpush.bf16.msra.mxu0 %v7012_v7 }
 0x5d9   :  { %v1244_v48 = vpack.c.b16 %v1242_v40, %v1241_v63 }
 0x5da   :  { %v7245_v4 = vpop.eup %7244 }
 0x5db   :  { %v7247_v5 = vpop.eup %7246  ;;  %v1166_v59 = vpop.xlane.xlu2 %1165  ;;  %6087 = vmatmul.msk.bf16.vlgmr.msra.gmra.mxu1 %vm647_vm8, %v1244_v48  ;;  %v1187_v12 = vmul.f32 %v7245_v4, %v7233_v27 }
 0x5dc   :  { %v1183_v3 = vmul.f32 %v7247_v5, %v7235_v31  ;;  %7248 = vrcp.f32 %v1166_v59 }
 0x5dd   :  { %v1193_v22 = vpack.c.bf16 %v1187_v12, %v1187_v12 }
 0x5de   :  { %v1189_v14 = vpack.c.bf16 %v1183_v3, %v1183_v3 }
 0x5df   :  { %v1243_v45 = vunpack.c.l.b16 %v1193_v22 }
 0x5e0   :  { %v1198_v18 = vunpack.c.l.b16 %v1189_v14 }
 0x5e1   :  { %v1245_v28 = vpack.c.b16 %v1243_v45, %v1243_v45 }
 0x5e2   :  { %v1200_v11 = vpack.c.b16 %v1198_v18, %v1197_v16  ;;  %v7249_v24 = vpop.eup %7248 }
 0x5e3   :  { %v1184_v26 = vmul.f32 %v7249_v24, %v7237_v19  ;;  %v7022_v19 = vld [vmem:[%s9646_s26 + $0x50] sm:$0xff] }
 0x5e4   :  { %6085 = vmatmul.msk.bf16.vlgmr.msrb.gmra.mxu0 %vm647_vm8, %v1200_v11  ;;  %1533 = vmatpush.bf16.msra.mxu2 %v7022_v19 }
 0x5e5   :  { %v1190_v30 = vpack.c.bf16 %v1184_v26, %v1184_v26 }
 0x5e7   :  { %v1199_v27 = vunpack.c.l.b16 %v1190_v30 }
 0x5e8   :  { %1534 = vmatpush.bf16.msra.mxu2 %v7021_v42 }
 0x5e9   :  { %v1201_v31 = vpack.c.b16 %v1199_v27, %v1199_v27 }
 0x5eb   :  { %6088 = vmatmul.msk.bf16.gmra.mxu1 %vm647_vm8, %v1245_v28 }
 0x5ec   :  { %1535 = vmatpush.bf16.msra.mxu2 %v7020_v23 }
 0x5f4   :  { %6086 = vmatmul.msk.bf16.gmra.mxu0 %vm647_vm8, %v1201_v31 }
 0x5fb   :  { %6158 = vmatmul.msk.bf16.vlgmr.msrb.gmra.mxu1 %vm139_vm0, %v7796_v10 }
 0x604   :  { %6130 = vmatmul.msk.bf16.vlgmr.msra.gmra.mxu0 %vm139_vm0, %v7796_v10 }
 0x60b   :  { %6159 = vmatmul.msk.bf16.gmra.mxu1 %vm139_vm0, %v7809_v38 }
 0x614   :  { %6131 = vmatmul.msk.bf16.gmra.mxu0 %vm139_vm0, %v7809_v38 }
 0x61b   :  { %6160 = vmatmul.msk.bf16.gmra.mxu1 %vm139_vm0, %v7823_v54 }
 0x624   :  { %6132 = vmatmul.msk.bf16.gmra.mxu0 %vm139_vm0, %v7823_v54 }
 0x658   :  { %v1273_v32 = vpop.f32.mrf.mxu1 }
 0x660   :  { %v1275_v33 = vpop.f32.mrf.mxu1 }
 0x661   :  { %v1229_v58 = vpop.f32.mrf.mxu0 }
 0x668   :  { %v1278_v34 = vpop.f32.mrf.mxu1 }
 0x669   :  { %v1231_v2 = vpop.f32.mrf.mxu0  ;;  %v1284_v60 = vpack.c.bf16 %v1278_v34, %v1275_v33 }
 0x66a   :  { %v1282_v8 = vpack.c.bf16 %v1231_v2, %v1229_v58 }
 0x66c   :  { %6095 = vmatmul.msk.bf16.vlgmr.msrb.gmra.mxu2 %vm558_vm6, %v1282_v8 }
 0x670   :  { %v1280_v55 = vpop.f32.mrf.mxu1 }
 0x671   :  { %v1234_v41 = vpop.f32.mrf.mxu0 }
 0x672   :  { %v1283_v44 = vpack.c.bf16 %v1273_v32, %v1234_v41 }
 0x678   :  { %v1475_v43 = vpop.f32.mrf.mxu1 }
 0x679   :  { %v1236_v36 = vpop.f32.mrf.mxu0  ;;  %v1476_v1 = vadd.f32 %v7157_v46, %v1475_v43 }
 0x67b   :  { %v1558_v62 = vpack.c.bf16 %v1476_v1, %v1476_v1 }
 0x67c   :  { %6096 = vmatmul.msk.bf16.gmra.mxu2 %vm558_vm6, %v1283_v44  ;;  %v7028_v44 = vld [vmem:[%s9644_s30 + $0x78] sm:$0xff] }
 0x67d   :  { %v1581_v5 = vunpack.c.l.b16 %v1558_v62 }
 0x680   :  { %v1477_v39 = vpop.f32.mrf.mxu1 }
 0x681   :  { %v1413_v47 = vpop.f32.mrf.mxu0  ;;  %v1478_v51 = vadd.f32 %v7157_v46, %v1477_v39 }
 0x682   :  { %v1414_v57 = vadd.f32 %v7158_v0, %v1413_v47 }
 0x683   :  { %v1559_v15 = vpack.c.bf16 %v1478_v51, %v1478_v51 }
 0x684   :  { %v1552_v14 = vpack.c.bf16 %v1414_v57, %v1414_v57 }
 0x685   :  { %v1582_v48 = vunpack.c.l.b16 %v1559_v15 }
 0x686   :  { %v1573_v22 = vunpack.c.l.b16 %v1552_v14 }
 0x687   :  { %v1584_v3 = vpack.c.b16 %v1582_v48, %v1581_v5 }
 0x688   :  { %v1480_v52 = vpop.f32.mrf.mxu1 }
 0x689   :  { %v1481_v53 = vadd.f32 %v7157_v46, %v1480_v52  ;;  %v1415_v50 = vpop.f32.mrf.mxu0  ;;  %v1593_v16 = vsel %vm558_vm6, %v1584_v3, 0  ;;  %v7027_v52 = vld [vmem:[%s9644_s30 + $0x70] sm:$0xff] }
 0x68a   :  { %v1416_v59 = vadd.f32 %v7158_v0, %v1415_v50 }
 0x68b   :  { %v1560_v56 = vpack.c.bf16 %v1481_v53, %v1481_v53 }
 0x68c   :  { %6097 = vmatmul.msk.bf16.gmra.mxu2 %vm558_vm6, %v1284_v60  ;;  %v1553_v12 = vpack.c.bf16 %v1416_v59, %v1416_v59  ;;  %v7026_v60 = vld [vmem:[%s9644_s30 + $0x68] sm:$0xff] }
 0x68d   :  { %v1583_v61 = vunpack.c.l.b16 %v1560_v56  ;;  %v7025_v56 = vld [vmem:[%s9644_s30 + $0x60] sm:$0xff] }
 0x68e   :  { %v1574_v18 = vunpack.c.l.b16 %v1553_v12 }
 0x68f   :  { %v1585_v63 = vpack.c.b16 %v1583_v61, %v1583_v61 }
 0x690   :  { %v1482_v40 = vpop.f32.mrf.mxu1  ;;  %v1576_v24 = vpack.c.b16 %v1574_v18, %v1573_v22 }
 0x691   :  { %v1596_v4 = vsel %vm558_vm6, %v1585_v63, 0  ;;  %v1418_v6 = vpop.f32.mrf.mxu0  ;;  %v1483_v27 = vadd.f32 %v7157_v46, %v1482_v40  ;;  %v8120_v63 = vpop.f32.mrf.mxu3 }
 0x692   :  { %1604 = vmatpush.bf16.xpose.msrb.mxu3 %v1596_v4  ;;  %v1419_v30 = vadd.f32 %v7158_v0, %v1418_v6 }
 0x693   :  { %v1561_v58 = vpack.c.bf16 %v1483_v27, %v1483_v27 }
 0x694   :  { %v1554_v33 = vpack.c.bf16 %v1419_v30, %v1419_v30 }
 0x695   :  { %v1627_v55 = vunpack.c.l.b16 %v1561_v58 }
 0x696   :  { %v1575_v19 = vunpack.c.l.b16 %v1554_v33 }
 0x698   :  { %v1485_v7 = vpop.f32.mrf.mxu1  ;;  %v1577_v43 = vpack.c.b16 %v1575_v19, %v1575_v19 }
 0x699   :  { %v1420_v11 = vpop.f32.mrf.mxu0  ;;  %v1486_v26 = vadd.f32 %v7157_v46, %v1485_v7 }
 0x69a   :  { %1605 = vmatpush.bf16.xpose.msrb.mxu3 %v1593_v16  ;;  %v1421_v42 = vadd.f32 %v7158_v0, %v1420_v11 }
 0x69b   :  { %v1562_v20 = vpack.c.bf16 %v1486_v26, %v1486_v26  ;;  %v7159_v26 = vld [vmem:[%s9611_s10 + $0x2] ss:$0 sm:$0xff] }
 0x69c   :  { %6186 = vmatmul.msk.bf16.vlgmr.msra.gmra.mxu2 %vm139_vm0, %v7796_v10  ;;  %v1555_v39 = vpack.c.bf16 %v1421_v42, %v1421_v42 }
 0x69d   :  { %v1628_v8 = vunpack.c.l.b16 %v1562_v20 }
 0x69e   :  { %v1619_v51 = vunpack.c.l.b16 %v1555_v39 }
 0x69f   :  { %v1630_v23 = vpack.c.b16 %v1628_v8, %v1627_v55 }
 0x6a0   :  { %v1487_v45 = vpop.f32.mrf.mxu1 }
 0x6a1   :  { %v1488_v28 = vadd.f32 %v7157_v46, %v1487_v45  ;;  %6189 = vmatmul.msk.bf16.vlgmr.msrb.gmra.mxu3 %vm558_vm6, %v1576_v24  ;;  %v1423_v2 = vpop.f32.mrf.mxu0  ;;  %v1639_v47 = vsel %vm558_vm6, %v1630_v23, 0 }
 0x6a2   :  { %v1424_v41 = vadd.f32 %v7158_v0, %v1423_v2 }
 0x6a3   :  { %v1563_v31 = vpack.c.bf16 %v1488_v28, %v1488_v28 }
 0x6a4   :  { %v1556_v36 = vpack.c.bf16 %v1424_v41, %v1424_v41 }
 0x6a5   :  { %v1629_v32 = vunpack.c.l.b16 %v1563_v31 }
 0x6a6   :  { %v1620_v46 = vunpack.c.l.b16 %v1556_v36 }
 0x6a7   :  { %v1631_v34 = vpack.c.b16 %v1629_v32, %v1629_v32 }
 0x6a8   :  { %v1622_v53 = vpack.c.b16 %v1620_v46, %v1619_v51 }
 0x6a9   :  { %v1642_v35 = vsel %vm558_vm6, %v1631_v34, 0  ;;  %v1425_v50 = vpop.f32.mrf.mxu0 }
 0x6aa   :  { %1650 = vmatpush.bf16.xpose.msrb.mxu0 %v1642_v35  ;;  %v1426_v1 = vadd.f32 %v7158_v0, %v1425_v50  ;;  %v8124_v0 = vpop.f32.mrf.mxu3 }
 0x6ac   :  { %6187 = vmatmul.msk.bf16.gmra.mxu2 %vm139_vm0, %v7809_v38  ;;  %v1557_v15 = vpack.c.bf16 %v1426_v1, %v1426_v1 }
 0x6ae   :  { %v1621_v61 = vunpack.c.l.b16 %v1557_v15 }
 0x6b0   :  { %v1623_v62 = vpack.c.b16 %v1621_v61, %v1621_v61 }
 0x6b1   :  { %6190 = vmatmul.msk.bf16.gmra.mxu3 %vm558_vm6, %v1577_v43 }
 0x6b2   :  { %1651 = vmatpush.bf16.xpose.msrb.mxu0 %v1639_v47  ;;  %v8130_v4 = vpop.f32.mrf.mxu3 }
 0x6b9   :  { %6191 = vmatmul.msk.bf16.vlgmr.msrb.gmra.mxu0 %vm558_vm6, %v1622_v53 }
 0x6ba   :  { %1927 = vmatpush.bf16.msra.mxu0 %v7028_v44  ;;  %v8136_v6 = vpop.f32.mrf.mxu3 }
 0x6bc   :  { %6188 = vmatmul.msk.bf16.gmra.mxu2 %vm139_vm0, %v7823_v54 }
 0x6be   :  { %1928 = vmatpush.bf16.msra.mxu0 %v7027_v52 }
 0x6c2   :  { %1929 = vmatpush.bf16.msra.mxu0 %v7026_v60  ;;  %v8140_v3 = vpop.f32.mrf.mxu3 }
 0x6c6   :  { %1930 = vmatpush.bf16.msra.mxu0 %v7025_v56 }
 0x6c9   :  { %6192 = vmatmul.msk.bf16.gmra.mxu0 %vm558_vm6, %v1623_v62 }
 0x6ca   :  { %v8144_v7 = vpop.f32.mrf.mxu3 }
 0x6d9   :  { %6231 = vmatmul.msk.bf16.vlgmr.msra.gmra.mxu0 %vm139_vm0, %v7796_v10 }
 0x6e9   :  { %6232 = vmatmul.msk.bf16.gmra.mxu0 %vm139_vm0, %v7809_v38 }
 0x6ef   :  { %v8122_v40 = vpop.f32.mrf.mxu2 }
 0x6f7   :  { %v8126_v48 = vpop.f32.mrf.mxu2 }
 0x6f9   :  { %6233 = vmatmul.msk.bf16.gmra.mxu0 %vm139_vm0, %v7823_v54 }
 0x6ff   :  { %v8132_v5 = vpop.f32.mrf.mxu2 }
 0x707   :  { %v8134_v59 = vpop.f32.mrf.mxu2 }
 0x70f   :  { %v8138_v57 = vpop.f32.mrf.mxu2 }
 0x717   :  { %v8142_v12 = vpop.f32.mrf.mxu2 }
 0x71f   :  { %v1537_v14 = vpop.f32.mrf.mxu2 }
 0x720   :  { %v1538_v32 = vadd.f32 %v7159_v26, %v1537_v14 }
 0x722   :  { %v1564_v35 = vpack.c.bf16 %v1538_v32, %v1538_v32 }
 0x724   :  { %v1607_v16 = vpop.f32.mrf.mxu3  ;;  %v1757_v39 = vunpack.c.l.b16 %v1564_v35 }
 0x725   :  { %v1662_v18 = vmul.f32 0.25, %v1607_v16 }
 0x727   :  { %v1539_v22 = vpop.f32.mrf.mxu2  ;;  %v8147_v11 = vadd.f32 %v1662_v18, %v7912_v49 }
 0x728   :  { %v1540_v30 = vadd.f32 %v7159_v26, %v1539_v22 }
 0x729   :  { %v1674_v24 = vsel %vm647_vm8, %v8147_v11, -inf }
 0x72a   :  { %1675 = vmax.xlane.f32.xlu0 %v1674_v24  ;;  %v1565_v34 = vpack.c.bf16 %v1540_v30, %v1540_v30 }
 0x72c   :  { %v1609_v45 = vpop.f32.mrf.mxu3  ;;  %v1758_v42 = vunpack.c.l.b16 %v1565_v34 }
 0x72d   :  { %v1663_v28 = vmul.f32 0.25, %v1609_v45 }
 0x72e   :  { %v1760_v52 = vpack.c.b16 %v1758_v42, %v1757_v39 }
 0x72f   :  { %v1542_v27 = vpop.f32.mrf.mxu2  ;;  %v1669_v31 = vadd.f32 %v1663_v28, %v7912_v49 }
 0x730   :  { %v1543_v20 = vadd.f32 %v7159_v26, %v1542_v27 }
 0x731   :  { %v1677_v33 = vsel %vm647_vm8, %v1669_v31, -inf }
 0x732   :  { %v1566_v58 = vpack.c.bf16 %v1543_v20, %v1543_v20  ;;  %1678 = vmax.xlane.f32.xlu1 %v1677_v33 }
 0x734   :  { %v1759_v2 = vunpack.c.l.b16 %v1566_v58  ;;  %v1612_v8 = vpop.f32.mrf.mxu3 }
 0x735   :  { %v1664_v19 = vmul.f32 0.25, %v1612_v8 }
 0x736   :  { %v1761_v55 = vpack.c.b16 %v1759_v2, %v1759_v2  ;;  %v1653_v41 = vpop.f32.mrf.mxu0 }
 0x737   :  { %v1544_v23 = vpop.f32.mrf.mxu2  ;;  %v1665_v43 = vmul.f32 0.25, %v1653_v41  ;;  %v1670_v36 = vadd.f32 %v1664_v19, %v7912_v49 }
 0x738   :  { %v1770_v44 = vsel %vm743_vm5, %v1761_v55, 0  ;;  %v1545_v22 = vadd.f32 %v7159_v26, %v1544_v23 }
 0x739   :  { %1778 = vmatpush.bf16.msra.mxu1 %v1770_v44  ;;  %v1680_v47 = vsel %vm647_vm8, %v1670_v36, -inf  ;;  %v1671_v46 = vadd.f32 %v1665_v43, %v7912_v49 }
 0x73a   :  { %1681 = vmax.xlane.f32.xlu2 %v1680_v47  ;;  %v1567_v20 = vpack.c.bf16 %v1545_v22, %v1545_v22 }
 0x73b   :  { %v1683_v51 = vsel %vm647_vm8, %v1671_v46, -inf }
 0x73c   :  { %1684 = vmax.xlane.f32.xlu0 %v1683_v51  ;;  %v1614_v53 = vpop.f32.mrf.mxu3  ;;  %v1801_v2 = vunpack.c.l.b16 %v1567_v20 }
 0x73d   :  { %1779 = vmatpush.bf16.msra.mxu1 %v1760_v52 }
 0x73e   :  { %v1655_v60 = vpop.f32.mrf.mxu0 }
 0x73f   :  { %v1547_v50 = vpop.f32.mrf.mxu2  ;;  %v1666_v1 = vmul.f32 0.25, %v1655_v60 }
 0x740   :  { %v1548_v62 = vadd.f32 %v7159_v26, %v1547_v50 }
 0x741   :  { %v1672_v56 = vadd.f32 %v1666_v1, %v7912_v49 }
 0x742   :  { %v1568_v28 = vpack.c.bf16 %v1548_v62, %v1548_v62 }
 0x743   :  { %v1686_v15 = vsel %vm647_vm8, %v1672_v56, -inf }
 0x744   :  { %1687 = vmax.xlane.f32.xlu1 %v1686_v15  ;;  %v1802_v58 = vunpack.c.l.b16 %v1568_v28 }
 0x746   :  { %v1658_v61 = vpop.f32.mrf.mxu0  ;;  %v1804_v8 = vpack.c.b16 %v1802_v58, %v1801_v2 }
 0x747   :  { %v1549_v14 = vpop.f32.mrf.mxu2  ;;  %v1667_v16 = vmul.f32 0.25, %v1658_v61 }
 0x748   :  { %v1550_v18 = vadd.f32 %v7159_v26, %v1549_v14 }
 0x749   :  { %v1673_v24 = vadd.f32 %v1667_v16, %v7912_v49 }
 0x74a   :  { %v1569_v45 = vpack.c.bf16 %v1550_v18, %v1550_v18 }
 0x74b   :  { %v1689_v30 = vsel %vm647_vm8, %v1673_v24, -inf }
 0x74c   :  { %v1803_v27 = vunpack.c.l.b16 %v1569_v45  ;;  %1690 = vmax.xlane.f32.xlu2 %v1689_v30 }
 0x74e   :  { %v1805_v32 = vpack.c.b16 %v1803_v27, %v1803_v27  ;;  %v1660_v33 = vpop.f32.mrf.mxu0  ;;  %v7032_v27 = vld [vmem:[%s9645_s5 + $0x78] sm:$0xff] }
 0x74f   :  { %1989 = vmatpush.bf16.msrb.mxu1 %v7032_v27  ;;  %v7030_v33 = vld [vmem:[%s9645_s5 + $0x68] sm:$0xff] }
 0x750   :  { %v1814_v34 = vsel %vm743_vm5, %v1805_v32, 0  ;;  %v7031_v32 = vld [vmem:[%s9645_s5 + $0x70] sm:$0xff] }
 0x751   :  { %1822 = vmatpush.bf16.msrb.mxu2 %v1814_v34 }
 0x753   :  { %1990 = vmatpush.bf16.msrb.mxu1 %v7031_v32 }
 0x755   :  { %1823 = vmatpush.bf16.msrb.mxu2 %v1804_v8 }
 0x757   :  { %1991 = vmatpush.bf16.msrb.mxu1 %v7030_v33 }
 0x79d   :  { %v1676_v35 = vpop.xlane.xlu0 %1675 }
 0x79e   :  { %v1692_v26 = vsub.f32 %v8147_v11, %v1676_v35 }
 0x7a0   :  { %v1698_v19 = vmul.f32 1.442695, %v1692_v26 }
 0x7a2   :  { %7250 = vpow2.f32 %v1698_v19  ;;  %v7029_v19 = vld [vmem:[%s9645_s5 + $0x60] sm:$0xff] }
 0x7a3   :  { %1992 = vmatpush.bf16.msrb.mxu1 %v7029_v19 }
 0x7a5   :  { %v1679_v55 = vpop.xlane.xlu1 %1678 }
 0x7a6   :  { %v1693_v41 = vsub.f32 %v1669_v31, %v1679_v55 }
 0x7a8   :  { %v7251_v42 = vpop.eup %7250  ;;  %v1700_v23 = vmul.f32 1.442695, %v1693_v41 }
 0x7a9   :  { %v1710_v43 = vsel %vm647_vm8, %v7251_v42, 0.0 }
 0x7aa   :  { %7252 = vpow2.f32 %v1700_v23  ;;  %1711 = vadd.xlane.f32.xlu0 %v1710_v43 }
 0x7ad   :  { %v1682_v44 = vpop.xlane.xlu2 %1681 }
 0x7ae   :  { %v1694_v39 = vsub.f32 %v1670_v36, %v1682_v44 }
 0x7af   :  { %v1685_v47 = vpop.xlane.xlu0 %1684 }
 0x7b0   :  { %v7253_v52 = vpop.eup %7252  ;;  %v1702_v51 = vmul.f32 1.442695, %v1694_v39  ;;  %v1695_v53 = vsub.f32 %v1671_v46, %v1685_v47  ;;  %v7036_v39 = vld [vmem:[%s9646_s26 + $0x78] sm:$0xff] }
 0x7b1   :  { %v1713_v60 = vsel %vm647_vm8, %v7253_v52, 0.0  ;;  %2051 = vmatpush.bf16.msra.mxu2 %v7036_v39 }
 0x7b2   :  { %7254 = vpow2.f32 %v1702_v51  ;;  %v1704_v11 = vmul.f32 1.442695, %v1695_v53  ;;  %1714 = vadd.xlane.f32.xlu1 %v1713_v60  ;;  %v7034_v60 = vld [vmem:[%s9646_s26 + $0x68] sm:$0xff] }
 0x7b4   :  { %7256 = vpow2.f32 %v1704_v11 }
 0x7b7   :  { %v1688_v50 = vpop.xlane.xlu1 %1687 }
 0x7b8   :  { %v7255_v31 = vpop.eup %7254  ;;  %v1696_v1 = vsub.f32 %v1672_v56, %v1688_v50 }
 0x7b9   :  { %v1716_v15 = vsel %vm647_vm8, %v7255_v31, 0.0 }
 0x7ba   :  { %v7257_v61 = vpop.eup %7256  ;;  %v1706_v62 = vmul.f32 1.442695, %v1696_v1  ;;  %1717 = vadd.xlane.f32.xlu2 %v1716_v15 }
 0x7bb   :  { %v1719_v36 = vsel %vm647_vm8, %v7257_v61, 0.0 }
 0x7bc   :  { %7258 = vpow2.f32 %v1706_v62  ;;  %1720 = vadd.xlane.f32.xlu0 %v1719_v36  ;;  %v7033_v36 = vld [vmem:[%s9646_s26 + $0x60] sm:$0xff] }
 0x7bf   :  { %v1691_v14 = vpop.xlane.xlu2 %1690 }
 0x7c0   :  { %v1697_v46 = vsub.f32 %v1673_v24, %v1691_v14 }
 0x7c2   :  { %v7259_v16 = vpop.eup %7258  ;;  %v1708_v18 = vmul.f32 1.442695, %v1697_v46 }
 0x7c3   :  { %v1722_v22 = vsel %vm647_vm8, %v7259_v16, 0.0 }
 0x7c4   :  { %7260 = vpow2.f32 %v1708_v18  ;;  %1723 = vadd.xlane.f32.xlu1 %v1722_v22 }
 0x7ca   :  { %v7261_v45 = vpop.eup %7260 }
 0x7cb   :  { %v1725_v56 = vsel %vm647_vm8, %v7261_v45, 0.0 }
 0x7cc   :  { %1726 = vadd.xlane.f32.xlu2 %v1725_v56 }
 0x81d   :  { %v1712_v28 = vpop.xlane.xlu0 %1711 }
 0x81e   :  { %7262 = vrcp.f32 %v1712_v28 }
 0x824   :  { %v7263_v20 = vpop.eup %7262 }
 0x825   :  { %v1715_v30 = vpop.xlane.xlu1 %1714  ;;  %v1734_v24 = vmul.f32 %v7263_v20, %v7251_v42 }
 0x826   :  { %7264 = vrcp.f32 %v1715_v30 }
 0x827   :  { %v1740_v34 = vpack.c.bf16 %v1734_v24, %v1734_v24 }
 0x829   :  { %v1749_v55 = vunpack.c.l.b16 %v1740_v34 }
 0x82c   :  { %v7265_v58 = vpop.eup %7264 }
 0x82d   :  { %v1735_v2 = vmul.f32 %v7265_v58, %v7253_v52  ;;  %v1718_v8 = vpop.xlane.xlu2 %1717  ;;  %v7035_v52 = vld [vmem:[%s9646_s26 + $0x70] sm:$0xff] }
 0x82e   :  { %7266 = vrcp.f32 %v1718_v8  ;;  %2052 = vmatpush.bf16.msra.mxu2 %v7035_v52 }
 0x82f   :  { %v1741_v35 = vpack.c.bf16 %v1735_v2, %v1735_v2  ;;  %v1721_v26 = vpop.xlane.xlu0 %1720  ;;  %v1932_v2 = vpop.f32.mrf.mxu0 }
 0x830   :  { %7268 = vrcp.f32 %v1721_v26  ;;  %v7161_v26 = vld [vmem:[%s9610_s9 + $0x3] ss:$0 sm:$0xff] }
 0x831   :  { %v1750_v41 = vunpack.c.l.b16 %v1741_v35 }
 0x832   :  { %2053 = vmatpush.bf16.msra.mxu2 %v7034_v60 }
 0x833   :  { %v1752_v42 = vpack.c.b16 %v1750_v41, %v1749_v55 }
 0x834   :  { %v7267_v23 = vpop.eup %7266 }
 0x835   :  { %6193 = vmatmul.msk.bf16.vlgmr.msra.gmra.mxu1 %vm647_vm8, %v1752_v42  ;;  %v1736_v43 = vmul.f32 %v7267_v23, %v7255_v31 }
 0x836   :  { %v7269_v47 = vpop.eup %7268  ;;  %2054 = vmatpush.bf16.msra.mxu2 %v7033_v36 }
 0x837   :  { %v1724_v44 = vpop.xlane.xlu1 %1723  ;;  %v1742_v51 = vpack.c.bf16 %v1736_v43, %v1736_v43  ;;  %v1737_v53 = vmul.f32 %v7269_v47, %v7257_v61  ;;  %v1934_v23 = vpop.f32.mrf.mxu0 }
 0x838   :  { %7270 = vrcp.f32 %v1724_v44 }
 0x839   :  { %v1743_v50 = vpack.c.bf16 %v1737_v53, %v1737_v53  ;;  %v1751_v15 = vunpack.c.l.b16 %v1742_v51 }
 0x83b   :  { %v1793_v14 = vunpack.c.l.b16 %v1743_v50  ;;  %v1753_v61 = vpack.c.b16 %v1751_v15, %v1751_v15 }
 0x83e   :  { %v7271_v11 = vpop.eup %7270 }
 0x83f   :  { %v1738_v31 = vmul.f32 %v7271_v11, %v7259_v16  ;;  %v1727_v1 = vpop.xlane.xlu2 %1726  ;;  %v8225_v11 = vld [vmem:[%s9609_s8 + $0x3] ss:$0 sm:$0xff] }
 0x840   :  { %7272 = vrcp.f32 %v1727_v1  ;;  %v1935_v1 = vadd.f32 %v8225_v11, %v1934_v23  ;;  %v1933_v36 = vadd.f32 %v8225_v11, %v1932_v2 }
 0x841   :  { %v1744_v62 = vpack.c.bf16 %v1738_v31, %v1738_v31 }
 0x843   :  { %v1794_v46 = vunpack.c.l.b16 %v1744_v62  ;;  %v1937_v62 = vpop.f32.mrf.mxu0 }
 0x845   :  { %v1796_v18 = vpack.c.b16 %v1794_v46, %v1793_v14  ;;  %6194 = vmatmul.msk.bf16.gmra.mxu1 %vm647_vm8, %v1753_v61  ;;  %v2072_v46 = vpack.c.bf16 %v1935_v1, %v1935_v1 }
 0x846   :  { %v7273_v22 = vpop.eup %7272 }
 0x847   :  { %6195 = vmatmul.msk.bf16.vlgmr.msrb.gmra.mxu2 %vm647_vm8, %v1796_v18  ;;  %v1739_v16 = vmul.f32 %v7273_v22, %v7261_v45  ;;  %v7024_v45 = vld [vmem:[%s9612_s11 + $0x10] sm:$0xff]  ;;  %v2071_v22 = vpack.c.bf16 %v1933_v36, %v1933_v36 }
 0x848   :  { %1862 = vmatpush.bf16.msra.mxu3 %v7024_v45  ;;  %v7162_v45 = vld [vmem:[%s9611_s10 + $0x3] ss:$0 sm:$0xff] }
 0x849   :  { %v1745_v56 = vpack.c.bf16 %v1739_v16, %v1739_v16 }
 0x84b   :  { %v1795_v28 = vunpack.c.l.b16 %v1745_v56  ;;  %v2093_v56 = vunpack.c.l.b16 %v2072_v46 }
 0x84d   :  { %v1797_v30 = vpack.c.b16 %v1795_v28, %v1795_v28  ;;  %v2092_v28 = vunpack.c.l.b16 %v2071_v22 }
 0x855   :  { %6259 = vmatmul.msk.bf16.vlgmr.msrb.gmra.mxu1 %vm139_vm0, %v7796_v10 }
 0x857   :  { %6196 = vmatmul.msk.bf16.gmra.mxu2 %vm647_vm8, %v1797_v30  ;;  %v1939_v30 = vpop.f32.mrf.mxu0 }
 0x858   :  { %v1940_v36 = vadd.f32 %v8225_v11, %v1939_v30 }
 0x85a   :  { %v2074_v22 = vpack.c.bf16 %v1940_v36, %v1940_v36 }
 0x865   :  { %6260 = vmatmul.msk.bf16.gmra.mxu1 %vm139_vm0, %v7809_v38 }
 0x867   :  { %6287 = vmatmul.msk.bf16.vlgmr.msra.gmra.mxu2 %vm139_vm0, %v7796_v10 }
 0x875   :  { %6261 = vmatmul.msk.bf16.gmra.mxu1 %vm139_vm0, %v7823_v54 }
 0x877   :  { %6288 = vmatmul.msk.bf16.gmra.mxu2 %vm139_vm0, %v7809_v38 }
 0x887   :  { %6289 = vmatmul.msk.bf16.gmra.mxu2 %vm139_vm0, %v7823_v54 }
 0x8b2   :  { %v1781_v27 = vpop.f32.mrf.mxu1 }
 0x8ba   :  { %v1783_v20 = vpop.f32.mrf.mxu1 }
 0x8bb   :  { %v1834_v24 = vpack.c.bf16 %v1783_v20, %v1781_v27  ;;  %v2095_v27 = vpack.c.b16 %v2093_v56, %v2092_v28  ;;  %v2138_v28 = vunpack.c.l.b16 %v2074_v22 }
 0x8bd   :  { %6203 = vmatmul.msk.bf16.vlgmr.msra.gmra.mxu3 %vm558_vm6, %v1834_v24 }
 0x8c2   :  { %v1786_v10 = vpop.f32.mrf.mxu1 }
 0x8ca   :  { %v1788_v32 = vpop.f32.mrf.mxu1  ;;  %v1825_v33 = vpop.f32.mrf.mxu2 }
 0x8cb   :  { %v1835_v58 = vpack.c.bf16 %v1825_v33, %v1786_v10 }
 0x8cd   :  { %6204 = vmatmul.msk.bf16.gmra.mxu3 %vm558_vm6, %v1835_v58 }
 0x8d2   :  { %v1827_v38 = vpop.f32.mrf.mxu2  ;;  %v1994_v34 = vpop.f32.mrf.mxu1 }
 0x8d3   :  { %v1995_v43 = vadd.f32 %v7161_v26, %v1994_v34  ;;  %v1938_v34 = vadd.f32 %v8225_v11, %v1937_v62 }
 0x8d5   :  { %v2077_v52 = vpack.c.bf16 %v1995_v43, %v1995_v43  ;;  %v2073_v23 = vpack.c.bf16 %v1938_v34, %v1938_v34 }
 0x8d7   :  { %v2100_v15 = vunpack.c.l.b16 %v2077_v52 }
 0x8da   :  { %v1830_v54 = vpop.f32.mrf.mxu2  ;;  %v1996_v8 = vpop.f32.mrf.mxu1 }
 0x8db   :  { %v1836_v35 = vpack.c.bf16 %v1830_v54, %v1827_v38  ;;  %v1997_v41 = vadd.f32 %v7161_v26, %v1996_v8 }
 0x8dd   :  { %6205 = vmatmul.msk.bf16.gmra.mxu3 %vm558_vm6, %v1836_v35  ;;  %v2078_v39 = vpack.c.bf16 %v1997_v41, %v1997_v41 }
 0x8df   :  { %v2101_v50 = vunpack.c.l.b16 %v2078_v39 }
 0x8e1   :  { %v2103_v14 = vpack.c.b16 %v2101_v50, %v2100_v15 }
 0x8e2   :  { %v1832_v19 = vpop.f32.mrf.mxu2  ;;  %v1999_v55 = vpop.f32.mrf.mxu1 }
 0x8e3   :  { %v2000_v42 = vadd.f32 %v7161_v26, %v1999_v55  ;;  %v2112_v16 = vsel %vm558_vm6, %v2103_v14, 0 }
 0x8e5   :  { %v2079_v44 = vpack.c.bf16 %v2000_v42, %v2000_v42 }
 0x8e7   :  { %v2102_v47 = vunpack.c.l.b16 %v2079_v44 }
 0x8e9   :  { %v2104_v51 = vpack.c.b16 %v2102_v47, %v2102_v47  ;;  %v1942_v47 = vpop.f32.mrf.mxu0 }
 0x8ea   :  { %v2001_v53 = vpop.f32.mrf.mxu1  ;;  %v2056_v60 = vpop.f32.mrf.mxu2  ;;  %v1943_v1 = vadd.f32 %v8225_v11, %v1942_v47 }
 0x8eb   :  { %v2115_v31 = vsel %vm558_vm6, %v2104_v51, 0  ;;  %v2057_v38 = vadd.f32 %v7162_v45, %v2056_v60  ;;  %v2002_v2 = vadd.f32 %v7161_v26, %v2001_v53  ;;  %v2094_v53 = vunpack.c.l.b16 %v2073_v23 }
 0x8ec   :  { %2123 = vmatpush.bf16.xpose.msrb.mxu3 %v2115_v31 }
 0x8ed   :  { %v2083_v42 = vpack.c.bf16 %v2057_v38, %v2057_v38  ;;  %v2080_v43 = vpack.c.bf16 %v2002_v2, %v2002_v2  ;;  %v2096_v46 = vpack.c.b16 %v2094_v53, %v2094_v53 }
 0x8ef   :  { %v2146_v15 = vunpack.c.l.b16 %v2080_v43 }
 0x8f2   :  { %v2004_v61 = vpop.f32.mrf.mxu1  ;;  %v2058_v18 = vpop.f32.mrf.mxu2 }
 0x8f3   :  { %v2059_v20 = vadd.f32 %v7162_v45, %v2058_v18  ;;  %v2005_v32 = vadd.f32 %v7161_v26, %v2004_v61  ;;  %v2075_v61 = vpack.c.bf16 %v1943_v1, %v1943_v1 }
 0x8f4   :  { %2124 = vmatpush.bf16.xpose.msrb.mxu3 %v2112_v16 }
 0x8f5   :  { %v2084_v35 = vpack.c.bf16 %v2059_v20, %v2059_v20  ;;  %v2081_v19 = vpack.c.bf16 %v2005_v32, %v2005_v32  ;;  %v2139_v56 = vunpack.c.l.b16 %v2075_v61  ;;  %v1944_v20 = vpop.f32.mrf.mxu0 }
 0x8f7   :  { %v2277_v52 = vunpack.c.l.b16 %v2084_v35  ;;  %v2147_v50 = vunpack.c.l.b16 %v2081_v19 }
 0x8f9   :  { %v2149_v14 = vpack.c.b16 %v2147_v50, %v2146_v15  ;;  %v1362_v50 = vadd.f32 %v8140_v3, %v8138_v57 }
 0x8fa   :  { %v2006_v24 = vpop.f32.mrf.mxu1  ;;  %v2061_v10 = vpop.f32.mrf.mxu2 }
 0x8fb   :  { %v2007_v33 = vadd.f32 %v7161_v26, %v2006_v24  ;;  %v2062_v58 = vadd.f32 %v7162_v45, %v2061_v10  ;;  %6290 = vmatmul.msk.bf16.vlgmr.msrb.gmra.mxu3 %vm558_vm6, %v2095_v27  ;;  %v2276_v26 = vunpack.c.l.b16 %v2083_v42  ;;  %v2158_v16 = vsel %vm558_vm6, %v2149_v14, 0 }
 0x8fc   :  { %v2141_v27 = vpack.c.b16 %v2139_v56, %v2138_v28 }
 0x8fd   :  { %v2082_v54 = vpack.c.bf16 %v2007_v33, %v2007_v33  ;;  %v2085_v8 = vpack.c.bf16 %v2062_v58, %v2062_v58  ;;  %v2279_v62 = vpack.c.b16 %v2277_v52, %v2276_v26  ;;  %v1945_v33 = vadd.f32 %v8225_v11, %v1944_v20 }
 0x8fe   :  { %v1352_v11 = vadd.f32 %v8120_v63, %v8122_v40 }
 0x8ff   :  { %v2148_v55 = vunpack.c.l.b16 %v2082_v54  ;;  %v2278_v41 = vunpack.c.l.b16 %v2085_v8  ;;  %v2076_v54 = vpack.c.bf16 %v1945_v33, %v1945_v33 }
 0x901   :  { %v2150_v44 = vpack.c.b16 %v2148_v55, %v2148_v55  ;;  %v2280_v39 = vpack.c.b16 %v2278_v41, %v2278_v41  ;;  %v2140_v41 = vunpack.c.l.b16 %v2076_v54 }
 0x902   :  { %v2063_v51 = vpop.f32.mrf.mxu2 }
 0x903   :  { %v2161_v60 = vsel %vm558_vm6, %v2150_v44, 0  ;;  %v2289_v31 = vsel %vm743_vm5, %v2280_v39, 0  ;;  %v2064_v30 = vadd.f32 %v7162_v45, %v2063_v51  ;;  %v2142_v23 = vpack.c.b16 %v2140_v41, %v2140_v41 }
 0x904   :  { %2169 = vmatpush.bf16.xpose.msrb.mxu0 %v2161_v60  ;;  %2297 = vmatpush.bf16.msra.mxu1 %v2289_v31  ;;  %v1357_v39 = vadd.f32 %v8130_v4, %v8132_v5 }
 0x905   :  { %v2086_v2 = vpack.c.bf16 %v2064_v30, %v2064_v30 }
 0x907   :  { %v2320_v55 = vunpack.c.l.b16 %v2086_v2 }
 0x908   :  { %2298 = vmatpush.bf16.msra.mxu1 %v2279_v62 }
 0x90a   :  { %v2066_v18 = vpop.f32.mrf.mxu2 }
 0x90b   :  { %6291 = vmatmul.msk.bf16.gmra.mxu3 %vm558_vm6, %v2096_v46  ;;  %v2067_v24 = vadd.f32 %v7162_v45, %v2066_v18 }
 0x90c   :  { %2170 = vmatpush.bf16.xpose.msrb.mxu0 %v2158_v16 }
 0x90d   :  { %v2087_v38 = vpack.c.bf16 %v2067_v24, %v2067_v24 }
 0x90f   :  { %v2321_v35 = vunpack.c.l.b16 %v2087_v38 }
 0x911   :  { %v2323_v42 = vpack.c.b16 %v2321_v35, %v2320_v55 }
 0x912   :  { %v2068_v10 = vpop.f32.mrf.mxu2 }
 0x913   :  { %v2069_v32 = vadd.f32 %v7162_v45, %v2068_v10  ;;  %6292 = vmatmul.msk.bf16.vlgmr.msrb.gmra.mxu0 %vm558_vm6, %v2141_v27 }
 0x915   :  { %v2088_v58 = vpack.c.bf16 %v2069_v32, %v2069_v32 }
 0x917   :  { %v2322_v34 = vunpack.c.l.b16 %v2088_v58 }
 0x919   :  { %v2324_v8 = vpack.c.b16 %v2322_v34, %v2322_v34 }
 0x91b   :  { %v2333_v19 = vsel %vm743_vm5, %v2324_v8, 0 }
 0x91c   :  { %2341 = vmatpush.bf16.msrb.mxu2 %v2333_v19 }
 0x920   :  { %2342 = vmatpush.bf16.msrb.mxu2 %v2323_v42 }
 0x923   :  { %6293 = vmatmul.msk.bf16.gmra.mxu0 %vm558_vm6, %v2142_v23 }
 0x940   :  { %v1864_v45 = vpop.f32.mrf.mxu3 }
 0x941   :  { %v8248_v43 = vadd.f32 %v1864_v45, %v1352_v11 }
 0x948   :  { %v8250_v44 = vpop.f32.mrf.mxu3 }
 0x950   :  { %v1869_v47 = vpop.f32.mrf.mxu3 }
 0x951   :  { %v8254_v52 = vadd.f32 %v1869_v47, %v1357_v39 }
 0x958   :  { %v8256_v51 = vpop.f32.mrf.mxu3 }
 0x960   :  { %v1874_v60 = vpop.f32.mrf.mxu3 }
 0x961   :  { %v8260_v31 = vadd.f32 %v1874_v60, %v1362_v50 }
 0x968   :  { %v8262_v63 = vpop.f32.mrf.mxu3 }
 0x97e   :  { %v2126_v40 = vpop.f32.mrf.mxu3 }
 0x97f   :  { %v2181_v26 = vmul.f32 0.25, %v2126_v40 }
 0x981   :  { %v2187_v53 = vadd.f32 %v2181_v26, %v7912_v49 }
 0x983   :  { %v2193_v1 = vsel %vm647_vm8, %v2187_v53, -inf }
 0x984   :  { %2194 = vmax.xlane.f32.xlu0 %v2193_v1 }
 0x986   :  { %v2128_v4 = vpop.f32.mrf.mxu3 }
 0x987   :  { %v2182_v5 = vmul.f32 0.25, %v2128_v4 }
 0x989   :  { %v2188_v15 = vadd.f32 %v2182_v5, %v7912_v49 }
 0x98b   :  { %v2196_v62 = vsel %vm647_vm8, %v2188_v15, -inf }
 0x98c   :  { %2197 = vmax.xlane.f32.xlu1 %v2196_v62 }
 0x98e   :  { %v2131_v57 = vpop.f32.mrf.mxu3 }
 0x98f   :  { %v2183_v3 = vmul.f32 0.25, %v2131_v57 }
 0x990   :  { %v2172_v36 = vpop.f32.mrf.mxu0 }
 0x991   :  { %v2184_v14 = vmul.f32 0.25, %v2172_v36  ;;  %v2189_v46 = vadd.f32 %v2183_v3, %v7912_v49 }
 0x993   :  { %v2199_v61 = vsel %vm647_vm8, %v2189_v46, -inf  ;;  %v2190_v18 = vadd.f32 %v2184_v14, %v7912_v49 }
 0x994   :  { %2200 = vmax.xlane.f32.xlu1 %v2199_v61 }
 0x995   :  { %v2202_v22 = vsel %vm647_vm8, %v2190_v18, -inf }
 0x996   :  { %2203 = vmax.xlane.f32.xlu2 %v2202_v22  ;;  %v2133_v16 = vpop.f32.mrf.mxu3 }
 0x998   :  { %v2174_v56 = vpop.f32.mrf.mxu0 }
 0x999   :  { %v2185_v28 = vmul.f32 0.25, %v2174_v56 }
 0x99b   :  { %v2191_v27 = vadd.f32 %v2185_v28, %v7912_v49 }
 0x99d   :  { %v2205_v20 = vsel %vm647_vm8, %v2191_v27, -inf }
 0x99e   :  { %2206 = vmax.xlane.f32.xlu0 %v2205_v20 }
 0x9a0   :  { %v2177_v24 = vpop.f32.mrf.mxu0 }
 0x9a1   :  { %v2186_v10 = vmul.f32 0.25, %v2177_v24 }
 0x9a3   :  { %v2192_v32 = vadd.f32 %v2186_v10, %v7912_v49 }
 0x9a5   :  { %v2208_v30 = vsel %vm647_vm8, %v2192_v32, -inf }
 0x9a6   :  { %2209 = vmax.xlane.f32.xlu2 %v2208_v30 }
 0x9a8   :  { %v2179_v33 = vpop.f32.mrf.mxu0 }
 0x9f7   :  { %v2195_v58 = vpop.xlane.xlu0 %2194 }
 0x9f8   :  { %v2211_v38 = vsub.f32 %v2187_v53, %v2195_v58 }
 0x9fa   :  { %v2217_v34 = vmul.f32 1.442695, %v2211_v38 }
 0x9fc   :  { %7274 = vpow2.f32 %v2217_v34 }
 0x9ff   :  { %v2198_v2 = vpop.xlane.xlu1 %2197 }
 0xa00   :  { %v2212_v54 = vsub.f32 %v2188_v15, %v2198_v2 }
 0xa02   :  { %v7275_v8 = vpop.eup %7274  ;;  %v2219_v35 = vmul.f32 1.442695, %v2212_v54 }
 0xa03   :  { %v2229_v19 = vsel %vm647_vm8, %v7275_v8, 0.0 }
 0xa04   :  { %7276 = vpow2.f32 %v2219_v35  ;;  %2230 = vadd.xlane.f32.xlu0 %v2229_v19 }
 0xa07   :  { %v2201_v55 = vpop.xlane.xlu1 %2200 }
 0xa08   :  { %v2213_v41 = vsub.f32 %v2189_v46, %v2201_v55 }
 0xa09   :  { %v2204_v42 = vpop.xlane.xlu2 %2203 }
 0xa0a   :  { %v7277_v23 = vpop.eup %7276  ;;  %v2221_v11 = vmul.f32 1.442695, %v2213_v41  ;;  %v2214_v45 = vsub.f32 %v2190_v18, %v2204_v42 }
 0xa0b   :  { %v2232_v39 = vsel %vm647_vm8, %v7277_v23, 0.0 }
 0xa0c   :  { %7278 = vpow2.f32 %v2221_v11  ;;  %v2223_v47 = vmul.f32 1.442695, %v2214_v45  ;;  %2233 = vadd.xlane.f32.xlu1 %v2232_v39 }
 0xa0e   :  { %7280 = vpow2.f32 %v2223_v47 }
 0xa11   :  { %v2207_v50 = vpop.xlane.xlu0 %2206 }
 0xa12   :  { %v7279_v60 = vpop.eup %7278  ;;  %v2215_v40 = vsub.f32 %v2191_v27, %v2207_v50 }
 0xa13   :  { %v2235_v26 = vsel %vm647_vm8, %v7279_v60, 0.0 }
 0xa14   :  { %v7281_v53 = vpop.eup %7280  ;;  %v2225_v1 = vmul.f32 1.442695, %v2215_v40  ;;  %2236 = vadd.xlane.f32.xlu1 %v2235_v26 }
 0xa15   :  { %v2238_v4 = vsel %vm647_vm8, %v7281_v53, 0.0 }
 0xa16   :  { %7282 = vpow2.f32 %v2225_v1  ;;  %2239 = vadd.xlane.f32.xlu2 %v2238_v4 }
 0xa19   :  { %v2210_v5 = vpop.xlane.xlu2 %2209 }
 0xa1a   :  { %v2216_v15 = vsub.f32 %v2192_v32, %v2210_v5 }
 0xa1c   :  { %v7283_v62 = vpop.eup %7282  ;;  %v2227_v57 = vmul.f32 1.442695, %v2216_v15 }
 0xa1d   :  { %v2241_v3 = vsel %vm647_vm8, %v7283_v62, 0.0 }
 0xa1e   :  { %7284 = vpow2.f32 %v2227_v57  ;;  %2242 = vadd.xlane.f32.xlu0 %v2241_v3 }
 0xa24   :  { %v7285_v36 = vpop.eup %7284 }
 0xa25   :  { %v2244_v14 = vsel %vm647_vm8, %v7285_v36, 0.0 }
 0xa26   :  { %2245 = vadd.xlane.f32.xlu2 %v2244_v14 }
 0xa77   :  { %v2231_v46 = vpop.xlane.xlu0 %2230 }
 0xa78   :  { %7286 = vrcp.f32 %v2231_v46 }
 0xa7e   :  { %v7287_v18 = vpop.eup %7286 }
 0xa7f   :  { %v2234_v61 = vpop.xlane.xlu1 %2233  ;;  %v2253_v22 = vmul.f32 %v7287_v18, %v7275_v8 }
 0xa80   :  { %7288 = vrcp.f32 %v2234_v61 }
 0xa81   :  { %v2259_v56 = vpack.c.bf16 %v2253_v22, %v2253_v22 }
 0xa83   :  { %v2268_v10 = vunpack.c.l.b16 %v2259_v56 }
 0xa86   :  { %v7289_v16 = vpop.eup %7288 }
 0xa87   :  { %v2254_v28 = vmul.f32 %v7289_v16, %v7277_v23  ;;  %v2237_v27 = vpop.xlane.xlu1 %2236  ;;  %v7163_v16 = vld [vmem:[%s9613_s12] ss:$0 sm:$0xff] }
 0xa88   :  { %7290 = vrcp.f32 %v2237_v27 }
 0xa89   :  { %v2260_v20 = vpack.c.bf16 %v2254_v28, %v2254_v28  ;;  %v2240_v24 = vpop.xlane.xlu2 %2239  ;;  %v1354_v28 = vadd.f32 %v8124_v0, %v8126_v48 }
 0xa8a   :  { %7292 = vrcp.f32 %v2240_v24 }
 0xa8b   :  { %v2269_v32 = vunpack.c.l.b16 %v2260_v20  ;;  %v1880_v20 = vadd.f32 %v8250_v44, %v1354_v28  ;;  %v1359_v44 = vadd.f32 %v8136_v6, %v8134_v59 }
 0xa8d   :  { %v2271_v30 = vpack.c.b16 %v2269_v32, %v2268_v10 }
 0xa8e   :  { %v7291_v33 = vpop.eup %7290 }
 0xa8f   :  { %6294 = vmatmul.msk.bf16.vlgmr.msra.gmra.mxu1 %vm647_vm8, %v2271_v30  ;;  %v2255_v58 = vmul.f32 %v7291_v33, %v7279_v60 }
 0xa90   :  { %v7293_v34 = vpop.eup %7292 }
 0xa91   :  { %v2243_v38 = vpop.xlane.xlu0 %2242  ;;  %v2261_v2 = vpack.c.bf16 %v2255_v58, %v2255_v58  ;;  %v2256_v54 = vmul.f32 %v7293_v34, %v7281_v53  ;;  %v7037_v53 = vld [vmem:[%s9612_s11 + $0x18] sm:$0xff] }
 0xa92   :  { %7294 = vrcp.f32 %v2243_v38  ;;  %2381 = vmatpush.bf16.msra.mxu3 %v7037_v53  ;;  %v1882_v38 = vadd.f32 %v8256_v51, %v1359_v44  ;;  %v1364_v51 = vadd.f32 %v8144_v7, %v8142_v12 }
 0xa93   :  { %v2262_v35 = vpack.c.bf16 %v2256_v54, %v2256_v54  ;;  %v2270_v41 = vunpack.c.l.b16 %v2261_v2 }
 0xa95   :  { %v2312_v23 = vunpack.c.l.b16 %v2262_v35  ;;  %v2272_v45 = vpack.c.b16 %v2270_v41, %v2270_v41 }
 0xa98   :  { %v7295_v8 = vpop.eup %7294 }
 0xa99   :  { %v2257_v19 = vmul.f32 %v7295_v8, %v7283_v62  ;;  %v2246_v55 = vpop.xlane.xlu2 %2245 }
 0xa9a   :  { %7296 = vrcp.f32 %v2246_v55 }
 0xa9b   :  { %v2263_v42 = vpack.c.bf16 %v2257_v19, %v2257_v19  ;;  %v1884_v19 = vadd.f32 %v8262_v63, %v1364_v51 }
 0xa9d   :  { %v2313_v11 = vunpack.c.l.b16 %v2263_v42 }
 0xa9f   :  { %v2315_v39 = vpack.c.b16 %v2313_v11, %v2312_v23  ;;  %6295 = vmatmul.msk.bf16.gmra.mxu1 %vm647_vm8, %v2272_v45 }
 0xaa0   :  { %v7297_v47 = vpop.eup %7296 }
 0xaa1   :  { %6296 = vmatmul.msk.bf16.vlgmr.msrb.gmra.mxu2 %vm647_vm8, %v2315_v39  ;;  %v2258_v50 = vmul.f32 %v7297_v47, %v7285_v36 }
 0xaa3   :  { %v2264_v60 = vpack.c.bf16 %v2258_v50, %v2258_v50 }
 0xaa5   :  { %v2314_v40 = vunpack.c.l.b16 %v2264_v60 }
 0xaa7   :  { %v2316_v26 = vpack.c.b16 %v2314_v40, %v2314_v40 }
 0xab1   :  { %6297 = vmatmul.msk.bf16.gmra.mxu2 %vm647_vm8, %v2316_v26 }
 0xb0c   :  { %v2300_v1 = vpop.f32.mrf.mxu1 }
 0xb14   :  { %v2302_v4 = vpop.f32.mrf.mxu1 }
 0xb15   :  { %v2353_v5 = vpack.c.bf16 %v2302_v4, %v2300_v1 }
 0xb17   :  { %6304 = vmatmul.msk.bf16.vlgmr.msra.gmra.mxu3 %vm558_vm6, %v2353_v5 }
 0xb1c   :  { %v2305_v15 = vpop.f32.mrf.mxu1 }
 0xb24   :  { %v2307_v62 = vpop.f32.mrf.mxu1  ;;  %v2344_v57 = vpop.f32.mrf.mxu2 }
 0xb25   :  { %v2354_v3 = vpack.c.bf16 %v2344_v57, %v2305_v15 }
 0xb27   :  { %6305 = vmatmul.msk.bf16.gmra.mxu3 %vm558_vm6, %v2354_v3 }
 0xb2c   :  { %v2346_v36 = vpop.f32.mrf.mxu2 }
 0xb34   :  { %v2349_v14 = vpop.f32.mrf.mxu2 }
 0xb35   :  { %v2355_v46 = vpack.c.bf16 %v2349_v14, %v2346_v36 }
 0xb37   :  { %6306 = vmatmul.msk.bf16.gmra.mxu3 %vm558_vm6, %v2355_v46 }
 0xb3c   :  { %v2351_v61 = vpop.f32.mrf.mxu2 }
 0xb9a   :  { %v2383_v18 = vpop.f32.mrf.mxu3 }
 0xb9b   :  { %v2398_v22 = vadd.f32 %v2383_v18, %v8248_v43 }
 0xb9d   :  { %v2404_v56 = vadd.f32 %v2398_v22, %v7656_v9 }
 0xb9f   :  { %v8299_v27 = vadd.f32 %v7163_v16, %v2404_v56 }
 0xba1   :  { %v2422_v24 = vsel %vm139_vm0, %v8299_v27, 0.0 }
 0xba2   :  { %2423 = vadd.xlane.f32.xlu0 %v2422_v24  ;;  %v2385_v10 = vpop.f32.mrf.mxu3  ;;  %v7045_v24 = vld [vmem:[%s9616_s15 + $0x34] sm:$0xf0] }
 0xba3   :  { %v2399_v32 = vadd.f32 %v2385_v10, %v1880_v20  ;;  %v6333_v20 = vld [vmem:[%s9616_s15 + $0x30] sm:$0xf]  ;;  %v7044_v10 = vld [vmem:[%s9616_s15 + $0x34] sm:$0xf] }
 0xba5   :  { %v2405_v43 = vadd.f32 %v2399_v32, %v7663_v13  ;;  %v6334_v32 = vor.u32 %v7045_v24, %v6333_v20 }
 0xba7   :  { %v8305_v30 = vadd.f32 %v7163_v16, %v2405_v43  ;;  %v6335_v43 = vld [vmem:[%s9616_s15 + $0x38] sm:$0xf0]  ;;  %2642 = vmatpush.bf16.msra.mxu0 %v6334_v32 }
 0xba9   :  { %v2425_v9 = vsel %vm139_vm0, %v8305_v30, 0.0 }
 0xbaa   :  { %2426 = vadd.xlane.f32.xlu1 %v2425_v9  ;;  %v2388_v33 = vpop.f32.mrf.mxu3  ;;  %v6338_v9 = vor.u32 %v7044_v10, %v6335_v43 }
 0xbab   :  { %v2400_v0 = vadd.f32 %v2388_v33, %v8254_v52  ;;  %v6325_v33 = vld [vmem:[%s9616_s15 + $0x20] sm:$0xf] }
 0xbac   :  { %2666 = vmatpush.bf16.msrb.mxu1 %v6338_v9  ;;  %v8440_v9 = vld [vmem:[%s9615_s14] ss:$0 sm:$0xff] }
 0xbad   :  { %v2406_v48 = vadd.f32 %v2400_v0, %v7670_v17  ;;  %v7043_v0 = vld [vmem:[%s9616_s15 + $0x24] sm:$0xf0] }
 0xbae   :  { %v6326_v44 = vor.u32 %v7043_v0, %v6325_v33 }
 0xbaf   :  { %v8313_v58 = vadd.f32 %v7163_v16, %v2406_v48  ;;  %v7042_v48 = vld [vmem:[%s9616_s15 + $0x24] sm:$0xf] }
 0xbb0   :  { %2643 = vmatpush.bf16.msra.mxu0 %v6326_v44 }
 0xbb1   :  { %v2428_v13 = vsel %vm139_vm0, %v8313_v58, 0.0 }
 0xbb2   :  { %2429 = vadd.xlane.f32.xlu2 %v2428_v13  ;;  %v2390_v34 = vpop.f32.mrf.mxu3 }
 0xbb3   :  { %v2401_v2 = vadd.f32 %v2390_v34, %v1882_v38  ;;  %v6327_v38 = vld [vmem:[%s9616_s15 + $0x28] sm:$0xf0]  ;;  %v6317_v34 = vld [vmem:[%s9616_s15 + $0x10] sm:$0xf] }
 0xbb4   :  { %v6330_v13 = vor.u32 %v7042_v48, %v6327_v38 }
 0xbb5   :  { %v2407_v54 = vadd.f32 %v2401_v2, %v7677_v21  ;;  %v7041_v2 = vld [vmem:[%s9616_s15 + $0x14] sm:$0xf0] }
 0xbb6   :  { %2667 = vmatpush.bf16.msrb.mxu1 %v6330_v13 }
 0xbb7   :  { %v8319_v8 = vadd.f32 %v7163_v16, %v2407_v54  ;;  %v7040_v54 = vld [vmem:[%s9616_s15 + $0x14] sm:$0xf] }
 0xbb9   :  { %v2431_v17 = vsel %vm139_vm0, %v8319_v8, 0.0 }
 0xbba   :  { %2432 = vadd.xlane.f32.xlu0 %v2431_v17  ;;  %v2393_v52 = vpop.f32.mrf.mxu3  ;;  %v6318_v17 = vor.u32 %v7041_v2, %v6317_v34 }
 0xbbb   :  { %v2402_v59 = vadd.f32 %v2393_v52, %v8260_v31  ;;  %v6319_v52 = vld [vmem:[%s9616_s15 + $0x18] sm:$0xf0] }
 0xbbc   :  { %2644 = vmatpush.bf16.msra.mxu0 %v6318_v17 }
 0xbbd   :  { %v2408_v6 = vadd.f32 %v2402_v59, %v7684_v25 }
 0xbbf   :  { %v8327_v35 = vadd.f32 %v7163_v16, %v2408_v6  ;;  %v6322_v6 = vor.u32 %v7040_v54, %v6319_v52 }
 0xbc1   :  { %v2434_v21 = vsel %vm139_vm0, %v8327_v35, 0.0  ;;  %2668 = vmatpush.bf16.msrb.mxu1 %v6322_v6 }
 0xbc2   :  { %2435 = vadd.xlane.f32.xlu1 %v2434_v21  ;;  %v2395_v55 = vpop.f32.mrf.mxu3  ;;  %v7039_v21 = vld [vmem:[%s9616_s15 + $0x4] sm:$0xf0] }
 0xbc3   :  { %v2403_v41 = vadd.f32 %v2395_v55, %v1884_v19  ;;  %v6309_v19 = vld [vmem:[%s9616_s15] sm:$0xf]  ;;  %v7038_v55 = vld [vmem:[%s9616_s15 + $0x4] sm:$0xf] }
 0xbc5   :  { %v2409_v42 = vadd.f32 %v2403_v41, %v7691_v29 }
 0xbc7   :  { %v8333_v23 = vadd.f32 %v7163_v16, %v2409_v42  ;;  %v6310_v42 = vor.u32 %v7039_v21, %v6309_v19 }
 0xbc9   :  { %v2437_v25 = vsel %vm139_vm0, %v8333_v23, 0.0  ;;  %2645 = vmatpush.bf16.msra.mxu0 %v6310_v42 }
 0xbca   :  { %2438 = vadd.xlane.f32.xlu2 %v2437_v25  ;;  %v6311_v25 = vld [vmem:[%s9616_s15 + $0x8] sm:$0xf0] }
 0xc15   :  { %v2424_v31 = vpop.xlane.xlu0 %2423 }
 0xc16   :  { %v2440_v12 = vmul.f32 %v2424_v31, %v7695_v37  ;;  %v6314_v31 = vor.u32 %v7038_v55, %v6311_v25 }
 0xc18   :  { %v8339_v7 = vsub.f32 %v8299_v27, %v2440_v12  ;;  %2669 = vmatpush.bf16.msrb.mxu1 %v6314_v31 }
 0xc1a   :  { %v2452_v63 = vmul.f32 %v8339_v7, %v8339_v7 }
 0xc1c   :  { %v2458_v11 = vsel %vm139_vm0, %v2452_v63, 0.0 }
 0xc1d   :  { %v2427_v45 = vpop.xlane.xlu1 %2426  ;;  %2459 = vadd.xlane.f32.xlu0 %v2458_v11 }
 0xc1e   :  { %v2441_v29 = vmul.f32 %v2427_v45, %v7695_v37 }
 0xc20   :  { %v8346_v39 = vsub.f32 %v8305_v30, %v2441_v29 }
 0xc22   :  { %v2453_v47 = vmul.f32 %v8346_v39, %v8346_v39 }
 0xc24   :  { %v2461_v50 = vsel %vm139_vm0, %v2453_v47, 0.0 }
 0xc25   :  { %v2430_v60 = vpop.xlane.xlu2 %2429  ;;  %2462 = vadd.xlane.f32.xlu1 %v2461_v50 }
 0xc26   :  { %v2442_v40 = vmul.f32 %v2430_v60, %v7695_v37 }
 0xc28   :  { %v8353_v26 = vsub.f32 %v8313_v58, %v2442_v40 }
 0xc2a   :  { %v2454_v53 = vmul.f32 %v8353_v26, %v8353_v26 }
 0xc2c   :  { %v2464_v1 = vsel %vm139_vm0, %v2454_v53, 0.0 }
 0xc2d   :  { %v2433_v4 = vpop.xlane.xlu0 %2432  ;;  %2465 = vadd.xlane.f32.xlu2 %v2464_v1 }
 0xc2e   :  { %v2443_v5 = vmul.f32 %v2433_v4, %v7695_v37 }
 0xc30   :  { %v8360_v15 = vsub.f32 %v8319_v8, %v2443_v5 }
 0xc32   :  { %v2455_v62 = vmul.f32 %v8360_v15, %v8360_v15 }
 0xc34   :  { %v2467_v57 = vsel %vm139_vm0, %v2455_v62, 0.0 }
 0xc35   :  { %2468 = vadd.xlane.f32.xlu0 %v2467_v57  ;;  %v2436_v3 = vpop.xlane.xlu1 %2435 }
 0xc36   :  { %v2444_v36 = vmul.f32 %v2436_v3, %v7695_v37 }
 0xc38   :  { %v8367_v14 = vsub.f32 %v8327_v35, %v2444_v36 }
 0xc3a   :  { %v2456_v46 = vmul.f32 %v8367_v14, %v8367_v14 }
 0xc3c   :  { %v2470_v61 = vsel %vm139_vm0, %v2456_v46, 0.0 }
 0xc3d   :  { %2471 = vadd.xlane.f32.xlu1 %v2470_v61  ;;  %v2439_v18 = vpop.xlane.xlu2 %2438 }
 0xc3e   :  { %v2445_v22 = vmul.f32 %v2439_v18, %v7695_v37 }
 0xc40   :  { %v8374_v16 = vsub.f32 %v8333_v23, %v2445_v22 }
 0xc42   :  { %v2457_v56 = vmul.f32 %v8374_v16, %v8374_v16 }
 0xc44   :  { %v2473_v28 = vsel %vm139_vm0, %v2457_v56, 0.0  ;;  %v8434_v56 = vld [vmem:[%s9614_s13] ss:$0 sm:$0xff] }
 0xc45   :  { %2474 = vadd.xlane.f32.xlu2 %v2473_v28 }
 0xc90   :  { %v2460_v59 = vpop.xlane.xlu0 %2459 }
 0xc91   :  { %v2476_v51 = vmul.f32 %v2460_v59, %v7695_v37 }
 0xc93   :  { %v2482_v41 = vadd.f32 1e-06, %v2476_v51 }
 0xc95   :  { %7298 = vrsqrt.f32 %v2482_v41  ;;  %vm2494_vm10 = vweird.f32 %v2482_v41 }
 0xc98   :  { %v2463_v12 = vpop.xlane.xlu1 %2462 }
 0xc99   :  { %v2477_v63 = vmul.f32 %v2463_v12, %v7695_v37 }
 0xc9b   :  { %v7299_v11 = vpop.eup %7298  ;;  %v2483_v45 = vadd.f32 1e-06, %v2477_v63 }
 0xc9c   :  { %v2489_v29 = vmul.f32 %v7299_v11, %v2482_v41  ;;  %vm2495_vm9 = vweird.f32 %v7299_v11 }
 0xc9d   :  { %7300 = vrsqrt.f32 %v2483_v45  ;;  %vm2496_vm11 = vmor %vm2494_vm10, %vm2495_vm9  ;;  %vm2504_vm13 = vweird.f32 %v2483_v45 }
 0xc9e   :  { %v2490_v47 = vmul.f32 %v7299_v11, %v2489_v29 }
 0xca0   :  { %v2491_v50 = vmul.f32 0.5, %v2490_v47  ;;  %v2466_v60 = vpop.xlane.xlu2 %2465 }
 0xca1   :  { %v2478_v40 = vmul.f32 %v2466_v60, %v7695_v37 }
 0xca2   :  { %v2492_v53 = vsub.f32 1.5, %v2491_v50 }
 0xca3   :  { %v7301_v1 = vpop.eup %7300  ;;  %v2484_v4 = vadd.f32 1e-06, %v2478_v40 }
 0xca4   :  { %v2493_v5 = vmul.f32 %v7299_v11, %v2492_v53  ;;  %v2499_v62 = vmul.f32 %v7301_v1, %v2483_v45  ;;  %vm2505_vm12 = vweird.f32 %v7301_v1 }
 0xca5   :  { %7302 = vrsqrt.f32 %v2484_v4  ;;  %vm2506_vm14 = vmor %vm2504_vm13, %vm2505_vm12  ;;  %vm2514_vm1 = vweird.f32 %v2484_v4 }
 0xca6   :  { %v2500_v57 = vmul.f32 %v7301_v1, %v2499_v62  ;;  %v2497_v3 = vsel %vm2496_vm11, %v7299_v11, %v2493_v5 }
 0xca7   :  { %v2548_v28 = vmul.f32 %v2497_v3, %v8339_v7 }
 0xca8   :  { %v2501_v36 = vmul.f32 0.5, %v2500_v57  ;;  %v2469_v46 = vpop.xlane.xlu0 %2468 }
 0xca9   :  { %v2479_v61 = vmul.f32 %v2469_v46, %v7695_v37  ;;  %v2557_v33 = vmul.f32 %v8434_v56, %v2548_v28 }
 0xcaa   :  { %v2502_v18 = vsub.f32 1.5, %v2501_v36 }
 0xcab   :  { %v7303_v22 = vpop.eup %7302  ;;  %v2485_v20 = vadd.f32 1e-06, %v2479_v61  ;;  %v2566_v2 = vadd.f32 %v8440_v9, %v2557_v33  ;;  %v7059_v33 = vld [vmem:[%s9618_s17 + $0x68] sm:$0xff] }
 0xcac   :  { %v2503_v24 = vmul.f32 %v7301_v1, %v2502_v18  ;;  %v2509_v10 = vmul.f32 %v7303_v22, %v2484_v4  ;;  %vm2515_vm15 = vweird.f32 %v7303_v22 }
 0xcad   :  { %7304 = vrsqrt.f32 %v2485_v20  ;;  %vm2516_vm2 = vmor %vm2514_vm1, %vm2515_vm15  ;;  %vm2524_vm4 = vweird.f32 %v2485_v20 }
 0xcae   :  { %v2507_v32 = vsel %vm2506_vm14, %v7301_v1, %v2503_v24  ;;  %v2510_v43 = vmul.f32 %v7303_v22, %v2509_v10 }
 0xcaf   :  { %v2549_v0 = vmul.f32 %v2507_v32, %v8346_v39 }
 0xcb0   :  { %v2511_v48 = vmul.f32 0.5, %v2510_v43  ;;  %v2472_v44 = vpop.xlane.xlu1 %2471  ;;  %v7060_v43 = vld [vmem:[%s9618_s17 + $0x70] sm:$0xff] }
 0xcb1   :  { %v2558_v7 = vmul.f32 %v8434_v56, %v2549_v0  ;;  %v2480_v38 = vmul.f32 %v2472_v44, %v7695_v37  ;;  %v7050_v0 = vld [vmem:[%s9618_s17 + $0x20] sm:$0xff]  ;;  %v7049_v44 = vld [vmem:[%s9618_s17 + $0x18] sm:$0xff] }
 0xcb2   :  { %v2512_v13 = vsub.f32 1.5, %v2511_v48  ;;  %v7058_v48 = vld [vmem:[%s9618_s17 + $0x60] sm:$0xff] }
 0xcb3   :  { %v7305_v34 = vpop.eup %7304  ;;  %v2567_v54 = vadd.f32 %v8440_v9, %v2558_v7  ;;  %v2486_v17 = vadd.f32 1e-06, %v2480_v38  ;;  %v7057_v7 = vld [vmem:[%s9618_s17 + $0x58] sm:$0xff]  ;;  %v7048_v38 = vld [vmem:[%s9618_s17 + $0x10] sm:$0xff] }
 0xcb4   :  { %v2513_v52 = vmul.f32 %v7303_v22, %v2512_v13  ;;  %v2519_v59 = vmul.f32 %v7305_v34, %v2485_v20  ;;  %vm2525_vm3 = vweird.f32 %v7305_v34  ;;  %v7056_v13 = vld [vmem:[%s9618_s17 + $0x50] sm:$0xff] }
 0xcb5   :  { %v2572_v6 = vpack.c.bf16 %v2567_v54, %v2566_v2  ;;  %7306 = vrsqrt.f32 %v2486_v17  ;;  %vm2526_vm7 = vmor %vm2524_vm4, %vm2525_vm3  ;;  %vm2534_vm10 = vweird.f32 %v2486_v17  ;;  %v7047_v2 = vld [vmem:[%s9618_s17 + $0x8] sm:$0xff] }
 0xcb6   :  { %v2520_v39 = vmul.f32 %v7305_v34, %v2519_v59  ;;  %v2517_v51 = vsel %vm2516_vm2, %v7303_v22, %v2513_v52  ;;  %v7055_v54 = vld [vmem:[%s9618_s17 + $0x48] sm:$0xff] }
 0xcb7   :  { %6339 = vmatmul.msk.bf16.vlgmr.msra.gmra.mxu0 %vm139_vm0, %v2572_v6  ;;  %6342 = vmatmul.msk.bf16.vlgmr.msrb.gmra.mxu1 %vm139_vm0, %v2572_v6  ;;  %v2550_v25 = vmul.f32 %v2517_v51, %v8353_v26  ;;  %v7054_v51 = vld [vmem:[%s9618_s17 + $0x40] sm:$0xff] }
 0xcb8   :  { %v2521_v19 = vmul.f32 0.5, %v2520_v39  ;;  %v2475_v21 = vpop.xlane.xlu2 %2474  ;;  %v7046_v39 = vld [vmem:[%s9618_s17] sm:$0xff] }
 0xcb9   :  { %v2481_v55 = vmul.f32 %v2475_v21, %v7695_v37  ;;  %v2559_v47 = vmul.f32 %v8434_v56, %v2550_v25 }
 0xcba   :  { %v2522_v41 = vsub.f32 1.5, %v2521_v19 }
 0xcbb   :  { %v7307_v42 = vpop.eup %7306  ;;  %v2487_v31 = vadd.f32 1e-06, %v2481_v55  ;;  %v2568_v1 = vadd.f32 %v8440_v9, %v2559_v47 }
 0xcbc   :  { %v2523_v12 = vmul.f32 %v7305_v34, %v2522_v41  ;;  %v2529_v63 = vmul.f32 %v7307_v42, %v2486_v17  ;;  %vm2535_vm9 = vweird.f32 %v7307_v42 }
 0xcbd   :  { %7308 = vrsqrt.f32 %v2487_v31  ;;  %vm2536_vm11 = vmor %vm2534_vm10, %vm2535_vm9  ;;  %vm2544_vm13 = vweird.f32 %v2487_v31 }
 0xcbe   :  { %v2527_v11 = vsel %vm2526_vm7, %v7305_v34, %v2523_v12  ;;  %v2530_v45 = vmul.f32 %v7307_v42, %v2529_v63  ;;  %v2583_v34 = vld [vmem:[%s9617_s16] sm:$0x3] }
 0xcbf   :  { %v2551_v29 = vmul.f32 %v2527_v11, %v8360_v15  ;;  %v8512_v17 = vperm.slane %v2583_v34, 0  ;;  %v8514_v52 = vperm.slane %v2583_v34, 1 }
 0xcc0   :  { %v2531_v50 = vmul.f32 0.5, %v2530_v45 }
 0xcc1   :  { %v2560_v60 = vmul.f32 %v8434_v56, %v2551_v29 }
 0xcc2   :  { %v2532_v40 = vsub.f32 1.5, %v2531_v50 }
 0xcc3   :  { %v7309_v53 = vpop.eup %7308  ;;  %v2569_v26 = vadd.f32 %v8440_v9, %v2560_v60 }
 0xcc4   :  { %v2533_v4 = vmul.f32 %v7307_v42, %v2532_v40  ;;  %v2539_v5 = vmul.f32 %v7309_v53, %v2487_v31  ;;  %vm2545_vm12 = vweird.f32 %v7309_v53 }
 0xcc5   :  { %v2573_v62 = vpack.c.bf16 %v2569_v26, %v2568_v1  ;;  %vm2546_vm14 = vmor %vm2544_vm13, %vm2545_vm12 }
 0xcc6   :  { %v2540_v57 = vmul.f32 %v7309_v53, %v2539_v5  ;;  %v2537_v15 = vsel %vm2536_vm11, %v7307_v42, %v2533_v4 }
 0xcc7   :  { %6340 = vmatmul.msk.bf16.gmra.mxu0 %vm139_vm0, %v2573_v62  ;;  %6343 = vmatmul.msk.bf16.gmra.mxu1 %vm139_vm0, %v2573_v62  ;;  %v2552_v46 = vmul.f32 %v2537_v15, %v8367_v14  ;;  %v7053_v14 = vld [vmem:[%s9618_s17 + $0x38] sm:$0xff] }
 0xcc8   :  { %v2541_v3 = vmul.f32 0.5, %v2540_v57  ;;  %2932 = vmatpush.bf16.msra.mxu2 %v7053_v14 }
 0xcc9   :  { %v2561_v28 = vmul.f32 %v8434_v56, %v2552_v46 }
 0xcca   :  { %v2542_v36 = vsub.f32 1.5, %v2541_v3 }
 0xccb   :  { %v2570_v24 = vadd.f32 %v8440_v9, %v2561_v28 }
 0xccc   :  { %v2543_v61 = vmul.f32 %v7309_v53, %v2542_v36 }
 0xcce   :  { %v2547_v18 = vsel %vm2546_vm14, %v7309_v53, %v2543_v61 }
 0xccf   :  { %v2553_v22 = vmul.f32 %v2547_v18, %v8374_v16  ;;  %v7061_v16 = vld [vmem:[%s9618_s17 + $0x78] sm:$0xff] }
 0xcd0   :  { %2956 = vmatpush.bf16.msrb.mxu3 %v7061_v16 }
 0xcd1   :  { %v2562_v20 = vmul.f32 %v8434_v56, %v2553_v22  ;;  %v7052_v56 = vld [vmem:[%s9618_s17 + $0x30] sm:$0xff] }
 0xcd2   :  { %2933 = vmatpush.bf16.msra.mxu2 %v7052_v56 }
 0xcd3   :  { %v2571_v10 = vadd.f32 %v8440_v9, %v2562_v20  ;;  %v7051_v9 = vld [vmem:[%s9618_s17 + $0x28] sm:$0xff] }
 0xcd4   :  { %2957 = vmatpush.bf16.msrb.mxu3 %v7060_v43 }
 0xcd5   :  { %v2574_v32 = vpack.c.bf16 %v2571_v10, %v2570_v24 }
 0xcd6   :  { %2934 = vmatpush.bf16.msra.mxu2 %v7051_v9 }
 0xcd7   :  { %6341 = vmatmul.msk.bf16.gmra.mxu0 %vm139_vm0, %v2574_v32  ;;  %6344 = vmatmul.msk.bf16.gmra.mxu1 %vm139_vm0, %v2574_v32 }
 0xcd8   :  { %2958 = vmatpush.bf16.msrb.mxu3 %v7059_v33 }
 0xcda   :  { %2935 = vmatpush.bf16.msra.mxu2 %v7050_v0 }
 0xcdc   :  { %2959 = vmatpush.bf16.msrb.mxu3 %v7058_v48 }
 0xcde   :  { %2936 = vmatpush.bf16.msra.mxu2 %v7049_v44 }
 0xce0   :  { %2960 = vmatpush.bf16.msrb.mxu3 %v7057_v7 }
 0xce2   :  { %2937 = vmatpush.bf16.msra.mxu2 %v7048_v38 }
 0xce4   :  { %2961 = vmatpush.bf16.msrb.mxu3 %v7056_v13 }
 0xce6   :  { %2938 = vmatpush.bf16.msra.mxu2 %v7047_v2 }
 0xce8   :  { %2962 = vmatpush.bf16.msrb.mxu3 %v7055_v54 }
 0xcea   :  { %2939 = vmatpush.bf16.msra.mxu2 %v7046_v39 }
 0xcec   :  { %2963 = vmatpush.bf16.msrb.mxu3 %v7054_v51 }
 0xd34   :  { %v2647_v59 = vpop.f32.mrf.mxu0  ;;  %v2671_v6 = vpop.f32.mrf.mxu1 }
 0xd35   :  { %v8523_v19 = vadd.f32 %v2647_v59, %v8512_v17  ;;  %v8526_v21 = vadd.f32 %v2671_v6, %v8514_v52 }
 0xd37   :  { %v2686_v55 = vmul.f32 %v8523_v19, %v8523_v19  ;;  %v2687_v41 = vmul.f32 %v8526_v21, %v8526_v21 }
 0xd39   :  { %v2698_v42 = vmul.f32 %v2686_v55, %v8523_v19  ;;  %v2699_v25 = vmul.f32 %v2687_v41, %v8526_v21 }
 0xd3b   :  { %v2710_v31 = vmul.f32 0.044715, %v2698_v42  ;;  %v2711_v12 = vmul.f32 0.044715, %v2699_v25 }
 0xd3c   :  { %v2649_v63 = vpop.f32.mrf.mxu0  ;;  %v2673_v11 = vpop.f32.mrf.mxu1 }
 0xd3d   :  { %v2722_v45 = vadd.f32 %v2710_v31, %v8523_v19  ;;  %v2723_v29 = vadd.f32 %v2711_v12, %v8526_v21  ;;  %v2650_v47 = vadd.f32 %v2649_v63, %v8512_v17  ;;  %v2674_v50 = vadd.f32 %v2673_v11, %v8514_v52 }
 0xd3f   :  { %v2734_v60 = vmul.f32 0.7978846, %v2722_v45  ;;  %v2735_v40 = vmul.f32 0.7978846, %v2723_v29  ;;  %v2688_v53 = vmul.f32 %v2650_v47, %v2650_v47  ;;  %v2689_v1 = vmul.f32 %v2674_v50, %v2674_v50 }
 0xd41   :  { %v2700_v26 = vmul.f32 %v2688_v53, %v2650_v47  ;;  %v2701_v4 = vmul.f32 %v2689_v1, %v2674_v50  ;;  %7310 = vtanh.f32 %v2734_v60 }
 0xd42   :  { %7312 = vtanh.f32 %v2735_v40 }
 0xd43   :  { %v2712_v5 = vmul.f32 0.044715, %v2700_v26  ;;  %v2713_v62 = vmul.f32 0.044715, %v2701_v4 }
 0xd44   :  { %v2652_v57 = vpop.f32.mrf.mxu0  ;;  %v2676_v15 = vpop.f32.mrf.mxu1 }
 0xd45   :  { %v2724_v3 = vadd.f32 %v2712_v5, %v2650_v47  ;;  %v2725_v36 = vadd.f32 %v2713_v62, %v2674_v50  ;;  %v8539_v46 = vadd.f32 %v2652_v57, %v8512_v17  ;;  %v8542_v61 = vadd.f32 %v2676_v15, %v8514_v52 }
 0xd47   :  { %v2736_v18 = vmul.f32 0.7978846, %v2724_v3  ;;  %v2737_v22 = vmul.f32 0.7978846, %v2725_v36  ;;  %v2690_v28 = vmul.f32 %v8539_v46, %v8539_v46  ;;  %v2691_v20 = vmul.f32 %v8542_v61, %v8542_v61  ;;  %v7311_v24 = vpop.eup %7310 }
 0xd48   :  { %v7313_v10 = vpop.eup %7312  ;;  %v2758_v43 = vadd.f32 1.0, %v7311_v24 }
 0xd49   :  { %7314 = vtanh.f32 %v2736_v18  ;;  %v2702_v32 = vmul.f32 %v2690_v28, %v8539_v46  ;;  %v2703_v14 = vmul.f32 %v2691_v20, %v8542_v61  ;;  %v2759_v9 = vadd.f32 1.0, %v7313_v10 }
 0xd4a   :  { %7316 = vtanh.f32 %v2737_v22  ;;  %v2770_v6 = vmul.f32 0.5, %v2758_v43 }
 0xd4b   :  { %v2714_v16 = vmul.f32 0.044715, %v2702_v32  ;;  %v2715_v56 = vmul.f32 0.044715, %v2703_v14  ;;  %v2771_v39 = vmul.f32 0.5, %v2759_v9 }
 0xd4c   :  { %v2654_v33 = vpop.f32.mrf.mxu0  ;;  %v2678_v0 = vpop.f32.mrf.mxu1  ;;  %v2782_v11 = vmul.f32 %v2770_v6, %v8523_v19 }
 0xd4d   :  { %v2726_v48 = vadd.f32 %v2714_v16, %v8539_v46  ;;  %v2727_v44 = vadd.f32 %v2715_v56, %v8542_v61  ;;  %v8553_v7 = vadd.f32 %v2654_v33, %v8512_v17  ;;  %v8556_v38 = vadd.f32 %v2678_v0, %v8514_v52 }
 0xd4e   :  { %v2783_v45 = vmul.f32 %v2771_v39, %v8526_v21 }
 0xd4f   :  { %v7315_v13 = vpop.eup %7314  ;;  %v2738_v34 = vmul.f32 0.7978846, %v2726_v48  ;;  %v2739_v2 = vmul.f32 0.7978846, %v2727_v44  ;;  %v2692_v54 = vmul.f32 %v8553_v7, %v8553_v7  ;;  %v2693_v55 = vmul.f32 %v8556_v38, %v8556_v38 }
 0xd50   :  { %v7317_v59 = vpop.eup %7316  ;;  %v2760_v51 = vadd.f32 1.0, %v7315_v13 }
 0xd51   :  { %v2761_v41 = vadd.f32 1.0, %v7317_v59  ;;  %v2704_v42 = vmul.f32 %v2692_v54, %v8553_v7  ;;  %7318 = vtanh.f32 %v2738_v34  ;;  %v2705_v31 = vmul.f32 %v2693_v55, %v8556_v38 }
 0xd52   :  { %v2772_v25 = vmul.f32 0.5, %v2760_v51  ;;  %7320 = vtanh.f32 %v2739_v2 }
 0xd53   :  { %v2773_v12 = vmul.f32 0.5, %v2761_v41  ;;  %v2716_v63 = vmul.f32 0.044715, %v2704_v42  ;;  %v2717_v60 = vmul.f32 0.044715, %v2705_v31 }
 0xd54   :  { %v2784_v29 = vmul.f32 %v2772_v25, %v2650_v47  ;;  %v2657_v40 = vpop.f32.mrf.mxu0  ;;  %v2681_v53 = vpop.f32.mrf.mxu1 }
 0xd55   :  { %v2785_v1 = vmul.f32 %v2773_v12, %v2674_v50  ;;  %v2728_v26 = vadd.f32 %v2716_v63, %v8553_v7  ;;  %v8568_v4 = vadd.f32 %v2657_v40, %v8512_v17  ;;  %v8571_v5 = vadd.f32 %v2681_v53, %v8514_v52 }
 0xd56   :  { %v2794_v62 = vpack.c.bf16 %v2784_v29, %v2782_v11  ;;  %v2729_v57 = vadd.f32 %v2717_v60, %v8556_v38 }
 0xd57   :  { %v2795_v15 = vpack.c.bf16 %v2785_v1, %v2783_v45  ;;  %v2740_v19 = vmul.f32 0.7978846, %v2728_v26  ;;  %v2694_v21 = vmul.f32 %v8568_v4, %v8568_v4  ;;  %v2695_v47 = vmul.f32 %v8571_v5, %v8571_v5  ;;  %v7319_v50 = vpop.eup %7318 }
 0xd58   :  { %v2741_v3 = vmul.f32 0.7978846, %v2729_v57  ;;  %2940 = vmatmul.bf16.vlgmr.msra.gmra.mxu2 %v2794_v62  ;;  %v7321_v36 = vpop.eup %7320  ;;  %v2762_v32 = vadd.f32 1.0, %v7319_v50 }
 0xd59   :  { %v2706_v18 = vmul.f32 %v2694_v21, %v8568_v4  ;;  %v2707_v22 = vmul.f32 %v2695_v47, %v8571_v5  ;;  %2964 = vmatmul.bf16.vlgmr.msrb.gmra.mxu3 %v2795_v15  ;;  %7322 = vtanh.f32 %v2740_v19  ;;  %v2763_v14 = vadd.f32 1.0, %v7321_v36 }
 0xd5a   :  { %7324 = vtanh.f32 %v2741_v3  ;;  %v2774_v54 = vmul.f32 0.5, %v2762_v32 }
 0xd5b   :  { %v2718_v28 = vmul.f32 0.044715, %v2706_v18  ;;  %v2719_v20 = vmul.f32 0.044715, %v2707_v22  ;;  %v2775_v51 = vmul.f32 0.5, %v2763_v14 }
 0xd5c   :  { %v2659_v24 = vpop.f32.mrf.mxu0  ;;  %v2683_v10 = vpop.f32.mrf.mxu1 }
 0xd5d   :  { %v2730_v16 = vadd.f32 %v2718_v28, %v8568_v4  ;;  %v2731_v56 = vadd.f32 %v2719_v20, %v8571_v5  ;;  %v2660_v43 = vadd.f32 %v2659_v24, %v8512_v17  ;;  %v2684_v9 = vadd.f32 %v2683_v10, %v8514_v52  ;;  %v7166_v28 = vld [vmem:[%s9619_s18] ss:$0 sm:$0xff] }
 0xd5e   :  { %v2786_v17 = vmul.f32 %v2774_v54, %v8539_v46  ;;  %v2787_v63 = vmul.f32 %v2775_v51, %v8542_v61 }
 0xd5f   :  { %v7323_v33 = vpop.eup %7322  ;;  %v2742_v0 = vmul.f32 0.7978846, %v2730_v16  ;;  %v2696_v48 = vmul.f32 %v2660_v43, %v2660_v43  ;;  %v2697_v44 = vmul.f32 %v2684_v9, %v2684_v9  ;;  %v2743_v34 = vmul.f32 0.7978846, %v2731_v56 }
 0xd60   :  { %v7325_v13 = vpop.eup %7324  ;;  %v2764_v2 = vadd.f32 1.0, %v7323_v33 }
 0xd61   :  { %v2708_v59 = vmul.f32 %v2696_v48, %v2660_v43  ;;  %v2709_v6 = vmul.f32 %v2697_v44, %v2684_v9  ;;  %v2765_v39 = vadd.f32 1.0, %v7325_v13  ;;  %7326 = vtanh.f32 %v2742_v0 }
 0xd62   :  { %v2776_v55 = vmul.f32 0.5, %v2764_v2  ;;  %7328 = vtanh.f32 %v2743_v34 }
 0xd63   :  { %v2720_v41 = vmul.f32 0.044715, %v2708_v59  ;;  %v2721_v42 = vmul.f32 0.044715, %v2709_v6  ;;  %v2777_v25 = vmul.f32 0.5, %v2765_v39 }
 0xd64   :  { %v2788_v52 = vmul.f32 %v2776_v55, %v8553_v7 }
 0xd65   :  { %v2732_v31 = vadd.f32 %v2720_v41, %v2660_v43  ;;  %v2733_v12 = vadd.f32 %v2721_v42, %v2684_v9  ;;  %v2789_v11 = vmul.f32 %v2777_v25, %v8556_v38 }
 0xd66   :  { %v2796_v45 = vpack.c.bf16 %v2788_v52, %v2786_v17 }
 0xd67   :  { %v2744_v29 = vmul.f32 0.7978846, %v2732_v31  ;;  %v2745_v60 = vmul.f32 0.7978846, %v2733_v12  ;;  %v2797_v40 = vpack.c.bf16 %v2789_v11, %v2787_v63  ;;  %v7327_v53 = vpop.eup %7326 }
 0xd68   :  { %2945 = vmatmul.bf16.gmra.mxu2 %v2796_v45  ;;  %v7329_v1 = vpop.eup %7328  ;;  %v2766_v26 = vadd.f32 1.0, %v7327_v53 }
 0xd69   :  { %2969 = vmatmul.bf16.gmra.mxu3 %v2797_v40  ;;  %7330 = vtanh.f32 %v2744_v29  ;;  %v2767_v46 = vadd.f32 1.0, %v7329_v1 }
 0xd6a   :  { %7332 = vtanh.f32 %v2745_v60  ;;  %v2778_v15 = vmul.f32 0.5, %v2766_v26 }
 0xd6b   :  { %v2779_v61 = vmul.f32 0.5, %v2767_v46 }
 0xd6c   :  { %v2790_v47 = vmul.f32 %v2778_v15, %v8568_v4 }
 0xd6d   :  { %v2791_v3 = vmul.f32 %v2779_v61, %v8571_v5 }
 0xd6f   :  { %v7331_v62 = vpop.eup %7330 }
 0xd70   :  { %v7333_v7 = vpop.eup %7332  ;;  %v2768_v57 = vadd.f32 1.0, %v7331_v62 }
 0xd71   :  { %v2769_v19 = vadd.f32 1.0, %v7333_v7 }
 0xd72   :  { %v2780_v21 = vmul.f32 0.5, %v2768_v57 }
 0xd73   :  { %v2781_v38 = vmul.f32 0.5, %v2769_v19 }
 0xd74   :  { %v2792_v50 = vmul.f32 %v2780_v21, %v2660_v43 }
 0xd75   :  { %v2793_v36 = vmul.f32 %v2781_v38, %v2684_v9 }
 0xd76   :  { %v2798_v18 = vpack.c.bf16 %v2792_v50, %v2790_v47 }
 0xd77   :  { %v2799_v22 = vpack.c.bf16 %v2793_v36, %v2791_v3 }
 0xd78   :  { %2950 = vmatmul.bf16.gmra.mxu2 %v2798_v18 }
 0xd79   :  { %2974 = vmatmul.bf16.gmra.mxu3 %v2799_v22 }
 0xddb   :  { %v2941_v20 = vpop.f32.mrf.mxu2 }
 0xddc   :  { %v2942_v24 = vadd.f32 %v7166_v28, %v2941_v20  ;;  %v2965_v10 = vpop.f32.mrf.mxu3 }
 0xdde   :  { %v2966_v32 = vadd.f32 %v2965_v10, %v2942_v24 }
 0xde0   :  { %v8594_v14 = vadd.f32 %v2966_v32, %v8299_v27 }
 0xde2   :  { %v2990_v4 = vsel %vm139_vm0, %v8594_v14, 0.0 }
 0xde3   :  { %v2943_v5 = vpop.f32.mrf.mxu2  ;;  %2991 = vadd.xlane.f32.xlu0 %v2990_v4  ;;  %v7065_v4 = vld [vmem:[%s9644_s30 + $0x98] sm:$0xff] }
 0xde4   :  { %v2944_v16 = vadd.f32 %v7166_v28, %v2943_v5  ;;  %v2967_v56 = vpop.f32.mrf.mxu3  ;;  %v7069_v5 = vld [vmem:[%s9645_s5 + $0x98] sm:$0xff]  ;;  %3194 = vmatpush.bf16.msrb.mxu0 %v7065_v4 }
 0xde5   :  { %3256 = vmatpush.bf16.msra.mxu1 %v7069_v5 }
 0xde6   :  { %v2968_v43 = vadd.f32 %v2967_v56, %v2944_v16  ;;  %v7073_v16 = vld [vmem:[%s9646_s26 + $0x98] sm:$0xff]  ;;  %v7064_v56 = vld [vmem:[%s9644_s30 + $0x90] sm:$0xff] }
 0xde7   :  { %3318 = vmatpush.bf16.msrb.mxu2 %v7073_v16 }
 0xde8   :  { %v8599_v9 = vadd.f32 %v2968_v43, %v8305_v30  ;;  %v7068_v43 = vld [vmem:[%s9645_s5 + $0x90] sm:$0xff]  ;;  %3195 = vmatpush.bf16.msrb.mxu0 %v7064_v56 }
 0xde9   :  { %3257 = vmatpush.bf16.msra.mxu1 %v7068_v43 }
 0xdea   :  { %v2993_v33 = vsel %vm139_vm0, %v8599_v9, 0.0 }
 0xdeb   :  { %2994 = vadd.xlane.f32.xlu1 %v2993_v33  ;;  %v2946_v0 = vpop.f32.mrf.mxu2  ;;  %v7072_v33 = vld [vmem:[%s9646_s26 + $0x90] sm:$0xff] }
 0xdec   :  { %v2947_v48 = vadd.f32 %v7166_v28, %v2946_v0  ;;  %v2970_v44 = vpop.f32.mrf.mxu3  ;;  %3319 = vmatpush.bf16.msrb.mxu2 %v7072_v33 }
 0xdee   :  { %v2971_v27 = vadd.f32 %v2970_v44, %v2947_v48  ;;  %v7063_v48 = vld [vmem:[%s9644_s30 + $0x88] sm:$0xff] }
 0xdef   :  { %v7067_v44 = vld [vmem:[%s9645_s5 + $0x88] sm:$0xff]  ;;  %3196 = vmatpush.bf16.msrb.mxu0 %v7063_v48 }
 0xdf0   :  { %v8604_v13 = vadd.f32 %v2971_v27, %v8313_v58  ;;  %v7071_v27 = vld [vmem:[%s9646_s26 + $0x88] sm:$0xff]  ;;  %3258 = vmatpush.bf16.msra.mxu1 %v7067_v44 }
 0xdf1   :  { %3320 = vmatpush.bf16.msrb.mxu2 %v7071_v27 }
 0xdf2   :  { %v2996_v34 = vsel %vm139_vm0, %v8604_v13, 0.0 }
 0xdf3   :  { %v2948_v2 = vpop.f32.mrf.mxu2  ;;  %2997 = vadd.xlane.f32.xlu2 %v2996_v34 }
 0xdf4   :  { %v2949_v54 = vadd.f32 %v7166_v28, %v2948_v2  ;;  %v2972_v59 = vpop.f32.mrf.mxu3 }
 0xdf6   :  { %v2973_v30 = vadd.f32 %v2972_v59, %v2949_v54  ;;  %v7062_v54 = vld [vmem:[%s9644_s30 + $0x80] sm:$0xff] }
 0xdf7   :  { %v7066_v59 = vld [vmem:[%s9645_s5 + $0x80] sm:$0xff]  ;;  %3197 = vmatpush.bf16.msrb.mxu0 %v7062_v54 }
 0xdf8   :  { %v8609_v6 = vadd.f32 %v2973_v30, %v8319_v8  ;;  %v7070_v30 = vld [vmem:[%s9646_s26 + $0x80] sm:$0xff]  ;;  %3259 = vmatpush.bf16.msra.mxu1 %v7066_v59 }
 0xdf9   :  { %3321 = vmatpush.bf16.msrb.mxu2 %v7070_v30 }
 0xdfa   :  { %v2999_v39 = vsel %vm139_vm0, %v8609_v6, 0.0 }
 0xdfb   :  { %3000 = vadd.xlane.f32.xlu0 %v2999_v39  ;;  %v2951_v51 = vpop.f32.mrf.mxu2 }
 0xdfc   :  { %v2952_v55 = vadd.f32 %v7166_v28, %v2951_v51  ;;  %v2975_v41 = vpop.f32.mrf.mxu3 }
 0xdfe   :  { %v2976_v58 = vadd.f32 %v2975_v41, %v2952_v55 }
 0xe00   :  { %v8614_v42 = vadd.f32 %v2976_v58, %v8327_v35 }
 0xe02   :  { %v3002_v25 = vsel %vm139_vm0, %v8614_v42, 0.0 }
 0xe03   :  { %v2953_v17 = vpop.f32.mrf.mxu2  ;;  %3003 = vadd.xlane.f32.xlu1 %v3002_v25 }
 0xe04   :  { %v2954_v52 = vadd.f32 %v7166_v28, %v2953_v17  ;;  %v2977_v31 = vpop.f32.mrf.mxu3 }
 0xe06   :  { %v2978_v8 = vadd.f32 %v2977_v31, %v2954_v52 }
 0xe08   :  { %v8619_v12 = vadd.f32 %v2978_v8, %v8333_v23 }
 0xe0a   :  { %v3005_v63 = vsel %vm139_vm0, %v8619_v12, 0.0 }
 0xe0b   :  { %3006 = vadd.xlane.f32.xlu2 %v3005_v63 }
 0xe56   :  { %v2992_v11 = vpop.xlane.xlu0 %2991 }
 0xe57   :  { %v3008_v45 = vmul.f32 %v2992_v11, %v7695_v37 }
 0xe59   :  { %v8625_v35 = vsub.f32 %v8594_v14, %v3008_v45 }
 0xe5b   :  { %v3020_v29 = vmul.f32 %v8625_v35, %v8625_v35 }
 0xe5d   :  { %v3026_v60 = vsel %vm139_vm0, %v3020_v29, 0.0 }
 0xe5e   :  { %v2995_v40 = vpop.xlane.xlu1 %2994  ;;  %3027 = vadd.xlane.f32.xlu0 %v3026_v60 }
 0xe5f   :  { %v3009_v23 = vmul.f32 %v2995_v40, %v7695_v37 }
 0xe61   :  { %v8632_v53 = vsub.f32 %v8599_v9, %v3009_v23 }
 0xe63   :  { %v3021_v1 = vmul.f32 %v8632_v53, %v8632_v53 }
 0xe65   :  { %v3029_v26 = vsel %vm139_vm0, %v3021_v1, 0.0 }
 0xe66   :  { %3030 = vadd.xlane.f32.xlu1 %v3029_v26  ;;  %v2998_v46 = vpop.xlane.xlu2 %2997 }
 0xe67   :  { %v3010_v62 = vmul.f32 %v2998_v46, %v7695_v37 }
 0xe69   :  { %v8639_v7 = vsub.f32 %v8604_v13, %v3010_v62 }
 0xe6b   :  { %v3022_v57 = vmul.f32 %v8639_v7, %v8639_v7 }
 0xe6d   :  { %v3032_v15 = vsel %vm139_vm0, %v3022_v57, 0.0  ;;  %v8708_v57 = vld [vmem:[%s9647_s4 + $0x1] ss:$0 sm:$0xff] }
 0xe6e   :  { %v3001_v19 = vpop.xlane.xlu0 %3000  ;;  %3033 = vadd.xlane.f32.xlu2 %v3032_v15 }
 0xe6f   :  { %v3011_v61 = vmul.f32 %v3001_v19, %v7695_v37 }
 0xe71   :  { %v8646_v21 = vsub.f32 %v8609_v6, %v3011_v61 }
 0xe73   :  { %v3023_v38 = vmul.f32 %v8646_v21, %v8646_v21 }
 0xe75   :  { %v3035_v47 = vsel %vm139_vm0, %v3023_v38, 0.0 }
 0xe76   :  { %3036 = vadd.xlane.f32.xlu0 %v3035_v47  ;;  %v3004_v50 = vpop.xlane.xlu1 %3003 }
 0xe77   :  { %v3012_v3 = vmul.f32 %v3004_v50, %v7695_v37 }
 0xe79   :  { %v8653_v36 = vsub.f32 %v8614_v42, %v3012_v3  ;;  %v8714_v3 = vld [vmem:[%s9648_s1 + $0x1] ss:$0 sm:$0xff] }
 0xe7b   :  { %v3024_v18 = vmul.f32 %v8653_v36, %v8653_v36 }
 0xe7d   :  { %v3038_v22 = vsel %vm139_vm0, %v3024_v18, 0.0 }
 0xe7e   :  { %3039 = vadd.xlane.f32.xlu1 %v3038_v22  ;;  %v3007_v28 = vpop.xlane.xlu2 %3006 }
 0xe7f   :  { %v3013_v20 = vmul.f32 %v3007_v28, %v7695_v37 }
 0xe81   :  { %v8660_v24 = vsub.f32 %v8619_v12, %v3013_v20 }
 0xe83   :  { %v3025_v10 = vmul.f32 %v8660_v24, %v8660_v24 }
 0xe85   :  { %v3041_v32 = vsel %vm139_vm0, %v3025_v10, 0.0 }
 0xe86   :  { %3042 = vadd.xlane.f32.xlu2 %v3041_v32 }
 0xed1   :  { %v3028_v0 = vpop.xlane.xlu0 %3027 }
 0xed2   :  { %v3044_v34 = vmul.f32 %v3028_v0, %v7695_v37 }
 0xed4   :  { %v3050_v2 = vadd.f32 1e-06, %v3044_v34 }
 0xed6   :  { %7334 = vrsqrt.f32 %v3050_v2  ;;  %vm3062_vm1 = vweird.f32 %v3050_v2 }
 0xed9   :  { %v3031_v39 = vpop.xlane.xlu1 %3030 }
 0xeda   :  { %v3045_v51 = vmul.f32 %v3031_v39, %v7695_v37 }
 0xedc   :  { %v7335_v55 = vpop.eup %7334  ;;  %v3051_v41 = vadd.f32 1e-06, %v3045_v51 }
 0xedd   :  { %v3057_v58 = vmul.f32 %v7335_v55, %v3050_v2  ;;  %vm3063_vm15 = vweird.f32 %v7335_v55 }
 0xede   :  { %7336 = vrsqrt.f32 %v3051_v41  ;;  %vm3064_vm2 = vmor %vm3062_vm1, %vm3063_vm15  ;;  %vm3072_vm4 = vweird.f32 %v3051_v41 }
 0xedf   :  { %v3058_v25 = vmul.f32 %v7335_v55, %v3057_v58 }
 0xee1   :  { %v3059_v17 = vmul.f32 0.5, %v3058_v25  ;;  %v3034_v52 = vpop.xlane.xlu2 %3033 }
 0xee2   :  { %v3046_v31 = vmul.f32 %v3034_v52, %v7695_v37 }
 0xee3   :  { %v3060_v8 = vsub.f32 1.5, %v3059_v17 }
 0xee4   :  { %v7337_v63 = vpop.eup %7336  ;;  %v3052_v11 = vadd.f32 1e-06, %v3046_v31 }
 0xee5   :  { %v3061_v45 = vmul.f32 %v7335_v55, %v3060_v8  ;;  %v3067_v29 = vmul.f32 %v7337_v63, %v3051_v41  ;;  %vm3073_vm3 = vweird.f32 %v7337_v63 }
 0xee6   :  { %7338 = vrsqrt.f32 %v3052_v11  ;;  %vm3074_vm7 = vmor %vm3072_vm4, %vm3073_vm3  ;;  %vm3082_vm10 = vweird.f32 %v3052_v11 }
 0xee7   :  { %v3068_v60 = vmul.f32 %v7337_v63, %v3067_v29  ;;  %v3065_v40 = vsel %vm3064_vm2, %v7335_v55, %v3061_v45 }
 0xee8   :  { %v3116_v15 = vmul.f32 %v3065_v40, %v8625_v35 }
 0xee9   :  { %v3069_v23 = vmul.f32 0.5, %v3068_v60  ;;  %v3037_v1 = vpop.xlane.xlu0 %3036 }
 0xeea   :  { %v3047_v26 = vmul.f32 %v3037_v1, %v7695_v37  ;;  %v3125_v18 = vmul.f32 %v8708_v57, %v3116_v15 }
 0xeeb   :  { %v3070_v46 = vsub.f32 1.5, %v3069_v23 }
 0xeec   :  { %v7339_v62 = vpop.eup %7338  ;;  %v3053_v19 = vadd.f32 1e-06, %v3047_v26  ;;  %v3134_v5 = vadd.f32 %v8714_v3, %v3125_v18 }
 0xeed   :  { %v3071_v61 = vmul.f32 %v7337_v63, %v3070_v46  ;;  %v3077_v38 = vmul.f32 %v7339_v62, %v3052_v11  ;;  %vm3083_vm9 = vweird.f32 %v7339_v62 }
 0xeee   :  { %7340 = vrsqrt.f32 %v3053_v19  ;;  %vm3084_vm11 = vmor %vm3082_vm10, %vm3083_vm9  ;;  %vm3092_vm13 = vweird.f32 %v3053_v19 }
 0xeef   :  { %v3075_v47 = vsel %vm3074_vm7, %v7337_v63, %v3071_v61  ;;  %v3078_v50 = vmul.f32 %v7339_v62, %v3077_v38 }
 0xef0   :  { %v3117_v22 = vmul.f32 %v3075_v47, %v8632_v53 }
 0xef1   :  { %v3079_v28 = vmul.f32 0.5, %v3078_v50  ;;  %v3040_v20 = vpop.xlane.xlu1 %3039 }
 0xef2   :  { %v3126_v35 = vmul.f32 %v8708_v57, %v3117_v22  ;;  %v3048_v10 = vmul.f32 %v3040_v20, %v7695_v37 }
 0xef3   :  { %v3080_v32 = vsub.f32 1.5, %v3079_v28 }
 0xef4   :  { %v7341_v4 = vpop.eup %7340  ;;  %v3135_v16 = vadd.f32 %v8714_v3, %v3126_v35  ;;  %v3054_v56 = vadd.f32 1e-06, %v3048_v10 }
 0xef5   :  { %v3081_v43 = vmul.f32 %v7339_v62, %v3080_v32  ;;  %v3087_v33 = vmul.f32 %v7341_v4, %v3053_v19  ;;  %vm3093_vm12 = vweird.f32 %v7341_v4 }
 0xef6   :  { %v8722_v0 = vpack.c.bf16 %v3135_v16, %v3134_v5  ;;  %7342 = vrsqrt.f32 %v3054_v56  ;;  %vm3094_vm14 = vmor %vm3092_vm13, %vm3093_vm12  ;;  %vm3102_vm1 = vweird.f32 %v3054_v56 }
 0xef7   :  { %v3088_v53 = vmul.f32 %v7341_v4, %v3087_v33  ;;  %v3085_v48 = vsel %vm3084_vm11, %v7339_v62, %v3081_v43 }
 0xef8   :  { %6436 = vmatmul.msk.bf16.vlgmr.msrb.gmra.mxu0 %vm139_vm0, %v8722_v0  ;;  %6464 = vmatmul.msk.bf16.vlgmr.msra.gmra.mxu1 %vm139_vm0, %v8722_v0  ;;  %v3118_v59 = vmul.f32 %v3085_v48, %v8639_v7 }
 0xef9   :  { %v3089_v44 = vmul.f32 0.5, %v3088_v53  ;;  %6492 = vmatmul.msk.bf16.vlgmr.msrb.gmra.mxu2 %vm139_vm0, %v8722_v0  ;;  %v3043_v27 = vpop.xlane.xlu2 %3042 }
 0xefa   :  { %v3049_v34 = vmul.f32 %v3043_v27, %v7695_v37  ;;  %v3127_v58 = vmul.f32 %v8708_v57, %v3118_v59  ;;  %v8772_v27 = vld [vmem:[%s9609_s8 + $0x4] ss:$0 sm:$0xff] }
 0xefb   :  { %v3090_v2 = vsub.f32 1.5, %v3089_v44 }
 0xefc   :  { %v7343_v54 = vpop.eup %7342  ;;  %v3055_v30 = vadd.f32 1e-06, %v3049_v34  ;;  %v3136_v63 = vadd.f32 %v8714_v3, %v3127_v58 }
 0xefd   :  { %v3091_v39 = vmul.f32 %v7341_v4, %v3090_v2  ;;  %v3097_v51 = vmul.f32 %v7343_v54, %v3054_v56  ;;  %vm3103_vm15 = vweird.f32 %v7343_v54 }
 0xefe   :  { %7344 = vrsqrt.f32 %v3055_v30  ;;  %vm3104_vm2 = vmor %vm3102_vm1, %vm3103_vm15  ;;  %vm3112_vm4 = vweird.f32 %v3055_v30 }
 0xeff   :  { %v3095_v55 = vsel %vm3094_vm14, %v7341_v4, %v3091_v39  ;;  %v3098_v41 = vmul.f32 %v7343_v54, %v3097_v51  ;;  %v8765_v4 = vld [vmem:[%s9611_s10 + $0x4] ss:$0 sm:$0xff] }
 0xf00   :  { %v3119_v25 = vmul.f32 %v3095_v55, %v8646_v21 }
 0xf01   :  { %v3099_v17 = vmul.f32 0.5, %v3098_v41 }
 0xf02   :  { %v3128_v52 = vmul.f32 %v8708_v57, %v3119_v25 }
 0xf03   :  { %v3100_v31 = vsub.f32 1.5, %v3099_v17 }
 0xf04   :  { %v7345_v8 = vpop.eup %7344  ;;  %v3137_v7 = vadd.f32 %v8714_v3, %v3128_v52 }
 0xf05   :  { %v3101_v11 = vmul.f32 %v7343_v54, %v3100_v31  ;;  %v3107_v45 = vmul.f32 %v7345_v8, %v3055_v30  ;;  %vm3113_vm3 = vweird.f32 %v7345_v8 }
 0xf06   :  { %v8737_v29 = vpack.c.bf16 %v3137_v7, %v3136_v63  ;;  %vm3114_vm7 = vmor %vm3112_vm4, %vm3113_vm3  ;;  %v7078_v7 = vld [vmem:[%s9644_s30 + $0xb8] sm:$0xff] }
 0xf07   :  { %v3108_v60 = vmul.f32 %v7345_v8, %v3107_v45  ;;  %v3105_v21 = vsel %vm3104_vm2, %v7343_v54, %v3101_v11 }
 0xf08   :  { %6437 = vmatmul.msk.bf16.gmra.mxu0 %vm139_vm0, %v8737_v29  ;;  %6465 = vmatmul.msk.bf16.gmra.mxu1 %vm139_vm0, %v8737_v29  ;;  %v3120_v1 = vmul.f32 %v3105_v21, %v8653_v36 }
 0xf09   :  { %v3109_v40 = vmul.f32 0.5, %v3108_v60  ;;  %6493 = vmatmul.msk.bf16.gmra.mxu2 %vm139_vm0, %v8737_v29 }
 0xf0a   :  { %v3129_v62 = vmul.f32 %v8708_v57, %v3120_v1 }
 0xf0b   :  { %v3110_v23 = vsub.f32 1.5, %v3109_v40 }
 0xf0c   :  { %v3138_v61 = vadd.f32 %v8714_v3, %v3129_v62 }
 0xf0d   :  { %v3111_v26 = vmul.f32 %v7345_v8, %v3110_v23 }
 0xf0f   :  { %v3115_v46 = vsel %vm3114_vm7, %v7345_v8, %v3111_v26  ;;  %v7077_v26 = vld [vmem:[%s9644_s30 + $0xb0] sm:$0xff] }
 0xf10   :  { %v3121_v15 = vmul.f32 %v3115_v46, %v8660_v24 }
 0xf12   :  { %v3130_v19 = vmul.f32 %v8708_v57, %v3121_v15  ;;  %v7170_v57 = vld [vmem:[%s9610_s9 + $0x4] ss:$0 sm:$0xff] }
 0xf14   :  { %v3139_v38 = vadd.f32 %v8714_v3, %v3130_v19 }
 0xf16   :  { %v8751_v47 = vpack.c.bf16 %v3139_v38, %v3138_v61  ;;  %v7076_v61 = vld [vmem:[%s9644_s30 + $0xa8] sm:$0xff] }
 0xf18   :  { %6438 = vmatmul.msk.bf16.gmra.mxu0 %vm139_vm0, %v8751_v47  ;;  %6466 = vmatmul.msk.bf16.gmra.mxu1 %vm139_vm0, %v8751_v47 }
 0xf19   :  { %6494 = vmatmul.msk.bf16.gmra.mxu2 %vm139_vm0, %v8751_v47 }
 0xf75   :  { %v3261_v36 = vpop.f32.mrf.mxu1  ;;  %v3199_v24 = vpop.f32.mrf.mxu0 }
 0xf76   :  { %v3262_v10 = vadd.f32 %v7170_v57, %v3261_v36  ;;  %v3200_v58 = vadd.f32 %v8772_v27, %v3199_v24 }
 0xf78   :  { %v3344_v56 = vpack.c.bf16 %v3262_v10, %v3262_v10  ;;  %v3338_v60 = vpack.c.bf16 %v3200_v58, %v3200_v58 }
 0xf7a   :  { %v3367_v30 = vunpack.c.l.b16 %v3344_v56  ;;  %v3359_v46 = vunpack.c.l.b16 %v3338_v60 }
 0xf7c   :  { %v3323_v50 = vpop.f32.mrf.mxu2 }
 0xf7d   :  { %v3263_v18 = vpop.f32.mrf.mxu1  ;;  %v3201_v35 = vpop.f32.mrf.mxu0  ;;  %v3324_v34 = vadd.f32 %v8765_v4, %v3323_v50 }
 0xf7e   :  { %v3264_v28 = vadd.f32 %v7170_v57, %v3263_v18  ;;  %v3202_v39 = vadd.f32 %v8772_v27, %v3201_v35 }
 0xf7f   :  { %v3350_v25 = vpack.c.bf16 %v3324_v34, %v3324_v34 }
 0xf80   :  { %v3345_v5 = vpack.c.bf16 %v3264_v28, %v3264_v28  ;;  %v3339_v31 = vpack.c.bf16 %v3202_v39, %v3202_v39 }
 0xf81   :  { %v3543_v21 = vunpack.c.l.b16 %v3350_v25 }
 0xf82   :  { %v3368_v2 = vunpack.c.l.b16 %v3345_v5  ;;  %v3360_v23 = vunpack.c.l.b16 %v3339_v31 }
 0xf84   :  { %v3325_v3 = vpop.f32.mrf.mxu2  ;;  %v3370_v17 = vpack.c.b16 %v3368_v2, %v3367_v30  ;;  %v3362_v15 = vpack.c.b16 %v3360_v23, %v3359_v46 }
 0xf85   :  { %v3266_v22 = vpop.f32.mrf.mxu1  ;;  %v3326_v43 = vadd.f32 %v8765_v4, %v3325_v3  ;;  %v3204_v55 = vpop.f32.mrf.mxu0 }
 0xf86   :  { %v3267_v20 = vadd.f32 %v7170_v57, %v3266_v22  ;;  %v3379_v40 = vsel %vm558_vm6, %v3370_v17, 0  ;;  %v3205_v24 = vadd.f32 %v8772_v27, %v3204_v55  ;;  %v7075_v22 = vld [vmem:[%s9644_s30 + $0xa0] sm:$0xff] }
 0xf87   :  { %v3351_v51 = vpack.c.bf16 %v3326_v43, %v3326_v43 }
 0xf88   :  { %v3346_v32 = vpack.c.bf16 %v3267_v20, %v3267_v20  ;;  %v3340_v35 = vpack.c.bf16 %v3205_v24, %v3205_v24 }
 0xf89   :  { %v3544_v8 = vunpack.c.l.b16 %v3351_v51 }
 0xf8a   :  { %v3369_v16 = vunpack.c.l.b16 %v3346_v32 }
 0xf8b   :  { %v3546_v1 = vpack.c.b16 %v3544_v8, %v3543_v21  ;;  %v7080_v21 = vld [vmem:[%s9645_s5 + $0xa8] sm:$0xff] }
 0xf8c   :  { %v3371_v33 = vpack.c.b16 %v3369_v16, %v3369_v16  ;;  %v3328_v53 = vpop.f32.mrf.mxu2 }
 0xf8d   :  { %v3329_v48 = vadd.f32 %v8765_v4, %v3328_v53  ;;  %v3268_v44 = vpop.f32.mrf.mxu1  ;;  %v3206_v62 = vpop.f32.mrf.mxu0 }
 0xf8e   :  { %v3382_v54 = vsel %vm558_vm6, %v3371_v33, 0  ;;  %v3269_v18 = vadd.f32 %v7170_v57, %v3268_v44  ;;  %v3361_v44 = vunpack.c.l.b16 %v3340_v35  ;;  %v3207_v30 = vadd.f32 %v8772_v27, %v3206_v62 }
 0xf8f   :  { %v3352_v59 = vpack.c.bf16 %v3329_v48, %v3329_v48  ;;  %3390 = vmatpush.bf16.xpose.msra.mxu3 %v3382_v54 }
 0xf90   :  { %v3347_v10 = vpack.c.bf16 %v3269_v18, %v3269_v18 }
 0xf91   :  { %v3545_v41 = vunpack.c.l.b16 %v3352_v59 }
 0xf92   :  { %v3413_v34 = vunpack.c.l.b16 %v3347_v10 }
 0xf93   :  { %v3547_v52 = vpack.c.b16 %v3545_v41, %v3545_v41  ;;  %v3363_v41 = vpack.c.b16 %v3361_v44, %v3361_v44 }
 0xf94   :  { %v3330_v63 = vpop.f32.mrf.mxu2 }
 0xf95   :  { %v3271_v11 = vpop.f32.mrf.mxu1  ;;  %v3556_v45 = vsel %vm743_vm5, %v3547_v52, 0  ;;  %v3209_v56 = vpop.f32.mrf.mxu0  ;;  %v3341_v52 = vpack.c.bf16 %v3207_v30, %v3207_v30 }
 0xf96   :  { %3564 = vmatpush.bf16.msrb.mxu1 %v3556_v45  ;;  %v3272_v36 = vadd.f32 %v7170_v57, %v3271_v11  ;;  %v3210_v2 = vadd.f32 %v8772_v27, %v3209_v56  ;;  %v7081_v11 = vld [vmem:[%s9645_s5 + $0xb0] sm:$0xff] }
 0xf97   :  { %3391 = vmatpush.bf16.xpose.msra.mxu3 %v3379_v40  ;;  %v3405_v45 = vunpack.c.l.b16 %v3341_v52 }
 0xf98   :  { %v3348_v28 = vpack.c.bf16 %v3272_v36, %v3272_v36  ;;  %v3342_v58 = vpack.c.bf16 %v3210_v2, %v3210_v2 }
 0xf9a   :  { %3565 = vmatpush.bf16.msrb.mxu1 %v3546_v1  ;;  %v3414_v33 = vunpack.c.l.b16 %v3348_v28  ;;  %v7079_v1 = vld [vmem:[%s9645_s5 + $0xa0] sm:$0xff] }
 0xf9c   :  { %v3333_v19 = vpop.f32.mrf.mxu2  ;;  %v3416_v51 = vpack.c.b16 %v3414_v33, %v3413_v34 }
 0xf9d   :  { %v3273_v38 = vpop.f32.mrf.mxu1  ;;  %v3334_v32 = vadd.f32 %v8765_v4, %v3333_v19  ;;  %v3211_v40 = vpop.f32.mrf.mxu0 }
 0xf9e   :  { %v3274_v50 = vadd.f32 %v7170_v57, %v3273_v38  ;;  %6495 = vmatmul.msk.bf16.vlgmr.msra.gmra.mxu3 %vm558_vm6, %v3362_v15  ;;  %v3331_v57 = vadd.f32 %v8765_v4, %v3330_v63  ;;  %v3425_v8 = vsel %vm558_vm6, %v3416_v51, 0  ;;  %v3406_v63 = vunpack.c.l.b16 %v3342_v58 }
 0xf9f   :  { %3668 = vmatpush.bf16.msrb.mxu3 %v7078_v7  ;;  %v3354_v54 = vpack.c.bf16 %v3334_v32, %v3334_v32  ;;  %v3212_v23 = vadd.f32 %v8772_v27, %v3211_v40 }
 0xfa0   :  { %v3349_v3 = vpack.c.bf16 %v3274_v50, %v3274_v50  ;;  %v3353_v39 = vpack.c.bf16 %v3331_v57, %v3331_v57  ;;  %v3408_v60 = vpack.c.b16 %v3406_v63, %v3405_v45 }
 0xfa1   :  { %v3588_v25 = vunpack.c.l.b16 %v3354_v54 }
 0xfa2   :  { %v3415_v20 = vunpack.c.l.b16 %v3349_v3  ;;  %v3587_v31 = vunpack.c.l.b16 %v3353_v39 }
 0xfa3   :  { %3669 = vmatpush.bf16.msrb.mxu3 %v7077_v26  ;;  %v3343_v26 = vpack.c.bf16 %v3212_v23, %v3212_v23 }
 0xfa4   :  { %v3417_v5 = vpack.c.b16 %v3415_v20, %v3415_v20  ;;  %v3335_v16 = vpop.f32.mrf.mxu2  ;;  %v3590_v7 = vpack.c.b16 %v3588_v25, %v3587_v31  ;;  %v8841_v20 = vld [vmem:[%s9609_s8 + $0x5] ss:$0 sm:$0xff] }
 0xfa5   :  { %v3336_v43 = vadd.f32 %v8765_v4, %v3335_v16  ;;  %v7082_v4 = vld [vmem:[%s9645_s5 + $0xb8] sm:$0xff]  ;;  %v3407_v46 = vunpack.c.l.b16 %v3343_v26 }
 0xfa6   :  { %v3428_v53 = vsel %vm558_vm6, %v3417_v5, 0 }
 0xfa7   :  { %3670 = vmatpush.bf16.msrb.mxu3 %v7076_v61  ;;  %v3355_v48 = vpack.c.bf16 %v3336_v43, %v3336_v43  ;;  %3436 = vmatpush.bf16.xpose.msra.mxu0 %v3428_v53  ;;  %v3409_v62 = vpack.c.b16 %v3407_v46, %v3407_v46 }
 0xfa9   :  { %v3589_v59 = vunpack.c.l.b16 %v3355_v48 }
 0xfab   :  { %3671 = vmatpush.bf16.msrb.mxu3 %v7075_v22  ;;  %v3591_v55 = vpack.c.b16 %v3589_v59, %v3589_v59 }
 0xfad   :  { %v3600_v17 = vsel %vm743_vm5, %v3591_v55, 0 }
 0xfae   :  { %3608 = vmatpush.bf16.msra.mxu2 %v3600_v17  ;;  %6496 = vmatmul.msk.bf16.gmra.mxu3 %vm558_vm6, %v3363_v41 }
 0xfaf   :  { %3437 = vmatpush.bf16.xpose.msra.mxu0 %v3425_v8  ;;  %v7173_v8 = vld [vmem:[%s9610_s9 + $0x5] ss:$0 sm:$0xff] }
 0xfb2   :  { %3609 = vmatpush.bf16.msra.mxu2 %v3590_v7 }
 0xfb6   :  { %6497 = vmatmul.msk.bf16.vlgmr.msra.gmra.mxu0 %vm558_vm6, %v3408_v60 }
 0xfb7   :  { %3730 = vmatpush.bf16.msrb.mxu0 %v7082_v4 }
 0xfbb   :  { %3731 = vmatpush.bf16.msrb.mxu0 %v7081_v11 }
 0xfbe   :  { %6530 = vmatmul.msk.bf16.vlgmr.msrb.gmra.mxu3 %vm139_vm0, %v8722_v0 }
 0xfbf   :  { %3732 = vmatpush.bf16.msrb.mxu0 %v7080_v21 }
 0xfc3   :  { %3733 = vmatpush.bf16.msrb.mxu0 %v7079_v1 }
 0xfc6   :  { %6498 = vmatmul.msk.bf16.gmra.mxu0 %vm558_vm6, %v3409_v62 }
 0xfce   :  { %6531 = vmatmul.msk.bf16.gmra.mxu3 %vm139_vm0, %v8737_v29 }
 0xfd6   :  { %6558 = vmatmul.msk.bf16.vlgmr.msrb.gmra.mxu0 %vm139_vm0, %v8722_v0 }
 0xfde   :  { %6532 = vmatmul.msk.bf16.gmra.mxu3 %vm139_vm0, %v8751_v47 }
 0xfe6   :  { %6559 = vmatmul.msk.bf16.gmra.mxu0 %vm139_vm0, %v8737_v29 }
 0xff6   :  { %6560 = vmatmul.msk.bf16.gmra.mxu0 %vm139_vm0, %v8751_v47 }
0x1021   :  { %v3393_v27 = vpop.f32.mrf.mxu3 }
0x1022   :  { %v3448_v50 = vmul.f32 0.25, %v3393_v27 }
0x1024   :  { %v8836_v28 = vadd.f32 %v3448_v50, %v7912_v49 }
0x1026   :  { %v3460_v32 = vsel %vm647_vm8, %v8836_v28, -inf }
0x1029   :  { %v3395_v15 = vpop.f32.mrf.mxu3 }
0x102a   :  { %v3449_v10 = vmul.f32 0.25, %v3395_v15 }
0x102c   :  { %v8852_v33 = vadd.f32 %v3449_v10, %v7912_v49 }
0x102e   :  { %v3463_v44 = vsel %vm647_vm8, %v8852_v33, -inf }
0x1031   :  { %v3398_v19 = vpop.f32.mrf.mxu3 }
0x1032   :  { %v3450_v48 = vmul.f32 0.25, %v3398_v19 }
0x1033   :  { %v3439_v61 = vpop.f32.mrf.mxu0 }
0x1034   :  { %v3451_v38 = vmul.f32 0.25, %v3439_v61  ;;  %v8863_v51 = vadd.f32 %v3450_v48, %v7912_v49 }
0x1036   :  { %v8831_v36 = vadd.f32 %v3451_v38, %v7912_v49  ;;  %v3466_v25 = vsel %vm647_vm8, %v8863_v51, -inf }
0x1038   :  { %v3469_v24 = vsel %vm647_vm8, %v8831_v36, -inf }
0x1039   :  { %v3400_v18 = vpop.f32.mrf.mxu3  ;;  %3470 = vmax.xlane.f32.xlu0 %v3469_v24 }
0x103b   :  { %v3441_v3 = vpop.f32.mrf.mxu0 }
0x103c   :  { %v3452_v22 = vmul.f32 0.25, %v3441_v3 }
0x103e   :  { %v8844_v35 = vadd.f32 %v3452_v22, %v7912_v49 }
0x1040   :  { %v3472_v5 = vsel %vm647_vm8, %v8844_v35, -inf }
0x1041   :  { %v3673_v16 = vpop.f32.mrf.mxu3  ;;  %3461 = vmax.xlane.f32.xlu0 %v3460_v32  ;;  %3473 = vmax.xlane.f32.xlu1 %v3472_v5 }
0x1042   :  { %v3674_v56 = vadd.f32 %v8841_v20, %v3673_v16 }
0x1043   :  { %v3444_v43 = vpop.f32.mrf.mxu0 }
0x1044   :  { %v3453_v57 = vmul.f32 0.25, %v3444_v43  ;;  %v3812_v54 = vpack.c.bf16 %v3674_v56, %v3674_v56 }
0x1046   :  { %v8855_v53 = vadd.f32 %v3453_v57, %v7912_v49  ;;  %v8865_v55 = vunpack.c.l.b16 %v3812_v54 }
0x1048   :  { %v3475_v34 = vsel %vm647_vm8, %v8855_v53, -inf }
0x1049   :  { %v3675_v2 = vpop.f32.mrf.mxu3  ;;  %3464 = vmax.xlane.f32.xlu1 %v3463_v44  ;;  %3476 = vmax.xlane.f32.xlu2 %v3475_v34 }
0x104a   :  { %v3676_v59 = vadd.f32 %v8841_v20, %v3675_v2 }
0x104b   :  { %v3446_v30 = vpop.f32.mrf.mxu0 }
0x104c   :  { %v3813_v39 = vpack.c.bf16 %v3676_v59, %v3676_v59 }
0x104e   :  { %v8867_v41 = vunpack.c.l.b16 %v3813_v39 }
0x1050   :  { %v3836_v58 = vpack.c.b16 %v8867_v41, %v8865_v55  ;;  %v7074_v55 = vld [vmem:[%s9612_s11 + $0x20] sm:$0xff] }
0x1051   :  { %v3678_v4 = vpop.f32.mrf.mxu3  ;;  %3467 = vmax.xlane.f32.xlu1 %v3466_v25 }
0x1052   :  { %v8874_v17 = vadd.f32 %v8841_v20, %v3678_v4 }
0x1053   :  { %v3735_v52 = vpop.f32.mrf.mxu0 }
0x1054   :  { %v3736_v45 = vadd.f32 %v7173_v8, %v3735_v52 }
0x1056   :  { %v3818_v23 = vpack.c.bf16 %v3736_v45, %v3736_v45 }
0x1058   :  { %v3841_v27 = vunpack.c.l.b16 %v3818_v23 }
0x1059   :  { %v3680_v38 = vpop.f32.mrf.mxu3 }
0x105a   :  { %v3681_v34 = vadd.f32 %v8841_v20, %v3680_v38 }
0x105b   :  { %v3737_v31 = vpop.f32.mrf.mxu0 }
0x105c   :  { %v3738_v7 = vadd.f32 %v7173_v8, %v3737_v31  ;;  %v3815_v59 = vpack.c.bf16 %v3681_v34, %v3681_v34 }
0x105e   :  { %v3819_v21 = vpack.c.bf16 %v3738_v7, %v3738_v7  ;;  %v3879_v25 = vunpack.c.l.b16 %v3815_v59 }
0x1060   :  { %v3842_v46 = vunpack.c.l.b16 %v3819_v21 }
0x1061   :  { %v3683_v56 = vpop.f32.mrf.mxu3 }
0x1062   :  { %v3844_v15 = vpack.c.b16 %v3842_v46, %v3841_v27  ;;  %v3684_v48 = vadd.f32 %v8841_v20, %v3683_v56 }
0x1063   :  { %v3740_v63 = vpop.f32.mrf.mxu0 }
0x1064   :  { %v3741_v11 = vadd.f32 %v7173_v8, %v3740_v63  ;;  %v3853_v61 = vsel %vm558_vm6, %v3844_v15, 0  ;;  %v3816_v54 = vpack.c.bf16 %v3684_v48, %v3684_v48 }
0x1066   :  { %v3820_v60 = vpack.c.bf16 %v3741_v11, %v3741_v11  ;;  %v3880_v39 = vunpack.c.l.b16 %v3816_v54 }
0x1068   :  { %v3843_v40 = vunpack.c.l.b16 %v3820_v60  ;;  %v3882_v4 = vpack.c.b16 %v3880_v39, %v3879_v25 }
0x1069   :  { %v3685_v52 = vpop.f32.mrf.mxu3 }
0x106a   :  { %v3845_v1 = vpack.c.b16 %v3843_v40, %v3843_v40  ;;  %v3686_v31 = vadd.f32 %v8841_v20, %v3685_v52 }
0x106b   :  { %v3742_v26 = vpop.f32.mrf.mxu0 }
0x106c   :  { %v3856_v62 = vsel %vm558_vm6, %v3845_v1, 0  ;;  %v3743_v3 = vadd.f32 %v7173_v8, %v3742_v26 }
0x106d   :  { %3864 = vmatpush.bf16.xpose.msrb.mxu2 %v3856_v62 }
0x106e   :  { %v3821_v5 = vpack.c.bf16 %v3743_v3, %v3743_v3 }
0x1070   :  { %v3887_v44 = vunpack.c.l.b16 %v3821_v5 }
0x1073   :  { %v3745_v19 = vpop.f32.mrf.mxu0 }
0x1074   :  { %v3746_v24 = vadd.f32 %v7173_v8, %v3745_v19 }
0x1075   :  { %3865 = vmatpush.bf16.xpose.msrb.mxu2 %v3853_v61 }
0x1076   :  { %v3822_v10 = vpack.c.bf16 %v3746_v24, %v3746_v24 }
0x1078   :  { %v3888_v43 = vunpack.c.l.b16 %v3822_v10 }
0x107a   :  { %v3890_v2 = vpack.c.b16 %v3888_v43, %v3887_v44 }
0x107b   :  { %v3747_v50 = vpop.f32.mrf.mxu0 }
0x107c   :  { %v3748_v18 = vadd.f32 %v7173_v8, %v3747_v50  ;;  %v3899_v30 = vsel %vm558_vm6, %v3890_v2, 0  ;;  %v3817_v8 = vpack.c.bf16 %v3686_v31, %v3686_v31 }
0x107e   :  { %v3823_v22 = vpack.c.bf16 %v3748_v18, %v3748_v18  ;;  %v3881_v63 = vunpack.c.l.b16 %v3817_v8 }
0x1080   :  { %v3889_v32 = vunpack.c.l.b16 %v3823_v22  ;;  %v3883_v7 = vpack.c.b16 %v3881_v63, %v3881_v63 }
0x1082   :  { %v3891_v16 = vpack.c.b16 %v3889_v32, %v3889_v32 }
0x1084   :  { %v3902_v57 = vsel %vm558_vm6, %v3891_v16, 0 }
0x1085   :  { %3910 = vmatpush.bf16.xpose.msra.mxu3 %v3902_v57 }
0x108d   :  { %3911 = vmatpush.bf16.xpose.msra.mxu3 %v3899_v30 }
0x1094   :  { %6591 = vmatmul.msk.bf16.vlgmr.msra.gmra.mxu3 %vm558_vm6, %v3882_v4 }
0x1095   :  { %4161 = vmatpush.bf16.msrb.mxu3 %v7074_v55 }
0x10a4   :  { %6592 = vmatmul.msk.bf16.gmra.mxu3 %vm558_vm6, %v3883_v7 }
0x10ac   :  { %v3471_v11 = vpop.xlane.xlu0 %3470 }
0x10ad   :  { %v3481_v45 = vsub.f32 %v8831_v36, %v3471_v11 }
0x10af   :  { %v3490_v60 = vmul.f32 1.442695, %v3481_v45 }
0x10b1   :  { %7346 = vpow2.f32 %v3490_v60 }
0x10b4   :  { %v3474_v21 = vpop.xlane.xlu1 %3473  ;;  %v3462_v40 = vpop.xlane.xlu0 %3461 }
0x10b5   :  { %v3482_v23 = vsub.f32 %v8844_v35, %v3474_v21  ;;  %v3478_v46 = vsub.f32 %v8836_v28, %v3462_v40  ;;  %v7086_v40 = vld [vmem:[%s9646_s26 + $0xb8] sm:$0xff] }
0x10b6   :  { %3792 = vmatpush.bf16.msra.mxu1 %v7086_v40 }
0x10b7   :  { %v7347_v1 = vpop.eup %7346  ;;  %v3492_v26 = vmul.f32 1.442695, %v3482_v23  ;;  %v3484_v62 = vmul.f32 1.442695, %v3478_v46 }
0x10b8   :  { %v3505_v20 = vsel %vm647_vm8, %v7347_v1, 0.0 }
0x10b9   :  { %3506 = vadd.xlane.f32.xlu2 %v3505_v20  ;;  %7348 = vpow2.f32 %v3492_v26  ;;  %v7085_v26 = vld [vmem:[%s9646_s26 + $0xb0] sm:$0xff] }
0x10ba   :  { %7350 = vpow2.f32 %v3484_v62  ;;  %3793 = vmatpush.bf16.msra.mxu1 %v7085_v26 }
0x10bc   :  { %v3465_v27 = vpop.xlane.xlu1 %3464  ;;  %v3477_v15 = vpop.xlane.xlu2 %3476 }
0x10bd   :  { %v3479_v19 = vsub.f32 %v8852_v33, %v3465_v27  ;;  %v3483_v36 = vsub.f32 %v8855_v53, %v3477_v15 }
0x10bf   :  { %v3486_v61 = vmul.f32 1.442695, %v3479_v19  ;;  %v3494_v38 = vmul.f32 1.442695, %v3483_v36  ;;  %v7349_v50 = vpop.eup %7348 }
0x10c0   :  { %v3508_v35 = vsel %vm647_vm8, %v7349_v50, 0.0  ;;  %v7351_v18 = vpop.eup %7350 }
0x10c1   :  { %7352 = vpow2.f32 %v3486_v61  ;;  %3509 = vadd.xlane.f32.xlu0 %v3508_v35  ;;  %v3496_v53 = vsel %vm647_vm8, %v7351_v18, 0.0 }
0x10c2   :  { %7354 = vpow2.f32 %v3494_v38  ;;  %v7084_v38 = vld [vmem:[%s9646_s26 + $0xa8] sm:$0xff] }
0x10c3   :  { %3794 = vmatpush.bf16.msra.mxu1 %v7084_v38  ;;  %v7174_v38 = vld [vmem:[%s9611_s10 + $0x5] ss:$0 sm:$0xff] }
0x10c4   :  { %v3468_v28 = vpop.xlane.xlu1 %3467 }
0x10c5   :  { %v3480_v24 = vsub.f32 %v8863_v51, %v3468_v28 }
0x10c7   :  { %v7353_v3 = vpop.eup %7352  ;;  %v3488_v22 = vmul.f32 1.442695, %v3480_v24  ;;  %v7083_v24 = vld [vmem:[%s9646_s26 + $0xa0] sm:$0xff] }
0x10c8   :  { %v7355_v10 = vpop.eup %7354  ;;  %v3499_v33 = vsel %vm647_vm8, %v7353_v3, 0.0  ;;  %3795 = vmatpush.bf16.msra.mxu1 %v7083_v24 }
0x10c9   :  { %7356 = vpow2.f32 %v3488_v22  ;;  %3500 = vadd.xlane.f32.xlu1 %v3499_v33  ;;  %v3511_v32 = vsel %vm647_vm8, %v7355_v10, 0.0  ;;  %3497 = vadd.xlane.f32.xlu0 %v3496_v53 }
0x10ca   :  { %3512 = vadd.xlane.f32.xlu2 %v3511_v32 }
0x10cf   :  { %v8899_v5 = vpop.eup %7356 }
0x10d0   :  { %v3502_v16 = vsel %vm647_vm8, %v8899_v5, 0.0 }
0x10d2   :  { %3503 = vadd.xlane.f32.xlu2 %v3502_v16 }
0x1117   :  { %v3913_v51 = vpop.f32.mrf.mxu3 }
0x1118   :  { %v3925_v56 = vmul.f32 0.25, %v3913_v51 }
0x111a   :  { %v8904_v43 = vadd.f32 %v3925_v56, %v7912_v49 }
0x111c   :  { %v3943_v57 = vsel %vm647_vm8, %v8904_v43, -inf }
0x111d   :  { %3944 = vmax.xlane.f32.xlu0 %v3943_v57 }
0x111f   :  { %v3915_v48 = vpop.f32.mrf.mxu3 }
0x1120   :  { %v3926_v44 = vmul.f32 0.25, %v3915_v48  ;;  %v3814_v48 = vpack.c.bf16 %v8874_v17, %v8874_v17 }
0x1122   :  { %v8909_v34 = vadd.f32 %v3926_v44, %v7912_v49 }
0x1124   :  { %v3946_v2 = vsel %vm647_vm8, %v8909_v34, -inf }
0x1125   :  { %3947 = vmax.xlane.f32.xlu1 %v3946_v2 }
0x1127   :  { %v3918_v54 = vpop.f32.mrf.mxu3 }
0x1128   :  { %v3927_v59 = vmul.f32 0.25, %v3918_v54 }
0x112a   :  { %v8914_v30 = vadd.f32 %v3927_v59, %v7912_v49 }
0x112c   :  { %v3949_v39 = vsel %vm647_vm8, %v8914_v30, -inf  ;;  %v3507_v25 = vpop.xlane.xlu2 %3506 }
0x112d   :  { %3950 = vmax.xlane.f32.xlu2 %v3949_v39  ;;  %7358 = vrcp.f32 %v3507_v25 }
0x112f   :  { %v3920_v4 = vpop.f32.mrf.mxu3 }
0x1133   :  { %v7359_v31 = vpop.eup %7358 }
0x1134   :  { %v3510_v52 = vpop.xlane.xlu0 %3509  ;;  %v3523_v8 = vmul.f32 %v7359_v31, %v7347_v1 }
0x1135   :  { %7360 = vrcp.f32 %v3510_v52 }
0x1136   :  { %v3529_v11 = vpack.c.bf16 %v3523_v8, %v3523_v8 }
0x1138   :  { %v3579_v1 = vunpack.c.l.b16 %v3529_v11 }
0x113b   :  { %v7361_v63 = vpop.eup %7360 }
0x113c   :  { %v3501_v7 = vpop.xlane.xlu1 %3500  ;;  %v3524_v45 = vmul.f32 %v7361_v63, %v7349_v50  ;;  %v3498_v60 = vpop.xlane.xlu0 %3497 }
0x113d   :  { %7362 = vrcp.f32 %v3501_v7  ;;  %v3513_v21 = vpop.xlane.xlu2 %3512 }
0x113e   :  { %7364 = vrcp.f32 %v3498_v60  ;;  %v3530_v23 = vpack.c.bf16 %v3524_v45, %v3524_v45 }
0x113f   :  { %7366 = vrcp.f32 %v3513_v21 }
0x1140   :  { %v3580_v46 = vunpack.c.l.b16 %v3530_v23 }
0x1142   :  { %v3582_v62 = vpack.c.b16 %v3580_v46, %v3579_v1 }
0x1143   :  { %v7363_v20 = vpop.eup %7362 }
0x1144   :  { %v7365_v27 = vpop.eup %7364  ;;  %v3521_v15 = vmul.f32 %v7363_v20, %v7353_v3  ;;  %6501 = vmatmul.msk.bf16.vlgmr.msra.gmra.mxu2 %vm647_vm8, %v3582_v62 }
0x1145   :  { %v7367_v19 = vpop.eup %7366  ;;  %v3520_v36 = vmul.f32 %v7365_v27, %v7351_v18  ;;  %v3504_v61 = vpop.xlane.xlu2 %3503 }
0x1146   :  { %v3527_v50 = vpack.c.bf16 %v3521_v15, %v3521_v15  ;;  %7368 = vrcp.f32 %v3504_v61  ;;  %v3525_v28 = vmul.f32 %v7367_v19, %v7355_v10 }
0x1147   :  { %v3526_v35 = vpack.c.bf16 %v3520_v36, %v3520_v36 }
0x1148   :  { %v3536_v22 = vunpack.c.l.b16 %v3527_v50  ;;  %v3531_v18 = vpack.c.bf16 %v3525_v28, %v3525_v28 }
0x1149   :  { %v3535_v3 = vunpack.c.l.b16 %v3526_v35 }
0x114a   :  { %v3581_v16 = vunpack.c.l.b16 %v3531_v18 }
0x114b   :  { %v3538_v33 = vpack.c.b16 %v3536_v22, %v3535_v3 }
0x114c   :  { %v7369_v53 = vpop.eup %7368  ;;  %v3583_v56 = vpack.c.b16 %v3581_v16, %v3581_v16 }
0x114d   :  { %6499 = vmatmul.msk.bf16.vlgmr.msrb.gmra.mxu1 %vm647_vm8, %v3538_v33  ;;  %v3522_v32 = vmul.f32 %v7369_v53, %v8899_v5  ;;  %v3835_v5 = vunpack.c.l.b16 %v3814_v48 }
0x114f   :  { %v3528_v51 = vpack.c.bf16 %v3522_v32, %v3522_v32  ;;  %v3837_v44 = vpack.c.b16 %v3835_v5, %v3835_v5 }
0x1151   :  { %v3537_v10 = vunpack.c.l.b16 %v3528_v51 }
0x1153   :  { %v3539_v57 = vpack.c.b16 %v3537_v10, %v3537_v10 }
0x1154   :  { %6502 = vmatmul.msk.bf16.gmra.mxu2 %vm647_vm8, %v3583_v56 }
0x115d   :  { %6500 = vmatmul.msk.bf16.gmra.mxu1 %vm647_vm8, %v3539_v57 }
0x1164   :  { %6589 = vmatmul.msk.bf16.vlgmr.msrb.gmra.mxu2 %vm558_vm6, %v3836_v58 }
0x116d   :  { %6586 = vmatmul.msk.bf16.vlgmr.msra.gmra.mxu1 %vm139_vm0, %v8722_v0 }
0x1174   :  { %6590 = vmatmul.msk.bf16.gmra.mxu2 %vm558_vm6, %v3837_v44 }
0x117d   :  { %6587 = vmatmul.msk.bf16.gmra.mxu1 %vm139_vm0, %v8737_v29 }
0x118d   :  { %6588 = vmatmul.msk.bf16.gmra.mxu1 %vm139_vm0, %v8751_v47 }
0x1190   :  { %v3945_v4 = vpop.xlane.xlu0 %3944 }
0x1191   :  { %v3955_v8 = vsub.f32 %v8904_v43, %v3945_v4 }
0x1193   :  { %v3964_v63 = vmul.f32 1.442695, %v3955_v8 }
0x1195   :  { %7370 = vpow2.f32 %v3964_v63 }
0x1198   :  { %v3948_v11 = vpop.xlane.xlu1 %3947 }
0x1199   :  { %v3956_v40 = vsub.f32 %v8909_v34, %v3948_v11 }
0x119b   :  { %v3966_v26 = vmul.f32 1.442695, %v3956_v40  ;;  %v8960_v20 = vpop.eup %7370 }
0x119c   :  { %v3979_v34 = vsel %vm647_vm8, %v8960_v20, 0.0 }
0x119d   :  { %7372 = vpow2.f32 %v3966_v26 }
0x11a0   :  { %v3951_v43 = vpop.xlane.xlu2 %3950 }
0x11a1   :  { %v3957_v19 = vsub.f32 %v8914_v30, %v3951_v43 }
0x11a3   :  { %v3968_v61 = vmul.f32 1.442695, %v3957_v19  ;;  %v8974_v28 = vpop.eup %7372 }
0x11a4   :  { %v3982_v53 = vsel %vm647_vm8, %v8974_v28, 0.0 }
0x11a5   :  { %7374 = vpow2.f32 %v3968_v61  ;;  %v7095_v61 = vld [vmem:[%s9645_s5 + $0xd8] sm:$0xff] }
0x11ab   :  { %v8980_v48 = vpop.eup %7374 }
0x11c7   :  { %v3611_v41 = vpop.f32.mrf.mxu2 }
0x11ca   :  { %v3567_v58 = vpop.f32.mrf.mxu1 }
0x11cf   :  { %v3613_v17 = vpop.f32.mrf.mxu2 }
0x11d2   :  { %v3569_v2 = vpop.f32.mrf.mxu1 }
0x11d3   :  { %v3620_v54 = vpack.c.bf16 %v3569_v2, %v3567_v58  ;;  %v3985_v58 = vsel %vm647_vm8, %v8980_v48, 0.0 }
0x11d5   :  { %6610 = vmatmul.msk.bf16.vlgmr.msrb.gmra.mxu3 %vm558_vm6, %v3620_v54 }
0x11d7   :  { %v3616_v59 = vpop.f32.mrf.mxu2 }
0x11d8   :  { %v3622_v27 = vpack.c.bf16 %v3616_v59, %v3613_v17 }
0x11da   :  { %v3572_v39 = vpop.f32.mrf.mxu1 }
0x11db   :  { %v3621_v31 = vpack.c.bf16 %v3611_v41, %v3572_v39 }
0x11df   :  { %v3618_v25 = vpop.f32.mrf.mxu2 }
0x11e2   :  { %v3574_v52 = vpop.f32.mrf.mxu1 }
0x11e5   :  { %6611 = vmatmul.msk.bf16.gmra.mxu3 %vm558_vm6, %v3621_v31 }
0x11e7   :  { %v3867_v7 = vpop.f32.mrf.mxu2 }
0x11e8   :  { %v3922_v45 = vmul.f32 0.25, %v3867_v7 }
0x11ea   :  { %v3797_v60 = vpop.f32.mrf.mxu1  ;;  %v8955_v21 = vadd.f32 %v3922_v45, %v7912_v49 }
0x11eb   :  { %v3798_v33 = vadd.f32 %v7174_v38, %v3797_v60 }
0x11ec   :  { %v3934_v23 = vsel %vm647_vm8, %v8955_v21, -inf }
0x11ed   :  { %3935 = vmax.xlane.f32.xlu0 %v3934_v23  ;;  %v3824_v56 = vpack.c.bf16 %v3798_v33, %v3798_v33 }
0x11ef   :  { %v3869_v1 = vpop.f32.mrf.mxu2  ;;  %v4017_v41 = vunpack.c.l.b16 %v3824_v56 }
0x11f0   :  { %v3923_v46 = vmul.f32 0.25, %v3869_v1 }
0x11f2   :  { %v3799_v62 = vpop.f32.mrf.mxu1  ;;  %v8963_v15 = vadd.f32 %v3923_v46, %v7912_v49 }
0x11f3   :  { %v3800_v30 = vadd.f32 %v7174_v38, %v3799_v62 }
0x11f4   :  { %v3937_v36 = vsel %vm647_vm8, %v8963_v15, -inf }
0x11f5   :  { %6612 = vmatmul.msk.bf16.gmra.mxu3 %vm558_vm6, %v3622_v27  ;;  %3980 = vadd.xlane.f32.xlu0 %v3979_v34  ;;  %v3825_v16 = vpack.c.bf16 %v3800_v30, %v3800_v30 }
0x11f6   :  { %3938 = vmax.xlane.f32.xlu1 %v3937_v36 }
0x11f7   :  { %v3872_v50 = vpop.f32.mrf.mxu2  ;;  %v4018_v5 = vunpack.c.l.b16 %v3825_v16 }
0x11f8   :  { %v3924_v35 = vmul.f32 0.25, %v3872_v50 }
0x11f9   :  { %v4020_v17 = vpack.c.b16 %v4018_v5, %v4017_v41 }
0x11fa   :  { %v3802_v24 = vpop.f32.mrf.mxu1  ;;  %v3930_v3 = vadd.f32 %v3924_v35, %v7912_v49 }
0x11fb   :  { %v3803_v22 = vadd.f32 %v7174_v38, %v3802_v24 }
0x11fc   :  { %v3940_v32 = vsel %vm647_vm8, %v3930_v3, -inf }
0x11fd   :  { %v3826_v18 = vpack.c.bf16 %v3803_v22, %v3803_v22  ;;  %3941 = vmax.xlane.f32.xlu2 %v3940_v32  ;;  %v7093_v22 = vld [vmem:[%s9645_s5 + $0xc8] sm:$0xff] }
0x11fe   :  { %3983 = vadd.xlane.f32.xlu1 %v3982_v53 }
0x11ff   :  { %v4019_v51 = vunpack.c.l.b16 %v3826_v18  ;;  %v3874_v10 = vpop.f32.mrf.mxu2 }
0x1201   :  { %v4021_v57 = vpack.c.b16 %v4019_v51, %v4019_v51 }
0x1202   :  { %v3804_v44 = vpop.f32.mrf.mxu1 }
0x1203   :  { %v4030_v55 = vsel %vm743_vm5, %v4021_v57, 0  ;;  %v3805_v25 = vadd.f32 %v7174_v38, %v3804_v44 }
0x1204   :  { %4038 = vmatpush.bf16.msra.mxu0 %v4030_v55 }
0x1205   :  { %3986 = vadd.xlane.f32.xlu2 %v3985_v58  ;;  %v3827_v8 = vpack.c.bf16 %v3805_v25, %v3805_v25 }
0x1207   :  { %v4061_v45 = vunpack.c.l.b16 %v3827_v8 }
0x1208   :  { %4039 = vmatpush.bf16.msra.mxu0 %v4020_v17 }
0x120a   :  { %v3807_v2 = vpop.f32.mrf.mxu1 }
0x120b   :  { %v3808_v54 = vadd.f32 %v7174_v38, %v3807_v2 }
0x120d   :  { %v3828_v52 = vpack.c.bf16 %v3808_v54, %v3808_v54 }
0x120f   :  { %v4062_v7 = vunpack.c.l.b16 %v3828_v52 }
0x1211   :  { %v4064_v60 = vpack.c.b16 %v4062_v7, %v4061_v45 }
0x1212   :  { %v3809_v59 = vpop.f32.mrf.mxu1 }
0x1213   :  { %v3810_v39 = vadd.f32 %v7174_v38, %v3809_v59  ;;  %v7090_v59 = vld [vmem:[%s9644_s30 + $0xd0] sm:$0xff] }
0x1215   :  { %v3829_v4 = vpack.c.bf16 %v3810_v39, %v3810_v39  ;;  %v7089_v39 = vld [vmem:[%s9644_s30 + $0xc8] sm:$0xff] }
0x1217   :  { %v4063_v31 = vunpack.c.l.b16 %v3829_v4 }
0x1219   :  { %v4065_v63 = vpack.c.b16 %v4063_v31, %v4063_v31 }
0x121b   :  { %v4074_v11 = vsel %vm743_vm5, %v4065_v63, 0 }
0x121c   :  { %4082 = vmatpush.bf16.msrb.mxu1 %v4074_v11  ;;  %v7088_v11 = vld [vmem:[%s9644_s30 + $0xc0] sm:$0xff] }
0x1220   :  { %4083 = vmatpush.bf16.msrb.mxu1 %v4064_v60 }
0x1224   :  { %4282 = vmatpush.bf16.msra.mxu1 %v7095_v61 }
0x1260   :  { %v3936_v40 = vpop.xlane.xlu0 %3935 }
0x1261   :  { %v3952_v23 = vsub.f32 %v8955_v21, %v3936_v40 }
0x1263   :  { %v3958_v26 = vmul.f32 1.442695, %v3952_v23 }
0x1265   :  { %7376 = vpow2.f32 %v3958_v26 }
0x1268   :  { %v3981_v1 = vpop.xlane.xlu0 %3980 }
0x1269   :  { %v3939_v43 = vpop.xlane.xlu1 %3938  ;;  %7378 = vrcp.f32 %v3981_v1 }
0x126a   :  { %v3953_v46 = vsub.f32 %v8963_v15, %v3939_v43  ;;  %v7094_v15 = vld [vmem:[%s9645_s5 + $0xd0] sm:$0xff] }
0x126b   :  { %v7377_v62 = vpop.eup %7376  ;;  %4283 = vmatpush.bf16.msra.mxu1 %v7094_v15 }
0x126c   :  { %v3960_v27 = vmul.f32 1.442695, %v3953_v46  ;;  %v3970_v19 = vsel %vm647_vm8, %v7377_v62, 0.0 }
0x126d   :  { %3971 = vadd.xlane.f32.xlu0 %v3970_v19 }
0x126e   :  { %7380 = vpow2.f32 %v3960_v27 }
0x126f   :  { %v7379_v21 = vpop.eup %7378  ;;  %4284 = vmatpush.bf16.msra.mxu1 %v7093_v22 }
0x1270   :  { %v3942_v36 = vpop.xlane.xlu2 %3941  ;;  %v3997_v30 = vmul.f32 %v7379_v21, %v8960_v20  ;;  %v7092_v20 = vld [vmem:[%s9645_s5 + $0xc0] sm:$0xff] }
0x1271   :  { %v3984_v34 = vpop.xlane.xlu1 %3983  ;;  %v3954_v38 = vsub.f32 %v3930_v3, %v3942_v36  ;;  %v7175_v36 = vld [vmem:[%s9610_s9 + $0x6] ss:$0 sm:$0xff] }
0x1272   :  { %7382 = vrcp.f32 %v3984_v34  ;;  %v4003_v3 = vpack.c.bf16 %v3997_v30, %v3997_v30 }
0x1273   :  { %v3962_v35 = vmul.f32 1.442695, %v3954_v38  ;;  %4285 = vmatpush.bf16.msra.mxu1 %v7092_v20 }
0x1274   :  { %v7381_v50 = vpop.eup %7380  ;;  %v4053_v51 = vunpack.c.l.b16 %v4003_v3 }
0x1275   :  { %v3973_v24 = vsel %vm647_vm8, %v7381_v50, 0.0  ;;  %7384 = vpow2.f32 %v3962_v35 }
0x1276   :  { %3974 = vadd.xlane.f32.xlu1 %v3973_v24 }
0x1278   :  { %v7383_v33 = vpop.eup %7382  ;;  %v3987_v53 = vpop.xlane.xlu2 %3986 }
0x1279   :  { %v3998_v18 = vmul.f32 %v7383_v33, %v8974_v28  ;;  %7386 = vrcp.f32 %v3987_v53 }
0x127b   :  { %v4004_v32 = vpack.c.bf16 %v3998_v18, %v3998_v18  ;;  %v7385_v16 = vpop.eup %7384 }
0x127c   :  { %v3976_v10 = vsel %vm647_vm8, %v7385_v16, 0.0 }
0x127d   :  { %v4054_v56 = vunpack.c.l.b16 %v4004_v32  ;;  %3977 = vadd.xlane.f32.xlu2 %v3976_v10 }
0x127f   :  { %v4056_v57 = vpack.c.b16 %v4054_v56, %v4053_v51  ;;  %v7387_v5 = vpop.eup %7386 }
0x1280   :  { %v3999_v28 = vmul.f32 %v7387_v5, %v8980_v48  ;;  %v7091_v48 = vld [vmem:[%s9644_s30 + $0xd8] sm:$0xff] }
0x1281   :  { %6595 = vmatmul.msk.bf16.vlgmr.msrb.gmra.mxu1 %vm647_vm8, %v4056_v57  ;;  %4220 = vmatpush.bf16.msrb.mxu0 %v7091_v48 }
0x1282   :  { %v4005_v44 = vpack.c.bf16 %v3999_v28, %v3999_v28 }
0x1284   :  { %v4055_v55 = vunpack.c.l.b16 %v4005_v44 }
0x1285   :  { %4221 = vmatpush.bf16.msrb.mxu0 %v7090_v59  ;;  %v7087_v59 = vld [vmem:[%s9612_s11 + $0x28] sm:$0xff] }
0x1286   :  { %v4057_v41 = vpack.c.b16 %v4055_v55, %v4055_v55  ;;  %4122 = vmatpush.bf16.msra.mxu2 %v7087_v59 }
0x1289   :  { %4222 = vmatpush.bf16.msrb.mxu0 %v7089_v39 }
0x128d   :  { %4223 = vmatpush.bf16.msrb.mxu0 %v7088_v11 }
0x1291   :  { %6596 = vmatmul.msk.bf16.gmra.mxu1 %vm647_vm8, %v4057_v41 }
0x12a1   :  { %6666 = vmatmul.msk.bf16.vlgmr.msra.gmra.mxu1 %vm139_vm0, %v8722_v0 }
0x12b1   :  { %6667 = vmatmul.msk.bf16.gmra.mxu1 %vm139_vm0, %v8737_v29 }
0x12c1   :  { %6668 = vmatmul.msk.bf16.gmra.mxu1 %vm139_vm0, %v8751_v47 }
0x12e0   :  { %v3972_v58 = vpop.xlane.xlu0 %3971 }
0x12e1   :  { %7388 = vrcp.f32 %v3972_v58 }
0x12e7   :  { %v7389_v2 = vpop.eup %7388 }
0x12e8   :  { %v3994_v54 = vmul.f32 %v7389_v2, %v7377_v62 }
0x12e9   :  { %v3975_v17 = vpop.xlane.xlu1 %3974 }
0x12ea   :  { %7390 = vrcp.f32 %v3975_v17  ;;  %v4000_v4 = vpack.c.bf16 %v3994_v54, %v3994_v54 }
0x12ec   :  { %v4009_v63 = vunpack.c.l.b16 %v4000_v4 }
0x12f0   :  { %v7391_v25 = vpop.eup %7390  ;;  %v3978_v31 = vpop.xlane.xlu2 %3977 }
0x12f1   :  { %v3995_v52 = vmul.f32 %v7391_v25, %v7381_v50  ;;  %7392 = vrcp.f32 %v3978_v31  ;;  %v7098_v31 = vld [vmem:[%s9646_s26 + $0xd0] sm:$0xff] }
0x12f3   :  { %v4001_v8 = vpack.c.bf16 %v3995_v52, %v3995_v52  ;;  %v7099_v52 = vld [vmem:[%s9646_s26 + $0xd8] sm:$0xff] }
0x12f4   :  { %4344 = vmatpush.bf16.msrb.mxu2 %v7099_v52 }
0x12f5   :  { %v4010_v7 = vunpack.c.l.b16 %v4001_v8 }
0x12f7   :  { %v4012_v45 = vpack.c.b16 %v4010_v7, %v4009_v63  ;;  %v7393_v60 = vpop.eup %7392  ;;  %v7097_v63 = vld [vmem:[%s9646_s26 + $0xc8] sm:$0xff]  ;;  %v7096_v7 = vld [vmem:[%s9646_s26 + $0xc0] sm:$0xff] }
0x12f8   :  { %v3996_v40 = vmul.f32 %v7393_v60, %v7385_v16  ;;  %4345 = vmatpush.bf16.msrb.mxu2 %v7098_v31 }
0x12f9   :  { %6593 = vmatmul.msk.bf16.vlgmr.msra.gmra.mxu0 %vm647_vm8, %v4012_v45 }
0x12fa   :  { %v4002_v26 = vpack.c.bf16 %v3996_v40, %v3996_v40  ;;  %v7176_v40 = vld [vmem:[%s9609_s8 + $0x6] ss:$0 sm:$0xff] }
0x12fc   :  { %v4011_v1 = vunpack.c.l.b16 %v4002_v26  ;;  %4346 = vmatpush.bf16.msrb.mxu2 %v7097_v63 }
0x12fe   :  { %v9027_v23 = vpop.f32.mrf.mxu1  ;;  %v4013_v46 = vpack.c.b16 %v4011_v1, %v4011_v1 }
0x1300   :  { %4347 = vmatpush.bf16.msrb.mxu2 %v7096_v7 }
0x1306   :  { %v9029_v43 = vpop.f32.mrf.mxu1 }
0x1309   :  { %6594 = vmatmul.msk.bf16.gmra.mxu0 %vm647_vm8, %v4013_v46 }
0x130e   :  { %v9032_v62 = vpop.f32.mrf.mxu1 }
0x130f   :  { %v4096_v46 = vpack.c.bf16 %v9032_v62, %v9029_v43  ;;  %v7103_v43 = vld [vmem:[%s9644_s30 + $0xf0] sm:$0xff] }
0x1316   :  { %v4092_v27 = vpop.f32.mrf.mxu1 }
0x1319   :  { %6638 = vmatmul.msk.bf16.vlgmr.msrb.gmra.mxu0 %vm139_vm0, %v8722_v0 }
0x131e   :  { %v4287_v19 = vpop.f32.mrf.mxu1 }
0x131f   :  { %v4288_v15 = vadd.f32 %v7175_v36, %v4287_v19 }
0x1321   :  { %v4370_v24 = vpack.c.bf16 %v4288_v15, %v4288_v15 }
0x1323   :  { %v4393_v53 = vunpack.c.l.b16 %v4370_v24 }
0x1326   :  { %v4289_v34 = vpop.f32.mrf.mxu1 }
0x1327   :  { %v4290_v21 = vadd.f32 %v7175_v36, %v4289_v34 }
0x1329   :  { %6639 = vmatmul.msk.bf16.gmra.mxu0 %vm139_vm0, %v8737_v29  ;;  %v4371_v35 = vpack.c.bf16 %v4290_v21, %v4290_v21 }
0x132b   :  { %v4394_v3 = vunpack.c.l.b16 %v4371_v35  ;;  %v7104_v35 = vld [vmem:[%s9644_s30 + $0xf8] sm:$0xff] }
0x132d   :  { %v4396_v32 = vpack.c.b16 %v4394_v3, %v4393_v53 }
0x132e   :  { %v4292_v61 = vpop.f32.mrf.mxu1 }
0x132f   :  { %v4293_v38 = vadd.f32 %v7175_v36, %v4292_v61  ;;  %v4405_v16 = vsel %vm558_vm6, %v4396_v32, 0  ;;  %v7101_v32 = vld [vmem:[%s9644_s30 + $0xe0] sm:$0xff] }
0x1331   :  { %v4372_v50 = vpack.c.bf16 %v4293_v38, %v4293_v38 }
0x1333   :  { %v4395_v30 = vunpack.c.l.b16 %v4372_v50 }
0x1335   :  { %v4397_v22 = vpack.c.b16 %v4395_v30, %v4395_v30 }
0x1336   :  { %v4294_v33 = vpop.f32.mrf.mxu1 }
0x1337   :  { %v4408_v18 = vsel %vm558_vm6, %v4397_v22, 0  ;;  %v4295_v57 = vadd.f32 %v7175_v36, %v4294_v33  ;;  %v7102_v22 = vld [vmem:[%s9644_s30 + $0xe8] sm:$0xff] }
0x1338   :  { %4416 = vmatpush.bf16.xpose.msra.mxu3 %v4408_v18 }
0x1339   :  { %6640 = vmatmul.msk.bf16.gmra.mxu0 %vm139_vm0, %v8751_v47  ;;  %v4373_v55 = vpack.c.bf16 %v4295_v57, %v4295_v57 }
0x133b   :  { %v4439_v48 = vunpack.c.l.b16 %v4373_v55 }
0x133e   :  { %v4297_v20 = vpop.f32.mrf.mxu1 }
0x133f   :  { %v4298_v56 = vadd.f32 %v7175_v36, %v4297_v20 }
0x1340   :  { %4417 = vmatpush.bf16.xpose.msra.mxu3 %v4405_v16 }
0x1341   :  { %v4374_v28 = vpack.c.bf16 %v4298_v56, %v4298_v56 }
0x1343   :  { %v4440_v58 = vunpack.c.l.b16 %v4374_v28 }
0x1345   :  { %v4442_v2 = vpack.c.b16 %v4440_v58, %v4439_v48 }
0x1346   :  { %v4299_v51 = vpop.f32.mrf.mxu1 }
0x1347   :  { %v4300_v10 = vadd.f32 %v7175_v36, %v4299_v51  ;;  %v4451_v54 = vsel %vm558_vm6, %v4442_v2, 0 }
0x1349   :  { %v4375_v5 = vpack.c.bf16 %v4300_v10, %v4300_v10 }
0x134b   :  { %v4441_v44 = vunpack.c.l.b16 %v4375_v5 }
0x134d   :  { %v4443_v41 = vpack.c.b16 %v4441_v44, %v4441_v44  ;;  %v9097_v44 = vpop.f32.mrf.mxu3 }
0x134f   :  { %v4454_v17 = vsel %vm558_vm6, %v4443_v41, 0 }
0x1350   :  { %4462 = vmatpush.bf16.xpose.msra.mxu0 %v4454_v17 }
0x1355   :  { %v9099_v55 = vpop.f32.mrf.mxu3 }
0x1358   :  { %4463 = vmatpush.bf16.xpose.msra.mxu0 %v4451_v54 }
0x135d   :  { %v9103_v41 = vpop.f32.mrf.mxu3 }
0x1360   :  { %4739 = vmatpush.bf16.msrb.mxu0 %v7104_v35 }
0x1364   :  { %4740 = vmatpush.bf16.msrb.mxu0 %v7103_v43 }
0x1365   :  { %v9109_v48 = vpop.f32.mrf.mxu3 }
0x1368   :  { %4741 = vmatpush.bf16.msrb.mxu0 %v7102_v22 }
0x136c   :  { %4742 = vmatpush.bf16.msrb.mxu0 %v7101_v32 }
0x136d   :  { %v9113_v54 = vpop.f32.mrf.mxu3 }
0x1376   :  { %v4041_v39 = vpop.f32.mrf.mxu0 }
0x137e   :  { %v4043_v25 = vpop.f32.mrf.mxu0 }
0x137f   :  { %v4094_v4 = vpack.c.bf16 %v4043_v25, %v4041_v39  ;;  %v9117_v39 = vpop.f32.mrf.mxu3 }
0x1381   :  { %6603 = vmatmul.msk.bf16.vlgmr.msra.gmra.mxu2 %vm558_vm6, %v4094_v4 }
0x1386   :  { %v4046_v8 = vpop.f32.mrf.mxu0 }
0x1387   :  { %v4095_v45 = vpack.c.bf16 %v9027_v23, %v4046_v8 }
0x138e   :  { %v4048_v11 = vpop.f32.mrf.mxu0 }
0x1391   :  { %6604 = vmatmul.msk.bf16.gmra.mxu2 %vm558_vm6, %v4095_v45 }
0x1396   :  { %v4225_v60 = vpop.f32.mrf.mxu0 }
0x1397   :  { %v4226_v26 = vadd.f32 %v7176_v40, %v4225_v60 }
0x1399   :  { %v4364_v27 = vpack.c.bf16 %v4226_v26, %v4226_v26 }
0x139b   :  { %v4385_v36 = vunpack.c.l.b16 %v4364_v27 }
0x139e   :  { %v4227_v1 = vpop.f32.mrf.mxu0 }
0x139f   :  { %v4228_v19 = vadd.f32 %v7176_v40, %v4227_v1 }
0x13a1   :  { %v4365_v34 = vpack.c.bf16 %v4228_v19, %v4228_v19  ;;  %6605 = vmatmul.msk.bf16.gmra.mxu2 %vm558_vm6, %v4096_v46 }
0x13a3   :  { %v4386_v23 = vunpack.c.l.b16 %v4365_v34 }
0x13a5   :  { %v4388_v61 = vpack.c.b16 %v4386_v23, %v4385_v36 }
0x13a6   :  { %v4230_v21 = vpop.f32.mrf.mxu0 }
0x13a7   :  { %6697 = vmatmul.msk.bf16.vlgmr.msra.gmra.mxu3 %vm558_vm6, %v4388_v61  ;;  %v4231_v38 = vadd.f32 %v7176_v40, %v4230_v21  ;;  %v7177_v21 = vld [vmem:[%s9611_s10 + $0x6] ss:$0 sm:$0xff] }
0x13a9   :  { %v4366_v15 = vpack.c.bf16 %v4231_v38, %v4231_v38 }
0x13ab   :  { %v4387_v30 = vunpack.c.l.b16 %v4366_v15 }
0x13ad   :  { %v4389_v24 = vpack.c.b16 %v4387_v30, %v4387_v30 }
0x13ae   :  { %v4232_v50 = vpop.f32.mrf.mxu0 }
0x13af   :  { %v4233_v62 = vadd.f32 %v7176_v40, %v4232_v50 }
0x13b1   :  { %6694 = vmatmul.msk.bf16.vlgmr.msrb.gmra.mxu2 %vm139_vm0, %v8722_v0  ;;  %v4367_v3 = vpack.c.bf16 %v4233_v62, %v4233_v62 }
0x13b3   :  { %v4431_v20 = vunpack.c.l.b16 %v4367_v3 }
0x13b6   :  { %v4235_v33 = vpop.f32.mrf.mxu0 }
0x13b7   :  { %v4236_v18 = vadd.f32 %v7176_v40, %v4235_v33  ;;  %6698 = vmatmul.msk.bf16.gmra.mxu3 %vm558_vm6, %v4389_v24 }
0x13b9   :  { %v4368_v53 = vpack.c.bf16 %v4236_v18, %v4236_v18 }
0x13bb   :  { %v4432_v16 = vunpack.c.l.b16 %v4368_v53 }
0x13bd   :  { %v4434_v51 = vpack.c.b16 %v4432_v16, %v4431_v20 }
0x13be   :  { %v4237_v56 = vpop.f32.mrf.mxu0 }
0x13bf   :  { %6699 = vmatmul.msk.bf16.vlgmr.msra.gmra.mxu0 %vm558_vm6, %v4434_v51  ;;  %v4238_v10 = vadd.f32 %v7176_v40, %v4237_v56 }
0x13c1   :  { %6695 = vmatmul.msk.bf16.gmra.mxu2 %vm139_vm0, %v8737_v29  ;;  %v4369_v57 = vpack.c.bf16 %v4238_v10, %v4238_v10 }
0x13c3   :  { %v4433_v5 = vunpack.c.l.b16 %v4369_v57 }
0x13c5   :  { %v4435_v28 = vpack.c.b16 %v4433_v5, %v4433_v5 }
0x13cf   :  { %6700 = vmatmul.msk.bf16.gmra.mxu0 %vm558_vm6, %v4435_v28 }
0x13d1   :  { %6696 = vmatmul.msk.bf16.gmra.mxu2 %vm139_vm0, %v8751_v47 }
0x13df   :  { %6739 = vmatmul.msk.bf16.vlgmr.msrb.gmra.mxu0 %vm139_vm0, %v8722_v0 }
0x13ef   :  { %6740 = vmatmul.msk.bf16.gmra.mxu0 %vm139_vm0, %v8737_v29 }
0x13ff   :  { %6741 = vmatmul.msk.bf16.gmra.mxu0 %vm139_vm0, %v8751_v47 }
0x1404   :  { %v9105_v58 = vpop.f32.mrf.mxu2 }
0x140c   :  { %v9107_v17 = vpop.f32.mrf.mxu2 }
0x1414   :  { %v9111_v2 = vpop.f32.mrf.mxu2 }
0x141c   :  { %v9115_v59 = vpop.f32.mrf.mxu2 }
0x1424   :  { %v9119_v25 = vpop.f32.mrf.mxu2 }
0x142a   :  { %v4419_v4 = vpop.f32.mrf.mxu3 }
0x142b   :  { %v4474_v52 = vmul.f32 0.25, %v4419_v4 }
0x142c   :  { %v9121_v31 = vpop.f32.mrf.mxu2 }
0x142d   :  { %v9124_v8 = vadd.f32 %v4474_v52, %v7912_v49 }
0x142f   :  { %v4486_v63 = vsel %vm647_vm8, %v9124_v8, -inf }
0x1430   :  { %4487 = vmax.xlane.f32.xlu0 %v4486_v63 }
0x1432   :  { %v4421_v7 = vpop.f32.mrf.mxu3 }
0x1433   :  { %v4475_v11 = vmul.f32 0.25, %v4421_v7 }
0x1434   :  { %v4349_v45 = vpop.f32.mrf.mxu2 }
0x1435   :  { %v9129_v60 = vadd.f32 %v4475_v11, %v7912_v49  ;;  %v4350_v62 = vadd.f32 %v7177_v21, %v4349_v45 }
0x1437   :  { %v4489_v40 = vsel %vm647_vm8, %v9129_v60, -inf  ;;  %v4376_v53 = vpack.c.bf16 %v4350_v62, %v4350_v62 }
0x1438   :  { %4490 = vmax.xlane.f32.xlu1 %v4489_v40 }
0x1439   :  { %v4569_v57 = vunpack.c.l.b16 %v4376_v53 }
0x143a   :  { %v4424_v26 = vpop.f32.mrf.mxu3 }
0x143b   :  { %v4476_v1 = vmul.f32 0.25, %v4424_v26 }
0x143c   :  { %v4351_v46 = vpop.f32.mrf.mxu2  ;;  %v4465_v27 = vpop.f32.mrf.mxu0 }
0x143d   :  { %v4477_v19 = vmul.f32 0.25, %v4465_v27  ;;  %v9134_v34 = vadd.f32 %v4476_v1, %v7912_v49  ;;  %v4352_v15 = vadd.f32 %v7177_v21, %v4351_v46 }
0x143f   :  { %v4492_v36 = vsel %vm647_vm8, %v9134_v34, -inf  ;;  %v9139_v23 = vadd.f32 %v4477_v19, %v7912_v49  ;;  %v4377_v33 = vpack.c.bf16 %v4352_v15, %v4352_v15 }
0x1440   :  { %4493 = vmax.xlane.f32.xlu2 %v4492_v36 }
0x1441   :  { %v4495_v61 = vsel %vm647_vm8, %v9139_v23, -inf  ;;  %v4570_v20 = vunpack.c.l.b16 %v4377_v33 }
0x1442   :  { %4496 = vmax.xlane.f32.xlu0 %v4495_v61  ;;  %v4426_v38 = vpop.f32.mrf.mxu3 }
0x1443   :  { %v4572_v28 = vpack.c.b16 %v4570_v20, %v4569_v57 }
0x1444   :  { %v4354_v50 = vpop.f32.mrf.mxu2  ;;  %v4467_v35 = vpop.f32.mrf.mxu0 }
0x1445   :  { %v4355_v30 = vadd.f32 %v7177_v21, %v4354_v50  ;;  %v4478_v43 = vmul.f32 0.25, %v4467_v35 }
0x1447   :  { %v4378_v24 = vpack.c.bf16 %v4355_v30, %v4355_v30  ;;  %v9147_v22 = vadd.f32 %v4478_v43, %v7912_v49 }
0x1449   :  { %v4571_v3 = vunpack.c.l.b16 %v4378_v24  ;;  %v4498_v18 = vsel %vm647_vm8, %v9147_v22, -inf }
0x144a   :  { %4499 = vmax.xlane.f32.xlu1 %v4498_v18 }
0x144b   :  { %v4573_v32 = vpack.c.b16 %v4571_v3, %v4571_v3 }
0x144c   :  { %v4356_v16 = vpop.f32.mrf.mxu2  ;;  %v4470_v51 = vpop.f32.mrf.mxu0 }
0x144d   :  { %v4479_v56 = vmul.f32 0.25, %v4470_v51  ;;  %v4582_v10 = vsel %vm743_vm5, %v4573_v32, 0  ;;  %v4357_v40 = vadd.f32 %v7177_v21, %v4356_v16 }
0x144e   :  { %4590 = vmatpush.bf16.msrb.mxu1 %v4582_v10 }
0x144f   :  { %v4485_v5 = vadd.f32 %v4479_v56, %v7912_v49  ;;  %v4379_v27 = vpack.c.bf16 %v4357_v40, %v4357_v40 }
0x1451   :  { %v4501_v4 = vsel %vm647_vm8, %v4485_v5, -inf  ;;  %v4613_v38 = vunpack.c.l.b16 %v4379_v27  ;;  %v7107_v27 = vld [vmem:[%s9645_s5 + $0xf0] sm:$0xff] }
0x1452   :  { %4502 = vmax.xlane.f32.xlu2 %v4501_v4  ;;  %4591 = vmatpush.bf16.msrb.mxu1 %v4572_v28 }
0x1454   :  { %v4359_v52 = vpop.f32.mrf.mxu2  ;;  %v4472_v63 = vpop.f32.mrf.mxu0 }
0x1455   :  { %v4360_v7 = vadd.f32 %v7177_v21, %v4359_v52 }
0x1457   :  { %v4380_v1 = vpack.c.bf16 %v4360_v7, %v4360_v7 }
0x1459   :  { %v4614_v36 = vunpack.c.l.b16 %v4380_v1  ;;  %v7108_v1 = vld [vmem:[%s9645_s5 + $0xf8] sm:$0xff] }
0x145a   :  { %4801 = vmatpush.bf16.msra.mxu1 %v7108_v1 }
0x145b   :  { %v4616_v15 = vpack.c.b16 %v4614_v36, %v4613_v38 }
0x145c   :  { %v4361_v11 = vpop.f32.mrf.mxu2 }
0x145d   :  { %v4362_v45 = vadd.f32 %v7177_v21, %v4361_v11 }
0x145e   :  { %4802 = vmatpush.bf16.msra.mxu1 %v7107_v27 }
0x145f   :  { %v4381_v26 = vpack.c.bf16 %v4362_v45, %v4362_v45 }
0x1461   :  { %v4615_v46 = vunpack.c.l.b16 %v4381_v26 }
0x1463   :  { %v4617_v19 = vpack.c.b16 %v4615_v46, %v4615_v46 }
0x1465   :  { %v4626_v61 = vsel %vm743_vm5, %v4617_v19, 0  ;;  %v7106_v19 = vld [vmem:[%s9645_s5 + $0xe8] sm:$0xff] }
0x1466   :  { %4634 = vmatpush.bf16.msra.mxu2 %v4626_v61  ;;  %4803 = vmatpush.bf16.msra.mxu1 %v7106_v19 }
0x146a   :  { %4635 = vmatpush.bf16.msra.mxu2 %v4616_v15 }
0x14a3   :  { %v4488_v50 = vpop.xlane.xlu0 %4487 }
0x14a4   :  { %v4504_v35 = vsub.f32 %v9124_v8, %v4488_v50 }
0x14a6   :  { %v4510_v30 = vmul.f32 1.442695, %v4504_v35 }
0x14a8   :  { %7394 = vpow2.f32 %v4510_v30  ;;  %v7105_v30 = vld [vmem:[%s9645_s5 + $0xe0] sm:$0xff] }
0x14a9   :  { %4804 = vmatpush.bf16.msra.mxu1 %v7105_v30 }
0x14ab   :  { %v4491_v43 = vpop.xlane.xlu1 %4490 }
0x14ac   :  { %v4505_v21 = vsub.f32 %v9129_v60, %v4491_v43 }
0x14ae   :  { %v7395_v62 = vpop.eup %7394  ;;  %v4512_v24 = vmul.f32 1.442695, %v4505_v21 }
0x14af   :  { %v4522_v33 = vsel %vm647_vm8, %v7395_v62, 0.0 }
0x14b0   :  { %7396 = vpow2.f32 %v4512_v24  ;;  %4523 = vadd.xlane.f32.xlu0 %v4522_v33 }
0x14b3   :  { %v4494_v3 = vpop.xlane.xlu2 %4493 }
0x14b4   :  { %v4506_v18 = vsub.f32 %v9134_v34, %v4494_v3 }
0x14b5   :  { %v4497_v53 = vpop.xlane.xlu0 %4496 }
0x14b6   :  { %v7397_v32 = vpop.eup %7396  ;;  %v4514_v20 = vmul.f32 1.442695, %v4506_v18  ;;  %v4507_v16 = vsub.f32 %v9139_v23, %v4497_v53  ;;  %v7112_v18 = vld [vmem:[%s9646_s26 + $0xf8] sm:$0xff] }
0x14b7   :  { %v4525_v8 = vsel %vm647_vm8, %v7397_v32, 0.0  ;;  %4863 = vmatpush.bf16.msrb.mxu2 %v7112_v18 }
0x14b8   :  { %7398 = vpow2.f32 %v4514_v20  ;;  %v4516_v51 = vmul.f32 1.442695, %v4507_v16  ;;  %4526 = vadd.xlane.f32.xlu1 %v4525_v8  ;;  %v7110_v8 = vld [vmem:[%s9646_s26 + $0xe8] sm:$0xff] }
0x14ba   :  { %7400 = vpow2.f32 %v4516_v51 }
0x14bd   :  { %v4500_v60 = vpop.xlane.xlu1 %4499 }
0x14be   :  { %v7399_v56 = vpop.eup %7398  ;;  %v4508_v10 = vsub.f32 %v9147_v22, %v4500_v60 }
0x14bf   :  { %v4528_v57 = vsel %vm647_vm8, %v7399_v56, 0.0 }
0x14c0   :  { %v7401_v28 = vpop.eup %7400  ;;  %v4518_v4 = vmul.f32 1.442695, %v4508_v10  ;;  %4529 = vadd.xlane.f32.xlu2 %v4528_v57 }
0x14c1   :  { %v4531_v34 = vsel %vm647_vm8, %v7401_v28, 0.0 }
0x14c2   :  { %7402 = vpow2.f32 %v4518_v4  ;;  %4532 = vadd.xlane.f32.xlu0 %v4531_v34  ;;  %v7109_v34 = vld [vmem:[%s9646_s26 + $0xe0] sm:$0xff] }
0x14c5   :  { %v4503_v23 = vpop.xlane.xlu2 %4502 }
0x14c6   :  { %v4509_v52 = vsub.f32 %v4485_v5, %v4503_v23 }
0x14c8   :  { %v7403_v63 = vpop.eup %7402  ;;  %v4520_v7 = vmul.f32 1.442695, %v4509_v52 }
0x14c9   :  { %v4534_v11 = vsel %vm647_vm8, %v7403_v63, 0.0 }
0x14ca   :  { %7404 = vpow2.f32 %v4520_v7  ;;  %4535 = vadd.xlane.f32.xlu1 %v4534_v11 }
0x14d0   :  { %v7405_v45 = vpop.eup %7404 }
0x14d1   :  { %v4537_v22 = vsel %vm647_vm8, %v7405_v45, 0.0 }
0x14d2   :  { %4538 = vadd.xlane.f32.xlu2 %v4537_v22 }
0x1523   :  { %v4524_v40 = vpop.xlane.xlu0 %4523 }
0x1524   :  { %7406 = vrcp.f32 %v4524_v40 }
0x152a   :  { %v7407_v46 = vpop.eup %7406 }
0x152b   :  { %v4527_v26 = vpop.xlane.xlu1 %4526  ;;  %v4546_v5 = vmul.f32 %v7407_v46, %v7395_v62 }
0x152c   :  { %7408 = vrcp.f32 %v4527_v26 }
0x152d   :  { %v4552_v61 = vpack.c.bf16 %v4546_v5, %v4546_v5 }
0x152f   :  { %v4561_v43 = vunpack.c.l.b16 %v4552_v61 }
0x1532   :  { %v7409_v36 = vpop.eup %7408 }
0x1533   :  { %v4547_v38 = vmul.f32 %v7409_v36, %v7397_v32  ;;  %v4530_v15 = vpop.xlane.xlu2 %4529  ;;  %v7111_v32 = vld [vmem:[%s9646_s26 + $0xf0] sm:$0xff] }
0x1534   :  { %7410 = vrcp.f32 %v4530_v15  ;;  %4864 = vmatpush.bf16.msrb.mxu2 %v7111_v32 }
0x1535   :  { %v4553_v50 = vpack.c.bf16 %v4547_v38, %v4547_v38  ;;  %v4533_v35 = vpop.xlane.xlu0 %4532  ;;  %v4744_v38 = vpop.f32.mrf.mxu0 }
0x1536   :  { %7412 = vrcp.f32 %v4533_v35  ;;  %v7179_v35 = vld [vmem:[%s9610_s9 + $0x7] ss:$0 sm:$0xff] }
0x1537   :  { %v4562_v21 = vunpack.c.l.b16 %v4553_v50 }
0x1538   :  { %4865 = vmatpush.bf16.msrb.mxu2 %v7110_v8 }
0x1539   :  { %v4564_v62 = vpack.c.b16 %v4562_v21, %v4561_v43 }
0x153a   :  { %v7411_v24 = vpop.eup %7410 }
0x153b   :  { %6701 = vmatmul.msk.bf16.vlgmr.msrb.gmra.mxu1 %vm647_vm8, %v4564_v62  ;;  %v4548_v33 = vmul.f32 %v7411_v24, %v7399_v56 }
0x153c   :  { %v7413_v53 = vpop.eup %7412  ;;  %4866 = vmatpush.bf16.msrb.mxu2 %v7109_v34 }
0x153d   :  { %v4536_v3 = vpop.xlane.xlu1 %4535  ;;  %v4554_v20 = vpack.c.bf16 %v4548_v33, %v4548_v33  ;;  %v4549_v16 = vmul.f32 %v7413_v53, %v7401_v28  ;;  %v4746_v24 = vpop.f32.mrf.mxu0 }
0x153e   :  { %7414 = vrcp.f32 %v4536_v3 }
0x153f   :  { %v4555_v60 = vpack.c.bf16 %v4549_v16, %v4549_v16  ;;  %v4563_v57 = vunpack.c.l.b16 %v4554_v20 }
0x1541   :  { %v4605_v23 = vunpack.c.l.b16 %v4555_v60  ;;  %v4565_v28 = vpack.c.b16 %v4563_v57, %v4563_v57 }
0x1544   :  { %v7415_v51 = vpop.eup %7414 }
0x1545   :  { %v4550_v56 = vmul.f32 %v7415_v51, %v7403_v63  ;;  %v4539_v10 = vpop.xlane.xlu2 %4538  ;;  %v9218_v51 = vld [vmem:[%s9609_s8 + $0x7] ss:$0 sm:$0xff] }
0x1546   :  { %7416 = vrcp.f32 %v4539_v10  ;;  %v4747_v10 = vadd.f32 %v9218_v51, %v4746_v24  ;;  %v4745_v34 = vadd.f32 %v9218_v51, %v4744_v38 }
0x1547   :  { %v4556_v4 = vpack.c.bf16 %v4550_v56, %v4550_v56 }
0x1549   :  { %v4606_v52 = vunpack.c.l.b16 %v4556_v4  ;;  %v4749_v4 = vpop.f32.mrf.mxu0 }
0x154b   :  { %v4608_v7 = vpack.c.b16 %v4606_v52, %v4605_v23  ;;  %6702 = vmatmul.msk.bf16.gmra.mxu1 %vm647_vm8, %v4565_v28  ;;  %v4884_v52 = vpack.c.bf16 %v4747_v10, %v4747_v10 }
0x154c   :  { %v7417_v11 = vpop.eup %7416 }
0x154d   :  { %6703 = vmatmul.msk.bf16.vlgmr.msra.gmra.mxu2 %vm647_vm8, %v4608_v7  ;;  %v4551_v63 = vmul.f32 %v7417_v11, %v7405_v45  ;;  %v7100_v45 = vld [vmem:[%s9612_s11 + $0x30] sm:$0xff]  ;;  %v4883_v11 = vpack.c.bf16 %v4745_v34, %v4745_v34 }
0x154e   :  { %4674 = vmatpush.bf16.msrb.mxu3 %v7100_v45  ;;  %v7180_v45 = vld [vmem:[%s9611_s10 + $0x7] ss:$0 sm:$0xff]  ;;  %s5892_s10 = sshll.u32 %s9624_s23, 4  ;;  %s5893_s10 = int_to_ptr.hbm [resolvable:$true] %s5892_s10 }
0x154f   :  { %v4557_v22 = vpack.c.bf16 %v4551_v63, %v4551_v63 }
0x1551   :  { %v4607_v40 = vunpack.c.l.b16 %v4557_v22  ;;  %v4905_v22 = vunpack.c.l.b16 %v4884_v52 }
0x1553   :  { %v4609_v26 = vpack.c.b16 %v4607_v40, %v4607_v40  ;;  %v4904_v40 = vunpack.c.l.b16 %v4883_v11 }
0x155b   :  { %6767 = vmatmul.msk.bf16.vlgmr.msra.gmra.mxu1 %vm139_vm0, %v8722_v0 }
0x155d   :  { %6704 = vmatmul.msk.bf16.gmra.mxu2 %vm647_vm8, %v4609_v26  ;;  %v4751_v26 = vpop.f32.mrf.mxu0 }
0x155e   :  { %v4752_v34 = vadd.f32 %v9218_v51, %v4751_v26 }
0x1560   :  { %v4886_v11 = vpack.c.bf16 %v4752_v34, %v4752_v34 }
0x156b   :  { %6768 = vmatmul.msk.bf16.gmra.mxu1 %vm139_vm0, %v8737_v29 }
0x156d   :  { %6795 = vmatmul.msk.bf16.vlgmr.msrb.gmra.mxu2 %vm139_vm0, %v8722_v0 }
0x157b   :  { %6769 = vmatmul.msk.bf16.gmra.mxu1 %vm139_vm0, %v8751_v47 }
0x157d   :  { %6796 = vmatmul.msk.bf16.gmra.mxu2 %vm139_vm0, %v8737_v29 }
0x158d   :  { %6797 = vmatmul.msk.bf16.gmra.mxu2 %vm139_vm0, %v8751_v47 }
0x15b8   :  { %v4593_v1 = vpop.f32.mrf.mxu1 }
0x15c0   :  { %v4595_v46 = vpop.f32.mrf.mxu1 }
0x15c1   :  { %v4646_v5 = vpack.c.bf16 %v4595_v46, %v4593_v1  ;;  %v4907_v1 = vpack.c.b16 %v4905_v22, %v4904_v40  ;;  %v4950_v40 = vunpack.c.l.b16 %v4886_v11 }
0x15c3   :  { %6711 = vmatmul.msk.bf16.vlgmr.msrb.gmra.mxu3 %vm558_vm6, %v4646_v5 }
0x15c8   :  { %v4598_v0 = vpop.f32.mrf.mxu1 }
0x15d0   :  { %v4600_v27 = vpop.f32.mrf.mxu1  ;;  %v4637_v19 = vpop.f32.mrf.mxu2 }
0x15d1   :  { %v4647_v36 = vpack.c.bf16 %v4637_v19, %v4598_v0 }
0x15d3   :  { %6712 = vmatmul.msk.bf16.gmra.mxu3 %vm558_vm6, %v4647_v36 }
0x15d8   :  { %v4639_v29 = vpop.f32.mrf.mxu2  ;;  %v4806_v61 = vpop.f32.mrf.mxu1 }
0x15d9   :  { %v4807_v33 = vadd.f32 %v7179_v35, %v4806_v61  ;;  %v4750_v61 = vadd.f32 %v9218_v51, %v4749_v4 }
0x15db   :  { %v4889_v32 = vpack.c.bf16 %v4807_v33, %v4807_v33  ;;  %v4885_v24 = vpack.c.bf16 %v4750_v61, %v4750_v61 }
0x15dd   :  { %v4912_v57 = vunpack.c.l.b16 %v4889_v32 }
0x15e0   :  { %v4642_v47 = vpop.f32.mrf.mxu2  ;;  %v4808_v15 = vpop.f32.mrf.mxu1 }
0x15e1   :  { %v4648_v50 = vpack.c.bf16 %v4642_v47, %v4639_v29  ;;  %v4809_v21 = vadd.f32 %v7179_v35, %v4808_v15 }
0x15e3   :  { %6713 = vmatmul.msk.bf16.gmra.mxu3 %vm558_vm6, %v4648_v50  ;;  %v4890_v18 = vpack.c.bf16 %v4809_v21, %v4809_v21 }
0x15e5   :  { %v4913_v60 = vunpack.c.l.b16 %v4890_v18 }
0x15e7   :  { %v4915_v23 = vpack.c.b16 %v4913_v60, %v4912_v57 }
0x15e8   :  { %v4644_v30 = vpop.f32.mrf.mxu2  ;;  %v4811_v43 = vpop.f32.mrf.mxu1 }
0x15e9   :  { %v4812_v62 = vadd.f32 %v7179_v35, %v4811_v43  ;;  %v4924_v63 = vsel %vm558_vm6, %v4915_v23, 0 }
0x15eb   :  { %v4891_v3 = vpack.c.bf16 %v4812_v62, %v4812_v62 }
0x15ed   :  { %v4914_v53 = vunpack.c.l.b16 %v4891_v3 }
0x15ef   :  { %v4916_v20 = vpack.c.b16 %v4914_v53, %v4914_v53  ;;  %v4754_v53 = vpop.f32.mrf.mxu0 }
0x15f0   :  { %v4813_v16 = vpop.f32.mrf.mxu1  ;;  %v4868_v8 = vpop.f32.mrf.mxu2  ;;  %v4755_v10 = vadd.f32 %v9218_v51, %v4754_v53 }
0x15f1   :  { %v4927_v56 = vsel %vm558_vm6, %v4916_v20, 0  ;;  %v4869_v29 = vadd.f32 %v7180_v45, %v4868_v8  ;;  %v4814_v38 = vadd.f32 %v7179_v35, %v4813_v16  ;;  %v4906_v16 = vunpack.c.l.b16 %v4885_v24 }
0x15f2   :  { %4935 = vmatpush.bf16.xpose.msra.mxu3 %v4927_v56 }
0x15f3   :  { %v4895_v62 = vpack.c.bf16 %v4869_v29, %v4869_v29  ;;  %v4892_v33 = vpack.c.bf16 %v4814_v38, %v4814_v38  ;;  %v4908_v52 = vpack.c.b16 %v4906_v16, %v4906_v16 }
0x15f5   :  { %v4958_v57 = vunpack.c.l.b16 %v4892_v33 }
0x15f8   :  { %v4816_v28 = vpop.f32.mrf.mxu1  ;;  %v4870_v7 = vpop.f32.mrf.mxu2 }
0x15f9   :  { %v4871_v46 = vadd.f32 %v7180_v45, %v4870_v7  ;;  %v4817_v27 = vadd.f32 %v7179_v35, %v4816_v28  ;;  %v4887_v28 = vpack.c.bf16 %v4755_v10, %v4755_v10 }
0x15fa   :  { %4936 = vmatpush.bf16.xpose.msra.mxu3 %v4924_v63 }
0x15fb   :  { %v4896_v50 = vpack.c.bf16 %v4871_v46, %v4871_v46  ;;  %v4893_v30 = vpack.c.bf16 %v4817_v27, %v4817_v27  ;;  %v4951_v22 = vunpack.c.l.b16 %v4887_v28  ;;  %v4756_v46 = vpop.f32.mrf.mxu0 }
0x15fd   :  { %v5089_v32 = vunpack.c.l.b16 %v4896_v50  ;;  %v4959_v60 = vunpack.c.l.b16 %v4893_v30 }
0x15ff   :  { %v4961_v23 = vpack.c.b16 %v4959_v60, %v4958_v57  ;;  %v4174_v60 = vadd.f32 %v9113_v54, %v9119_v25 }
0x1600   :  { %v4818_v5 = vpop.f32.mrf.mxu1  ;;  %v4873_v0 = vpop.f32.mrf.mxu2 }
0x1601   :  { %v4819_v19 = vadd.f32 %v7179_v35, %v4818_v5  ;;  %v4874_v36 = vadd.f32 %v7180_v45, %v4873_v0  ;;  %6798 = vmatmul.msk.bf16.vlgmr.msra.gmra.mxu3 %vm558_vm6, %v4907_v1  ;;  %v5088_v35 = vunpack.c.l.b16 %v4895_v62  ;;  %v4970_v63 = vsel %vm558_vm6, %v4961_v23, 0 }
0x1602   :  { %v4953_v1 = vpack.c.b16 %v4951_v22, %v4950_v40 }
0x1603   :  { %v4894_v47 = vpack.c.bf16 %v4819_v19, %v4819_v19  ;;  %v4897_v15 = vpack.c.bf16 %v4874_v36, %v4874_v36  ;;  %v5091_v4 = vpack.c.b16 %v5089_v32, %v5088_v35  ;;  %v4757_v19 = vadd.f32 %v9218_v51, %v4756_v46 }
0x1604   :  { %v4164_v51 = vadd.f32 %v9097_v44, %v9105_v58 }
0x1605   :  { %v4960_v43 = vunpack.c.l.b16 %v4894_v47  ;;  %v5090_v21 = vunpack.c.l.b16 %v4897_v15  ;;  %v4888_v47 = vpack.c.bf16 %v4757_v19, %v4757_v19 }
0x1607   :  { %v4962_v3 = vpack.c.b16 %v4960_v43, %v4960_v43  ;;  %v5092_v18 = vpack.c.b16 %v5090_v21, %v5090_v21  ;;  %v4952_v21 = vunpack.c.l.b16 %v4888_v47 }
0x1608   :  { %v4875_v20 = vpop.f32.mrf.mxu2 }
0x1609   :  { %v4973_v8 = vsel %vm558_vm6, %v4962_v3, 0  ;;  %v5101_v56 = vsel %vm743_vm5, %v5092_v18, 0  ;;  %v4876_v26 = vadd.f32 %v7180_v45, %v4875_v20  ;;  %v4954_v24 = vpack.c.b16 %v4952_v21, %v4952_v21 }
0x160a   :  { %4981 = vmatpush.bf16.xpose.msra.mxu0 %v4973_v8  ;;  %5109 = vmatpush.bf16.msrb.mxu1 %v5101_v56  ;;  %v4169_v18 = vadd.f32 %v9103_v41, %v9111_v2 }
0x160b   :  { %v4898_v38 = vpack.c.bf16 %v4876_v26, %v4876_v26 }
0x160d   :  { %v5132_v43 = vunpack.c.l.b16 %v4898_v38 }
0x160e   :  { %5110 = vmatpush.bf16.msrb.mxu1 %v5091_v4 }
0x1610   :  { %v4878_v7 = vpop.f32.mrf.mxu2 }
0x1611   :  { %6799 = vmatmul.msk.bf16.gmra.mxu3 %vm558_vm6, %v4908_v52  ;;  %v4879_v5 = vadd.f32 %v7180_v45, %v4878_v7 }
0x1612   :  { %4982 = vmatpush.bf16.xpose.msra.mxu0 %v4970_v63 }
0x1613   :  { %v4899_v29 = vpack.c.bf16 %v4879_v5, %v4879_v5 }
0x1615   :  { %v5133_v50 = vunpack.c.l.b16 %v4899_v29 }
0x1617   :  { %v5135_v62 = vpack.c.b16 %v5133_v50, %v5132_v43 }
0x1618   :  { %v4880_v0 = vpop.f32.mrf.mxu2 }
0x1619   :  { %v4881_v27 = vadd.f32 %v7180_v45, %v4880_v0  ;;  %6800 = vmatmul.msk.bf16.vlgmr.msra.gmra.mxu0 %vm558_vm6, %v4953_v1 }
0x161b   :  { %v4900_v36 = vpack.c.bf16 %v4881_v27, %v4881_v27 }
0x161d   :  { %v5134_v61 = vunpack.c.l.b16 %v4900_v36 }
0x161f   :  { %v5136_v15 = vpack.c.b16 %v5134_v61, %v5134_v61 }
0x1621   :  { %v5145_v30 = vsel %vm743_vm5, %v5136_v15, 0 }
0x1622   :  { %5153 = vmatpush.bf16.msra.mxu2 %v5145_v30 }
0x1626   :  { %5154 = vmatpush.bf16.msra.mxu2 %v5135_v62 }
0x1629   :  { %6801 = vmatmul.msk.bf16.gmra.mxu0 %vm558_vm6, %v4954_v24 }
0x1646   :  { %v4676_v45 = vpop.f32.mrf.mxu3 }
0x1647   :  { %v9241_v33 = vadd.f32 %v4676_v45, %v4164_v51 }
0x164e   :  { %v9243_v3 = vpop.f32.mrf.mxu3 }
0x1656   :  { %v4681_v53 = vpop.f32.mrf.mxu3 }
0x1657   :  { %v9247_v32 = vadd.f32 %v4681_v53, %v4169_v18 }
0x165e   :  { %v9249_v20 = vpop.f32.mrf.mxu3 }
0x1666   :  { %v4686_v8 = vpop.f32.mrf.mxu3 }
0x1667   :  { %v9253_v56 = vadd.f32 %v4686_v8, %v4174_v60 }
0x166e   :  { %v9255_v44 = vpop.f32.mrf.mxu3 }
0x1684   :  { %v4938_v58 = vpop.f32.mrf.mxu3 }
0x1685   :  { %v4993_v35 = vmul.f32 0.25, %v4938_v58 }
0x1687   :  { %v4999_v16 = vadd.f32 %v4993_v35, %v7912_v49 }
0x1689   :  { %v5005_v10 = vsel %vm647_vm8, %v4999_v16, -inf }
0x168a   :  { %5006 = vmax.xlane.f32.xlu0 %v5005_v10 }
0x168c   :  { %v4940_v41 = vpop.f32.mrf.mxu3 }
0x168d   :  { %v4994_v2 = vmul.f32 0.25, %v4940_v41 }
0x168f   :  { %v5000_v57 = vadd.f32 %v4994_v2, %v7912_v49 }
0x1691   :  { %v5008_v4 = vsel %vm647_vm8, %v5000_v57, -inf }
0x1692   :  { %5009 = vmax.xlane.f32.xlu1 %v5008_v4 }
0x1694   :  { %v4943_v54 = vpop.f32.mrf.mxu3 }
0x1695   :  { %v4995_v25 = vmul.f32 0.25, %v4943_v54 }
0x1696   :  { %v4984_v34 = vpop.f32.mrf.mxu0 }
0x1697   :  { %v4996_v23 = vmul.f32 0.25, %v4984_v34  ;;  %v5001_v52 = vadd.f32 %v4995_v25, %v7912_v49 }
0x1699   :  { %v5011_v28 = vsel %vm647_vm8, %v5001_v52, -inf  ;;  %v5002_v7 = vadd.f32 %v4996_v23, %v7912_v49 }
0x169a   :  { %5012 = vmax.xlane.f32.xlu1 %v5011_v28 }
0x169b   :  { %v5014_v11 = vsel %vm647_vm8, %v5002_v7, -inf }
0x169c   :  { %5015 = vmax.xlane.f32.xlu2 %v5014_v11  ;;  %v4945_v63 = vpop.f32.mrf.mxu3 }
0x169e   :  { %v4986_v22 = vpop.f32.mrf.mxu0 }
0x169f   :  { %v4997_v40 = vmul.f32 0.25, %v4986_v22 }
0x16a1   :  { %v5003_v1 = vadd.f32 %v4997_v40, %v7912_v49 }
0x16a3   :  { %v5017_v46 = vsel %vm647_vm8, %v5003_v1, -inf }
0x16a4   :  { %5018 = vmax.xlane.f32.xlu0 %v5017_v46 }
0x16a6   :  { %v4989_v5 = vpop.f32.mrf.mxu0 }
0x16a7   :  { %v4998_v35 = vmul.f32 0.25, %v4989_v5 }
0x16a9   :  { %v5004_v10 = vadd.f32 %v4998_v35, %v7912_v49 }
0x16ae   :  { %v4991_v0 = vpop.f32.mrf.mxu0 }
0x16fd   :  { %v5007_v27 = vpop.xlane.xlu0 %5006 }
0x16fe   :  { %v5023_v26 = vsub.f32 %v4999_v16, %v5007_v27 }
0x1700   :  { %v5029_v19 = vmul.f32 1.442695, %v5023_v26 }
0x1702   :  { %7418 = vpow2.f32 %v5029_v19 }
0x1705   :  { %v5010_v36 = vpop.xlane.xlu1 %5009 }
0x1706   :  { %v5024_v29 = vsub.f32 %v5000_v57, %v5010_v36  ;;  %v5020_v57 = vsel %vm647_vm8, %v5004_v10, -inf }
0x1708   :  { %v7419_v61 = vpop.eup %7418  ;;  %v5031_v38 = vmul.f32 1.442695, %v5024_v29 }
0x1709   :  { %v5041_v47 = vsel %vm647_vm8, %v7419_v61, 0.0 }
0x170a   :  { %7420 = vpow2.f32 %v5031_v38  ;;  %5042 = vadd.xlane.f32.xlu2 %v5041_v47 }
0x170d   :  { %v5013_v15 = vpop.xlane.xlu1 %5012 }
0x170e   :  { %v5025_v50 = vsub.f32 %v5001_v52, %v5013_v15 }
0x170f   :  { %v5016_v30 = vpop.xlane.xlu2 %5015 }
0x1710   :  { %v7421_v43 = vpop.eup %7420  ;;  %v5033_v21 = vmul.f32 1.442695, %v5025_v50  ;;  %v5026_v62 = vsub.f32 %v5002_v7, %v5016_v30 }
0x1711   :  { %v5044_v24 = vsel %vm647_vm8, %v7421_v43, 0.0 }
0x1712   :  { %7422 = vpow2.f32 %v5033_v21  ;;  %v5035_v51 = vmul.f32 1.442695, %v5026_v62  ;;  %5045 = vadd.xlane.f32.xlu0 %v5044_v24 }
0x1714   :  { %7424 = vpow2.f32 %v5035_v51 }
0x1717   :  { %v5019_v45 = vpop.xlane.xlu0 %5018 }
0x1718   :  { %v7423_v18 = vpop.eup %7422  ;;  %v5027_v53 = vsub.f32 %v5003_v1, %v5019_v45  ;;  %v7113_v45 = vld [vmem:[%s9612_s11 + $0x38] sm:$0xff] }
0x1719   :  { %v5047_v60 = vsel %vm647_vm8, %v7423_v18, 0.0  ;;  %5193 = vmatpush.bf16.msrb.mxu3 %v7113_v45 }
0x171a   :  { %v7425_v8 = vpop.eup %7424  ;;  %v5037_v58 = vmul.f32 1.442695, %v5027_v53  ;;  %5048 = vadd.xlane.f32.xlu0 %v5047_v60 }
0x171b   :  { %v5050_v16 = vsel %vm647_vm8, %v7425_v8, 0.0 }
0x171c   :  { %7426 = vpow2.f32 %v5037_v58  ;;  %5051 = vadd.xlane.f32.xlu1 %v5050_v16 }
0x1722   :  { %v7427_v41 = vpop.eup %7426 }
0x1723   :  { %v5053_v2 = vsel %vm647_vm8, %v7427_v41, 0.0 }
0x1724   :  { %5054 = vadd.xlane.f32.xlu2 %v5053_v2  ;;  %5021 = vmax.xlane.f32.xlu1 %v5020_v57 }
0x177d   :  { %v5043_v4 = vpop.xlane.xlu2 %5042 }
0x177e   :  { %7428 = vrcp.f32 %v5043_v4 }
0x1784   :  { %v7429_v25 = vpop.eup %7428 }
0x1785   :  { %v5046_v54 = vpop.xlane.xlu0 %5045  ;;  %v5065_v34 = vmul.f32 %v7429_v25, %v7419_v61 }
0x1786   :  { %7430 = vrcp.f32 %v5046_v54 }
0x1787   :  { %v5071_v52 = vpack.c.bf16 %v5065_v34, %v5065_v34 }
0x1789   :  { %v5080_v63 = vunpack.c.l.b16 %v5071_v52 }
0x178c   :  { %v7431_v23 = vpop.eup %7430 }
0x178d   :  { %v5066_v28 = vmul.f32 %v7431_v23, %v7421_v43  ;;  %v5049_v7 = vpop.xlane.xlu0 %5048  ;;  %v9288_v23 = vld [vmem:[%s9613_s12 + $0x1] ss:$0 sm:$0xff] }
0x178e   :  { %7432 = vrcp.f32 %v5049_v7  ;;  %v4166_v7 = vadd.f32 %v9099_v55, %v9107_v17 }
0x178f   :  { %v5072_v11 = vpack.c.bf16 %v5066_v28, %v5066_v28  ;;  %v5052_v49 = vpop.xlane.xlu1 %5051 }
0x1790   :  { %7434 = vrcp.f32 %v5052_v49  ;;  %v4692_v49 = vadd.f32 %v9243_v3, %v4166_v7  ;;  %v7119_v7 = vld [vmem:[%s9616_s15 + $0x64] sm:$0xf0] }
0x1791   :  { %v5081_v22 = vunpack.c.l.b16 %v5072_v11 }
0x1793   :  { %v5083_v40 = vpack.c.b16 %v5081_v22, %v5080_v63 }
0x1794   :  { %v7433_v1 = vpop.eup %7432 }
0x1795   :  { %6802 = vmatmul.msk.bf16.vlgmr.msrb.gmra.mxu1 %vm647_vm8, %v5083_v40  ;;  %v5067_v46 = vmul.f32 %v7433_v1, %v7423_v18 }
0x1796   :  { %v7435_v27 = vpop.eup %7434 }
0x1797   :  { %v5055_v5 = vpop.xlane.xlu2 %5054  ;;  %v5022_v0 = vpop.xlane.xlu1 %5021  ;;  %v5073_v36 = vpack.c.bf16 %v5067_v46, %v5067_v46  ;;  %v5068_v29 = vmul.f32 %v7435_v27, %v7425_v8  ;;  %v4171_v27 = vadd.f32 %v9109_v48, %v9115_v59 }
0x1798   :  { %7436 = vrcp.f32 %v5055_v5  ;;  %v5028_v26 = vsub.f32 %v5004_v10, %v5022_v0 }
0x1799   :  { %v5074_v38 = vpack.c.bf16 %v5068_v29, %v5068_v29  ;;  %v5082_v15 = vunpack.c.l.b16 %v5073_v36 }
0x179a   :  { %v5039_v19 = vmul.f32 1.442695, %v5028_v26 }
0x179b   :  { %v5124_v43 = vunpack.c.l.b16 %v5074_v38  ;;  %v5084_v24 = vpack.c.b16 %v5082_v15, %v5082_v15 }
0x179c   :  { %7438 = vpow2.f32 %v5039_v19 }
0x179e   :  { %v7437_v61 = vpop.eup %7436 }
0x179f   :  { %v5069_v47 = vmul.f32 %v7437_v61, %v7427_v41 }
0x17a1   :  { %v5075_v50 = vpack.c.bf16 %v5069_v47, %v5069_v47 }
0x17a2   :  { %v7439_v30 = vpop.eup %7438 }
0x17a3   :  { %v5125_v21 = vunpack.c.l.b16 %v5075_v50  ;;  %v5056_v62 = vsel %vm647_vm8, %v7439_v30, 0.0 }
0x17a4   :  { %5057 = vadd.xlane.f32.xlu2 %v5056_v62 }
0x17a5   :  { %v5127_v51 = vpack.c.b16 %v5125_v21, %v5124_v43  ;;  %6803 = vmatmul.msk.bf16.gmra.mxu1 %vm647_vm8, %v5084_v24 }
0x17a7   :  { %6804 = vmatmul.msk.bf16.vlgmr.msra.gmra.mxu2 %vm647_vm8, %v5127_v51 }
0x1812   :  { %v5112_v18 = vpop.f32.mrf.mxu1 }
0x1817   :  { %v5058_v53 = vpop.xlane.xlu2 %5057 }
0x1818   :  { %7440 = vrcp.f32 %v5058_v53 }
0x181a   :  { %v5114_v60 = vpop.f32.mrf.mxu1 }
0x181b   :  { %v5165_v8 = vpack.c.bf16 %v5114_v60, %v5112_v18 }
0x181d   :  { %6812 = vmatmul.msk.bf16.vlgmr.msrb.gmra.mxu3 %vm558_vm6, %v5165_v8 }
0x181e   :  { %v7441_v58 = vpop.eup %7440 }
0x181f   :  { %v5070_v35 = vmul.f32 %v7441_v58, %v7439_v30 }
0x1821   :  { %v5076_v16 = vpack.c.bf16 %v5070_v35, %v5070_v35  ;;  %v4176_v35 = vadd.f32 %v9117_v39, %v9121_v31 }
0x1822   :  { %v5117_v10 = vpop.f32.mrf.mxu1 }
0x1823   :  { %v5126_v41 = vunpack.c.l.b16 %v5076_v16 }
0x1825   :  { %v5128_v2 = vpack.c.b16 %v5126_v41, %v5126_v41  ;;  %v4696_v41 = vadd.f32 %v9255_v44, %v4176_v35 }
0x1827   :  { %6805 = vmatmul.msk.bf16.gmra.mxu2 %vm647_vm8, %v5128_v2 }
0x182a   :  { %v5119_v57 = vpop.f32.mrf.mxu1  ;;  %v5156_v4 = vpop.f32.mrf.mxu2 }
0x182b   :  { %v5166_v54 = vpack.c.bf16 %v5156_v4, %v5117_v10 }
0x182d   :  { %6813 = vmatmul.msk.bf16.gmra.mxu3 %vm558_vm6, %v5166_v54  ;;  %v6853_v54 = vld [vmem:[%s9616_s15 + $0x70] sm:$0xf] }
0x1832   :  { %v5158_v52 = vpop.f32.mrf.mxu2 }
0x18a0   :  { %v5195_v25 = vpop.f32.mrf.mxu3 }
0x18a1   :  { %v5210_v34 = vadd.f32 %v5195_v25, %v9241_v33  ;;  %v7121_v25 = vld [vmem:[%s9616_s15 + $0x74] sm:$0xf0] }
0x18a3   :  { %v5216_v28 = vadd.f32 %v5210_v34, %v8594_v14  ;;  %v6854_v34 = vor.u32 %v7121_v25, %v6853_v54 }
0x18a5   :  { %v9294_v11 = vadd.f32 %v9288_v23, %v5216_v28  ;;  %5459 = vmatpush.bf16.msrb.mxu0 %v6854_v34  ;;  %v6845_v28 = vld [vmem:[%s9616_s15 + $0x60] sm:$0xf] }
0x18a7   :  { %v5237_v63 = vsel %vm139_vm0, %v9294_v11, 0.0 }
0x18a8   :  { %5238 = vadd.xlane.f32.xlu0 %v5237_v63  ;;  %v5197_v33 = vpop.f32.mrf.mxu3  ;;  %v6846_v63 = vor.u32 %v7119_v7, %v6845_v28  ;;  %v9427_v28 = vld [vmem:[%s9615_s14 + $0x1] ss:$0 sm:$0xff] }
0x18a9   :  { %v5211_v22 = vadd.f32 %v5197_v33, %v4692_v49  ;;  %v7118_v49 = vld [vmem:[%s9616_s15 + $0x64] sm:$0xf]  ;;  %v6847_v33 = vld [vmem:[%s9616_s15 + $0x68] sm:$0xf0] }
0x18aa   :  { %v5161_v40 = vpop.f32.mrf.mxu2  ;;  %5460 = vmatpush.bf16.msrb.mxu0 %v6846_v63 }
0x18ab   :  { %v5217_v1 = vadd.f32 %v5211_v22, %v8599_v9  ;;  %v5167_v46 = vpack.c.bf16 %v5161_v40, %v5158_v52  ;;  %v4694_v9 = vadd.f32 %v9249_v20, %v4171_v27  ;;  %v6850_v22 = vor.u32 %v7118_v49, %v6847_v33  ;;  %v6837_v40 = vld [vmem:[%s9616_s15 + $0x50] sm:$0xf]  ;;  %v7115_v27 = vld [vmem:[%s9616_s15 + $0x44] sm:$0xf0] }
0x18ad   :  { %6814 = vmatmul.msk.bf16.gmra.mxu3 %vm558_vm6, %v5167_v46  ;;  %v5228_v14 = vadd.f32 %v9288_v23, %v5217_v1  ;;  %v7117_v1 = vld [vmem:[%s9616_s15 + $0x54] sm:$0xf0]  ;;  %v7116_v46 = vld [vmem:[%s9616_s15 + $0x54] sm:$0xf] }
0x18af   :  { %v5240_v55 = vsel %vm139_vm0, %v5228_v14, 0.0 }
0x18b0   :  { %5241 = vadd.xlane.f32.xlu1 %v5240_v55  ;;  %v5200_v17 = vpop.f32.mrf.mxu3  ;;  %v6839_v55 = vld [vmem:[%s9616_s15 + $0x58] sm:$0xf0] }
0x18b1   :  { %v5212_v3 = vadd.f32 %v5200_v17, %v9247_v32 }
0x18b2   :  { %v5163_v5 = vpop.f32.mrf.mxu2 }
0x18b3   :  { %v5218_v0 = vadd.f32 %v5212_v3, %v8604_v13  ;;  %v6842_v3 = vor.u32 %v7116_v46, %v6839_v55 }
0x18b5   :  { %v5229_v26 = vadd.f32 %v9288_v23, %v5218_v0  ;;  %v6829_v0 = vld [vmem:[%s9616_s15 + $0x40] sm:$0xf] }
0x18b7   :  { %v5243_v19 = vsel %vm139_vm0, %v5229_v26, 0.0 }
0x18b8   :  { %5244 = vadd.xlane.f32.xlu2 %v5243_v19  ;;  %v5202_v36 = vpop.f32.mrf.mxu3  ;;  %v6830_v19 = vor.u32 %v7115_v27, %v6829_v0 }
0x18b9   :  { %v5213_v29 = vadd.f32 %v5202_v36, %v4694_v9  ;;  %v6831_v36 = vld [vmem:[%s9616_s15 + $0x48] sm:$0xf0] }
0x18bb   :  { %v5219_v61 = vadd.f32 %v5213_v29, %v8609_v6 }
0x18bd   :  { %v9312_v38 = vadd.f32 %v9288_v23, %v5219_v61 }
0x18bf   :  { %v5246_v13 = vsel %vm139_vm0, %v9312_v38, 0.0 }
0x18c0   :  { %5247 = vadd.xlane.f32.xlu0 %v5246_v13 }
0x191b   :  { %v5239_v32 = vpop.xlane.xlu0 %5238 }
0x191c   :  { %v5255_v48 = vmul.f32 %v5239_v32, %v7695_v37 }
0x191e   :  { %v9318_v59 = vsub.f32 %v9294_v11, %v5255_v48 }
0x1920   :  { %v5267_v20 = vmul.f32 %v9318_v59, %v9318_v59 }
0x1922   :  { %v5273_v47 = vsel %vm139_vm0, %v5267_v20, 0.0 }
0x1923   :  { %5274 = vadd.xlane.f32.xlu1 %v5273_v47  ;;  %v5242_v6 = vpop.xlane.xlu1 %5241 }
0x1924   :  { %v5256_v15 = vmul.f32 %v5242_v6, %v7695_v37 }
0x1926   :  { %v9324_v50 = vsub.f32 %v5228_v14, %v5256_v15  ;;  %v6838_v14 = vor.u32 %v7117_v1, %v6837_v40 }
0x1928   :  { %v5268_v30 = vmul.f32 %v9324_v50, %v9324_v50  ;;  %5461 = vmatpush.bf16.msrb.mxu0 %v6838_v14 }
0x192a   :  { %v5276_v43 = vsel %vm139_vm0, %v5268_v30, 0.0 }
0x192b   :  { %5277 = vadd.xlane.f32.xlu2 %v5276_v43  ;;  %v5245_v21 = vpop.xlane.xlu2 %5244 }
0x192c   :  { %v5257_v62 = vmul.f32 %v5245_v21, %v7695_v37  ;;  %5462 = vmatpush.bf16.msrb.mxu0 %v6830_v19 }
0x192e   :  { %v9330_v24 = vsub.f32 %v5229_v26, %v5257_v62  ;;  %v7114_v26 = vld [vmem:[%s9616_s15 + $0x44] sm:$0xf] }
0x192f   :  { %v6834_v29 = vor.u32 %v7114_v26, %v6831_v36 }
0x1930   :  { %v5205_v51 = vpop.f32.mrf.mxu3  ;;  %v5269_v45 = vmul.f32 %v9330_v24, %v9330_v24 }
0x1931   :  { %v5214_v18 = vadd.f32 %v5205_v51, %v9253_v56 }
0x1932   :  { %v5279_v53 = vsel %vm139_vm0, %v5269_v45, 0.0 }
0x1933   :  { %v5220_v60 = vadd.f32 %v5214_v18, %v8614_v42  ;;  %5280 = vadd.xlane.f32.xlu0 %v5279_v53  ;;  %v5248_v8 = vpop.xlane.xlu0 %5247 }
0x1934   :  { %v5258_v58 = vmul.f32 %v5248_v8, %v7695_v37 }
0x1935   :  { %v9341_v16 = vadd.f32 %v9288_v23, %v5220_v60 }
0x1936   :  { %v9344_v10 = vsub.f32 %v9312_v38, %v5258_v58 }
0x1937   :  { %v5249_v56 = vsel %vm139_vm0, %v9341_v16, 0.0 }
0x1938   :  { %5250 = vadd.xlane.f32.xlu2 %v5249_v56  ;;  %v5207_v42 = vpop.f32.mrf.mxu3  ;;  %v5270_v2 = vmul.f32 %v9344_v10, %v9344_v10 }
0x1939   :  { %v5215_v57 = vadd.f32 %v5207_v42, %v4696_v41 }
0x193a   :  { %v5282_v4 = vsel %vm139_vm0, %v5270_v2, 0.0 }
0x193b   :  { %v5221_v39 = vadd.f32 %v5215_v57, %v8619_v12  ;;  %5283 = vadd.xlane.f32.xlu1 %v5282_v4  ;;  %v7120_v12 = vld [vmem:[%s9616_s15 + $0x74] sm:$0xf]  ;;  %v9419_v4 = vld [vmem:[%s9614_s13 + $0x1] ss:$0 sm:$0xff]  ;;  %s7508_s13 = smov [#allocation2]  }
0x193c   :  { %s5890_s14 = sshll.u32 %s7508_s13, 4  ;;  %s5891_s14 = int_to_ptr.vmem [resolvable:$true] %s5890_s14 }
0x193d   :  { %v9354_v31 = vadd.f32 %v9288_v23, %v5221_v39  ;;  %v6855_v23 = vld [vmem:[%s9616_s15 + $0x78] sm:$0xf0] }
0x193e   :  { %v6858_v52 = vor.u32 %v7120_v12, %v6855_v23 }
0x193f   :  { %v5252_v44 = vsel %vm139_vm0, %v9354_v31, 0.0 }
0x1940   :  { %5253 = vadd.xlane.f32.xlu0 %v5252_v44  ;;  %5483 = vmatpush.bf16.msra.mxu1 %v6858_v52 }
0x1944   :  { %5484 = vmatpush.bf16.msra.mxu1 %v6850_v22 }
0x1948   :  { %5485 = vmatpush.bf16.msra.mxu1 %v6842_v3 }
0x194c   :  { %5486 = vmatpush.bf16.msra.mxu1 %v6834_v29 }
0x1996   :  { %v5275_v17 = vpop.xlane.xlu1 %5274 }
0x1997   :  { %v5291_v5 = vmul.f32 %v5275_v17, %v7695_v37 }
0x1999   :  { %v5297_v9 = vadd.f32 1e-06, %v5291_v5 }
0x199b   :  { %7442 = vrsqrt.f32 %v5297_v9  ;;  %vm5309_vm6 = vweird.f32 %v5297_v9 }
0x199e   :  { %v5278_v61 = vpop.xlane.xlu2 %5277 }
0x199f   :  { %v5292_v13 = vmul.f32 %v5278_v61, %v7695_v37 }
0x19a1   :  { %v7443_v32 = vpop.eup %7442  ;;  %v5298_v48 = vadd.f32 1e-06, %v5292_v13 }
0x19a2   :  { %v5304_v20 = vmul.f32 %v7443_v32, %v5297_v9  ;;  %vm5310_vm5 = vweird.f32 %v7443_v32 }
0x19a3   :  { %7444 = vrsqrt.f32 %v5298_v48  ;;  %vm5311_vm8 = vmor %vm5309_vm6, %vm5310_vm5  ;;  %vm5319_vm10 = vweird.f32 %v5298_v48 }
0x19a4   :  { %v5305_v47 = vmul.f32 %v7443_v32, %v5304_v20  ;;  %v7128_v20 = vld [vmem:[%s9618_s17 + $0xb0] sm:$0xff] }
0x19a6   :  { %v5306_v6 = vmul.f32 0.5, %v5305_v47  ;;  %v5281_v15 = vpop.xlane.xlu0 %5280  ;;  %v7136_v47 = vld [vmem:[%s9618_s17 + $0xf0] sm:$0xff] }
0x19a7   :  { %v5293_v30 = vmul.f32 %v5281_v15, %v7695_v37  ;;  %v7127_v15 = vld [vmem:[%s9618_s17 + $0xa8] sm:$0xff] }
0x19a8   :  { %v5307_v43 = vsub.f32 1.5, %v5306_v6 }
0x19a9   :  { %v7445_v21 = vpop.eup %7444  ;;  %v5299_v62 = vadd.f32 1e-06, %v5293_v30  ;;  %v7135_v30 = vld [vmem:[%s9618_s17 + $0xe8] sm:$0xff] }
0x19aa   :  { %v5308_v51 = vmul.f32 %v7443_v32, %v5307_v43  ;;  %v5314_v45 = vmul.f32 %v7445_v21, %v5298_v48  ;;  %vm5320_vm9 = vweird.f32 %v7445_v21 }
0x19ab   :  { %7446 = vrsqrt.f32 %v5299_v62  ;;  %v5251_v18 = vpop.xlane.xlu2 %5250  ;;  %vm5321_vm11 = vmor %vm5319_vm10, %vm5320_vm9  ;;  %vm5329_vm13 = vweird.f32 %v5299_v62  ;;  %vm5796_vm9 = vcmask 1040384   ;;  %vm5800_vm10 = vcmask 517120  }
0x19ac   :  { %v5315_v53 = vmul.f32 %v7445_v21, %v5314_v45  ;;  %v5259_v60 = vmul.f32 %v5251_v18, %v7695_v37  ;;  %v5312_v8 = vsel %vm5311_vm8, %v7443_v32, %v5308_v51  ;;  %v7134_v51 = vld [vmem:[%s9618_s17 + $0xe0] sm:$0xff]  ;;  %v7125_v18 = vld [vmem:[%s9618_s17 + $0x98] sm:$0xff] }
0x19ad   :  { %v5363_v39 = vmul.f32 %v5312_v8, %v9318_v59 }
0x19ae   :  { %v5316_v58 = vmul.f32 0.5, %v5315_v53  ;;  %v9411_v35 = vsub.f32 %v9341_v16, %v5259_v60  ;;  %v5284_v41 = vpop.xlane.xlu1 %5283  ;;  %v7133_v53 = vld [vmem:[%s9618_s17 + $0xd8] sm:$0xff] }
0x19af   :  { %v5294_v56 = vmul.f32 %v5284_v41, %v7695_v37  ;;  %v5372_v59 = vmul.f32 %v9419_v4, %v5363_v39 }
0x19b0   :  { %v5317_v42 = vsub.f32 1.5, %v5316_v58  ;;  %v5271_v2 = vmul.f32 %v9411_v35, %v9411_v35 }
0x19b1   :  { %v7447_v57 = vpop.eup %7446  ;;  %v5300_v44 = vadd.f32 1e-06, %v5294_v56  ;;  %v5381_v46 = vadd.f32 %v9427_v28, %v5372_v59  ;;  %v7124_v56 = vld [vmem:[%s9618_s17 + $0x90] sm:$0xff] }
0x19b2   :  { %v5318_v54 = vmul.f32 %v7445_v21, %v5317_v42  ;;  %v5324_v16 = vmul.f32 %v7447_v57, %v5299_v62  ;;  %v5285_v25 = vsel %vm139_vm0, %v5271_v2, 0.0  ;;  %vm5330_vm12 = vweird.f32 %v7447_v57  ;;  %v7126_v62 = vld [vmem:[%s9618_s17 + $0xa0] sm:$0xff]  ;;  %v7132_v42 = vld [vmem:[%s9618_s17 + $0xd0] sm:$0xff] }
0x19b3   :  { %7448 = vrsqrt.f32 %v5300_v44  ;;  %5286 = vadd.xlane.f32.xlu1 %v5285_v25  ;;  %v5254_v12 = vpop.xlane.xlu0 %5253  ;;  %vm5331_vm14 = vmor %vm5329_vm13, %vm5330_vm12  ;;  %vm5339_vm1 = vweird.f32 %v5300_v44 }
0x19b4   :  { %v5322_v34 = vsel %vm5321_vm11, %v7445_v21, %v5318_v54  ;;  %v5325_v23 = vmul.f32 %v7447_v57, %v5324_v16  ;;  %v5260_v52 = vmul.f32 %v5254_v12, %v7695_v37  ;;  %v7131_v54 = vld [vmem:[%s9618_s17 + $0xc8] sm:$0xff] }
0x19b5   :  { %v5364_v7 = vmul.f32 %v5322_v34, %v9324_v50 }
0x19b6   :  { %v5326_v49 = vmul.f32 0.5, %v5325_v23  ;;  %v9432_v63 = vsub.f32 %v9354_v31, %v5260_v52 }
0x19b7   :  { %v5373_v33 = vmul.f32 %v9419_v4, %v5364_v7 }
0x19b8   :  { %v5327_v22 = vsub.f32 1.5, %v5326_v49  ;;  %v5272_v40 = vmul.f32 %v9432_v63, %v9432_v63  ;;  %v7122_v49 = vld [vmem:[%s9618_s17 + $0x80] sm:$0xff] }
0x19b9   :  { %v7449_v1 = vpop.eup %7448  ;;  %v5382_v14 = vadd.f32 %v9427_v28, %v5373_v33  ;;  %v7130_v33 = vld [vmem:[%s9618_s17 + $0xc0] sm:$0xff] }
0x19ba   :  { %v5328_v55 = vmul.f32 %v7447_v57, %v5327_v22  ;;  %v5334_v17 = vmul.f32 %v7449_v1, %v5300_v44  ;;  %v5288_v50 = vsel %vm139_vm0, %v5272_v40, 0.0  ;;  %vm5340_vm15 = vweird.f32 %v7449_v1  ;;  %v7123_v44 = vld [vmem:[%s9618_s17 + $0x88] sm:$0xff] }
0x19bb   :  { %v5387_v3 = vpack.c.bf16 %v5382_v14, %v5381_v46  ;;  %5289 = vadd.xlane.f32.xlu2 %v5288_v50  ;;  %vm5341_vm2 = vmor %vm5339_vm1, %vm5340_vm15 }
0x19bc   :  { %v5335_v31 = vmul.f32 %v7449_v1, %v5334_v17  ;;  %v5332_v5 = vsel %vm5331_vm14, %v7447_v57, %v5328_v55  ;;  %v6826_v57 = vld [vmem:[%s9617_s16 + $0x2] sm:$0x3] }
0x19bd   :  { %6859 = vmatmul.msk.bf16.vlgmr.msrb.gmra.mxu0 %vm139_vm0, %v5387_v3  ;;  %6862 = vmatmul.msk.bf16.vlgmr.msra.gmra.mxu1 %vm139_vm0, %v5387_v3  ;;  %v5365_v26 = vmul.f32 %v5332_v5, %v9330_v24  ;;  %v7129_v24 = vld [vmem:[%s9618_s17 + $0xb8] sm:$0xff]  ;;  %v9497_v16 = vperm.slane %v6826_v57, 0  ;;  %v9499_v25 = vperm.slane %v6826_v57, 1 }
0x19be   :  { %v5336_v0 = vmul.f32 0.5, %v5335_v31  ;;  %5751 = vmatpush.bf16.msrb.mxu2 %v7129_v24 }
0x19bf   :  { %v5374_v29 = vmul.f32 %v9419_v4, %v5365_v26 }
0x19c0   :  { %v5337_v27 = vsub.f32 1.5, %v5336_v0 }
0x19c1   :  { %v5383_v13 = vadd.f32 %v9427_v28, %v5374_v29 }
0x19c2   :  { %v5338_v9 = vmul.f32 %v7449_v1, %v5337_v27  ;;  %5752 = vmatpush.bf16.msrb.mxu2 %v7128_v20 }
0x19c4   :  { %v5342_v19 = vsel %vm5341_vm2, %v7449_v1, %v5338_v9 }
0x19c5   :  { %v5366_v36 = vmul.f32 %v5342_v19, %v9344_v10  ;;  %v7137_v10 = vld [vmem:[%s9618_s17 + $0xf8] sm:$0xff] }
0x19c6   :  { %5771 = vmatpush.bf16.msra.mxu3 %v7137_v10  ;;  %5753 = vmatpush.bf16.msrb.mxu2 %v7127_v15 }
0x19c7   :  { %v5375_v61 = vmul.f32 %v9419_v4, %v5366_v36 }
0x19c9   :  { %v5384_v32 = vadd.f32 %v9427_v28, %v5375_v61 }
0x19ca   :  { %5772 = vmatpush.bf16.msra.mxu3 %v7136_v47  ;;  %5754 = vmatpush.bf16.msrb.mxu2 %v7126_v62 }
0x19cb   :  { %v5388_v48 = vpack.c.bf16 %v5384_v32, %v5383_v13 }
0x19cd   :  { %6860 = vmatmul.msk.bf16.gmra.mxu0 %vm139_vm0, %v5388_v48  ;;  %6863 = vmatmul.msk.bf16.gmra.mxu1 %vm139_vm0, %v5388_v48 }
0x19ce   :  { %5773 = vmatpush.bf16.msra.mxu3 %v7135_v30  ;;  %5755 = vmatpush.bf16.msrb.mxu2 %v7125_v18 }
0x19d2   :  { %5774 = vmatpush.bf16.msra.mxu3 %v7134_v51  ;;  %5756 = vmatpush.bf16.msrb.mxu2 %v7124_v56 }
0x19d6   :  { %5775 = vmatpush.bf16.msra.mxu3 %v7133_v53  ;;  %5757 = vmatpush.bf16.msrb.mxu2 %v7123_v44 }
0x19da   :  { %5776 = vmatpush.bf16.msra.mxu3 %v7132_v42  ;;  %5758 = vmatpush.bf16.msrb.mxu2 %v7122_v49 }
0x19de   :  { %5777 = vmatpush.bf16.msra.mxu3 %v7131_v54 }
0x19e2   :  { %5778 = vmatpush.bf16.msra.mxu3 %v7130_v33 }
0x1a26   :  { %v5287_v6 = vpop.xlane.xlu1 %5286 }
0x1a27   :  { %v5295_v43 = vmul.f32 %v5287_v6, %v7695_v37 }
0x1a29   :  { %v5301_v21 = vadd.f32 1e-06, %v5295_v43 }
0x1a2b   :  { %7450 = vrsqrt.f32 %v5301_v21  ;;  %vm5349_vm4 = vweird.f32 %v5301_v21 }
0x1a2e   :  { %v5290_v45 = vpop.xlane.xlu2 %5289 }
0x1a2f   :  { %v5296_v60 = vmul.f32 %v5290_v45, %v7695_v37 }
0x1a31   :  { %v7451_v8 = vpop.eup %7450  ;;  %v5302_v58 = vadd.f32 1e-06, %v5296_v60 }
0x1a32   :  { %v5344_v41 = vmul.f32 %v7451_v8, %v5301_v21  ;;  %vm5350_vm3 = vweird.f32 %v7451_v8 }
0x1a33   :  { %7452 = vrsqrt.f32 %v5302_v58  ;;  %vm5351_vm7 = vmor %vm5349_vm4, %vm5350_vm3  ;;  %vm5359_vm6 = vweird.f32 %v5302_v58 }
0x1a34   :  { %v5345_v2 = vmul.f32 %v7451_v8, %v5344_v41 }
0x1a36   :  { %v5346_v39 = vmul.f32 0.5, %v5345_v2 }
0x1a38   :  { %v5347_v12 = vsub.f32 1.5, %v5346_v39 }
0x1a39   :  { %v7453_v34 = vpop.eup %7452 }
0x1a3a   :  { %v5348_v23 = vmul.f32 %v7451_v8, %v5347_v12  ;;  %v5354_v52 = vmul.f32 %v7453_v34, %v5302_v58  ;;  %v5464_v59 = vpop.f32.mrf.mxu0  ;;  %v5488_v7 = vpop.f32.mrf.mxu1  ;;  %vm5360_vm5 = vweird.f32 %v7453_v34 }
0x1a3b   :  { %v9508_v22 = vadd.f32 %v5464_v59, %v9497_v16  ;;  %v9511_v40 = vadd.f32 %v5488_v7, %v9499_v25  ;;  %vm5361_vm8 = vmor %vm5359_vm6, %vm5360_vm5 }
0x1a3c   :  { %v5355_v1 = vmul.f32 %v7453_v34, %v5354_v52  ;;  %v5352_v55 = vsel %vm5351_vm7, %v7451_v8, %v5348_v23 }
0x1a3d   :  { %v5503_v46 = vmul.f32 %v9508_v22, %v9508_v22  ;;  %v5504_v14 = vmul.f32 %v9511_v40, %v9511_v40  ;;  %v5367_v5 = vmul.f32 %v5352_v55, %v9411_v35 }
0x1a3e   :  { %v5356_v17 = vmul.f32 0.5, %v5355_v1 }
0x1a3f   :  { %v5515_v50 = vmul.f32 %v5503_v46, %v9508_v22  ;;  %v5516_v3 = vmul.f32 %v5504_v14, %v9511_v40  ;;  %v5376_v10 = vmul.f32 %v9419_v4, %v5367_v5 }
0x1a40   :  { %v5357_v31 = vsub.f32 1.5, %v5356_v17 }
0x1a41   :  { %v5527_v0 = vmul.f32 0.044715, %v5515_v50  ;;  %v5528_v27 = vmul.f32 0.044715, %v5516_v3 }
0x1a42   :  { %v5358_v26 = vmul.f32 %v7453_v34, %v5357_v31  ;;  %v5466_v9 = vpop.f32.mrf.mxu0  ;;  %v5490_v19 = vpop.f32.mrf.mxu1 }
0x1a43   :  { %v5539_v36 = vadd.f32 %v5527_v0, %v9508_v22  ;;  %v5540_v29 = vadd.f32 %v5528_v27, %v9511_v40  ;;  %v9523_v61 = vadd.f32 %v5466_v9, %v9497_v16  ;;  %v9526_v13 = vadd.f32 %v5490_v19, %v9499_v25 }
0x1a44   :  { %v5362_v32 = vsel %vm5361_vm8, %v7453_v34, %v5358_v26 }
0x1a45   :  { %v5368_v35 = vmul.f32 %v5362_v32, %v9432_v63  ;;  %v5551_v48 = vmul.f32 0.7978846, %v5539_v36  ;;  %v5505_v24 = vmul.f32 %v9523_v61, %v9523_v61  ;;  %v5552_v20 = vmul.f32 0.7978846, %v5540_v29 }
0x1a46   :  { %v5506_v47 = vmul.f32 %v9526_v13, %v9526_v13  ;;  %v5385_v63 = vadd.f32 %v9427_v28, %v5376_v10 }
0x1a47   :  { %v5517_v6 = vmul.f32 %v5505_v24, %v9523_v61  ;;  %v5377_v15 = vmul.f32 %v9419_v4, %v5368_v35  ;;  %7454 = vtanh.f32 %v5551_v48 }
0x1a48   :  { %v5518_v30 = vmul.f32 %v5506_v47, %v9526_v13  ;;  %7456 = vtanh.f32 %v5552_v20 }
0x1a49   :  { %v5529_v43 = vmul.f32 0.044715, %v5517_v6  ;;  %v5386_v21 = vadd.f32 %v9427_v28, %v5377_v15 }
0x1a4a   :  { %v5530_v62 = vmul.f32 0.044715, %v5518_v30  ;;  %v5469_v51 = vpop.f32.mrf.mxu0  ;;  %v5493_v45 = vpop.f32.mrf.mxu1 }
0x1a4b   :  { %v5541_v18 = vadd.f32 %v5529_v43, %v9523_v61  ;;  %v9541_v53 = vadd.f32 %v5469_v51, %v9497_v16  ;;  %v9544_v60 = vadd.f32 %v5493_v45, %v9499_v25  ;;  %v5389_v4 = vpack.c.bf16 %v5386_v21, %v5385_v63 }
0x1a4c   :  { %v5542_v8 = vadd.f32 %v5530_v62, %v9526_v13 }
0x1a4d   :  { %v5553_v58 = vmul.f32 0.7978846, %v5541_v18  ;;  %v5507_v41 = vmul.f32 %v9541_v53, %v9541_v53  ;;  %v5508_v28 = vmul.f32 %v9544_v60, %v9544_v60  ;;  %6861 = vmatmul.msk.bf16.gmra.mxu0 %vm139_vm0, %v5389_v4  ;;  %6864 = vmatmul.msk.bf16.gmra.mxu1 %vm139_vm0, %v5389_v4  ;;  %v7455_v42 = vpop.eup %7454 }
0x1a4e   :  { %v5554_v56 = vmul.f32 0.7978846, %v5542_v8  ;;  %v7457_v39 = vpop.eup %7456  ;;  %v5575_v12 = vadd.f32 1.0, %v7455_v42 }
0x1a4f   :  { %7458 = vtanh.f32 %v5553_v58  ;;  %v5519_v2 = vmul.f32 %v5507_v41, %v9541_v53  ;;  %v5520_v57 = vmul.f32 %v5508_v28, %v9544_v60  ;;  %v5576_v52 = vadd.f32 1.0, %v7457_v39 }
0x1a50   :  { %7460 = vtanh.f32 %v5554_v56  ;;  %v5587_v17 = vmul.f32 0.5, %v5575_v12 }
0x1a51   :  { %v5531_v44 = vmul.f32 0.044715, %v5519_v2  ;;  %v5532_v54 = vmul.f32 0.044715, %v5520_v57  ;;  %v5588_v5 = vmul.f32 0.5, %v5576_v52 }
0x1a52   :  { %v5471_v34 = vpop.f32.mrf.mxu0  ;;  %v5495_v23 = vpop.f32.mrf.mxu1  ;;  %v5599_v29 = vmul.f32 %v5587_v17, %v9508_v22 }
0x1a53   :  { %v5543_v59 = vadd.f32 %v5531_v44, %v9541_v53  ;;  %v5544_v7 = vadd.f32 %v5532_v54, %v9544_v60  ;;  %v5472_v49 = vadd.f32 %v5471_v34, %v9497_v16  ;;  %v5496_v33 = vadd.f32 %v5495_v23, %v9499_v25 }
0x1a54   :  { %v5600_v48 = vmul.f32 %v5588_v5, %v9511_v40 }
0x1a55   :  { %v7459_v1 = vpop.eup %7458  ;;  %v5555_v46 = vmul.f32 0.7978846, %v5543_v59  ;;  %v5509_v14 = vmul.f32 %v5472_v49, %v5472_v49  ;;  %v5556_v3 = vmul.f32 0.7978846, %v5544_v7  ;;  %v5510_v31 = vmul.f32 %v5496_v33, %v5496_v33 }
0x1a56   :  { %v7461_v55 = vpop.eup %7460  ;;  %v5577_v50 = vadd.f32 1.0, %v7459_v1 }
0x1a57   :  { %v5578_v0 = vadd.f32 1.0, %v7461_v55  ;;  %v5521_v27 = vmul.f32 %v5509_v14, %v5472_v49  ;;  %v5522_v9 = vmul.f32 %v5510_v31, %v5496_v33  ;;  %7462 = vtanh.f32 %v5555_v46 }
0x1a58   :  { %v5589_v26 = vmul.f32 0.5, %v5577_v50  ;;  %7464 = vtanh.f32 %v5556_v3 }
0x1a59   :  { %v5590_v19 = vmul.f32 0.5, %v5578_v0  ;;  %v5533_v36 = vmul.f32 0.044715, %v5521_v27  ;;  %v5534_v35 = vmul.f32 0.044715, %v5522_v9 }
0x1a5a   :  { %v5601_v32 = vmul.f32 %v5589_v26, %v9523_v61 }
0x1a5b   :  { %v5602_v24 = vmul.f32 %v5590_v19, %v9526_v13  ;;  %v5545_v10 = vadd.f32 %v5533_v36, %v5472_v49  ;;  %v5546_v47 = vadd.f32 %v5534_v35, %v5496_v33 }
0x1a5c   :  { %v5611_v20 = vpack.c.bf16 %v5601_v32, %v5599_v29 }
0x1a5d   :  { %v5612_v6 = vpack.c.bf16 %v5602_v24, %v5600_v48  ;;  %v5557_v15 = vmul.f32 0.7978846, %v5545_v10  ;;  %v5558_v30 = vmul.f32 0.7978846, %v5546_v47  ;;  %v7463_v43 = vpop.eup %7462 }
0x1a5e   :  { %5759 = vmatmul.bf16.vlgmr.msrb.gmra.mxu2 %v5611_v20  ;;  %v7465_v63 = vpop.eup %7464  ;;  %v5579_v22 = vadd.f32 1.0, %v7463_v43 }
0x1a5f   :  { %7466 = vtanh.f32 %v5557_v15  ;;  %5779 = vmatmul.bf16.vlgmr.msra.gmra.mxu3 %v5612_v6  ;;  %v5580_v61 = vadd.f32 1.0, %v7465_v63 }
0x1a60   :  { %7468 = vtanh.f32 %v5558_v30  ;;  %v5591_v40 = vmul.f32 0.5, %v5579_v22 }
0x1a61   :  { %v5592_v13 = vmul.f32 0.5, %v5580_v61 }
0x1a62   :  { %v5603_v8 = vmul.f32 %v5591_v40, %v9541_v53 }
0x1a63   :  { %v5604_v41 = vmul.f32 %v5592_v13, %v9544_v60  ;;  %v7184_v13 = vld [vmem:[%s9619_s18 + $0x1] ss:$0 sm:$0xff] }
0x1a65   :  { %v7467_v21 = vpop.eup %7466 }
0x1a66   :  { %v7469_v62 = vpop.eup %7468  ;;  %v5581_v51 = vadd.f32 1.0, %v7467_v21 }
0x1a67   :  { %v5582_v45 = vadd.f32 1.0, %v7469_v62 }
0x1a68   :  { %v5593_v18 = vmul.f32 0.5, %v5581_v51 }
0x1a69   :  { %v5594_v4 = vmul.f32 0.5, %v5582_v45 }
0x1a6a   :  { %v5605_v58 = vmul.f32 %v5593_v18, %v5472_v49 }
0x1a6b   :  { %v5606_v28 = vmul.f32 %v5594_v4, %v5496_v33 }
0x1a6c   :  { %v5613_v56 = vpack.c.bf16 %v5605_v58, %v5603_v8 }
0x1a6d   :  { %v5614_v42 = vpack.c.bf16 %v5606_v28, %v5604_v41 }
0x1a6e   :  { %5763 = vmatmul.bf16.gmra.mxu2 %v5613_v56 }
0x1a6f   :  { %5783 = vmatmul.bf16.gmra.mxu3 %v5614_v42 }
0x1aca   :  { %v5474_v2 = vpop.f32.mrf.mxu0  ;;  %v5498_v57 = vpop.f32.mrf.mxu1 }
0x1acb   :  { %v5475_v39 = vadd.f32 %v5474_v2, %v9497_v16  ;;  %v5499_v44 = vadd.f32 %v5498_v57, %v9499_v25 }
0x1acd   :  { %v5511_v54 = vmul.f32 %v5475_v39, %v5475_v39  ;;  %v5512_v12 = vmul.f32 %v5499_v44, %v5499_v44 }
0x1acf   :  { %v5523_v34 = vmul.f32 %v5511_v54, %v5475_v39  ;;  %v5524_v23 = vmul.f32 %v5512_v12, %v5499_v44 }
0x1ad1   :  { %v5535_v52 = vmul.f32 0.044715, %v5523_v34  ;;  %v5536_v53 = vmul.f32 0.044715, %v5524_v23 }
0x1ad2   :  { %v5476_v59 = vpop.f32.mrf.mxu0  ;;  %v5500_v7 = vpop.f32.mrf.mxu1 }
0x1ad3   :  { %v5547_v60 = vadd.f32 %v5535_v52, %v5475_v39  ;;  %v5548_v49 = vadd.f32 %v5536_v53, %v5499_v44  ;;  %v5477_v33 = vadd.f32 %v5476_v59, %v9497_v16  ;;  %v5501_v1 = vadd.f32 %v5500_v7, %v9499_v25 }
0x1ad5   :  { %v5559_v46 = vmul.f32 0.7978846, %v5547_v60  ;;  %v5513_v14 = vmul.f32 %v5477_v33, %v5477_v33  ;;  %v5514_v55 = vmul.f32 %v5501_v1, %v5501_v1  ;;  %v5560_v17 = vmul.f32 0.7978846, %v5548_v49  ;;  %v7139_v60 = vld [vmem:[%s9622_s21 + $0x8] sm:$0xff]  ;;  %v7138_v49 = vld [vmem:[%s9622_s21] sm:$0xff] }
0x1ad7   :  { %v5525_v50 = vmul.f32 %v5513_v14, %v5477_v33  ;;  %v5526_v3 = vmul.f32 %v5514_v55, %v5501_v1  ;;  %7470 = vtanh.f32 %v5559_v46 }
0x1ad8   :  { %7472 = vtanh.f32 %v5560_v17 }
0x1ad9   :  { %v5537_v31 = vmul.f32 0.044715, %v5525_v50  ;;  %v5538_v5 = vmul.f32 0.044715, %v5526_v3 }
0x1adb   :  { %v5549_v0 = vadd.f32 %v5537_v31, %v5477_v33  ;;  %v5550_v27 = vadd.f32 %v5538_v5, %v5501_v1  ;;  %v7185_v5 = vld [vmem:[%s9620_s19] ss:$0 sm:$0xff] }
0x1add   :  { %v5561_v26 = vmul.f32 0.7978846, %v5549_v0  ;;  %v5562_v9 = vmul.f32 0.7978846, %v5550_v27  ;;  %v7471_v19 = vpop.eup %7470 }
0x1ade   :  { %v7473_v36 = vpop.eup %7472  ;;  %v5583_v29 = vadd.f32 1.0, %v7471_v19 }
0x1adf   :  { %7474 = vtanh.f32 %v5561_v26  ;;  %v5584_v32 = vadd.f32 1.0, %v7473_v36  ;;  %v7187_v36 = vld [vmem:[%s9623_s22] ss:$0 sm:$0xff] }
0x1ae0   :  { %7476 = vtanh.f32 %v5562_v9  ;;  %v5595_v10 = vmul.f32 0.5, %v5583_v29 }
0x1ae1   :  { %v5760_v16 = vpop.f32.mrf.mxu2  ;;  %v5596_v47 = vmul.f32 0.5, %v5584_v32 }
0x1ae2   :  { %v5780_v25 = vpop.f32.mrf.mxu3  ;;  %v5607_v63 = vmul.f32 %v5595_v10, %v5475_v39  ;;  %v5761_v18 = vadd.f32 %v7184_v13, %v5760_v16 }
0x1ae3   :  { %v5608_v61 = vmul.f32 %v5596_v47, %v5499_v44 }
0x1ae4   :  { %v5781_v41 = vadd.f32 %v5780_v25, %v5761_v18 }
0x1ae5   :  { %v7475_v35 = vpop.eup %7474 }
0x1ae6   :  { %v7477_v48 = vpop.eup %7476  ;;  %v5585_v24 = vadd.f32 1.0, %v7475_v35  ;;  %v5791_v42 = vadd.f32 %v5781_v41, %v9294_v11  ;;  %v7141_v11 = vld [vmem:[%s9622_s21 + $0x18] sm:$0xff] }
0x1ae7   :  { %v5586_v20 = vadd.f32 1.0, %v7477_v48  ;;  %5875 = vmatpush.bf16.msra.mxu0 %v7141_v11 }
0x1ae8   :  { %v5597_v6 = vmul.f32 0.5, %v5585_v24 }
0x1ae9   :  { %v5762_v15 = vpop.f32.mrf.mxu2  ;;  %v5598_v30 = vmul.f32 0.5, %v5586_v20 }
0x1aea   :  { %v5782_v43 = vpop.f32.mrf.mxu3  ;;  %v5609_v22 = vmul.f32 %v5597_v6, %v5477_v33 }
0x1aeb   :  { %v5610_v21 = vmul.f32 %v5598_v30, %v5501_v1 }
0x1aec   :  { %v5615_v62 = vpack.c.bf16 %v5609_v22, %v5607_v63 }
0x1aed   :  { %v5616_v51 = vpack.c.bf16 %v5610_v21, %v5608_v61 }
0x1aee   :  { %5767 = vmatmul.bf16.gmra.mxu2 %v5615_v62 }
0x1aef   :  { %5787 = vmatmul.bf16.gmra.mxu3 %v5616_v51 }
0x1af1   :  { %v5764_v40 = vpop.f32.mrf.mxu2 }
0x1af2   :  { %v5784_v45 = vpop.f32.mrf.mxu3 }
0x1af9   :  { %v5765_v4 = vpop.f32.mrf.mxu2 }
0x1afa   :  { %v5766_v8 = vadd.f32 %v7184_v13, %v5765_v4  ;;  %v5785_v58 = vpop.f32.mrf.mxu3 }
0x1afc   :  { %v5786_v28 = vadd.f32 %v5785_v58, %v5766_v8 }
0x1afe   :  { %v5792_v56 = vadd.f32 %v5786_v28, %v9312_v38  ;;  %v7140_v38 = vld [vmem:[%s9622_s21 + $0x10] sm:$0xff] }
0x1aff   :  { %5876 = vmatpush.bf16.msra.mxu0 %v7140_v38 }
0x1b00   :  { %v5794_v2 = vrot.slane %v5792_v56, 7 }
0x1b02   :  { %v5797_v57 = vsel %vm5796_vm9, %v5791_v42, %v5794_v2 }
0x1b03   :  { %v5801_v39 = vsel %vm5800_vm10, %v5797_v57, 0.0  ;;  %5877 = vmatpush.bf16.msra.mxu0 %v7139_v60 }
0x1b04   :  { %5802 = vadd.xlane.f32.xlu0 %v5801_v39 }
0x1b07   :  { %5878 = vmatpush.bf16.msra.mxu0 %v7138_v49 }
0x1b71   :  { %v5768_v44 = vpop.f32.mrf.mxu2 }
0x1b72   :  { %v5788_v54 = vpop.f32.mrf.mxu3 }
0x1b77   :  { %v5803_v12 = vpop.xlane.xlu0 %5802 }
0x1b78   :  { %v5804_v34 = vmul.f32 %v5803_v12, %v7695_v37 }
0x1b79   :  { %v5769_v23 = vpop.f32.mrf.mxu2 }
0x1b7a   :  { %v5805_v52 = vsub.f32 %v5797_v57, %v5804_v34  ;;  %v5789_v53 = vpop.f32.mrf.mxu3 }
0x1b7c   :  { %v5806_v59 = vmul.f32 %v5805_v52, %v5805_v52 }
0x1b7e   :  { %v5807_v7 = vsel %vm5800_vm10, %v5806_v59, 0.0 }
0x1b7f   :  { %5808 = vadd.xlane.f32.xlu1 %v5807_v7 }
0x1bf2   :  { %v5809_v33 = vpop.xlane.xlu1 %5808 }
0x1bf3   :  { %v5810_v1 = vmul.f32 %v5809_v33, %v7695_v37  ;;  %v7186_v37 = vld [vmem:[%s9621_s20] ss:$0 sm:$0xff] }
0x1bf5   :  { %v5811_v46 = vadd.f32 1e-06, %v5810_v1 }
0x1bf7   :  { %7478 = vrsqrt.f32 %v5811_v46  ;;  %vm5818_vm12 = vweird.f32 %v5811_v46 }
0x1bfd   :  { %v7479_v14 = vpop.eup %7478 }
0x1bfe   :  { %v5813_v55 = vmul.f32 %v7479_v14, %v5811_v46  ;;  %vm5819_vm11 = vweird.f32 %v7479_v14 }
0x1bff   :  { %vm5820_vm13 = vmor %vm5818_vm12, %vm5819_vm11 }
0x1c00   :  { %v5814_v17 = vmul.f32 %v7479_v14, %v5813_v55 }
0x1c02   :  { %v5815_v50 = vmul.f32 0.5, %v5814_v17 }
0x1c04   :  { %v5816_v3 = vsub.f32 1.5, %v5815_v50 }
0x1c06   :  { %v5817_v31 = vmul.f32 %v7479_v14, %v5816_v3 }
0x1c08   :  { %v5821_v0 = vsel %vm5820_vm13, %v7479_v14, %v5817_v31 }
0x1c09   :  { %v5822_v27 = vmul.f32 %v5821_v0, %v5805_v52 }
0x1c0b   :  { %v5826_v26 = vmul.f32 %v7185_v5, %v5822_v27 }
0x1c0d   :  { %v5830_v9 = vadd.f32 %v7186_v37, %v5826_v26 }
0x1c0f   :  { %v5831_v19 = vpack.c.bf16 %v5830_v9, %v5830_v9 }
0x1c11   :  { %6978 = vmatmul.msk.bf16.vlgmr.msra.gmra.mxu0 %vm139_vm0, %v5831_v19 }
0x1c8e   :  { %v5880_v16 = vpop.f32.mrf.mxu0 }
0x1c8f   :  { %v5881_v25 = vadd.f32 %v7187_v36, %v5880_v16 }
0x1c91   :  { %5884 = vst [vmem:[#allocation2] sm:$0x3] %v5881_v25 }
0x1c92   :  { %5895 = dma.vmem_to_hbm [thread:$0]  %s5891_s14, 32, %s5893_s10, [#allocation3]  }
0x1c96   :  { %v5882_v29 = vpop.f32.mrf.mxu0 }
0x1c97   :  { %7504 = dma.done.wait [#allocation3], 32  }
0x1c98   :  { %7505 = vsyncadd [#allocation3], 4294967264 }
0x1c99   :  { %5900 = vsyncpa [#allocation3], 1 }

</bundles_post_ra>
